<compile_context>
chip_gen: v5e
topology: v5e:2x2
jax: 0.10.0
libtpu: 0.0.40
codegen_flags: <defaults>
</compile_context>

<pallas_src>
import functools
import math

import jax
import jax.numpy as jnp
from jax.experimental import pallas as pl
from jax.experimental.pallas import tpu as pltpu


def _round_up(v, m):
    return (v + m - 1) // m * m


def _soft_hist2d_kernel(x_ref, y_ref, o_ref, acc_ref, *,
                        sigma, delta, vmin, bins, d_actual, tk):
    # x_ref / y_ref: (B, TK)   o_ref / acc_ref: (B, bins, bins)
    k = pl.program_id(1)

    @pl.when(k == 0)
    def _():
        acc_ref[...] = jnp.zeros_like(acc_ref)

    # Bin centers built in-kernel (cheap VPU iota+mul+add; no DMA stream).
    centers = (jax.lax.broadcasted_iota(jnp.int32, (bins, 1), 0)
               .astype(jnp.float32) * delta + (vmin + 0.5 * delta))   # (bins, 1)

    x = x_ref[...]                                    # (B, TK)
    y = y_ref[...]
    dx = x[:, None, :] - centers[None, :, :]          # (B, bins, TK)
    dy = y[:, None, :] - centers[None, :, :]

    # Closed-form sigmoid difference:
    #   sig(s*(d+h)) - sig(s*(d-h)) = t*(kk^2-1) / ((1+t*kk)*(kk+t)),  t=exp(s*d)
    kk = math.exp(sigma * delta * 0.5)                # compile-time constant
    scale = kk * kk - 1.0
    tx = jnp.exp(jnp.clip(sigma * dx, -30.0, 30.0))   # clamp avoids f32 overflow
    ty = jnp.exp(jnp.clip(sigma * dy, -30.0, 30.0))
    xw = (tx * scale) * pl.reciprocal((1.0 + tx * kk) * (kk + tx), approx=True)
    yw = (ty * scale) * pl.reciprocal((1.0 + ty * kk) * (kk + ty), approx=True)

    # Zero weights for padded D columns (only emitted if padding exists).
    if d_actual % tk != 0:
        col = k * tk + jax.lax.broadcasted_iota(jnp.int32, (1, 1, tk), 2)
        xw = jnp.where(col < d_actual, xw, 0.0)

    # z[b, i, j] += sum_d xw[b, i, d] * yw[b, j, d]   (batched MXU matmul)
    acc_ref[...] += jnp.einsum("bid,bjd->bij", xw, yw,
                               preferred_element_type=jnp.float32)

    @pl.when(k == pl.num_programs(1) - 1)
    def _():
        o_ref[...] = acc_ref[...].astype(o_ref.dtype)


def soft_histogram_2d(x, y, *, bins=50, vmin=0.0, vmax=1.0, sigma=10.0,
                      batch_block=8, k_block=512):
    assert x.shape == y.shape, "(SoftHistogram2D) x and y sizes do not match"
    n, d = x.shape
    delta = float(vmax - vmin) / float(bins)

    x = x.astype(jnp.float32)
    y = y.astype(jnp.float32)

    # --- batch blocking: B rows per grid step (B multiple of 8 or full N) ---
    if n >= batch_block:
        b_blk = batch_block
        n_pad = pl.cdiv(n, b_blk) * b_blk
    else:
        b_blk = n            # full-extent block -> exempt from /8 constraint
        n_pad = n

    # --- D tiling: lane-aligned TK, trailing reduction grid axis ------------
    tk = min(k_block, _round_up(d, 128))
    d_pad = pl.cdiv(d, tk) * tk

    if (n_pad, d_pad) != (n, d):
        x = jnp.pad(x, ((0, n_pad - n), (0, d_pad - d)))
        y = jnp.pad(y, ((0, n_pad - n), (0, d_pad - d)))

    grid = (n_pad // b_blk, d_pad // tk)   # reduction axis (D) last

    kernel = functools.partial(
        _soft_hist2d_kernel,
        sigma=float(sigma), delta=delta, vmin=float(vmin),
        bins=bins, d_actual=d, tk=tk)

    out = pl.pallas_call(
        kernel,
        out_shape=jax.ShapeDtypeStruct((n_pad, bins, bins), jnp.float32),
        grid_spec=pltpu.PrefetchScalarGridSpec(
            num_scalar_prefetch=0,
            grid=grid,
            in_specs=[
                pl.BlockSpec((b_blk, tk), lambda i, k: (i, k)),   # x block
                pl.BlockSpec((b_blk, tk), lambda i, k: (i, k)),   # y block
            ],
            out_specs=pl.BlockSpec((b_blk, bins, bins), lambda i, k: (i, 0, 0)),
            scratch_shapes=[pltpu.VMEM((b_blk, bins, bins), jnp.float32)],
        ),
        compiler_params=pltpu.CompilerParams(
            dimension_semantics=("parallel", "arbitrary"),
        ),
    )(x, y)
    return out[:n]


def _reference(x, y, *, bins=50, vmin=0.0, vmax=1.0, sigma=10.0):
    delta = float(vmax - vmin) / float(bins)
    centers = vmin + delta * (jnp.arange(bins, dtype=jnp.float32) + 0.5)
    dx = x[:, None, :] - centers[None, :, None]
    dy = y[:, None, :] - centers[None, :, None]
    xw = jax.nn.sigmoid(sigma * (dx + delta / 2)) - jax.nn.sigmoid(sigma * (dx - delta / 2))
    yw = jax.nn.sigmoid(sigma * (dy + delta / 2)) - jax.nn.sigmoid(sigma * (dy - delta / 2))
    return jnp.einsum("nid,njd->nij", xw, yw)


if __name__ == "__main__":
    key = jax.random.PRNGKey(0)
    kx, ky = jax.random.split(key)
    # N=10, D=300 exercises batch blocking (B=8 with row padding) and the
    # D-padding mask path; "vectorized image" rows of length 300.
    N, D, BINS = 10, 300, 50
    x = jax.random.uniform(kx, (N, D), dtype=jnp.float32)
    y = jax.random.uniform(ky, (N, D), dtype=jnp.float32)

    z = soft_histogram_2d(x, y, bins=BINS, vmin=0.0, vmax=1.0, sigma=10.0)
    z = jax.block_until_ready(z)

    z_ref = _reference(x, y, bins=BINS, vmin=0.0, vmax=1.0, sigma=10.0)
    assert z.shape == (N, BINS, BINS)
    # Tolerance slightly relaxed vs 1e-4: the closed-form weights use the
    # EUP approximate reciprocal (per the perf review).
    assert jnp.allclose(z, z_ref, atol=2e-3, rtol=2e-3), "mismatch vs reference"

    print("KERNEL_OK")
</pallas_src>

<mosaic_0001>
module attributes {stable_mosaic.version = 11 : i64} {
  func.func @_soft_hist2d_kernel(%arg0: i32, %arg1: i32, %arg2: memref<8x384xf32, #tpu.memory_space<vmem>>, %arg3: memref<8x384xf32, #tpu.memory_space<vmem>>, %arg4: memref<8x50x50xf32, #tpu.memory_space<vmem>>, %arg5: memref<8x50x50xf32, #tpu.memory_space<vmem>>) attributes {dimension_semantics = [#tpu.dimension_semantics<parallel>, #tpu.dimension_semantics<arbitrary>], iteration_bounds = array<i64: 2, 1>, scalar_prefetch = 0 : i64, scratch_operands = 1 : i64, tpu.core_type = #tpu.core_type<tc>, window_params = [{transform_indices = @transform_0, window_bounds = array<i64: 8, 384>}, {transform_indices = @transform_1, window_bounds = array<i64: 8, 384>}, {transform_indices = @transform_2, window_bounds = array<i64: 8, 50, 50>}]} {
    %c0_i32 = arith.constant 0 : i32
    %0 = arith.cmpi eq, %arg1, %c0_i32 : i32
    %1 = arith.extui %0 : i1 to i32
    %c0_i32_0 = arith.constant 0 : i32
    %2 = arith.cmpi ne, %1, %c0_i32_0 : i32
    scf.if %2 {
      %cst_29 = arith.constant 0.000000e+00 : f32
      %74 = vector.broadcast %cst_29 : f32 to vector<8x50x50xf32>
      %c0_30 = arith.constant 0 : index
      %c0_31 = arith.constant 0 : index
      %c0_32 = arith.constant 0 : index
      %75 = vector.load %arg5[%c0_30, %c0_31, %c0_32] : memref<8x50x50xf32, #tpu.memory_space<vmem>>, vector<8x50x50xf32>
      tpu.vector_store %arg5[%c0_30, %c0_31, %c0_32], %74 {strides = array<i32>} : memref<8x50x50xf32, #tpu.memory_space<vmem>>, vector<8x50x50xf32>,
    } else {
    }
    %3 = tpu.iota {dimensions = array<i32: 0>} : vector<50x1xi32>
    %4 = arith.sitofp %3 : vector<50x1xi32> to vector<50x1xf32>
    %cst = arith.constant 2.000000e-02 : f32
    %5 = vector.broadcast %cst : f32 to vector<50x1xf32>
    %6 = arith.mulf %4, %5 : vector<50x1xf32>
    %cst_1 = arith.constant 0.00999999977 : f32
    %7 = vector.broadcast %cst_1 : f32 to vector<50x1xf32>
    %8 = arith.addf %6, %7 : vector<50x1xf32>
    %c0 = arith.constant 0 : index
    %c0_2 = arith.constant 0 : index
    %9 = vector.load %arg2[%c0, %c0_2] : memref<8x384xf32, #tpu.memory_space<vmem>>, vector<8x384xf32>
    %c0_3 = arith.constant 0 : index
    %c0_4 = arith.constant 0 : index
    %10 = vector.load %arg3[%c0_3, %c0_4] : memref<8x384xf32, #tpu.memory_space<vmem>>, vector<8x384xf32>
    %11 = vector.shape_cast %9 : vector<8x384xf32> to vector<8x1x384xf32>
    %12 = vector.shape_cast %8 : vector<50x1xf32> to vector<1x50x1xf32>
    %13 = vector.broadcast %11 : vector<8x1x384xf32> to vector<8x50x384xf32>
    %14 = vector.broadcast %12 : vector<1x50x1xf32> to vector<8x50x384xf32>
    %15 = arith.subf %13, %14 : vector<8x50x384xf32>
    %16 = vector.shape_cast %10 : vector<8x384xf32> to vector<8x1x384xf32>
    %17 = vector.shape_cast %8 : vector<50x1xf32> to vector<1x50x1xf32>
    %18 = vector.broadcast %16 : vector<8x1x384xf32> to vector<8x50x384xf32>
    %19 = vector.broadcast %17 : vector<1x50x1xf32> to vector<8x50x384xf32>
    %20 = arith.subf %18, %19 : vector<8x50x384xf32>
    %cst_5 = arith.constant 1.000000e+01 : f32
    %21 = vector.broadcast %cst_5 : f32 to vector<8x50x384xf32>
    %22 = arith.mulf %21, %15 : vector<8x50x384xf32>
    %cst_6 = arith.constant -3.000000e+01 : f32
    %cst_7 = arith.constant 3.000000e+01 : f32
    %23 = vector.broadcast %cst_6 : f32 to vector<8x50x384xf32>
    %24 = arith.maximumf %23, %22 : vector<8x50x384xf32>
    %25 = vector.broadcast %cst_7 : f32 to vector<8x50x384xf32>
    %26 = arith.minimumf %25, %24 : vector<8x50x384xf32>
    %27 = math.exp %26 : vector<8x50x384xf32>
    %cst_8 = arith.constant 1.000000e+01 : f32
    %28 = vector.broadcast %cst_8 : f32 to vector<8x50x384xf32>
    %29 = arith.mulf %28, %20 : vector<8x50x384xf32>
    %cst_9 = arith.constant -3.000000e+01 : f32
    %cst_10 = arith.constant 3.000000e+01 : f32
    %30 = vector.broadcast %cst_9 : f32 to vector<8x50x384xf32>
    %31 = arith.maximumf %30, %29 : vector<8x50x384xf32>
    %32 = vector.broadcast %cst_10 : f32 to vector<8x50x384xf32>
    %33 = arith.minimumf %32, %31 : vector<8x50x384xf32>
    %34 = math.exp %33 : vector<8x50x384xf32>
    %cst_11 = arith.constant 0.221402764 : f32
    %35 = vector.broadcast %cst_11 : f32 to vector<8x50x384xf32>
    %36 = arith.mulf %27, %35 : vector<8x50x384xf32>
    %cst_12 = arith.constant 1.10517097 : f32
    %37 = vector.broadcast %cst_12 : f32 to vector<8x50x384xf32>
    %38 = arith.mulf %27, %37 : vector<8x50x384xf32>
    %cst_13 = arith.constant 1.000000e+00 : f32
    %39 = vector.broadcast %cst_13 : f32 to vector<8x50x384xf32>
    %40 = arith.addf %39, %38 : vector<8x50x384xf32>
    %cst_14 = arith.constant 1.10517097 : f32
    %41 = vector.broadcast %cst_14 : f32 to vector<8x50x384xf32>
    %42 = arith.addf %41, %27 : vector<8x50x384xf32>
    %43 = arith.mulf %40, %42 : vector<8x50x384xf32>
    %44 = tpu.reciprocal %43 {approx = true} : vector<8x50x384xf32> -> vector<8x50x384xf32>
    %45 = arith.mulf %36, %44 : vector<8x50x384xf32>
    %cst_15 = arith.constant 0.221402764 : f32
    %46 = vector.broadcast %cst_15 : f32 to vector<8x50x384xf32>
    %47 = arith.mulf %34, %46 : vector<8x50x384xf32>
    %cst_16 = arith.constant 1.10517097 : f32
    %48 = vector.broadcast %cst_16 : f32 to vector<8x50x384xf32>
    %49 = arith.mulf %34, %48 : vector<8x50x384xf32>
    %cst_17 = arith.constant 1.000000e+00 : f32
    %50 = vector.broadcast %cst_17 : f32 to vector<8x50x384xf32>
    %51 = arith.addf %50, %49 : vector<8x50x384xf32>
    %cst_18 = arith.constant 1.10517097 : f32
    %52 = vector.broadcast %cst_18 : f32 to vector<8x50x384xf32>
    %53 = arith.addf %52, %34 : vector<8x50x384xf32>
    %54 = arith.mulf %51, %53 : vector<8x50x384xf32>
    %55 = tpu.reciprocal %54 {approx = true} : vector<8x50x384xf32> -> vector<8x50x384xf32>
    %56 = arith.mulf %47, %55 : vector<8x50x384xf32>
    %c384_i32 = arith.constant 384 : i32
    %57 = arith.muli %arg1, %c384_i32 : i32
    %58 = tpu.iota {dimensions = array<i32: 2>} : vector<1x1x384xi32>
    %59 = vector.broadcast %57 : i32 to vector<1x1x384xi32>
    %60 = arith.addi %59, %58 : vector<1x1x384xi32>
    %c300_i32 = arith.constant 300 : i32
    %61 = vector.broadcast %c300_i32 : i32 to vector<1x1x384xi32>
    %62 = arith.cmpi slt, %60, %61 : vector<1x1x384xi32>
    %cst_19 = arith.constant 0.000000e+00 : f32
    %63 = vector.shape_cast %62 : vector<1x1x384xi1> to vector<1x1x384xi1>
    %64 = vector.broadcast %63 : vector<1x1x384xi1> to vector<8x50x384xi1>
    %65 = vector.broadcast %cst_19 : f32 to vector<8x50x384xf32>
    %66 = arith.select %64, %45, %65 : vector<8x50x384xi1>, vector<8x50x384xf32>
    %c0_20 = arith.constant 0 : index
    %c0_21 = arith.constant 0 : index
    %c0_22 = arith.constant 0 : index
    %67 = vector.load %arg5[%c0_20, %c0_21, %c0_22] : memref<8x50x50xf32, #tpu.memory_space<vmem>>, vector<8x50x50xf32>
    "tpu.trace_start"() <{level = 10 : i32, message = "bid,bjd->bij"}> : () -> ()
    %cst_23 = arith.constant dense<0.000000e+00> : vector<8x50x50xf32>
    %68 = tpu.matmul %66, %56, %cst_23 {dimension_numbers = #tpu.dot_dimension_numbers<[2], [2], [1], [1], [0, 0, 0, 1, 1, 1], [0], [0]>} : vector<8x50x384xf32>, vector<8x50x384xf32>, vector<8x50x50xf32> -> vector<8x50x50xf32>
    "tpu.trace_stop"() : () -> ()
    %69 = arith.addf %67, %68 : vector<8x50x50xf32>
    %c0_24 = arith.constant 0 : index
    %c0_25 = arith.constant 0 : index
    %c0_26 = arith.constant 0 : index
    %70 = vector.load %arg5[%c0_24, %c0_25, %c0_26] : memref<8x50x50xf32, #tpu.memory_space<vmem>>, vector<8x50x50xf32>
    tpu.vector_store %arg5[%c0_24, %c0_25, %c0_26], %69 {strides = array<i32>} : memref<8x50x50xf32, #tpu.memory_space<vmem>>, vector<8x50x50xf32>,
    %c0_i32_27 = arith.constant 0 : i32
    %71 = arith.cmpi eq, %arg1, %c0_i32_27 : i32
    %72 = arith.extui %71 : i1 to i32
    %c0_i32_28 = arith.constant 0 : i32
    %73 = arith.cmpi ne, %72, %c0_i32_28 : i32
    scf.if %73 {
      %c0_29 = arith.constant 0 : index
      %c0_30 = arith.constant 0 : index
      %c0_31 = arith.constant 0 : index
      %74 = vector.load %arg5[%c0_29, %c0_30, %c0_31] : memref<8x50x50xf32, #tpu.memory_space<vmem>>, vector<8x50x50xf32>
      %c0_32 = arith.constant 0 : index
      %c0_33 = arith.constant 0 : index
      %c0_34 = arith.constant 0 : index
      %75 = vector.load %arg4[%c0_32, %c0_33, %c0_34] : memref<8x50x50xf32, #tpu.memory_space<vmem>>, vector<8x50x50xf32>
      tpu.vector_store %arg4[%c0_32, %c0_33, %c0_34], %74 {strides = array<i32>} : memref<8x50x50xf32, #tpu.memory_space<vmem>>, vector<8x50x50xf32>,
    } else {
    }
    return
  }
  func.func @transform_0(%arg0: i32, %arg1: i32) -> (i32, i32) {
    %c0_i32 = arith.constant 0 : i32
    return %arg0, %arg1 : i32, i32
  }
  func.func @transform_1(%arg0: i32, %arg1: i32) -> (i32, i32) {
    %c0_i32 = arith.constant 0 : i32
    return %arg0, %arg1 : i32, i32
  }
  func.func @transform_2(%arg0: i32, %arg1: i32) -> (i32, i32, i32) {
    %c0_i32 = arith.constant 0 : i32
    %c0_i32_0 = arith.constant 0 : i32
    %c0_i32_1 = arith.constant 0 : i32
    return %arg0, %c0_i32, %c0_i32_0 : i32, i32, i32
  }
}

</mosaic_0001>

<bundles_post_ra>
// kernel: tpu_custom_call.1
= control target key start
LH: loop header
LB: loop body
LE: loop exit
PB: predicated region body
PF: predicated region fallthrough
CT: control target
= control target key end

     0   :  { %7 = vsyncpa [#allocation4], 0  ;;  %s10499_s0 = inlined_call_operand.hbm [shape: f32[16,384], index: 0, kind: input, shape index: {}]   ;;  %s10500_s1 = inlined_call_operand.hbm [shape: f32[16,384], index: 1, kind: input, shape index: {}]   ;;  %s10501_s2 = inlined_call_operand.vmem [shape: f32[16,50,50], index: 2, kind: output, shape index: {}]  }
   0x1   :  { %9 = vsyncpa [#allocation4 + $0x1], 0 }
   0x2   :  { %10 = vsyncpa [#allocation6], 0 }
   0x3   :  { %12 = vsyncpa [#allocation6 + $0x1], 0  ;;  %s8307_s9 = smov 0   ;;  %s8309_s10 = smov 0  }
   0x4   :  { %s8311_s11 = smov 0   ;;  %s8313_s12 = smov 0  }
   0x5   :  { %s8315_s13 = smov 0   ;;  %s8317_s14 = smov 0  }
   0x6 LB: > { %s6352_s15 = sadd.s32 4294967295, %s8289_s14   ;;  %s30_s16 = sadd.s32 1, %s8285_s13  ;;  %s8289_s14 = sphi %s8317_s14, %s18_s14   ;;  %s8285_s13 = sphi %s8315_s13, %s10509_s13   ;;  %s8281_s12 = sphi %s8313_s12, %s10508_s12   ;;  %s8277_s11 = sphi %s8311_s11, %s10507_s11   ;;  %s8273_s10 = sphi %s8309_s10, %s10506_s10   ;;  %s8269_s9 = sphi %s8307_s9, %s10505_s9  }
   0x7   : > { %p32_p0 = scmp.ge.s32.totalorder %s30_s16, 2  ;;  %s39_s17 = sadd.s32 1, %s8277_s11 }
   0x8   : > { %p46_p1 = scmp.ne.s32.totalorder %s8277_s11, %s8273_s10  ;;  %p47_p2 = scmp.eq.s32.totalorder %s8289_s14, 0 }
   0x9   : > { %s10511_s16 = smov (%p32_p0, %s30_s16), 0  ;;  %p52_p4 = scmp.ne.s32.totalorder %s8273_s10, %s8269_s9 }
   0xa   : > { %p48_p3 = por %p47_p2, %p46_p1  ;;  %s34_s18 = ssub.s32 %s8285_s13, %s10511_s16 }
   0xb   : > { %p53_p5 = scmp.eq.s32.totalorder %s6352_s15, 0  ;;  %p37_p6 = scmp.eq.s32.totalorder %s34_s18, 0 }
   0xc   : > { %p6772_p8 = scmp.lt.s32.totalorder %s8289_s14, 2  ;;  %s130_s21 = sand.u32 1, %s8277_s11  }
   0xd   : > { %p8346_p7 = por %p53_p5, %p52_p4  ;;  %s6756_s22 = smul.u32 24, %s8285_s13 }
   0xe   : > { %s8352_s20 = scalar_select %p37_p6, %s8277_s11, %s39_s17  }
   0xf   : > { %s6755_s23 = smul.u32 24, %s130_s21  ;;  %s141_s26 = scalar_lea.hbm %s10499_s0, %s6756_s22 }
  0x10   : > { %p8359_p9 = pnand %p6772_p8, %p48_p3  ;;  %s143_s28 = sshll.u32 %s141_s26, 4  ;;  %s144_s28 = int_to_ptr.hbm [resolvable:$true] %s143_s28 }
  0x11   : > { %s134_s29 = scalar_lea.vmem [#allocation3], %s6755_s23  ;;  %s131_s3 = scalar_lea.sflag [#allocation4], %s130_s21 }
  0x12   : > { %s145_s30 = sshll.u32 %s134_s29, 4  ;;  %p6358_p10 = scmp.ge.s32.totalorder %s8289_s14, 1  ;;  %s146_s30 = int_to_ptr.vmem [resolvable:$true] %s145_s30 }
  0x13   : > { %6768 = dma.hbm_to_vmem [thread:$0]  (!%p8359_p9), %s144_s28, 384, %s146_s30, %s131_s3  }
  0x14   : > { %p172_p11 = scmp.lt.s32.totalorder %s8289_s14, 3  ;;  %s163_s6 = scalar_lea.hbm %s10500_s1, %s6756_s22 }
  0x15   : > { %s165_s7 = sshll.u32 %s163_s6, 4  ;;  %s156_s8 = scalar_lea.vmem [#allocation5], %s6755_s23  ;;  %s166_s7 = int_to_ptr.hbm [resolvable:$true] %s165_s7 }
  0x16   : > { %p173_p12 = pnand %p6358_p10, %p172_p11  ;;  %s167_s9 = sshll.u32 %s156_s8, 4  ;;  %s168_s9 = int_to_ptr.vmem [resolvable:$true] %s167_s9 }
  0x17   : > { %s153_s15 = scalar_lea.sflag [#allocation6], %s130_s21  ;;  %s178_s17 = sand.u32 (!%p173_p12), 1, %s8273_s10  }
  0x18   : > { %6771 = dma.hbm_to_vmem [thread:$0]  (!%p8359_p9), %s166_s7, 384, %s168_s9, %s153_s15  }
  0x19   : > { %176 = sbr.rel (%p173_p12) target bundleno = 1266 (0x4f2), region = 28  ;;  %s179_s24 = scalar_lea.sflag (!%p173_p12), [#allocation4], %s178_s17 }
  0x1a   : > { %s6759_s18 = smul.u32 (!%p173_p12), 24, %s178_s17 }
  0x1c   : > { %s8373_s25 = scalar_lea.vmem (!%p173_p12), [#allocation3], %s6759_s18 }
  0x1e   : > { %8260 = dma.done.wait (%p8346_p7), %s179_s24, 384  }
  0x1f   : > { %8262 = vsyncadd (%p8346_p7), %s179_s24, 4294966912  ;;  %s189_s22 = scalar_lea.sflag [#allocation6], %s178_s17  ;;  %s8379_s23 = scalar_lea.vmem [#allocation5], %s6759_s18 }
  0x20   : > { %8264 = dma.done.wait (%p8346_p7), %s189_s22, 384  }
  0x21   : > { %8266 = vsyncadd (%p8346_p7), %s189_s22, 4294966912  ;;  %v291_v0 = vlaneseq  ;;  %vm331_vm0 = vcmask 1040384   ;;  %v8393_v10 = vld [vmem:[%s8379_s23] sm:$0xff]  ;;  %v324_v11 = vld [vmem:[%s8379_s23 + $0x8] sm:$0xff]  ;;  %vm333_vm1 = vcmask 1041408   ;;  %vm335_vm2 = vcmask 1041409  }
  0x22   : > { %v325_v12 = vld [vmem:[%s8379_s23 + $0x10] sm:$0xff]  ;;  %vm337_vm3 = vcmask 1042433   ;;  %v8397_v14 = vrot.slane %v324_v11, 7  ;;  %vm340_vm4 = vcmask 1042434   ;;  %vm342_vm5 = vcmask 1043458   ;;  %s6359_s19 = sshll.u32 %s8281_s12, 3 }
  0x23   : > { %v8386_v1 = vshrl.u32 %v291_v0, 7  ;;  %v8399_v15 = vrot.slane %v325_v12, 6  ;;  %vm345_vm7 = vcmask 1043459   ;;  %vm347_vm8 = vcmask 1044483   ;;  %p9252_p13 = scmp.lt.s32.totalorder %s6359_s19, 15 }
  0x24   : > { %v591_v20 = vsel %vm331_vm0, %v8393_v10, %v8397_v14  ;;  %v593_v21 = vsel %vm335_vm2, %v8393_v10, %v8397_v14  ;;  %vm350_vm9 = vcmask 1044484   ;;  %vm352_vm10 = vcmask 1045508  }
  0x25   : > { %v298_v2 = vadd.s32 48, %v8386_v1  ;;  %v297_v3 = vadd.s32 40, %v8386_v1  ;;  %v296_v4 = vadd.s32 32, %v8386_v1  ;;  %v295_v5 = vadd.s32 24, %v8386_v1  ;;  %s10513_s19 = smov (!%p9252_p13, %s6359_s19), 15 }
  0x26   : > { %v592_v22 = vsel %vm333_vm1, %v591_v20, %v8399_v15  ;;  %v594_v23 = vsel %vm337_vm3, %v593_v21, %v8399_v15  ;;  %v8451_v62 = vadd.s32 16, %v8386_v1  ;;  %vm355_vm11 = vcmask 1045509   ;;  %s6760_s12 = smul.u32 56, %s10513_s19 }
  0x27   : > { %v305_v6 = vcvt.s32.f32 %v298_v2  ;;  %v304_v7 = vcvt.s32.f32 %v297_v3  ;;  %v303_v8 = vcvt.s32.f32 %v296_v4  ;;  %v302_v9 = vcvt.s32.f32 %v295_v5 }
  0x28   : > { %v8417_v26 = vperm.slane %v592_v22, 0  ;;  %v8419_v27 = vperm.slane %v592_v22, 2  ;;  %v8421_v28 = vperm.slane %v592_v22, 1  ;;  %v8423_v29 = vrot.slane %v594_v23, 1  ;;  %s9306_s28 = scalar_lea.vmem %s10501_s2, %s6760_s12 }
  0x29   : > { %v312_v13 = vmul.f32 0.02, %v305_v6  ;;  %v311_v16 = vmul.f32 0.02, %v304_v7  ;;  %v310_v17 = vmul.f32 0.02, %v303_v8  ;;  %v301_v21 = vcvt.s32.f32 %v8451_v62 }
  0x2a   : > { %v309_v18 = vmul.f32 0.02, %v302_v9  ;;  %v8434_v34 = vperm.slane %v8423_v29, 0  ;;  %v299_v62 = vcvt.s32.f32 %v8386_v1  ;;  %vm357_vm12 = vcmask 1046533  }
  0x2b   : > { %v8401_v19 = vadd.f32 0.01, %v312_v13  ;;  %v8413_v24 = vadd.f32 0.01, %v311_v16  ;;  %v8415_v25 = vadd.f32 0.01, %v310_v17 }
  0x2c   : > { %v8425_v30 = vadd.f32 0.01, %v309_v18  ;;  %vm233_vm13 = vcmask 408576   ;;  %vm360_vm14 = vcmask 1046534   ;;  %vm362_vm15 = vcmask 1045504  }
  0x2d   : > { %v680_v31 = vsub.f32 %v8417_v26, %v8401_v19  ;;  %v682_v32 = vsub.f32 %v8419_v27, %v8401_v19  ;;  %v681_v33 = vsub.f32 %v8421_v28, %v8401_v19  ;;  %v677_v35 = vsub.f32 %v8417_v26, %v8413_v24 }
  0x2e   : > { %v679_v36 = vsub.f32 %v8419_v27, %v8413_v24  ;;  %v678_v37 = vsub.f32 %v8421_v28, %v8413_v24  ;;  %v674_v38 = vsub.f32 %v8417_v26, %v8415_v25  ;;  %v701_v42 = vsub.f32 %v8434_v34, %v8401_v19 }
  0x2f   : > { %v1688_v39 = vmul.f32 10.0, %v680_v31  ;;  %v1690_v40 = vmul.f32 10.0, %v682_v32  ;;  %v1689_v41 = vmul.f32 10.0, %v681_v33  ;;  %v1685_v43 = vmul.f32 10.0, %v677_v35 }
  0x30   : > { %v1687_v44 = vmul.f32 10.0, %v679_v36  ;;  %v1686_v45 = vmul.f32 10.0, %v678_v37  ;;  %v698_v46 = vsub.f32 %v8434_v34, %v8413_v24  ;;  %v1709_v50 = vmul.f32 10.0, %v701_v42 }
  0x31   : > { %v6547_v47 = vclamps-f32 %v1688_v39, 30.0  ;;  %v6549_v48 = vclamps-f32 %v1690_v40, 30.0  ;;  %v6548_v49 = vclamps-f32 %v1689_v41, 30.0  ;;  %v6544_v51 = vclamps-f32 %v1685_v43, 30.0 }
  0x32   : > { %v6546_v52 = vclamps-f32 %v1687_v44, 30.0  ;;  %v6545_v53 = vclamps-f32 %v1686_v45, 30.0  ;;  %v1706_v54 = vmul.f32 10.0, %v698_v46  ;;  %v676_v58 = vsub.f32 %v8419_v27, %v8415_v25 }
  0x33   : > { %v2210_v55 = vmul.f32 1.442695, %v6547_v47  ;;  %v2214_v56 = vmul.f32 1.442695, %v6549_v48  ;;  %v2212_v57 = vmul.f32 1.442695, %v6548_v49  ;;  %v675_v6 = vsub.f32 %v8421_v28, %v8415_v25 }
  0x34   : > { %v6568_v59 = vclamps-f32 %v1709_v50, 30.0  ;;  %v2204_v60 = vmul.f32 1.442695, %v6544_v51  ;;  %v2208_v61 = vmul.f32 1.442695, %v6546_v52  ;;  %v6565_v63 = vclamps-f32 %v1706_v54, 30.0 }
  0x35   : > { %6822 = vpow2.f32 %v2210_v55  ;;  %v1682_v2 = vmul.f32 10.0, %v674_v38  ;;  %v1684_v3 = vmul.f32 10.0, %v676_v58  ;;  %v2206_v5 = vmul.f32 1.442695, %v6545_v53 }
  0x36   : > { %6824 = vpow2.f32 %v2214_v56  ;;  %v2252_v4 = vmul.f32 1.442695, %v6568_v59  ;;  %v695_v9 = vsub.f32 %v8434_v34, %v8415_v25  ;;  %v8457_v11 = vmul.f32 10.0, %v675_v6 }
  0x37   : > { %6826 = vpow2.f32 %v2212_v57  ;;  %v6541_v7 = vclamps-f32 %v1682_v2, 30.0  ;;  %v6543_v8 = vclamps-f32 %v1684_v3, 30.0  ;;  %v671_v12 = vsub.f32 %v8417_v26, %v8425_v30 }
  0x38   : > { %6828 = vpow2.f32 %v2252_v4  ;;  %v673_v13 = vsub.f32 %v8419_v27, %v8425_v30  ;;  %v2246_v16 = vmul.f32 1.442695, %v6565_v63  ;;  %v8463_v17 = vmul.f32 10.0, %v695_v9 }
  0x39   : > { %6830 = vpow2.f32 %v2204_v60  ;;  %v2198_v18 = vmul.f32 1.442695, %v6541_v7  ;;  %v2202_v20 = vmul.f32 1.442695, %v6543_v8  ;;  %v6542_v23 = vclamps-f32 %v8457_v11, 30.0 }
  0x3a   : > { %6832 = vpow2.f32 %v2208_v61  ;;  %v8467_v31 = vmul.f32 10.0, %v671_v12  ;;  %v8469_v32 = vmul.f32 10.0, %v673_v13  ;;  %v6562_v37 = vclamps-f32 %v8463_v17, 30.0 }
  0x3b   : > { %v6823_v22 = vpop.eup %6822  ;;  %6834 = vpow2.f32 %v2206_v5  ;;  %v672_v38 = vsub.f32 %v8421_v28, %v8425_v30  ;;  %v692_v42 = vsub.f32 %v8434_v34, %v8425_v30 }
  0x3c   : > { %v6825_v33 = vpop.eup %6824  ;;  %v3872_v35 = vmul.f32 1.105171, %v6823_v22  ;;  %v4208_v36 = vadd.f32 1.105171, %v6823_v22  ;;  %6836 = vpow2.f32 %v2246_v16  ;;  %v3704_v44 = vmul.f32 0.22140276, %v6823_v22 }
  0x3d   : > { %v6827_v39 = vpop.eup %6826  ;;  %v3874_v40 = vmul.f32 1.105171, %v6825_v33  ;;  %v4210_v41 = vadd.f32 1.105171, %v6825_v33  ;;  %6838 = vpow2.f32 %v2198_v18  ;;  %v3706_v48 = vmul.f32 0.22140276, %v6825_v33 }
  0x3e   : > { %v6829_v43 = vpop.eup %6828  ;;  %v4040_v45 = vadd.f32 1.0, %v3872_v35  ;;  %v3873_v46 = vmul.f32 1.105171, %v6827_v39  ;;  %v4209_v50 = vadd.f32 1.105171, %v6827_v39  ;;  %6840 = vpow2.f32 %v2202_v20 }
  0x3f   : > { %v6831_v47 = vpop.eup %6830  ;;  %v4042_v49 = vadd.f32 1.0, %v3874_v40  ;;  %v3893_v54 = vmul.f32 1.105171, %v6829_v43  ;;  %v4229_v55 = vadd.f32 1.105171, %v6829_v43  ;;  %v6538_v12 = vclamps-f32 %v8467_v31, 30.0 }
  0x40   : > { %v6833_v51 = vpop.eup %6832  ;;  %v4376_v52 = vmul.f32 %v4208_v36, %v4040_v45  ;;  %v4041_v53 = vadd.f32 1.0, %v3873_v46  ;;  %v3705_v58 = vmul.f32 0.22140276, %v6827_v39  ;;  %v3869_v59 = vmul.f32 1.105171, %v6831_v47 }
  0x41   : > { %v6835_v56 = vpop.eup %6834  ;;  %v4378_v57 = vmul.f32 %v4210_v41, %v4042_v49  ;;  %v4205_v60 = vadd.f32 1.105171, %v6831_v47  ;;  %v3725_v63 = vmul.f32 0.22140276, %v6829_v43  ;;  %v4061_v2 = vadd.f32 1.0, %v3893_v54 }
  0x42   : > { %6842 = vrcp.f32 %v4376_v52  ;;  %v4377_v61 = vmul.f32 %v4209_v50, %v4041_v53  ;;  %v6837_v3 = vpop.eup %6836  ;;  %v4037_v4 = vadd.f32 1.0, %v3869_v59  ;;  %v3871_v5 = vmul.f32 1.105171, %v6833_v51 }
  0x43   : > { %6844 = vrcp.f32 %v4378_v57  ;;  %v4207_v6 = vadd.f32 1.105171, %v6833_v51  ;;  %v8476_v7 = vpop.eup %6838  ;;  %v4397_v8 = vmul.f32 %v4229_v55, %v4061_v2  ;;  %v3870_v9 = vmul.f32 1.105171, %v6835_v56 }
  0x44   : > { %6846 = vrcp.f32 %v4377_v61  ;;  %v8479_v13 = vpop.eup %6840  ;;  %v3701_v16 = vmul.f32 0.22140276, %v6831_v47  ;;  %v4373_v18 = vmul.f32 %v4205_v60, %v4037_v4  ;;  %v4039_v20 = vadd.f32 1.0, %v3871_v5 }
  0x45   : > { %v4206_v22 = vadd.f32 1.105171, %v6835_v56  ;;  %6848 = vrcp.f32 %v4397_v8  ;;  %v4038_v33 = vadd.f32 1.0, %v3870_v9  ;;  %v3890_v35 = vmul.f32 1.105171, %v6837_v3 }
  0x46   : > { %v4226_v36 = vadd.f32 1.105171, %v6837_v3  ;;  %6850 = vrcp.f32 %v4373_v18  ;;  %v3703_v39 = vmul.f32 0.22140276, %v6833_v51  ;;  %v4375_v40 = vmul.f32 %v4207_v6, %v4039_v20 }
  0x47   : > { %v3866_v41 = vmul.f32 1.105171, %v8476_v7  ;;  %v3702_v45 = vmul.f32 0.22140276, %v6835_v56  ;;  %v4374_v46 = vmul.f32 %v4206_v22, %v4038_v33  ;;  %v4058_v49 = vadd.f32 1.0, %v3890_v35 }
  0x48   : > { %v6843_v43 = vpop.eup %6842  ;;  %v4202_v31 = vadd.f32 1.105171, %v8476_v7  ;;  %6852 = vrcp.f32 %v4375_v40  ;;  %v3868_v53 = vmul.f32 1.105171, %v8479_v13  ;;  %v4204_v51 = vadd.f32 1.105171, %v8479_v13 }
  0x49   : > { %v6845_v50 = vpop.eup %6844  ;;  %v4712_v47 = vmul.f32 %v6843_v43, %v3704_v44  ;;  %v4034_v52 = vadd.f32 1.0, %v3866_v41  ;;  %6854 = vrcp.f32 %v4374_v46  ;;  %v4394_v57 = vmul.f32 %v4226_v36, %v4058_v49 }
  0x4a   : > { %v6847_v54 = vpop.eup %6846  ;;  %v4714_v55 = vmul.f32 %v6845_v50, %v3706_v48  ;;  %v4036_v56 = vadd.f32 1.0, %v3868_v53  ;;  %v2200_v61 = vmul.f32 1.442695, %v6542_v23  ;;  %v2240_v44 = vmul.f32 1.442695, %v6562_v37 }
  0x4b   : > { %5113 = vmatpush.xpose.msra.mxu0 %v4712_v47  ;;  %v4713_v59 = vmul.f32 %v6847_v54, %v3705_v58  ;;  %v4370_v60 = vmul.f32 %v4202_v31, %v4034_v52  ;;  %v6849_v2 = vpop.eup %6848  ;;  %6856 = vrcp.f32 %v4394_v57  ;;  %v2192_v4 = vmul.f32 1.442695, %v6538_v12 }
  0x4c   : > { %5189 = vmatpush.xpose.msra.mxu2 %v4714_v55  ;;  %v6540_v48 = vclamps-f32 %v8469_v32, 30.0  ;;  %v6851_v5 = vpop.eup %6850  ;;  %v4733_v6 = vmul.f32 %v6849_v2, %v3725_v63  ;;  %v4372_v8 = vmul.f32 %v4204_v51, %v4036_v56  ;;  %v1680_v58 = vmul.f32 10.0, %v672_v38 }
  0x4d   : > { %5151 = vmatpush.xpose.msra.mxu1 %v4713_v59  ;;  %6858 = vrcp.f32 %v4370_v60  ;;  %v4709_v11 = vmul.f32 %v6851_v5, %v3701_v16  ;;  %v1700_v17 = vmul.f32 10.0, %v692_v42  ;;  %v3722_v9 = vmul.f32 0.22140276, %v6837_v3 }
  0x4e   : > { %6860 = vpow2.f32 %v2200_v61  ;;  %v2196_v23 = vmul.f32 1.442695, %v6540_v48  ;;  %v6853_v37 = vpop.eup %6852  ;;  %5227 = vmatpush.xpose.msra.mxu3 %v4733_v6  ;;  %v6539_v32 = vclamps-f32 %v1680_v58, 30.0  ;;  %v308_v63 = vmul.f32 0.02, %v301_v21 }
  0x4f   : > { %6862 = vrcp.f32 %v4372_v8  ;;  %v6855_v12 = vpop.eup %6854  ;;  %5114 = vmatpush.xpose.msra.mxu0 %v4709_v11  ;;  %v4711_v18 = vmul.f32 %v6853_v37, %v3703_v39  ;;  %v3698_v38 = vmul.f32 0.22140276, %v8476_v7  ;;  %v6559_v16 = vclamps-f32 %v1700_v17, 30.0 }
  0x50   : > { %6864 = vpow2.f32 %v2240_v44  ;;  %v4710_v20 = vmul.f32 %v6855_v12, %v3702_v45  ;;  %v2194_v22 = vmul.f32 1.442695, %v6539_v32  ;;  %v8499_v33 = vadd.f32 0.01, %v308_v63 }
  0x51   : > { %6866 = vpow2.f32 %v2192_v4  ;;  %v6857_v42 = vpop.eup %6856  ;;  %5190 = vmatpush.xpose.msra.mxu2 %v4711_v18  ;;  %v3700_v3 = vmul.f32 0.22140276, %v8479_v13  ;;  %v2234_v35 = vmul.f32 1.442695, %v6559_v16  ;;  %v293_v43 = vadd.s32 8, %v8386_v1 }
  0x52   : > { %6868 = vpow2.f32 %v2196_v23  ;;  %5152 = vmatpush.xpose.msra.mxu1 %v4710_v20  ;;  %v4730_v36 = vmul.f32 %v6857_v42, %v3722_v9  ;;  %v668_v7 = vsub.f32 %v8417_v26, %v8499_v33  ;;  %v670_v39 = vsub.f32 %v8419_v27, %v8499_v33 }
  0x53   : > { %v6859_v21 = vpop.eup %6858  ;;  %6870 = vpow2.f32 %v2194_v22  ;;  %v669_v13 = vsub.f32 %v8421_v28, %v8499_v33  ;;  %v689_v31 = vsub.f32 %v8434_v34, %v8499_v33  ;;  %v306_v54 = vmul.f32 0.02, %v299_v62 }
  0x54   : > { %v6861_v40 = vpop.eup %6860  ;;  %v4706_v41 = vmul.f32 %v6859_v21, %v3698_v38  ;;  %6872 = vpow2.f32 %v2234_v35  ;;  %5228 = vmatpush.xpose.msra.mxu3 %v4730_v36  ;;  %v1676_v53 = vmul.f32 10.0, %v668_v7  ;;  %v1678_v59 = vmul.f32 10.0, %v670_v39 }
  0x55   : > { %v6863_v45 = vpop.eup %6862  ;;  %v3867_v46 = vmul.f32 1.105171, %v6861_v40  ;;  %v4203_v49 = vadd.f32 1.105171, %v6861_v40  ;;  %v3699_v52 = vmul.f32 0.22140276, %v6861_v40  ;;  %v300_v44 = vcvt.s32.f32 %v293_v43 }
  0x56   : > { %v6865_v50 = vpop.eup %6864  ;;  %5115 = vmatpush.xpose.msra.mxu0 %v4706_v41  ;;  %v4708_v47 = vmul.f32 %v6863_v45, %v3700_v3  ;;  %v1677_v60 = vmul.f32 10.0, %v669_v13  ;;  %v1697_v8 = vmul.f32 10.0, %v689_v31  ;;  %v6535_v37 = vclamps-f32 %v1676_v53, 30.0 }
  0x57   : > { %v6867_v55 = vpop.eup %6866  ;;  %v4035_v57 = vadd.f32 1.0, %v3867_v46  ;;  %v3887_v51 = vmul.f32 1.105171, %v6865_v50  ;;  %v3719_v1 = vmul.f32 0.22140276, %v6865_v50  ;;  %v6537_v62 = vclamps-f32 %v1678_v59, 30.0 }
  0x58   : > { %v6869_v56 = vpop.eup %6868  ;;  %5191 = vmatpush.xpose.msra.mxu2 %v4708_v47  ;;  %v4223_v61 = vadd.f32 1.105171, %v6865_v50  ;;  %v3863_v2 = vmul.f32 1.105171, %v6867_v55  ;;  %v4199_v6 = vadd.f32 1.105171, %v6867_v55 }
  0x59   : > { %v6871_v4 = vpop.eup %6870  ;;  %v4371_v48 = vmul.f32 %v4203_v49, %v4035_v57  ;;  %v4055_v5 = vadd.f32 1.0, %v3887_v51  ;;  %v3865_v23 = vmul.f32 1.105171, %v6869_v56  ;;  %v4201_v17 = vadd.f32 1.105171, %v6869_v56 }
  0x5a   : > { %v6873_v58 = vpop.eup %6872  ;;  %v4031_v11 = vadd.f32 1.0, %v3863_v2  ;;  %v3695_v32 = vmul.f32 0.22140276, %v6867_v55  ;;  %v3864_v63 = vmul.f32 1.105171, %v6871_v4  ;;  %v6536_v7 = vclamps-f32 %v1677_v60, 30.0 }
  0x5b   : > { %6874 = vrcp.f32 %v4371_v48  ;;  %v4391_v9 = vmul.f32 %v4223_v61, %v4055_v5  ;;  %v3697_v18 = vmul.f32 0.22140276, %v6869_v56  ;;  %v4033_v38 = vadd.f32 1.0, %v3865_v23 }
  0x5c   : > { %v4367_v12 = vmul.f32 %v4199_v6, %v4031_v11  ;;  %v4200_v16 = vadd.f32 1.105171, %v6871_v4  ;;  %v4032_v20 = vadd.f32 1.0, %v3864_v63  ;;  %v3884_v22 = vmul.f32 1.105171, %v6873_v58 }
  0x5d   : > { %6876 = vrcp.f32 %v4391_v9  ;;  %v4220_v42 = vadd.f32 1.105171, %v6873_v58  ;;  %v4369_v3 = vmul.f32 %v4201_v17, %v4033_v38  ;;  %v2186_v35 = vmul.f32 1.442695, %v6535_v37 }
  0x5e   : > { %6878 = vrcp.f32 %v4367_v12  ;;  %v4368_v21 = vmul.f32 %v4200_v16, %v4032_v20  ;;  %v4052_v36 = vadd.f32 1.0, %v3884_v22  ;;  %v6556_v39 = vclamps-f32 %v1697_v8, 30.0 }
  0x5f   : > { %6880 = vrcp.f32 %v4369_v3  ;;  %v2190_v40 = vmul.f32 1.442695, %v6537_v62  ;;  %v307_v41 = vmul.f32 0.02, %v300_v44  ;;  %v8512_v13 = vadd.f32 0.01, %v306_v54 }
  0x60   : > { %6882 = vrcp.f32 %v4368_v21  ;;  %v4388_v45 = vmul.f32 %v4220_v42, %v4052_v36  ;;  %v2188_v46 = vmul.f32 1.442695, %v6536_v7  ;;  %v2228_v49 = vmul.f32 1.442695, %v6556_v39 }
  0x61   : > { %v6875_v43 = vpop.eup %6874  ;;  %6884 = vpow2.f32 %v2186_v35  ;;  %v8514_v50 = vadd.f32 0.01, %v307_v41  ;;  %v662_v47 = vsub.f32 %v8417_v26, %v8512_v13  ;;  %v3696_v55 = vmul.f32 0.22140276, %v6871_v4 }
  0x62   : > { %v4707_v31 = vmul.f32 %v6875_v43, %v3699_v52  ;;  %v3716_v57 = vmul.f32 0.22140276, %v6873_v58  ;;  %6886 = vrcp.f32 %v4388_v45  ;;  %v664_v54 = vsub.f32 %v8419_v27, %v8512_v13 }
  0x63   : > { %v6877_v53 = vpop.eup %6876  ;;  %6888 = vpow2.f32 %v2190_v40  ;;  %v665_v52 = vsub.f32 %v8417_v26, %v8514_v50  ;;  %v667_v60 = vsub.f32 %v8419_v27, %v8514_v50  ;;  %v666_v61 = vsub.f32 %v8421_v28, %v8514_v50 }
  0x64   : > { %v6879_v51 = vpop.eup %6878  ;;  %5153 = vmatpush.xpose.msra.mxu1 %v4707_v31  ;;  %v4727_v59 = vmul.f32 %v6877_v53, %v3719_v1  ;;  %6890 = vpow2.f32 %v2188_v46  ;;  %v686_v2 = vsub.f32 %v8434_v34, %v8514_v50  ;;  %v1670_v48 = vmul.f32 10.0, %v662_v47  ;;  %v321_v47 = vld [vmem:[%s8373_s25 + $0x8] sm:$0xff] }
  0x65   : > { %v4703_v56 = vmul.f32 %v6879_v51, %v3695_v32  ;;  %v6881_v44 = vpop.eup %6880  ;;  %6892 = vpow2.f32 %v2228_v49  ;;  %v1673_v4 = vmul.f32 10.0, %v665_v52  ;;  %v1675_v1 = vmul.f32 10.0, %v667_v60  ;;  %v322_v60 = vld [vmem:[%s8373_s25 + $0x10] sm:$0xff] }
  0x66   : > { %5229 = vmatpush.xpose.msra.mxu3 %v4727_v59  ;;  %v6883_v5 = vpop.eup %6882  ;;  %v4705_v26 = vmul.f32 %v6881_v44, %v3697_v18  ;;  %v1674_v6 = vmul.f32 10.0, %v666_v61  ;;  %v663_v27 = vsub.f32 %v8421_v28, %v8512_v13  ;;  %v683_v8 = vsub.f32 %v8434_v34, %v8512_v13 }
  0x67   : > { %5116 = vmatpush.xpose.msra.mxu0 %v4703_v56  ;;  %v6885_v58 = vpop.eup %6884  ;;  %v4704_v11 = vmul.f32 %v6883_v5, %v3696_v55  ;;  %v6532_v23 = vclamps-f32 %v1673_v4, 30.0  ;;  %v6534_v17 = vclamps-f32 %v1675_v1, 30.0  ;;  %v1694_v37 = vmul.f32 10.0, %v686_v2  ;;  %v8537_v5 = vld [vmem:[%s8373_s25] sm:$0xff] }
  0x68   : > { %v6887_v9 = vpop.eup %6886  ;;  %5192 = vmatpush.xpose.msra.mxu2 %v4705_v26  ;;  %v3860_v32 = vmul.f32 1.105171, %v6885_v58  ;;  %v4196_v63 = vadd.f32 1.105171, %v6885_v58  ;;  %v6529_v12 = vclamps-f32 %v1670_v48, 30.0  ;;  %v1672_v38 = vmul.f32 10.0, %v664_v54 }
  0x69   : > { %v6889_v16 = vpop.eup %6888  ;;  %5154 = vmatpush.xpose.msra.mxu1 %v4704_v11  ;;  %v4724_v18 = vmul.f32 %v6887_v9, %v3716_v57  ;;  %v3692_v20 = vmul.f32 0.22140276, %v6885_v58  ;;  %v2180_v22 = vmul.f32 1.442695, %v6532_v23  ;;  %v2184_v28 = vmul.f32 1.442695, %v6534_v17 }
  0x6a   : > { %v6891_v42 = vpop.eup %6890  ;;  %v4028_v3 = vadd.f32 1.0, %v3860_v32  ;;  %v3694_v34 = vmul.f32 0.22140276, %v6889_v16  ;;  %v3862_v35 = vmul.f32 1.105171, %v6889_v16  ;;  %v6533_v62 = vclamps-f32 %v1674_v6, 30.0 }
  0x6b   : > { %v6893_v21 = vpop.eup %6892  ;;  %5230 = vmatpush.xpose.msra.mxu3 %v4724_v18  ;;  %v4198_v36 = vadd.f32 1.105171, %v6889_v16  ;;  %v3861_v7 = vmul.f32 1.105171, %v6891_v42  ;;  %6894 = vpow2.f32 %v2180_v22  ;;  %v6553_v39 = vclamps-f32 %v1694_v37, 30.0 }
  0x6c   : > { %v4364_v40 = vmul.f32 %v4196_v63, %v4028_v3  ;;  %v4030_v41 = vadd.f32 1.0, %v3862_v35  ;;  %v3693_v43 = vmul.f32 0.22140276, %v6891_v42  ;;  %v4197_v45 = vadd.f32 1.105171, %v6891_v42 }
  0x6d   : > { %v4029_v46 = vadd.f32 1.0, %v3861_v7  ;;  %v3881_v49 = vmul.f32 1.105171, %v6893_v21  ;;  %v4217_v31 = vadd.f32 1.105171, %v6893_v21  ;;  %6896 = vpow2.f32 %v2184_v28 }
  0x6e   : > { %6898 = vrcp.f32 %v4364_v40  ;;  %v4366_v53 = vmul.f32 %v4198_v36, %v4030_v41  ;;  %v3713_v55 = vmul.f32 0.22140276, %v6893_v21  ;;  %v2182_v57 = vmul.f32 1.442695, %v6533_v62 }
  0x6f   : > { %v4365_v54 = vmul.f32 %v4197_v45, %v4029_v46  ;;  %v4049_v51 = vadd.f32 1.0, %v3881_v49  ;;  %v2222_v59 = vmul.f32 1.442695, %v6553_v39  ;;  %v6531_v52 = vclamps-f32 %v1672_v38, 30.0 }
  0x70   : > { %6900 = vrcp.f32 %v4366_v53  ;;  %v1671_v56 = vmul.f32 10.0, %v663_v27  ;;  %v1691_v61 = vmul.f32 10.0, %v683_v8  ;;  %v8534_v2 = vrot.slane %v321_v47, 7 }
  0x71   : > { %v6895_v44 = vpop.eup %6894  ;;  %6902 = vrcp.f32 %v4365_v54  ;;  %v4385_v4 = vmul.f32 %v4217_v31, %v4049_v51  ;;  %v2174_v1 = vmul.f32 1.442695, %v6529_v12  ;;  %v2178_v48 = vmul.f32 1.442695, %v6531_v52 }
  0x72   : > { %v3857_v26 = vmul.f32 1.105171, %v6895_v44  ;;  %v4193_v6 = vadd.f32 1.105171, %v6895_v44  ;;  %6904 = vpow2.f32 %v2182_v57  ;;  %v8539_v58 = vrot.slane %v322_v60, 6 }
  0x73   : > { %v6897_v11 = vpop.eup %6896  ;;  %6906 = vrcp.f32 %v4385_v4  ;;  %v3689_v23 = vmul.f32 0.22140276, %v6895_v44  ;;  %v6530_v17 = vclamps-f32 %v1671_v56, 30.0  ;;  %v6550_v27 = vclamps-f32 %v1691_v61, 30.0 }
  0x74   : > { %v6899_v8 = vpop.eup %6898  ;;  %v4025_v37 = vadd.f32 1.0, %v3857_v26  ;;  %v3859_v9 = vmul.f32 1.105171, %v6897_v11  ;;  %6908 = vpow2.f32 %v2222_v59  ;;  %v332_v32 = vsel %vm331_vm0, %v8537_v5, %v8534_v2 }
  0x75   : > { %v4700_v63 = vmul.f32 %v6899_v8, %v3692_v20  ;;  %v4195_v12 = vadd.f32 1.105171, %v6897_v11  ;;  %6910 = vpow2.f32 %v2174_v1  ;;  %v2176_v38 = vmul.f32 1.442695, %v6530_v17 }
  0x76   : > { %v6901_v16 = vpop.eup %6900  ;;  %v4361_v18 = vmul.f32 %v4193_v6, %v4025_v37  ;;  %v4027_v22 = vadd.f32 1.0, %v3859_v9  ;;  %6912 = vpow2.f32 %v2178_v48  ;;  %v2216_v28 = vmul.f32 1.442695, %v6550_v27 }
  0x77   : > { %v6903_v42 = vpop.eup %6902  ;;  %5117 = vmatpush.xpose.msra.mxu0 %v4700_v63  ;;  %v4702_v3 = vmul.f32 %v6901_v16, %v3694_v34  ;;  %v3691_v35 = vmul.f32 0.22140276, %v6897_v11  ;;  %6914 = vpow2.f32 %v2176_v38  ;;  %v8546_v62 = vsel %vm333_vm1, %v332_v32, %v8539_v58 }
  0x78   : > { %v6905_v21 = vpop.eup %6904  ;;  %v4701_v36 = vmul.f32 %v6903_v42, %v3693_v43  ;;  %6916 = vrcp.f32 %v4361_v18  ;;  %v4363_v20 = vmul.f32 %v4195_v12, %v4027_v22  ;;  %v8549_v7 = vperm.slane %v8546_v62, 0 }
  0x79   : > { %v6907_v39 = vpop.eup %6906  ;;  %5193 = vmatpush.xpose.msra.mxu2 %v4702_v3  ;;  %v8551_v40 = vmul.f32 0.22140276, %v6905_v21  ;;  %v3858_v41 = vmul.f32 1.105171, %v6905_v21  ;;  %v4194_v45 = vadd.f32 1.105171, %v6905_v21  ;;  %6918 = vpow2.f32 %v2216_v28 }
  0x7a   : > { %v6909_v34 = vpop.eup %6908  ;;  %5155 = vmatpush.xpose.msra.mxu1 %v4701_v36  ;;  %v4721_v46 = vmul.f32 %v6907_v39, %v3713_v55  ;;  %6920 = vrcp.f32 %v4363_v20  ;;  %v418_v43 = vsub.f32 %v8549_v7, %v8512_v13  ;;  %v8556_v49 = vperm.slane %v8546_v62, 2 }
  0x7b   : > { %v6911_v31 = vpop.eup %6910  ;;  %v4026_v47 = vadd.f32 1.0, %v3858_v41  ;;  %v3710_v53 = vmul.f32 0.22140276, %v6909_v34  ;;  %v3878_v57 = vmul.f32 1.105171, %v6909_v34  ;;  %v4864_v54 = vand.u32 127, %v291_v0 }
  0x7c   : > { %v6913_v51 = vpop.eup %6912  ;;  %5231 = vmatpush.xpose.msra.mxu3 %v4721_v46  ;;  %v4214_v59 = vadd.f32 1.105171, %v6909_v34  ;;  %v3686_v52 = vmul.f32 0.22140276, %v6911_v31  ;;  %v3854_v60 = vmul.f32 1.105171, %v6911_v31  ;;  %v420_v11 = vsub.f32 %v8556_v49, %v8512_v13 }
  0x7d   : > { %v6915_v56 = vpop.eup %6914  ;;  %v4362_v55 = vmul.f32 %v4194_v45, %v4026_v47  ;;  %v4046_v61 = vadd.f32 1.0, %v3878_v57  ;;  %v4190_v44 = vadd.f32 1.105171, %v6911_v31  ;;  %v8559_v4 = vmul.f32 0.22140276, %v6913_v51 }
  0x7e   : > { %v6917_v1 = vpop.eup %6916  ;;  %v4022_v48 = vadd.f32 1.0, %v3854_v60  ;;  %v3856_v26 = vmul.f32 1.105171, %v6913_v51  ;;  %v4192_v6 = vadd.f32 1.105171, %v6913_v51  ;;  %v830_v8 = vmul.f32 10.0, %v418_v43 }
  0x7f   : > { %v6919_v17 = vpop.eup %6918  ;;  %v4697_v0 = vmul.f32 %v6917_v1, %v3689_v23  ;;  %6922 = vrcp.f32 %v4362_v55  ;;  %v4382_v27 = vmul.f32 %v4214_v59, %v4046_v61  ;;  %v3855_v63 = vmul.f32 1.105171, %v6915_v56 }
  0x80   : > { %v6921_v37 = vpop.eup %6920  ;;  %v4358_v9 = vmul.f32 %v4190_v44, %v4022_v48  ;;  %v4024_v32 = vadd.f32 1.0, %v3856_v26  ;;  %v4191_v12 = vadd.f32 1.105171, %v6915_v56  ;;  %v3687_v16 = vmul.f32 0.22140276, %v6915_v56 }
  0x81   : > { %5118 = vmatpush.xpose.msra.mxu0 %v4697_v0  ;;  %v4699_v38 = vmul.f32 %v6921_v37, %v3691_v35  ;;  %6924 = vrcp.f32 %v4382_v27  ;;  %v3875_v18 = vmul.f32 1.105171, %v6919_v17  ;;  %v4023_v28 = vadd.f32 1.0, %v3855_v63 }
  0x82   : > { %6926 = vrcp.f32 %v4358_v9  ;;  %v4360_v22 = vmul.f32 %v4192_v6, %v4024_v32  ;;  %v4211_v42 = vadd.f32 1.105171, %v6919_v17  ;;  %v3707_v3 = vmul.f32 0.22140276, %v6919_v17 }
  0x83   : > { %5194 = vmatpush.xpose.msra.mxu2 %v4699_v38  ;;  %v4043_v23 = vadd.f32 1.0, %v3875_v18  ;;  %v6361_v21 = vclamps-f32 %v830_v8, 30.0  ;;  %v832_v36 = vmul.f32 10.0, %v420_v11  ;;  %v4359_v20 = vmul.f32 %v4191_v12, %v4023_v28 }
  0x84   : > { %6928 = vrcp.f32 %v4360_v22  ;;  %v596_v39 = vsel %vm340_vm4, %v8393_v10, %v8397_v14  ;;  %v8566_v46 = vadd.s32 256, %v4864_v54  ;;  %v8572_v47 = vperm.slane %v8546_v62, 1 }
  0x85   : > { %v6923_v35 = vpop.eup %6922  ;;  %v4379_v41 = vmul.f32 %v4211_v42, %v4043_v23  ;;  %v1334_v45 = vmul.f32 1.442695, %v6361_v21  ;;  %v6363_v34 = vclamps-f32 %v832_v36, 30.0  ;;  %6930 = vrcp.f32 %v4359_v20 }
  0x86   : > { %v4698_v43 = vmul.f32 %v6923_v35, %v8551_v40  ;;  %v597_v31 = vsel %vm342_vm5, %v596_v39, %v8399_v15  ;;  %v336_v10 = vsel %vm335_vm2, %v8537_v5, %v8534_v2  ;;  %v419_v40 = vsub.f32 %v8572_v47, %v8512_v13 }
  0x87   : > { %v6925_v57 = vpop.eup %6924  ;;  %6932 = vrcp.f32 %v4379_v41  ;;  %v1338_v51 = vmul.f32 1.442695, %v6363_v34  ;;  %v8574_v59 = vrot.slane %v597_v31, 2  ;;  %v338_v62 = vsel %vm337_vm3, %v336_v10, %v8539_v58 }
  0x88   : > { %v6927_v54 = vpop.eup %6926  ;;  %5156 = vmatpush.xpose.msra.mxu1 %v4698_v43  ;;  %v4718_v60 = vmul.f32 %v6925_v57, %v3710_v53  ;;  %6934 = vpow2.f32 %v1334_v45  ;;  %v8586_v61 = vrot.slane %v338_v62, 1  ;;  %v831_v5 = vmul.f32 10.0, %v419_v40 }
  0x89   : > { %v4694_v56 = vmul.f32 %v6927_v54, %v3686_v52  ;;  %6936 = vpow2.f32 %v1338_v51  ;;  %v8584_v55 = vperm.slane %v8574_v59, 0  ;;  %v421_v53 = vsub.f32 %v8549_v7, %v8514_v50 }
  0x8a   : > { %v6929_v44 = vpop.eup %6928  ;;  %5232 = vmatpush.xpose.msra.mxu3 %v4718_v60  ;;  %v423_v1 = vsub.f32 %v8556_v49, %v8514_v50  ;;  %v8593_v48 = vperm.slane %v8423_v29, 1  ;;  %v8599_v6 = vperm.slane %v8586_v61, 0  ;;  %v8602_v11 = vperm.slane %v8574_v59, 1 }
  0x8b   : > { %5119 = vmatpush.xpose.msra.mxu0 %v4694_v56  ;;  %v4696_v52 = vmul.f32 %v6929_v44, %v8559_v4  ;;  %v722_v26 = vsub.f32 %v8584_v55, %v8401_v19  ;;  %v6931_v17 = vpop.eup %6930  ;;  %v6362_v0 = vclamps-f32 %v831_v5, 30.0  ;;  %v8605_v27 = vperm.slane %v8423_v29, 2 }
  0x8c   : > { %v833_v8 = vmul.f32 10.0, %v421_v53  ;;  %v835_v37 = vmul.f32 10.0, %v423_v1  ;;  %v4695_v32 = vmul.f32 %v6931_v17, %v3687_v16  ;;  %v439_v63 = vsub.f32 %v8599_v6, %v8512_v13 }
  0x8d   : > { %v6933_v9 = vpop.eup %6932  ;;  %5195 = vmatpush.xpose.msra.mxu2 %v4696_v52  ;;  %v1730_v4 = vmul.f32 10.0, %v722_v26  ;;  %v723_v12 = vsub.f32 %v8602_v11, %v8401_v19  ;;  %v1336_v22 = vmul.f32 1.442695, %v6362_v0  ;;  %v703_v28 = vsub.f32 %v8605_v27, %v8401_v19 }
  0x8e   : > { %v6935_v38 = vpop.eup %6934  ;;  %v4715_v18 = vmul.f32 %v6933_v9, %v3707_v3  ;;  %v6364_v29 = vclamps-f32 %v833_v8, 30.0  ;;  %5157 = vmatpush.xpose.msra.mxu1 %v4695_v32  ;;  %v702_v16 = vsub.f32 %v8593_v48, %v8401_v19  ;;  %v851_v45 = vmul.f32 10.0, %v439_v63 }
  0x8f   : > { %v6937_v42 = vpop.eup %6936  ;;  %v2510_v23 = vmul.f32 0.22140276, %v6935_v38  ;;  %v2678_v21 = vmul.f32 1.105171, %v6935_v38  ;;  %v3014_v36 = vadd.f32 1.105171, %v6935_v38  ;;  %6938 = vpow2.f32 %v1336_v22 }
  0x90   : > { %5233 = vmatpush.xpose.msra.mxu3 %v4715_v18  ;;  %v2512_v20 = vmul.f32 0.22140276, %v6937_v42  ;;  %v2680_v39 = vmul.f32 1.105171, %v6937_v42  ;;  %v3016_v35 = vadd.f32 1.105171, %v6937_v42  ;;  %v719_v17 = vsub.f32 %v8584_v55, %v8413_v24 }
  0x91   : > { %v2846_v41 = vadd.f32 1.0, %v2678_v21  ;;  %v6589_v3 = vclamps-f32 %v1730_v4, 30.0  ;;  %v1731_v34 = vmul.f32 10.0, %v723_v12  ;;  %v1711_v31 = vmul.f32 10.0, %v703_v28 }
  0x92   : > { %v2848_v43 = vadd.f32 1.0, %v2680_v39  ;;  %v1340_v57 = vmul.f32 1.442695, %v6364_v29  ;;  %v6366_v51 = vclamps-f32 %v835_v37, 30.0  ;;  %v6382_v60 = vclamps-f32 %v851_v45, 30.0 }
  0x93   : > { %v3182_v10 = vmul.f32 %v3014_v36, %v2846_v41  ;;  %v2294_v54 = vmul.f32 1.442695, %v6589_v3  ;;  %v6590_v40 = vclamps-f32 %v1731_v34, 30.0  ;;  %vm4873_vm6 = vcmp.lt.s32.totalorder %v8566_v46, 300 }
  0x94   : > { %v3184_v62 = vmul.f32 %v3016_v35, %v2848_v43  ;;  %v6570_v56 = vclamps-f32 %v1711_v31, 30.0  ;;  %6940 = vpow2.f32 %v1340_v57  ;;  %v1344_v44 = vmul.f32 1.442695, %v6366_v51 }
  0x95   : > { %6942 = vrcp.f32 %v3182_v10  ;;  %v1376_v5 = vmul.f32 1.442695, %v6382_v60  ;;  %v2296_v53 = vmul.f32 1.442695, %v6590_v40  ;;  %v1710_v1 = vmul.f32 10.0, %v702_v16  ;;  %v6939_v52 = vpop.eup %6938 }
  0x96   : > { %6944 = vrcp.f32 %v3184_v62  ;;  %v2256_v26 = vmul.f32 1.442695, %v6570_v56  ;;  %v422_v0 = vsub.f32 %v8572_v47, %v8514_v50  ;;  %v8620_v8 = vmul.f32 0.22140276, %v6939_v52 }
  0x97   : > { %6946 = vpow2.f32 %v2294_v54  ;;  %v2679_v37 = vmul.f32 1.105171, %v6939_v52  ;;  %v3015_v9 = vadd.f32 1.105171, %v6939_v52  ;;  %v6569_v32 = vclamps-f32 %v1710_v1, 30.0 }
  0x98   : > { %6948 = vpow2.f32 %v1376_v5  ;;  %v1727_v4 = vmul.f32 10.0, %v719_v17  ;;  %v834_v63 = vmul.f32 10.0, %v422_v0  ;;  %v442_v38 = vsub.f32 %v8599_v6, %v8514_v50 }
  0x99   : > { %v2847_v12 = vadd.f32 1.0, %v2679_v37  ;;  %6950 = vpow2.f32 %v2296_v53  ;;  %v424_v18 = vsub.f32 %v8549_v7, %v8499_v33  ;;  %v2254_v28 = vmul.f32 1.442695, %v6569_v32 }
  0x9a   : > { %v6941_v22 = vpop.eup %6940  ;;  %6952 = vpow2.f32 %v2256_v26  ;;  %v6586_v29 = vclamps-f32 %v1727_v4, 30.0  ;;  %v6365_v42 = vclamps-f32 %v834_v63, 30.0  ;;  %v854_v51 = vmul.f32 10.0, %v442_v38 }
  0x9b   : > { %v6943_v21 = vpop.eup %6942  ;;  %v3183_v36 = vmul.f32 %v3015_v9, %v2847_v12  ;;  %v8626_v16 = vmul.f32 0.22140276, %v6941_v22  ;;  %v2681_v39 = vmul.f32 1.105171, %v6941_v22  ;;  %v3017_v35 = vadd.f32 1.105171, %v6941_v22 }
  0x9c   : > { %v6945_v41 = vpop.eup %6944  ;;  %v3518_v3 = vmul.f32 %v6943_v21, %v2510_v23  ;;  %6954 = vpow2.f32 %v1344_v44  ;;  %v2288_v45 = vmul.f32 1.442695, %v6586_v29  ;;  %v8628_v34 = vmul.f32 1.442695, %v6365_v42 }
  0x9d   : > { %v6947_v43 = vpop.eup %6946  ;;  %v3520_v31 = vmul.f32 %v6945_v41, %v2512_v20  ;;  %6956 = vrcp.f32 %v3183_v36  ;;  %v2849_v57 = vadd.f32 1.0, %v2681_v39  ;;  %vm240_vm0 = vcmask 402432  }
  0x9e   : > { %v6949_v10 = vpop.eup %6948  ;;  %5120 = vmatmul.f32.vlgmr.msra.gmra.mxu0 %v3518_v3  ;;  %v8630_v54 = vmul.f32 0.22140276, %v6947_v43  ;;  %v3914_v60 = vmul.f32 1.105171, %v6947_v43  ;;  %v4250_v40 = vadd.f32 1.105171, %v6947_v43  ;;  %6958 = vpow2.f32 %v2254_v28 }
  0x9f   : > { %v6951_v62 = vpop.eup %6950  ;;  %6697 = vmatmul.msk.f32.vlgmr.msra.gmra.mxu2 %vm4873_vm6, %v3520_v31  ;;  %v8634_v23 = vmul.f32 0.22140276, %v6949_v10  ;;  %v2699_v56 = vmul.f32 1.105171, %v6949_v10  ;;  %v3035_v44 = vadd.f32 1.105171, %v6949_v10  ;;  %v3185_v5 = vmul.f32 %v3017_v35, %v2849_v57 }
  0xa0   : > { %v6953_v20 = vpop.eup %6952  ;;  %v4082_v53 = vadd.f32 1.0, %v3914_v60  ;;  %v3747_v1 = vmul.f32 0.22140276, %v6951_v62  ;;  %v3915_v52 = vmul.f32 1.105171, %v6951_v62  ;;  %6960 = vpow2.f32 %v2288_v45 }
  0xa1   : > { %v2867_v26 = vadd.f32 1.0, %v2699_v56  ;;  %v4251_v17 = vadd.f32 1.105171, %v6951_v62  ;;  %v8636_v0 = vmul.f32 0.22140276, %v6953_v20  ;;  %6962 = vrcp.f32 %v3185_v5 }
  0xa2   : > { %v6955_v37 = vpop.eup %6954  ;;  %v4418_v9 = vmul.f32 %v4250_v40, %v4082_v53  ;;  %v4083_v32 = vadd.f32 1.0, %v3915_v52  ;;  %v3895_v4 = vmul.f32 1.105171, %v6953_v20  ;;  %v4231_v63 = vadd.f32 1.105171, %v6953_v20 }
  0xa3   : > { %v6957_v12 = vpop.eup %6956  ;;  %v3203_v38 = vmul.f32 %v3035_v44, %v2867_v26  ;;  %v8638_v22 = vmul.f32 0.22140276, %v6955_v37  ;;  %v2683_v28 = vmul.f32 1.105171, %v6955_v37  ;;  %v3019_v29 = vadd.f32 1.105171, %v6955_v37 }
  0xa4   : > { %v6959_v42 = vpop.eup %6958  ;;  %6964 = vrcp.f32 %v4418_v9  ;;  %v3519_v21 = vmul.f32 %v6957_v12, %v8620_v8  ;;  %v4419_v36 = vmul.f32 %v4251_v17, %v4083_v32  ;;  %v4063_v39 = vadd.f32 1.0, %v3895_v4 }
  0xa5   : > { %6966 = vrcp.f32 %v3203_v38  ;;  %v2851_v35 = vadd.f32 1.0, %v2683_v28  ;;  %v8641_v41 = vmul.f32 0.22140276, %v6959_v42  ;;  %v3894_v3 = vmul.f32 1.105171, %v6959_v42 }
  0xa6   : > { %v6961_v45 = vpop.eup %6960  ;;  %5158 = vmatmul.f32.vlgmr.msra.gmra.mxu1 %v3519_v21  ;;  %6968 = vrcp.f32 %v4419_v36  ;;  %v4399_v43 = vmul.f32 %v4231_v63, %v4063_v39  ;;  %v4230_v31 = vadd.f32 1.105171, %v6959_v42  ;;  %v6385_v57 = vclamps-f32 %v854_v51, 30.0 }
  0xa7   : > { %v6963_v10 = vpop.eup %6962  ;;  %v3187_v60 = vmul.f32 %v3019_v29, %v2851_v35  ;;  %v4062_v40 = vadd.f32 1.0, %v3894_v3  ;;  %v8643_v62 = vmul.f32 0.22140276, %v6961_v45  ;;  %v3911_v56 = vmul.f32 1.105171, %v6961_v45 }
  0xa8   : > { %6970 = vrcp.f32 %v4399_v43  ;;  %v3521_v8 = vmul.f32 %v6963_v10, %v8626_v16  ;;  %v4247_v44 = vadd.f32 1.105171, %v6961_v45  ;;  %v1382_v5 = vmul.f32 1.442695, %v6385_v57 }
  0xa9   : > { %6972 = vrcp.f32 %v3187_v60  ;;  %v4398_v20 = vmul.f32 %v4230_v31, %v4062_v40  ;;  %v4079_v53 = vadd.f32 1.0, %v3911_v56  ;;  %v720_v52 = vsub.f32 %v8602_v11, %v8413_v24 }
  0xaa   : > { %v6965_v26 = vpop.eup %6964  ;;  %5123 = vmatmul.f32.gmra.mxu0 %v3521_v8  ;;  %6974 = vpow2.f32 %v8628_v34  ;;  %v700_v51 = vsub.f32 %v8605_v27, %v8413_v24  ;;  %v836_v17 = vmul.f32 10.0, %v424_v18  ;;  %v426_v16 = vsub.f32 %v8556_v49, %v8499_v33 }
  0xab   : > { %v6967_v37 = vpop.eup %6966  ;;  %v4754_v9 = vmul.f32 %v6965_v26, %v8630_v54  ;;  %6976 = vrcp.f32 %v4398_v20  ;;  %v4415_v32 = vmul.f32 %v4247_v44, %v4079_v53  ;;  %v1728_v4 = vmul.f32 10.0, %v720_v52 }
  0xac   : > { %v6969_v63 = vpop.eup %6968  ;;  %v3539_v12 = vmul.f32 %v6967_v37, %v8634_v23  ;;  %6978 = vpow2.f32 %v1382_v5  ;;  %v1708_v34 = vmul.f32 10.0, %v700_v51  ;;  %v6367_v38 = vclamps-f32 %v836_v17, 30.0 }
  0xad   : > { %5341 = vmatpush.xpose.msrb.mxu2 %v4754_v9  ;;  %v4755_v28 = vmul.f32 %v6969_v63, %v3747_v1  ;;  %6980 = vrcp.f32 %v4415_v32  ;;  %v6587_v29 = vclamps-f32 %v1728_v4, 30.0  ;;  %v838_v18 = vmul.f32 10.0, %v426_v16 }
  0xae   : > { %v6971_v42 = vpop.eup %6970  ;;  %5234 = vmatmul.f32.vlgmr.msra.gmra.mxu3 %v3539_v12  ;;  %v6567_v21 = vclamps-f32 %v1708_v34, 30.0  ;;  %v1346_v36 = vmul.f32 1.442695, %v6367_v38  ;;  %v699_v54 = vsub.f32 %v8593_v48, %v8413_v24  ;;  %v716_v39 = vsub.f32 %v8584_v55, %v8415_v25 }
  0xaf   : > { %v6973_v35 = vpop.eup %6972  ;;  %5379 = vmatpush.xpose.msrb.mxu3 %v4755_v28  ;;  %v4735_v23 = vmul.f32 %v6971_v42, %v8636_v0  ;;  %v2290_v3 = vmul.f32 1.442695, %v6587_v29  ;;  %v6369_v45 = vclamps-f32 %v838_v18, 30.0  ;;  %v425_v1 = vsub.f32 %v8572_v47, %v8499_v33 }
  0xb0   : > { %v6975_v43 = vpop.eup %6974  ;;  %v3523_v31 = vmul.f32 %v6973_v35, %v8638_v22  ;;  %v2250_v57 = vmul.f32 1.442695, %v6567_v21  ;;  %6982 = vpow2.f32 %v1346_v36  ;;  %v1707_v10 = vmul.f32 10.0, %v699_v54 }
  0xb1   : > { %v6977_v60 = vpop.eup %6976  ;;  %5303 = vmatpush.xpose.msrb.mxu1 %v4735_v23  ;;  %v8666_v40 = vmul.f32 0.22140276, %v6975_v43  ;;  %v2682_v56 = vmul.f32 1.105171, %v6975_v43  ;;  %v3018_v8 = vadd.f32 1.105171, %v6975_v43  ;;  %6984 = vpow2.f32 %v2290_v3 }
  0xb2   : > { %v6979_v44 = vpop.eup %6978  ;;  %6698 = vmatmul.msk.f32.gmra.mxu2 %vm4873_vm6, %v3523_v31  ;;  %v4734_v0 = vmul.f32 %v6977_v60, %v8641_v41  ;;  %6986 = vpow2.f32 %v2250_v57  ;;  %v1350_v5 = vmul.f32 1.442695, %v6369_v45  ;;  %v6566_v20 = vclamps-f32 %v1707_v10, 30.0 }
  0xb3   : > { %v6981_v22 = vpop.eup %6980  ;;  %v2850_v53 = vadd.f32 1.0, %v2682_v56  ;;  %v2534_v52 = vmul.f32 0.22140276, %v6979_v44  ;;  %v2702_v26 = vmul.f32 1.105171, %v6979_v44  ;;  %v1724_v51 = vmul.f32 10.0, %v716_v39 }
  0xb4   : > { %5265 = vmatpush.xpose.msrb.mxu0 %v4734_v0  ;;  %v4751_v17 = vmul.f32 %v6981_v22, %v8643_v62  ;;  %v3038_v16 = vadd.f32 1.105171, %v6979_v44  ;;  %6988 = vpow2.f32 %v1350_v5  ;;  %v2248_v37 = vmul.f32 1.442695, %v6566_v20 }
  0xb5   : > { %v3186_v9 = vmul.f32 %v3018_v8, %v2850_v53  ;;  %v2870_v32 = vadd.f32 1.0, %v2702_v26  ;;  %v6583_v4 = vclamps-f32 %v1724_v51, 30.0  ;;  %v837_v63 = vmul.f32 10.0, %v425_v1 }
  0xb6   : > { %v6983_v12 = vpop.eup %6982  ;;  %5342 = vmatpush.xpose.msrb.mxu2 %v4751_v17  ;;  %6990 = vpow2.f32 %v2248_v37  ;;  %v445_v41 = vsub.f32 %v8599_v6, %v8499_v33  ;;  %v717_v34 = vsub.f32 %v8602_v11, %v8415_v25  ;;  %v697_v38 = vsub.f32 %v8605_v27, %v8415_v25 }
  0xb7   : > { %v6985_v62 = vpop.eup %6984  ;;  %6992 = vrcp.f32 %v3186_v9  ;;  %v3206_v28 = vmul.f32 %v3038_v16, %v2870_v32  ;;  %v8678_v29 = vmul.f32 0.22140276, %v6983_v12  ;;  %v2684_v18 = vmul.f32 1.105171, %v6983_v12 }
  0xb8   : > { %v6987_v42 = vpop.eup %6986  ;;  %v3744_v21 = vmul.f32 0.22140276, %v6985_v62  ;;  %v3912_v36 = vmul.f32 1.105171, %v6985_v62  ;;  %v4248_v54 = vadd.f32 1.105171, %v6985_v62  ;;  %v427_v39 = vsub.f32 %v8549_v7, %v8425_v30 }
  0xb9   : > { %6994 = vrcp.f32 %v3206_v28  ;;  %v3724_v35 = vmul.f32 0.22140276, %v6987_v42  ;;  %v3892_v23 = vmul.f32 1.105171, %v6987_v42  ;;  %v4228_v3 = vadd.f32 1.105171, %v6987_v42 }
  0xba   : > { %v6989_v45 = vpop.eup %6988  ;;  %v4080_v1 = vadd.f32 1.0, %v3912_v36  ;;  %v2852_v43 = vadd.f32 1.0, %v2684_v18  ;;  %v3020_v31 = vadd.f32 1.105171, %v6983_v12  ;;  %v2282_v57 = vmul.f32 1.442695, %v6583_v4 }
  0xbb   : > { %v4060_v10 = vadd.f32 1.0, %v3892_v23  ;;  %v8682_v60 = vmul.f32 0.22140276, %v6989_v45  ;;  %v2686_v56 = vmul.f32 1.105171, %v6989_v45  ;;  %v6368_v8 = vclamps-f32 %v837_v63, 30.0 }
  0xbc   : > { %v6991_v44 = vpop.eup %6990  ;;  %v4416_v0 = vmul.f32 %v4248_v54, %v4080_v1  ;;  %v3188_v5 = vmul.f32 %v3020_v31, %v2852_v43  ;;  %v3022_v20 = vadd.f32 1.105171, %v6989_v45  ;;  %6996 = vpow2.f32 %v2282_v57 }
  0xbd   : > { %v6993_v22 = vpop.eup %6992  ;;  %v4396_v53 = vmul.f32 %v4228_v3, %v4060_v10  ;;  %v2854_v26 = vadd.f32 1.0, %v2686_v56  ;;  %v8684_v51 = vmul.f32 0.22140276, %v6991_v44  ;;  %v3891_v17 = vmul.f32 1.105171, %v6991_v44 }
  0xbe   : > { %v3522_v16 = vmul.f32 %v6993_v22, %v8666_v40  ;;  %6998 = vrcp.f32 %v4416_v0  ;;  %v4227_v37 = vadd.f32 1.105171, %v6991_v44  ;;  %v1348_v9 = vmul.f32 1.442695, %v6368_v8 }
  0xbf   : > { %v6995_v32 = vpop.eup %6994  ;;  %7000 = vrcp.f32 %v4396_v53  ;;  %v3190_v4 = vmul.f32 %v3022_v20, %v2854_v26  ;;  %v4059_v63 = vadd.f32 1.0, %v3891_v17  ;;  %v857_v12 = vmul.f32 10.0, %v445_v41 }
  0xc0   : > { %5161 = vmatmul.f32.gmra.mxu1 %v3522_v16  ;;  %v3542_v62 = vmul.f32 %v6995_v32, %v2534_v52  ;;  %7002 = vrcp.f32 %v3188_v5  ;;  %v1725_v28 = vmul.f32 10.0, %v717_v34  ;;  %v1705_v18 = vmul.f32 10.0, %v697_v38 }
  0xc1   : > { %7004 = vrcp.f32 %v3190_v4  ;;  %v4395_v42 = vmul.f32 %v4227_v37, %v4059_v63  ;;  %v6388_v36 = vclamps-f32 %v857_v12, 30.0  ;;  %v839_v54 = vmul.f32 10.0, %v427_v39 }
  0xc2   : > { %v6997_v23 = vpop.eup %6996  ;;  %5237 = vmatmul.f32.gmra.mxu3 %v3542_v62  ;;  %7006 = vpow2.f32 %v1348_v9  ;;  %v6584_v40 = vclamps-f32 %v1725_v28, 30.0  ;;  %v6564_v3 = vclamps-f32 %v1705_v18, 30.0  ;;  %v429_v45 = vsub.f32 %v8556_v49, %v8425_v30 }
  0xc3   : > { %7008 = vrcp.f32 %v4395_v42  ;;  %v8689_v1 = vmul.f32 0.22140276, %v6997_v23  ;;  %v3908_v41 = vmul.f32 1.105171, %v6997_v23  ;;  %v4244_v52 = vadd.f32 1.105171, %v6997_v23 }
  0xc4   : > { %v6999_v43 = vpop.eup %6998  ;;  %v1388_v34 = vmul.f32 1.442695, %v6388_v36  ;;  %v2284_v38 = vmul.f32 1.442695, %v6584_v40  ;;  %v2244_v31 = vmul.f32 1.442695, %v6564_v3  ;;  %v696_v39 = vsub.f32 %v8593_v48, %v8415_v25 }
  0xc5   : > { %v7001_v57 = vpop.eup %7000  ;;  %v4752_v10 = vmul.f32 %v6999_v43, %v3744_v21  ;;  %v4076_v56 = vadd.f32 1.0, %v3908_v41  ;;  %v6370_v8 = vclamps-f32 %v839_v54, 30.0  ;;  %v841_v44 = vmul.f32 10.0, %v429_v45 }
  0xc6   : > { %v7003_v0 = vpop.eup %7002  ;;  %v4732_v5 = vmul.f32 %v7001_v57, %v3724_v35  ;;  %7010 = vpow2.f32 %v1388_v34  ;;  %v1704_v20 = vmul.f32 10.0, %v696_v39  ;;  %v713_v22 = vsub.f32 %v8584_v55, %v8425_v30 }
  0xc7   : > { %v7005_v53 = vpop.eup %7004  ;;  %5380 = vmatpush.xpose.msrb.mxu3 %v4752_v10  ;;  %v3524_v26 = vmul.f32 %v7003_v0, %v8678_v29  ;;  %v4412_v17 = vmul.f32 %v4244_v52, %v4076_v56  ;;  %7012 = vpow2.f32 %v2284_v38  ;;  %v1352_v16 = vmul.f32 1.442695, %v6370_v8 }
  0xc8   : > { %v7007_v37 = vpop.eup %7006  ;;  %5304 = vmatpush.xpose.msrb.mxu1 %v4732_v5  ;;  %v3526_v21 = vmul.f32 %v7005_v53, %v8682_v60  ;;  %7014 = vpow2.f32 %v2244_v31  ;;  %v6372_v9 = vclamps-f32 %v841_v44, 30.0  ;;  %v6563_v32 = vclamps-f32 %v1704_v20, 30.0 }
  0xc9   : > { %v7009_v35 = vpop.eup %7008  ;;  %5126 = vmatmul.f32.gmra.mxu0 %v3524_v26  ;;  %7016 = vrcp.f32 %v4412_v17  ;;  %v2517_v4 = vmul.f32 0.22140276, %v7007_v37  ;;  %v2685_v63 = vmul.f32 1.105171, %v7007_v37  ;;  %v3021_v12 = vadd.f32 1.105171, %v7007_v37 }
  0xca   : > { %6699 = vmatmul.msk.f32.gmra.mxu2 %vm4873_vm6, %v3526_v21  ;;  %v4731_v29 = vmul.f32 %v7009_v35, %v8684_v51  ;;  %7018 = vpow2.f32 %v1352_v16  ;;  %v1356_v62 = vmul.f32 1.442695, %v6372_v9  ;;  %v2242_v28 = vmul.f32 1.442695, %v6563_v32 }
  0xcb   : > { %v2853_v18 = vadd.f32 1.0, %v2685_v63  ;;  %v1721_v42 = vmul.f32 10.0, %v713_v22  ;;  %v428_v60 = vsub.f32 %v8572_v47, %v8425_v30  ;;  %v448_v36 = vsub.f32 %v8599_v6, %v8425_v30 }
  0xcc   : > { %v7011_v54 = vpop.eup %7010  ;;  %5266 = vmatpush.xpose.msrb.mxu0 %v4731_v29  ;;  %7020 = vpow2.f32 %v1356_v62  ;;  %v714_v23 = vsub.f32 %v8602_v11, %v8425_v30  ;;  %v694_v51 = vsub.f32 %v8605_v27, %v8425_v30  ;;  %v430_v40 = vsub.f32 %v8549_v7, %v8415_v25 }
  0xcd   : > { %v7013_v3 = vpop.eup %7012  ;;  %v3189_v45 = vmul.f32 %v3021_v12, %v2853_v18  ;;  %v2537_v41 = vmul.f32 0.22140276, %v7011_v54  ;;  %v2705_v52 = vmul.f32 1.105171, %v7011_v54  ;;  %v3041_v43 = vadd.f32 1.105171, %v7011_v54 }
  0xce   : > { %v7015_v34 = vpop.eup %7014  ;;  %v3741_v38 = vmul.f32 0.22140276, %v7013_v3  ;;  %v3909_v31 = vmul.f32 1.105171, %v7013_v3  ;;  %v4245_v39 = vadd.f32 1.105171, %v7013_v3  ;;  %7022 = vpow2.f32 %v2242_v28 }
  0xcf   : > { %v7017_v57 = vpop.eup %7016  ;;  %7024 = vrcp.f32 %v3189_v45  ;;  %v2873_v10 = vadd.f32 1.0, %v2705_v52  ;;  %v3721_v56 = vmul.f32 0.22140276, %v7015_v34  ;;  %v3889_v8 = vmul.f32 1.105171, %v7015_v34 }
  0xd0   : > { %v7019_v44 = vpop.eup %7018  ;;  %v4748_v0 = vmul.f32 %v7017_v57, %v8689_v1  ;;  %v4077_v5 = vadd.f32 1.0, %v3909_v31  ;;  %v4225_v20 = vadd.f32 1.105171, %v7015_v34  ;;  %v6580_v22 = vclamps-f32 %v1721_v42, 30.0 }
  0xd1   : > { %v3209_v53 = vmul.f32 %v3041_v43, %v2873_v10  ;;  %v4057_v26 = vadd.f32 1.0, %v3889_v8  ;;  %v8711_v17 = vmul.f32 0.22140276, %v7019_v44  ;;  %v2687_v16 = vmul.f32 1.105171, %v7019_v44 }
  0xd2   : > { %v7021_v37 = vpop.eup %7020  ;;  %5343 = vmatpush.xpose.msrb.mxu2 %v4748_v0  ;;  %v4413_v21 = vmul.f32 %v4245_v39, %v4077_v5  ;;  %v3023_v9 = vadd.f32 1.105171, %v7019_v44  ;;  %v2276_v32 = vmul.f32 1.442695, %v6580_v22  ;;  %v840_v35 = vmul.f32 10.0, %v428_v60 }
  0xd3   : > { %7026 = vrcp.f32 %v3209_v53  ;;  %v4393_v63 = vmul.f32 %v4225_v20, %v4057_v26  ;;  %v2855_v12 = vadd.f32 1.0, %v2687_v16  ;;  %v8713_v29 = vmul.f32 0.22140276, %v7021_v37 }
  0xd4   : > { %v7023_v1 = vpop.eup %7022  ;;  %7028 = vrcp.f32 %v4413_v21  ;;  %v2689_v62 = vmul.f32 1.105171, %v7021_v37  ;;  %v3025_v28 = vadd.f32 1.105171, %v7021_v37  ;;  %v6371_v18 = vclamps-f32 %v840_v35, 30.0 }
  0xd5   : > { %v7025_v42 = vpop.eup %7024  ;;  %7030 = vrcp.f32 %v4393_v63  ;;  %v3191_v54 = vmul.f32 %v3023_v9, %v2855_v12  ;;  %v8715_v3 = vmul.f32 0.22140276, %v7023_v1  ;;  %v3888_v45 = vmul.f32 1.105171, %v7023_v1 }
  0xd6   : > { %v3525_v52 = vmul.f32 %v7025_v42, %v2517_v4  ;;  %v2857_v43 = vadd.f32 1.0, %v2689_v62  ;;  %v4224_v34 = vadd.f32 1.105171, %v7023_v1  ;;  %7032 = vpow2.f32 %v2276_v32 }
  0xd7   : > { %7034 = vrcp.f32 %v3191_v54  ;;  %v4056_v60 = vadd.f32 1.0, %v3888_v45  ;;  %v1354_v31 = vmul.f32 1.442695, %v6371_v18  ;;  %v860_v39 = vmul.f32 10.0, %v448_v36 }
  0xd8   : > { %5164 = vmatmul.f32.gmra.mxu1 %v3525_v52  ;;  %v3193_v57 = vmul.f32 %v3025_v28, %v2857_v43  ;;  %v1722_v10 = vmul.f32 10.0, %v714_v23  ;;  %v1702_v8 = vmul.f32 10.0, %v694_v51  ;;  %v842_v44 = vmul.f32 10.0, %v430_v40 }
  0xd9   : > { %v7027_v0 = vpop.eup %7026  ;;  %v4392_v5 = vmul.f32 %v4224_v34, %v4056_v60  ;;  %7036 = vpow2.f32 %v1354_v31  ;;  %v6391_v20 = vclamps-f32 %v860_v39, 30.0  ;;  %v432_v22 = vsub.f32 %v8556_v49, %v8415_v25 }
  0xda   : > { %v7029_v4 = vpop.eup %7028  ;;  %v3545_v53 = vmul.f32 %v7027_v0, %v2537_v41  ;;  %7038 = vrcp.f32 %v3193_v57  ;;  %v6581_v26 = vclamps-f32 %v1722_v10, 30.0  ;;  %v6561_v16 = vclamps-f32 %v1702_v8, 30.0 }
  0xdb   : > { %v7031_v37 = vpop.eup %7030  ;;  %v4749_v21 = vmul.f32 %v7029_v4, %v3741_v38  ;;  %7040 = vrcp.f32 %v4392_v5  ;;  %v1394_v36 = vmul.f32 1.442695, %v6391_v20  ;;  %v6373_v9 = vclamps-f32 %v842_v44, 30.0 }
  0xdc   : > { %v7033_v23 = vpop.eup %7032  ;;  %5240 = vmatmul.f32.gmra.mxu3 %v3545_v53  ;;  %v4729_v51 = vmul.f32 %v7031_v37, %v3721_v56  ;;  %v2278_v40 = vmul.f32 1.442695, %v6581_v26  ;;  %v2238_v32 = vmul.f32 1.442695, %v6561_v16  ;;  %v844_v35 = vmul.f32 10.0, %v432_v22 }
  0xdd   : > { %v7035_v63 = vpop.eup %7034  ;;  %5381 = vmatpush.xpose.msrb.mxu3 %v4749_v21  ;;  %v8719_v12 = vmul.f32 0.22140276, %v7033_v23  ;;  %v3905_v1 = vmul.f32 1.105171, %v7033_v23  ;;  %v4241_v41 = vadd.f32 1.105171, %v7033_v23  ;;  %7042 = vpow2.f32 %v1394_v36 }
  0xde   : > { %5305 = vmatpush.xpose.msrb.mxu1 %v4729_v51  ;;  %v3527_v62 = vmul.f32 %v7035_v63, %v8711_v17  ;;  %7044 = vpow2.f32 %v2278_v40  ;;  %v1358_v38 = vmul.f32 1.442695, %v6373_v9  ;;  %v6375_v28 = vclamps-f32 %v844_v35, 30.0 }
  0xdf   : > { %v7037_v18 = vpop.eup %7036  ;;  %v4073_v42 = vadd.f32 1.0, %v3905_v1  ;;  %7046 = vpow2.f32 %v2238_v32  ;;  %v693_v56 = vsub.f32 %v8593_v48, %v8425_v30  ;;  %v710_v54 = vsub.f32 %v8584_v55, %v8499_v33 }
  0xe0   : > { %v7039_v45 = vpop.eup %7038  ;;  %5129 = vmatmul.f32.gmra.mxu0 %v3527_v62  ;;  %v8726_v52 = vmul.f32 0.22140276, %v7037_v18  ;;  %v2688_v43 = vmul.f32 1.105171, %v7037_v18  ;;  %v3024_v34 = vadd.f32 1.105171, %v7037_v18  ;;  %7048 = vpow2.f32 %v1358_v38 }
  0xe1   : > { %v7041_v17 = vpop.eup %7040  ;;  %v3529_v60 = vmul.f32 %v7039_v45, %v8713_v29  ;;  %v4409_v31 = vmul.f32 %v4241_v41, %v4073_v42  ;;  %v1362_v39 = vmul.f32 1.442695, %v6375_v28  ;;  %v1701_v57 = vmul.f32 10.0, %v693_v56 }
  0xe2   : > { %v4728_v10 = vmul.f32 %v7041_v17, %v8715_v3  ;;  %v2856_v8 = vadd.f32 1.0, %v2688_v43  ;;  %v1718_v44 = vmul.f32 10.0, %v710_v54  ;;  %v431_v0 = vsub.f32 %v8572_v47, %v8415_v25 }
  0xe3   : > { %v7043_v5 = vpop.eup %7042  ;;  %6700 = vmatmul.msk.f32.gmra.mxu2 %vm4873_vm6, %v3529_v60  ;;  %7050 = vrcp.f32 %v4409_v31  ;;  %v6560_v20 = vclamps-f32 %v1701_v57, 30.0  ;;  %v451_v22 = vsub.f32 %v8599_v6, %v8415_v25  ;;  %v711_v29 = vsub.f32 %v8602_v11, %v8499_v33 }
  0xe4   : > { %v7045_v4 = vpop.eup %7044  ;;  %5267 = vmatpush.xpose.msrb.mxu0 %v4728_v10  ;;  %v3192_v3 = vmul.f32 %v3024_v34, %v2856_v8  ;;  %v2540_v53 = vmul.f32 0.22140276, %v7043_v5  ;;  %v2708_v26 = vmul.f32 1.105171, %v7043_v5  ;;  %v3044_v16 = vadd.f32 1.105171, %v7043_v5 }
  0xe5   : > { %v7047_v37 = vpop.eup %7046  ;;  %v3738_v21 = vmul.f32 0.22140276, %v7045_v4  ;;  %v3906_v36 = vmul.f32 1.105171, %v7045_v4  ;;  %v4242_v9 = vadd.f32 1.105171, %v7045_v4  ;;  %7052 = vpow2.f32 %v1362_v39 }
  0xe6   : > { %v7049_v23 = vpop.eup %7048  ;;  %7054 = vrcp.f32 %v3192_v3  ;;  %v2876_v51 = vadd.f32 1.0, %v2708_v26  ;;  %v3718_v40 = vmul.f32 0.22140276, %v7047_v37  ;;  %v3886_v32 = vmul.f32 1.105171, %v7047_v37 }
  0xe7   : > { %v4074_v35 = vadd.f32 1.0, %v3906_v36  ;;  %v4222_v63 = vadd.f32 1.105171, %v7047_v37  ;;  %v8738_v1 = vmul.f32 0.22140276, %v7049_v23  ;;  %v6577_v41 = vclamps-f32 %v1718_v44, 30.0 }
  0xe8   : > { %v3212_v62 = vmul.f32 %v3044_v16, %v2876_v51  ;;  %v4054_v38 = vadd.f32 1.0, %v3886_v32  ;;  %v2690_v28 = vmul.f32 1.105171, %v7049_v23  ;;  %v3026_v18 = vadd.f32 1.105171, %v7049_v23 }
  0xe9   : > { %v7051_v42 = vpop.eup %7050  ;;  %v4410_v56 = vmul.f32 %v4242_v9, %v4074_v35  ;;  %v2236_v54 = vmul.f32 1.442695, %v6560_v20  ;;  %v2270_v45 = vmul.f32 1.442695, %v6577_v41  ;;  %v843_v43 = vmul.f32 10.0, %v431_v0 }
  0xea   : > { %v4745_v34 = vmul.f32 %v7051_v42, %v8719_v12  ;;  %7056 = vrcp.f32 %v3212_v62  ;;  %v4390_v17 = vmul.f32 %v4222_v63, %v4054_v38  ;;  %v2858_v60 = vadd.f32 1.0, %v2690_v28 }
  0xeb   : > { %v7053_v31 = vpop.eup %7052  ;;  %7058 = vrcp.f32 %v4410_v56  ;;  %v6374_v39 = vclamps-f32 %v843_v43, 30.0  ;;  %v863_v57 = vmul.f32 10.0, %v451_v22  ;;  %v1719_v10 = vmul.f32 10.0, %v711_v29 }
  0xec   : > { %v7055_v8 = vpop.eup %7054  ;;  %5344 = vmatpush.xpose.msrb.mxu2 %v4745_v34  ;;  %7060 = vrcp.f32 %v4390_v17  ;;  %v3194_v44 = vmul.f32 %v3026_v18, %v2858_v60  ;;  %v8741_v5 = vmul.f32 0.22140276, %v7053_v31  ;;  %v2692_v4 = vmul.f32 1.105171, %v7053_v31 }
  0xed   : > { %v3528_v20 = vmul.f32 %v7055_v8, %v8726_v52  ;;  %v3028_v0 = vadd.f32 1.105171, %v7053_v31  ;;  %7062 = vpow2.f32 %v2236_v54  ;;  %v1360_v12 = vmul.f32 1.442695, %v6374_v39 }
  0xee   : > { %7064 = vrcp.f32 %v3194_v44  ;;  %v2860_v3 = vadd.f32 1.0, %v2692_v4  ;;  %v6394_v26 = vclamps-f32 %v863_v57, 30.0  ;;  %v6578_v16 = vclamps-f32 %v1719_v10, 30.0 }
  0xef   : > { %5167 = vmatmul.f32.gmra.mxu1 %v3528_v20  ;;  %7066 = vpow2.f32 %v2270_v45  ;;  %v691_v22 = vsub.f32 %v8605_v27, %v8499_v33  ;;  %v433_v29 = vsub.f32 %v8549_v7, %v8413_v24  ;;  %v435_v37 = vsub.f32 %v8556_v49, %v8413_v24 }
  0xf0   : > { %v7057_v36 = vpop.eup %7056  ;;  %v3196_v52 = vmul.f32 %v3028_v0, %v2860_v3  ;;  %7068 = vpow2.f32 %v1360_v12  ;;  %v1400_v9 = vmul.f32 1.442695, %v6394_v26  ;;  %v2272_v23 = vmul.f32 1.442695, %v6578_v16 }
  0xf1   : > { %v7059_v51 = vpop.eup %7058  ;;  %v3548_v32 = vmul.f32 %v7057_v36, %v2540_v53  ;;  %v1699_v35 = vmul.f32 10.0, %v691_v22  ;;  %v845_v63 = vmul.f32 10.0, %v433_v29  ;;  %v847_v41 = vmul.f32 10.0, %v435_v37 }
  0xf2   : > { %v7061_v62 = vpop.eup %7060  ;;  %v4746_v38 = vmul.f32 %v7059_v51, %v3738_v21  ;;  %7070 = vrcp.f32 %v3196_v52  ;;  %v690_v28 = vsub.f32 %v8593_v48, %v8499_v33  ;;  %v707_v18 = vsub.f32 %v8584_v55, %v8514_v50 }
  0xf3   : > { %v7063_v42 = vpop.eup %7062  ;;  %5243 = vmatmul.f32.gmra.mxu3 %v3548_v32  ;;  %v4726_v56 = vmul.f32 %v7061_v62, %v3718_v40  ;;  %7072 = vpow2.f32 %v1400_v9  ;;  %v6558_v54 = vclamps-f32 %v1699_v35, 30.0  ;;  %v6376_v45 = vclamps-f32 %v845_v63, 30.0 }
  0xf4   : > { %v7065_v43 = vpop.eup %7064  ;;  %5382 = vmatpush.xpose.msrb.mxu3 %v4746_v38  ;;  %v8754_v53 = vmul.f32 0.22140276, %v7063_v42  ;;  %v3885_v34 = vmul.f32 1.105171, %v7063_v42  ;;  %v4221_v17 = vadd.f32 1.105171, %v7063_v42  ;;  %7074 = vpow2.f32 %v2272_v23 }
  0xf5   : > { %v7067_v21 = vpop.eup %7066  ;;  %5306 = vmatpush.xpose.msrb.mxu1 %v4726_v56  ;;  %v3530_v60 = vmul.f32 %v7065_v43, %v8738_v1  ;;  %v2232_v31 = vmul.f32 1.442695, %v6558_v54  ;;  %v1364_v39 = vmul.f32 1.442695, %v6376_v45  ;;  %v6378_v57 = vclamps-f32 %v847_v41, 30.0 }
  0xf6   : > { %v7069_v10 = vpop.eup %7068  ;;  %v4053_v8 = vadd.f32 1.0, %v3885_v34  ;;  %v3734_v40 = vmul.f32 0.22140276, %v7067_v21  ;;  %v3902_v44 = vmul.f32 1.105171, %v7067_v21  ;;  %v1698_v4 = vmul.f32 10.0, %v690_v28 }
  0xf7   : > { %5132 = vmatmul.f32.gmra.mxu0 %v3530_v60  ;;  %v4238_v20 = vadd.f32 1.105171, %v7067_v21  ;;  %v2523_v0 = vmul.f32 0.22140276, %v7069_v10  ;;  %v2691_v12 = vmul.f32 1.105171, %v7069_v10  ;;  %7076 = vpow2.f32 %v2232_v31 }
  0xf8   : > { %v7071_v3 = vpop.eup %7070  ;;  %v4389_v26 = vmul.f32 %v4221_v17, %v4053_v8  ;;  %v4070_v16 = vadd.f32 1.0, %v3902_v44  ;;  %v3027_v22 = vadd.f32 1.105171, %v7069_v10  ;;  %7078 = vpow2.f32 %v1364_v39 }
  0xf9   : > { %v7073_v29 = vpop.eup %7072  ;;  %v3532_v1 = vmul.f32 %v7071_v3, %v8741_v5  ;;  %v2859_v37 = vadd.f32 1.0, %v2691_v12  ;;  %v1368_v36 = vmul.f32 1.442695, %v6378_v57  ;;  %v6557_v52 = vclamps-f32 %v1698_v4, 30.0 }
  0xfa   : > { %v7075_v9 = vpop.eup %7074  ;;  %7080 = vrcp.f32 %v4389_v26  ;;  %v4406_v23 = vmul.f32 %v4238_v20, %v4070_v16  ;;  %v2543_v51 = vmul.f32 0.22140276, %v7073_v29  ;;  %v2711_v32 = vmul.f32 1.105171, %v7073_v29 }
  0xfb   : > { %6701 = vmatmul.msk.f32.gmra.mxu2 %vm4873_vm6, %v3532_v1  ;;  %v3195_v35 = vmul.f32 %v3027_v22, %v2859_v37  ;;  %v3047_v63 = vadd.f32 1.105171, %v7073_v29  ;;  %v3735_v41 = vmul.f32 0.22140276, %v7075_v9  ;;  %v3903_v62 = vmul.f32 1.105171, %v7075_v9 }
  0xfc   : > { %7082 = vrcp.f32 %v4406_v23  ;;  %v2879_v38 = vadd.f32 1.0, %v2711_v32  ;;  %v4239_v28 = vadd.f32 1.105171, %v7075_v9  ;;  %v2230_v42 = vmul.f32 1.442695, %v6557_v52 }
  0xfd   : > { %v7077_v5 = vpop.eup %7076  ;;  %7084 = vrcp.f32 %v3195_v35  ;;  %v4071_v56 = vadd.f32 1.0, %v3903_v62  ;;  %v1715_v54 = vmul.f32 10.0, %v707_v18  ;;  %v434_v45 = vsub.f32 %v8572_v47, %v8413_v24 }
  0xfe   : > { %v7079_v43 = vpop.eup %7078  ;;  %v3215_v34 = vmul.f32 %v3047_v63, %v2879_v38  ;;  %v8762_v17 = vmul.f32 0.22140276, %v7077_v5  ;;  %v3883_v21 = vmul.f32 1.105171, %v7077_v5  ;;  %v4219_v60 = vadd.f32 1.105171, %v7077_v5 }
  0xff   : > { %v4407_v31 = vmul.f32 %v4239_v28, %v4071_v56  ;;  %v8764_v39 = vmul.f32 0.22140276, %v7079_v43  ;;  %v2693_v57 = vmul.f32 1.105171, %v7079_v43  ;;  %v3029_v10 = vadd.f32 1.105171, %v7079_v43 }
 0x100   : > { %v7081_v8 = vpop.eup %7080  ;;  %7086 = vrcp.f32 %v3215_v34  ;;  %v4051_v44 = vadd.f32 1.0, %v3883_v21  ;;  %v6574_v4 = vclamps-f32 %v1715_v54, 30.0  ;;  %v846_v20 = vmul.f32 10.0, %v434_v45 }
 0x101   : > { %v4725_v18 = vmul.f32 %v7081_v8, %v8754_v53  ;;  %7088 = vrcp.f32 %v4407_v31  ;;  %v2861_v12 = vadd.f32 1.0, %v2693_v57  ;;  %v454_v3 = vsub.f32 %v8599_v6, %v8413_v24 }
 0x102   : > { %v7083_v26 = vpop.eup %7082  ;;  %v4387_v16 = vmul.f32 %v4219_v60, %v4051_v44  ;;  %7090 = vpow2.f32 %v1368_v36  ;;  %v2264_v22 = vmul.f32 1.442695, %v6574_v4  ;;  %v6377_v29 = vclamps-f32 %v846_v20, 30.0 }
 0x103   : > { %v7085_v1 = vpop.eup %7084  ;;  %5268 = vmatpush.xpose.msrb.mxu0 %v4725_v18  ;;  %v4742_v37 = vmul.f32 %v7083_v26, %v3734_v40  ;;  %v3197_v52 = vmul.f32 %v3029_v10, %v2861_v12  ;;  %7092 = vpow2.f32 %v2230_v42  ;;  %v866_v9 = vmul.f32 10.0, %v454_v3 }
 0x104   : > { %v3531_v23 = vmul.f32 %v7085_v1, %v2523_v0  ;;  %7094 = vrcp.f32 %v4387_v16  ;;  %v1366_v32 = vmul.f32 1.442695, %v6377_v29  ;;  %v708_v53 = vsub.f32 %v8602_v11, %v8514_v50 }
 0x105   : > { %5345 = vmatpush.xpose.msrb.mxu2 %v4742_v37  ;;  %7096 = vrcp.f32 %v3197_v52  ;;  %v6397_v35 = vclamps-f32 %v866_v9, 30.0  ;;  %v688_v36 = vsub.f32 %v8605_v27, %v8514_v50  ;;  %v436_v63 = vsub.f32 %v8549_v7, %v8401_v19 }
 0x106   : > { %v7087_v62 = vpop.eup %7086  ;;  %5170 = vmatmul.f32.gmra.mxu1 %v3531_v23  ;;  %7098 = vpow2.f32 %v2264_v22  ;;  %v1716_v40 = vmul.f32 10.0, %v708_v53  ;;  %v438_v0 = vsub.f32 %v8556_v49, %v8401_v19  ;;  %v687_v38 = vsub.f32 %v8593_v48, %v8514_v50 }
 0x107   : > { %v7089_v28 = vpop.eup %7088  ;;  %v3551_v42 = vmul.f32 %v7087_v62, %v2543_v51  ;;  %7100 = vpow2.f32 %v1366_v32  ;;  %v1406_v5 = vmul.f32 1.442695, %v6397_v35  ;;  %v1696_v56 = vmul.f32 10.0, %v688_v36 }
 0x108   : > { %v7091_v54 = vpop.eup %7090  ;;  %v4743_v45 = vmul.f32 %v7089_v28, %v3735_v41  ;;  %v6575_v43 = vclamps-f32 %v1716_v40, 30.0  ;;  %v848_v34 = vmul.f32 10.0, %v436_v63  ;;  %v850_v7 = vmul.f32 10.0, %v438_v0 }
 0x109   : > { %v7093_v21 = vpop.eup %7092  ;;  %5246 = vmatmul.f32.gmra.mxu3 %v3551_v42  ;;  %v2527_v60 = vmul.f32 0.22140276, %v7091_v54  ;;  %v2695_v31 = vmul.f32 1.105171, %v7091_v54  ;;  %v3031_v57 = vadd.f32 1.105171, %v7091_v54  ;;  %7102 = vpow2.f32 %v1406_v5 }
 0x10a   : > { %v7095_v49 = vpop.eup %7094  ;;  %5383 = vmatpush.xpose.msrb.mxu3 %v4743_v45  ;;  %v3714_v10 = vmul.f32 0.22140276, %v7093_v21  ;;  %v3882_v8 = vmul.f32 1.105171, %v7093_v21  ;;  %v4218_v44 = vadd.f32 1.105171, %v7093_v21  ;;  %v704_v51 = vsub.f32 %v8584_v55, %v8512_v13 }
 0x10b   : > { %v7097_v4 = vpop.eup %7096  ;;  %v4723_v41 = vmul.f32 %v7095_v49, %v8762_v17  ;;  %v2863_v20 = vadd.f32 1.0, %v2695_v31  ;;  %v2266_v18 = vmul.f32 1.442695, %v6575_v43  ;;  %v6555_v12 = vclamps-f32 %v1696_v56, 30.0 }
 0x10c   : > { %v7099_v3 = vpop.eup %7098  ;;  %v3533_v26 = vmul.f32 %v7097_v4, %v8764_v39  ;;  %v4050_v16 = vadd.f32 1.0, %v3882_v8  ;;  %v6379_v22 = vclamps-f32 %v848_v34, 30.0  ;;  %v6381_v29 = vclamps-f32 %v850_v7, 30.0 }
 0x10d   : > { %v7101_v1 = vpop.eup %7100  ;;  %5307 = vmatpush.xpose.msrb.mxu1 %v4723_v41  ;;  %v3199_v37 = vmul.f32 %v3031_v57, %v2863_v20  ;;  %v3731_v52 = vmul.f32 0.22140276, %v7099_v3  ;;  %v3899_v9 = vmul.f32 1.105171, %v7099_v3  ;;  %v4235_v23 = vadd.f32 1.105171, %v7099_v3 }
 0x10e   : > { %5135 = vmatmul.f32.gmra.mxu0 %v3533_v26  ;;  %v4386_v55 = vmul.f32 %v4218_v44, %v4050_v16  ;;  %v2526_v32 = vmul.f32 0.22140276, %v7101_v1  ;;  %v2694_v53 = vmul.f32 1.105171, %v7101_v1  ;;  %v3030_v17 = vadd.f32 1.105171, %v7101_v1 }
 0x10f   : > { %v7103_v35 = vpop.eup %7102  ;;  %7104 = vrcp.f32 %v3199_v37  ;;  %v4067_v36 = vadd.f32 1.0, %v3899_v9  ;;  %v2226_v63 = vmul.f32 1.442695, %v6555_v12  ;;  %v1370_v62 = vmul.f32 1.442695, %v6379_v22 }
 0x110   : > { %7106 = vrcp.f32 %v4386_v55  ;;  %v2862_v39 = vadd.f32 1.0, %v2694_v53  ;;  %v8783_v40 = vmul.f32 0.22140276, %v7103_v35  ;;  %v2714_v0 = vmul.f32 1.105171, %v7103_v35 }
 0x111   : > { %v4403_v28 = vmul.f32 %v4235_v23, %v4067_v36  ;;  %v3050_v42 = vadd.f32 1.105171, %v7103_v35  ;;  %7108 = vpow2.f32 %v2266_v18  ;;  %v1374_v5 = vmul.f32 1.442695, %v6381_v29 }
 0x112   : > { %v3198_v56 = vmul.f32 %v3030_v17, %v2862_v39  ;;  %v2882_v54 = vadd.f32 1.0, %v2714_v0  ;;  %7110 = vpow2.f32 %v2226_v63  ;;  %v1695_v45 = vmul.f32 10.0, %v687_v38 }
 0x113   : > { %7112 = vrcp.f32 %v4403_v28  ;;  %v1712_v43 = vmul.f32 10.0, %v704_v51  ;;  %v437_v34 = vsub.f32 %v8572_v47, %v8401_v19  ;;  %v457_v7 = vsub.f32 %v8599_v6, %v8401_v19 }
 0x114   : > { %7114 = vrcp.f32 %v3198_v56  ;;  %v3218_v21 = vmul.f32 %v3050_v42, %v2882_v54  ;;  %v6554_v31 = vclamps-f32 %v1695_v45, 30.0  ;;  %v705_v57 = vsub.f32 %v8602_v11, %v8512_v13 }
 0x115   : > { %v7105_v49 = vpop.eup %7104  ;;  %7116 = vpow2.f32 %v1370_v62  ;;  %v6571_v8 = vclamps-f32 %v1712_v43, 30.0  ;;  %v849_v44 = vmul.f32 10.0, %v437_v34  ;;  %v869_v4 = vmul.f32 10.0, %v457_v7 }
 0x116   : > { %v7107_v38 = vpop.eup %7106  ;;  %v3535_v41 = vmul.f32 %v7105_v49, %v2527_v60  ;;  %7118 = vrcp.f32 %v3218_v21  ;;  %v2224_v51 = vmul.f32 1.442695, %v6554_v31  ;;  %v1713_v20 = vmul.f32 10.0, %v705_v57 }
 0x117   : > { %v7109_v47 = vpop.eup %7108  ;;  %v4722_v18 = vmul.f32 %v7107_v38, %v3714_v10  ;;  %7120 = vpow2.f32 %v1374_v5  ;;  %v2258_v6 = vmul.f32 1.442695, %v6571_v8  ;;  %v6380_v12 = vclamps-f32 %v849_v44, 30.0 }
 0x118   : > { %v7111_v3 = vpop.eup %7110  ;;  %6702 = vmatmul.msk.f32.gmra.mxu2 %vm4873_vm6, %v3535_v41  ;;  %v8793_v11 = vmul.f32 0.22140276, %v7109_v47  ;;  %v3900_v26 = vmul.f32 1.105171, %v7109_v47  ;;  %v4236_v16 = vadd.f32 1.105171, %v7109_v47  ;;  %7122 = vpow2.f32 %v2224_v51 }
 0x119   : > { %v7113_v22 = vpop.eup %7112  ;;  %5269 = vmatpush.xpose.msrb.mxu0 %v4722_v18  ;;  %v8795_v60 = vmul.f32 0.22140276, %v7111_v3  ;;  %v3880_v29 = vmul.f32 1.105171, %v7111_v3  ;;  %v4216_v1 = vadd.f32 1.105171, %v7111_v3  ;;  %7124 = vpow2.f32 %v2258_v6 }
 0x11a   : > { %v7115_v10 = vpop.eup %7114  ;;  %v4739_v37 = vmul.f32 %v7113_v22, %v3731_v52  ;;  %v4068_v9 = vadd.f32 1.0, %v3900_v26  ;;  %v1372_v23 = vmul.f32 1.442695, %v6380_v12  ;;  %v6400_v55 = vclamps-f32 %v869_v4, 30.0 }
 0x11b   : > { %v7117_v53 = vpop.eup %7116  ;;  %v3534_v17 = vmul.f32 %v7115_v10, %v2526_v32  ;;  %v4048_v35 = vadd.f32 1.0, %v3880_v29  ;;  %v6572_v36 = vclamps-f32 %v1713_v20, 30.0  ;;  %v684_v63 = vsub.f32 %v8593_v48, %v8512_v13 }
 0x11c   : > { %v7119_v62 = vpop.eup %7118  ;;  %5346 = vmatpush.xpose.msrb.mxu2 %v4739_v37  ;;  %v4404_v39 = vmul.f32 %v4236_v16, %v4068_v9  ;;  %v8799_v0 = vmul.f32 0.22140276, %v7117_v53  ;;  %v2696_v28 = vmul.f32 1.105171, %v7117_v53  ;;  %v3032_v42 = vadd.f32 1.105171, %v7117_v53 }
 0x11d   : > { %v7121_v5 = vpop.eup %7120  ;;  %5173 = vmatmul.f32.gmra.mxu1 %v3534_v17  ;;  %v3554_v52 = vmul.f32 %v7119_v62, %v8783_v40  ;;  %v4384_v56 = vmul.f32 %v4216_v1, %v4048_v35  ;;  %7126 = vpow2.f32 %v1372_v23  ;;  %v1412_v54 = vmul.f32 1.442695, %v6400_v55 }
 0x11e   : > { %v7123_v32 = vpop.eup %7122  ;;  %7128 = vrcp.f32 %v4404_v39  ;;  %v2864_v45 = vadd.f32 1.0, %v2696_v28  ;;  %v8802_v43 = vmul.f32 0.22140276, %v7121_v5  ;;  %v2698_v48 = vmul.f32 1.105171, %v7121_v5 }
 0x11f   : > { %v7125_v34 = vpop.eup %7124  ;;  %5249 = vmatmul.f32.gmra.mxu3 %v3554_v52  ;;  %7130 = vrcp.f32 %v4384_v56  ;;  %v3034_v7 = vadd.f32 1.105171, %v7121_v5  ;;  %v3711_v21 = vmul.f32 0.22140276, %v7123_v32  ;;  %v3879_v31 = vmul.f32 1.105171, %v7123_v32 }
 0x120   : > { %v3200_v57 = vmul.f32 %v3032_v42, %v2864_v45  ;;  %v2866_v49 = vadd.f32 1.0, %v2698_v48  ;;  %v4215_v8 = vadd.f32 1.105171, %v7123_v32  ;;  %v8804_v44 = vmul.f32 0.22140276, %v7125_v34 }
 0x121   : > { %v4047_v40 = vadd.f32 1.0, %v3879_v31  ;;  %v3896_v4 = vmul.f32 1.105171, %v7125_v34  ;;  %v4232_v38 = vadd.f32 1.105171, %v7125_v34  ;;  %7132 = vpow2.f32 %v1412_v54 }
 0x122   : > { %7134 = vrcp.f32 %v3200_v57  ;;  %v3202_v41 = vmul.f32 %v3034_v7, %v2866_v49  ;;  %v2260_v51 = vmul.f32 1.442695, %v6572_v36  ;;  %v1692_v20 = vmul.f32 10.0, %v684_v63  ;;  %v8166_v36 = vld [vmem:[%s8373_s25] sm:$0xff] }
 0x123   : > { %v7127_v47 = vpop.eup %7126  ;;  %v4383_v18 = vmul.f32 %v4215_v8, %v4047_v40  ;;  %v4064_v6 = vadd.f32 1.0, %v3896_v4  ;;  %v685_v12 = vsub.f32 %v8605_v27, %v8512_v13  ;;  %v8809_v3 = vperm.slane %v8586_v61, 1  ;;  %v8167_v8 = vld [vmem:[%s8379_s23] sm:$0xff] }
 0x124   : > { %v7129_v26 = vpop.eup %7128  ;;  %7136 = vrcp.f32 %v3202_v41  ;;  %v8811_v16 = vmul.f32 0.22140276, %v7127_v47  ;;  %v2697_v22 = vmul.f32 1.105171, %v7127_v47  ;;  %v3033_v29 = vadd.f32 1.105171, %v7127_v47 }
 0x125   : > { %v7131_v1 = vpop.eup %7130  ;;  %v4740_v10 = vmul.f32 %v7129_v26, %v8793_v11  ;;  %7138 = vrcp.f32 %v4383_v18  ;;  %v4400_v37 = vmul.f32 %v4232_v38, %v4064_v6  ;;  %v6551_v9 = vclamps-f32 %v1692_v20, 30.0 }
 0x126   : > { %v4720_v23 = vmul.f32 %v7131_v1, %v8795_v60  ;;  %v2865_v55 = vadd.f32 1.0, %v2697_v22  ;;  %7140 = vpow2.f32 %v2260_v51  ;;  %v1693_v27 = vmul.f32 10.0, %v685_v12 }
 0x127   : > { %v7133_v53 = vpop.eup %7132  ;;  %5384 = vmatpush.xpose.msrb.mxu3 %v4740_v10  ;;  %7142 = vrcp.f32 %v4400_v37  ;;  %v2218_v17 = vmul.f32 1.442695, %v6551_v9  ;;  %v440_v35 = vsub.f32 %v8809_v3, %v8512_v13  ;;  %v341_v63 = vsel %vm340_vm4, %v8166_v36, %v8534_v2 }
 0x128   : > { %v7135_v11 = vpop.eup %7134  ;;  %5308 = vmatpush.xpose.msrb.mxu1 %v4720_v23  ;;  %v3201_v62 = vmul.f32 %v3033_v29, %v2865_v55  ;;  %v8820_v39 = vmul.f32 0.22140276, %v7133_v53  ;;  %v2717_v60 = vmul.f32 1.105171, %v7133_v53  ;;  %v3053_v28 = vadd.f32 1.105171, %v7133_v53 }
 0x129   : > { %v3536_v42 = vmul.f32 %v7135_v11, %v8799_v0  ;;  %7144 = vpow2.f32 %v2218_v17  ;;  %v6552_v5 = vclamps-f32 %v1693_v27, 30.0  ;;  %v852_v52 = vmul.f32 10.0, %v440_v35 }
 0x12a   : > { %v7137_v56 = vpop.eup %7136  ;;  %7146 = vrcp.f32 %v3201_v62  ;;  %v2885_v54 = vadd.f32 1.0, %v2717_v60  ;;  %v343_v32 = vsel %vm342_vm5, %v341_v63, %v8539_v58  ;;  %v599_v40 = vsel %vm345_vm7, %v8167_v8, %v8397_v14 }
 0x12b   : > { %v7139_v45 = vpop.eup %7138  ;;  %5138 = vmatmul.f32.gmra.mxu0 %v3536_v42  ;;  %v3538_v48 = vmul.f32 %v7137_v56, %v8802_v43  ;;  %v2220_v34 = vmul.f32 1.442695, %v6552_v5  ;;  %v6383_v7 = vclamps-f32 %v852_v52, 30.0  ;;  %v8826_v31 = vrot.slane %v343_v32, 2 }
 0x12c   : > { %v7141_v0 = vpop.eup %7140  ;;  %v4719_v57 = vmul.f32 %v7139_v45, %v3711_v21  ;;  %v3221_v49 = vmul.f32 %v3053_v28, %v2885_v54  ;;  %v600_v6 = vsel %vm347_vm8, %v599_v40, %v8399_v15  ;;  %v8840_v12 = vperm.slane %v8586_v61, 2 }
 0x12d   : > { %v7143_v4 = vpop.eup %7142  ;;  %6703 = vmatmul.msk.f32.gmra.mxu2 %vm4873_vm6, %v3538_v48  ;;  %v3729_v38 = vmul.f32 0.22140276, %v7141_v0  ;;  %v3897_v41 = vmul.f32 1.105171, %v7141_v0  ;;  %v4233_v51 = vadd.f32 1.105171, %v7141_v0  ;;  %7148 = vpow2.f32 %v2220_v34 }
 0x12e   : > { %5270 = vmatpush.xpose.msrb.mxu0 %v4719_v57  ;;  %v4736_v43 = vmul.f32 %v7143_v4, %v8804_v44  ;;  %7150 = vrcp.f32 %v3221_v49  ;;  %v1378_v20 = vmul.f32 1.442695, %v6383_v7  ;;  %v8835_v21 = vperm.slane %v8826_v31, 0 }
 0x12f   : > { %v7145_v47 = vpop.eup %7144  ;;  %v4065_v18 = vadd.f32 1.0, %v3897_v41  ;;  %v8843_v26 = vperm.slane %v8826_v31, 1  ;;  %v601_v23 = vrot.slane %v600_v6, 3  ;;  %v441_v61 = vsub.f32 %v8840_v12, %v8512_v13 }
 0x130   : > { %v7147_v22 = vpop.eup %7146  ;;  %5347 = vmatpush.xpose.msrb.mxu2 %v4736_v43  ;;  %v3708_v29 = vmul.f32 0.22140276, %v7145_v47  ;;  %v3876_v44 = vmul.f32 1.105171, %v7145_v47  ;;  %v4212_v1 = vadd.f32 1.105171, %v7145_v47  ;;  %7152 = vpow2.f32 %v1378_v20 }
 0x131   : > { %v3537_v10 = vmul.f32 %v7147_v22, %v8811_v16  ;;  %v4401_v37 = vmul.f32 %v4233_v51, %v4065_v18  ;;  %v460_v9 = vsub.f32 %v8835_v21, %v8512_v13  ;;  %v461_v27 = vsub.f32 %v8843_v26, %v8512_v13 }
 0x132   : > { %v4044_v55 = vadd.f32 1.0, %v3876_v44  ;;  %v443_v53 = vsub.f32 %v8809_v3, %v8514_v50  ;;  %v8854_v16 = vperm.slane %v601_v23, 1  ;;  %v8856_v36 = vperm.slane %v601_v23, 2 }
 0x133   : > { %v7149_v17 = vpop.eup %7148  ;;  %5176 = vmatmul.f32.gmra.mxu1 %v3537_v10  ;;  %7154 = vrcp.f32 %v4401_v37  ;;  %v872_v35 = vmul.f32 10.0, %v460_v9  ;;  %v853_v56 = vmul.f32 10.0, %v441_v61  ;;  %v873_v45 = vmul.f32 10.0, %v461_v27 }
 0x134   : > { %v7151_v63 = vpop.eup %7150  ;;  %v4380_v11 = vmul.f32 %v4212_v1, %v4044_v55  ;;  %v3709_v62 = vmul.f32 0.22140276, %v7149_v17  ;;  %v3877_v60 = vmul.f32 1.105171, %v7149_v17  ;;  %v4213_v28 = vadd.f32 1.105171, %v7149_v17 }
 0x135   : > { %v3557_v42 = vmul.f32 %v7151_v63, %v8820_v39  ;;  %v6403_v5 = vclamps-f32 %v872_v35, 30.0  ;;  %v744_v52 = vsub.f32 %v8854_v16, %v8401_v19  ;;  %v745_v48 = vsub.f32 %v8856_v36, %v8401_v19 }
 0x136   : > { %v7153_v54 = vpop.eup %7152  ;;  %7156 = vrcp.f32 %v4380_v11  ;;  %v4045_v32 = vadd.f32 1.0, %v3877_v60  ;;  %v463_v57 = vsub.f32 %v8835_v21, %v8514_v50  ;;  %v6384_v40 = vclamps-f32 %v853_v56, 30.0 }
 0x137   : > { %5252 = vmatmul.f32.gmra.mxu3 %v3557_v42  ;;  %v2532_v34 = vmul.f32 0.22140276, %v7153_v54  ;;  %v2700_v7 = vmul.f32 1.105171, %v7153_v54  ;;  %v3036_v0 = vadd.f32 1.105171, %v7153_v54  ;;  %v741_v11 = vsub.f32 %v8854_v16, %v8413_v24 }
 0x138   : > { %v4381_v39 = vmul.f32 %v4213_v28, %v4045_v32  ;;  %v1418_v49 = vmul.f32 1.442695, %v6403_v5  ;;  %v1752_v8 = vmul.f32 10.0, %v744_v52  ;;  %v6404_v51 = vclamps-f32 %v873_v45, 30.0 }
 0x139   : > { %v7155_v4 = vpop.eup %7154  ;;  %v2868_v41 = vadd.f32 1.0, %v2700_v7  ;;  %v1753_v43 = vmul.f32 10.0, %v745_v48  ;;  %v8865_v20 = vperm.slane %v601_v23, 0  ;;  %v1380_v6 = vmul.f32 1.442695, %v6384_v40 }
 0x13a   : > { %v4737_v47 = vmul.f32 %v7155_v4, %v3729_v38  ;;  %7158 = vrcp.f32 %v4381_v39  ;;  %v6611_v18 = vclamps-f32 %v1752_v8, 30.0  ;;  %v1420_v44 = vmul.f32 1.442695, %v6404_v51 }
 0x13b   : > { %v3204_v22 = vmul.f32 %v3036_v0, %v2868_v41  ;;  %7160 = vpow2.f32 %v1418_v49  ;;  %v6612_v1 = vclamps-f32 %v1753_v43, 30.0  ;;  %v743_v9 = vsub.f32 %v8865_v20, %v8401_v19 }
 0x13c   : > { %v7157_v10 = vpop.eup %7156  ;;  %5385 = vmatpush.xpose.msrb.mxu3 %v4737_v47  ;;  %v2338_v37 = vmul.f32 1.442695, %v6611_v18  ;;  %7162 = vpow2.f32 %v1380_v6  ;;  %v855_v55 = vmul.f32 10.0, %v443_v53  ;;  %v875_v27 = vmul.f32 10.0, %v463_v57 }
 0x13d   : > { %v4716_v61 = vmul.f32 %v7157_v10, %v3708_v29  ;;  %7164 = vrcp.f32 %v3204_v22  ;;  %v2340_v23 = vmul.f32 1.442695, %v6612_v1  ;;  %v1751_v38 = vmul.f32 10.0, %v743_v9 }
 0x13e   : > { %7166 = vpow2.f32 %v2338_v37  ;;  %v6386_v17 = vclamps-f32 %v855_v55, 30.0  ;;  %v8870_v35 = vperm.slane %v8574_v59, 2  ;;  %v6406_v63 = vclamps-f32 %v875_v27, 30.0 }
 0x13f   : > { %5271 = vmatpush.xpose.msrb.mxu0 %v4716_v61  ;;  %7168 = vpow2.f32 %v1420_v44  ;;  %v444_v60 = vsub.f32 %v8840_v12, %v8514_v50  ;;  %v6610_v29 = vclamps-f32 %v1751_v38, 30.0  ;;  %v8878_v56 = vmul.f32 10.0, %v741_v11 }
 0x140   : > { %v7159_v53 = vpop.eup %7158  ;;  %7170 = vpow2.f32 %v2340_v23  ;;  %v1384_v28 = vmul.f32 1.442695, %v6386_v17  ;;  %v724_v42 = vsub.f32 %v8870_v35, %v8401_v19  ;;  %v1424_v59 = vmul.f32 1.442695, %v6406_v63 }
 0x141   : > { %v7161_v5 = vpop.eup %7160  ;;  %v4717_v52 = vmul.f32 %v7159_v53, %v3709_v62  ;;  %v8880_v54 = vmul.f32 10.0, %v444_v60  ;;  %v2336_v4 = vmul.f32 1.442695, %v6610_v29  ;;  %v464_v6 = vsub.f32 %v8843_v26, %v8514_v50 }
 0x142   : > { %v7163_v32 = vpop.eup %7162  ;;  %v2552_v45 = vmul.f32 0.22140276, %v7161_v5  ;;  %v2720_v48 = vmul.f32 1.105171, %v7161_v5  ;;  %v3056_v7 = vadd.f32 1.105171, %v7161_v5  ;;  %7172 = vpow2.f32 %v1384_v28 }
 0x143   : > { %v7165_v0 = vpop.eup %7164  ;;  %5309 = vmatpush.xpose.msrb.mxu1 %v4717_v52  ;;  %v8882_v57 = vmul.f32 0.22140276, %v7163_v32  ;;  %v2701_v39 = vmul.f32 1.105171, %v7163_v32  ;;  %v3037_v49 = vadd.f32 1.105171, %v7163_v32  ;;  %7174 = vpow2.f32 %v1424_v59 }
 0x144   : > { %v7167_v8 = vpop.eup %7166  ;;  %v3540_v40 = vmul.f32 %v7165_v0, %v2532_v34  ;;  %v2888_v62 = vadd.f32 1.0, %v2720_v48  ;;  %v1732_v41 = vmul.f32 10.0, %v724_v42  ;;  %7176 = vpow2.f32 %v2336_v4 }
 0x145   : > { %v7169_v51 = vpop.eup %7168  ;;  %v3768_v43 = vmul.f32 0.22140276, %v7167_v8  ;;  %v3936_v47 = vmul.f32 1.105171, %v7167_v8  ;;  %v4272_v18 = vadd.f32 1.105171, %v7167_v8 }
 0x146   : > { %v7171_v22 = vpop.eup %7170  ;;  %5272 = vmatmul.f32.vlgmr.msrb.gmra.mxu0 %v3540_v40  ;;  %v3224_v44 = vmul.f32 %v3056_v7, %v2888_v62  ;;  %v2869_v1 = vadd.f32 1.0, %v2701_v39  ;;  %v2553_v10 = vmul.f32 0.22140276, %v7169_v51  ;;  %v2721_v37 = vmul.f32 1.105171, %v7169_v51 }
 0x147   : > { %v4104_v9 = vadd.f32 1.0, %v3936_v47  ;;  %v3057_v55 = vadd.f32 1.105171, %v7169_v51  ;;  %v8886_v61 = vmul.f32 0.22140276, %v7171_v22  ;;  %v6591_v7 = vclamps-f32 %v1732_v41, 30.0 }
 0x148   : > { %v7173_v34 = vpop.eup %7172  ;;  %7178 = vrcp.f32 %v3224_v44  ;;  %v3205_v23 = vmul.f32 %v3037_v49, %v2869_v1  ;;  %v2889_v27 = vadd.f32 1.0, %v2721_v37  ;;  %v3937_v38 = vmul.f32 1.105171, %v7171_v22 }
 0x149   : > { %v7175_v17 = vpop.eup %7174  ;;  %v4440_v63 = vmul.f32 %v4272_v18, %v4104_v9  ;;  %v4273_v11 = vadd.f32 1.105171, %v7171_v22  ;;  %v2535_v60 = vmul.f32 0.22140276, %v7173_v34  ;;  %v2703_v53 = vmul.f32 1.105171, %v7173_v34 }
 0x14a   : > { %7180 = vrcp.f32 %v3205_v23  ;;  %v3225_v29 = vmul.f32 %v3057_v55, %v2889_v27  ;;  %v4105_v28 = vadd.f32 1.0, %v3937_v38  ;;  %v3039_v42 = vadd.f32 1.105171, %v7173_v34  ;;  %v7177_v0 = vpop.eup %7176 }
 0x14b   : > { %7182 = vrcp.f32 %v4440_v63  ;;  %v2871_v5 = vadd.f32 1.0, %v2703_v53  ;;  %v8888_v52 = vmul.f32 0.22140276, %v7175_v17  ;;  %v2723_v59 = vmul.f32 1.105171, %v7175_v17 }
 0x14c   : > { %7184 = vrcp.f32 %v3225_v29  ;;  %v4441_v32 = vmul.f32 %v4273_v11, %v4105_v28  ;;  %v3059_v48 = vadd.f32 1.105171, %v7175_v17  ;;  %v6608_v8 = vclamps-f32 %v8878_v56, 30.0 }
 0x14d   : > { %v3207_v39 = vmul.f32 %v3039_v42, %v2871_v5  ;;  %v2891_v49 = vadd.f32 1.0, %v2723_v59  ;;  %v6387_v40 = vclamps-f32 %v8880_v54, 30.0  ;;  %v8892_v4 = vmul.f32 0.22140276, %v7177_v0 }
 0x14e   : > { %v7179_v62 = vpop.eup %7178  ;;  %7186 = vrcp.f32 %v4441_v32  ;;  %v3935_v51 = vmul.f32 1.105171, %v7177_v0  ;;  %v4271_v47 = vadd.f32 1.105171, %v7177_v0  ;;  %v2298_v44 = vmul.f32 1.442695, %v6591_v7 }
 0x14f   : > { %v3560_v18 = vmul.f32 %v7179_v62, %v2552_v45  ;;  %7188 = vrcp.f32 %v3207_v39  ;;  %v3227_v22 = vmul.f32 %v3059_v48, %v2891_v49  ;;  %v2332_v41 = vmul.f32 1.442695, %v6608_v8 }
 0x150   : > { %v7181_v1 = vpop.eup %7180  ;;  %v4103_v37 = vadd.f32 1.0, %v3935_v51  ;;  %v1386_v9 = vmul.f32 1.442695, %v6387_v40  ;;  %v876_v55 = vmul.f32 10.0, %v464_v6  ;;  %v742_v54 = vsub.f32 %v8856_v36, %v8413_v24 }
 0x151   : > { %v7183_v34 = vpop.eup %7182  ;;  %5348 = vmatmul.f32.vlgmr.msrb.gmra.mxu2 %v3560_v18  ;;  %v3541_v56 = vmul.f32 %v7181_v1, %v8882_v57  ;;  %7190 = vrcp.f32 %v3227_v22  ;;  %v740_v23 = vsub.f32 %v8865_v20, %v8413_v24  ;;  %v446_v29 = vsub.f32 %v8809_v3, %v8499_v33 }
 0x152   : > { %v7185_v45 = vpop.eup %7184  ;;  %v4776_v27 = vmul.f32 %v7183_v34, %v3768_v43  ;;  %v4439_v38 = vmul.f32 %v4271_v47, %v4103_v37  ;;  %7192 = vpow2.f32 %v2298_v44  ;;  %v6407_v17 = vclamps-f32 %v876_v55, 30.0 }
 0x153   : > { %6704 = vmatmul.msk.f32.vlgmr.msrb.gmra.mxu1 %vm4873_vm6, %v3541_v56  ;;  %v3561_v6 = vmul.f32 %v7185_v45, %v2553_v10  ;;  %7194 = vpow2.f32 %v2332_v41  ;;  %v1750_v63 = vmul.f32 10.0, %v742_v54  ;;  %v1748_v11 = vmul.f32 10.0, %v740_v23 }
 0x154   : > { %v7187_v57 = vpop.eup %7186  ;;  %5493 = vmatpush.xpose.msra.mxu2 %v4776_v27  ;;  %7196 = vrcp.f32 %v4439_v38  ;;  %v1426_v53 = vmul.f32 1.442695, %v6407_v17  ;;  %v466_v43 = vsub.f32 %v8835_v21, %v8499_v33  ;;  %v858_v32 = vmul.f32 10.0, %v446_v29 }
 0x155   : > { %v7189_v28 = vpop.eup %7188  ;;  %5386 = vmatmul.f32.vlgmr.msrb.gmra.mxu3 %v3561_v6  ;;  %v4777_v42 = vmul.f32 %v7187_v57, %v8886_v61  ;;  %7198 = vpow2.f32 %v1386_v9  ;;  %v6609_v5 = vclamps-f32 %v1750_v63, 30.0  ;;  %v6607_v10 = vclamps-f32 %v1748_v11, 30.0 }
 0x156   : > { %v3543_v59 = vmul.f32 %v7189_v28, %v2535_v60  ;;  %7200 = vpow2.f32 %v1426_v53  ;;  %v878_v48 = vmul.f32 10.0, %v466_v43  ;;  %v721_v49 = vsub.f32 %v8870_v35, %v8413_v24 }
 0x157   : > { %v7191_v7 = vpop.eup %7190  ;;  %5531 = vmatpush.xpose.msra.mxu3 %v4777_v42  ;;  %v2334_v0 = vmul.f32 1.442695, %v6609_v5  ;;  %v2330_v39 = vmul.f32 1.442695, %v6607_v10  ;;  %v738_v8 = vsub.f32 %v8854_v16, %v8415_v25  ;;  %v6389_v62 = vclamps-f32 %v858_v32, 30.0 }
 0x158   : > { %v7193_v40 = vpop.eup %7192  ;;  %5275 = vmatmul.f32.gmra.mxu0 %v3543_v59  ;;  %v3563_v61 = vmul.f32 %v7191_v7, %v8888_v52  ;;  %v6409_v51 = vclamps-f32 %v878_v48, 30.0  ;;  %v447_v60 = vsub.f32 %v8840_v12, %v8499_v33  ;;  %v1729_v17 = vmul.f32 10.0, %v721_v49 }
 0x159   : > { %v7195_v47 = vpop.eup %7194  ;;  %v3748_v18 = vmul.f32 0.22140276, %v7193_v40  ;;  %v3916_v22 = vmul.f32 1.105171, %v7193_v40  ;;  %v4252_v44 = vadd.f32 1.105171, %v7193_v40  ;;  %7202 = vpow2.f32 %v2334_v0 }
 0x15a   : > { %v7197_v1 = vpop.eup %7196  ;;  %5351 = vmatmul.f32.gmra.mxu2 %v3563_v61  ;;  %v3765_v37 = vmul.f32 0.22140276, %v7195_v47  ;;  %v3933_v41 = vmul.f32 1.105171, %v7195_v47  ;;  %v4269_v9 = vadd.f32 1.105171, %v7195_v47  ;;  %7204 = vpow2.f32 %v2330_v39 }
 0x15b   : > { %v7199_v55 = vpop.eup %7198  ;;  %v4775_v34 = vmul.f32 %v7197_v1, %v8892_v4  ;;  %v4084_v52 = vadd.f32 1.0, %v3916_v22  ;;  %v1390_v56 = vmul.f32 1.442695, %v6389_v62  ;;  %v1430_v54 = vmul.f32 1.442695, %v6409_v51 }
 0x15c   : > { %v7201_v23 = vpop.eup %7200  ;;  %v4101_v45 = vadd.f32 1.0, %v3933_v41  ;;  %v2536_v27 = vmul.f32 0.22140276, %v7199_v55  ;;  %v2704_v38 = vmul.f32 1.105171, %v7199_v55  ;;  %v6588_v42 = vclamps-f32 %v1729_v17, 30.0 }
 0x15d   : > { %5455 = vmatpush.xpose.msra.mxu1 %v4775_v34  ;;  %v4420_v6 = vmul.f32 %v4252_v44, %v4084_v52  ;;  %v3040_v63 = vadd.f32 1.105171, %v7199_v55  ;;  %v2556_v11 = vmul.f32 0.22140276, %v7201_v23  ;;  %v2724_v57 = vmul.f32 1.105171, %v7201_v23 }
 0x15e   : > { %v4437_v53 = vmul.f32 %v4269_v9, %v4101_v45  ;;  %v2872_v29 = vadd.f32 1.0, %v2704_v38  ;;  %v3060_v43 = vadd.f32 1.105171, %v7201_v23  ;;  %7206 = vpow2.f32 %v1390_v56 }
 0x15f   : > { %v7203_v28 = vpop.eup %7202  ;;  %7208 = vrcp.f32 %v4420_v6  ;;  %v2892_v4 = vadd.f32 1.0, %v2724_v57  ;;  %v1746_v5 = vmul.f32 10.0, %v738_v8  ;;  %v2292_v62 = vmul.f32 1.442695, %v6588_v42 }
 0x160   : > { %v7205_v10 = vpop.eup %7204  ;;  %7210 = vrcp.f32 %v4437_v53  ;;  %v3208_v59 = vmul.f32 %v3040_v63, %v2872_v29  ;;  %v3766_v32 = vmul.f32 0.22140276, %v7203_v28  ;;  %v3934_v48 = vmul.f32 1.105171, %v7203_v28 }
 0x161   : > { %v3228_v7 = vmul.f32 %v3060_v43, %v2892_v4  ;;  %v4270_v0 = vadd.f32 1.105171, %v7203_v28  ;;  %v8914_v39 = vmul.f32 0.22140276, %v7205_v10  ;;  %v3932_v49 = vmul.f32 1.105171, %v7205_v10 }
 0x162   : > { %7212 = vrcp.f32 %v3208_v59  ;;  %v4102_v40 = vadd.f32 1.0, %v3934_v48  ;;  %v4268_v61 = vadd.f32 1.105171, %v7205_v10  ;;  %v6605_v47 = vclamps-f32 %v1746_v5, 30.0 }
 0x163   : > { %7214 = vrcp.f32 %v3228_v7  ;;  %v4100_v51 = vadd.f32 1.0, %v3932_v49  ;;  %v859_v22 = vmul.f32 10.0, %v447_v60  ;;  %v467_v1 = vsub.f32 %v8843_v26, %v8499_v33 }
 0x164   : > { %v7207_v44 = vpop.eup %7206  ;;  %v4438_v8 = vmul.f32 %v4270_v0, %v4102_v40  ;;  %7216 = vpow2.f32 %v1430_v54  ;;  %v739_v41 = vsub.f32 %v8856_v36, %v8415_v25  ;;  %v2326_v38 = vmul.f32 1.442695, %v6605_v47 }
 0x165   : > { %v7209_v9 = vpop.eup %7208  ;;  %v4436_v55 = vmul.f32 %v4268_v61, %v4100_v51  ;;  %v8920_v34 = vmul.f32 0.22140276, %v7207_v44  ;;  %v2706_v52 = vmul.f32 1.105171, %v7207_v44  ;;  %v3042_v56 = vadd.f32 1.105171, %v7207_v44 }
 0x166   : > { %v7211_v23 = vpop.eup %7210  ;;  %v4756_v45 = vmul.f32 %v7209_v9, %v3748_v18  ;;  %7218 = vrcp.f32 %v4438_v8  ;;  %v6390_v60 = vclamps-f32 %v859_v22, 30.0  ;;  %v879_v6 = vmul.f32 10.0, %v467_v1 }
 0x167   : > { %v4773_v17 = vmul.f32 %v7211_v23, %v3765_v37  ;;  %7220 = vrcp.f32 %v4436_v55  ;;  %v2874_v54 = vadd.f32 1.0, %v2706_v52  ;;  %v1747_v53 = vmul.f32 10.0, %v739_v41 }
 0x168   : > { %v7213_v63 = vpop.eup %7212  ;;  %5417 = vmatpush.xpose.msra.mxu0 %v4756_v45  ;;  %7222 = vpow2.f32 %v2292_v62  ;;  %v1392_v57 = vmul.f32 1.442695, %v6390_v60  ;;  %v737_v29 = vsub.f32 %v8865_v20, %v8415_v25  ;;  %v6410_v18 = vclamps-f32 %v879_v6, 30.0 }
 0x169   : > { %v7215_v43 = vpop.eup %7214  ;;  %5494 = vmatpush.xpose.msra.mxu2 %v4773_v17  ;;  %v3544_v28 = vmul.f32 %v7213_v63, %v2536_v27  ;;  %v3210_v4 = vmul.f32 %v3042_v56, %v2874_v54  ;;  %7224 = vpow2.f32 %v2326_v38  ;;  %v6606_v37 = vclamps-f32 %v1747_v53, 30.0 }
 0x16a   : > { %v7217_v42 = vpop.eup %7216  ;;  %v3564_v5 = vmul.f32 %v7215_v43, %v2556_v11  ;;  %7226 = vpow2.f32 %v1392_v57  ;;  %v1745_v10 = vmul.f32 10.0, %v737_v29  ;;  %v1432_v49 = vmul.f32 1.442695, %v6410_v18 }
 0x16b   : > { %6705 = vmatmul.msk.f32.gmra.mxu1 %vm4873_vm6, %v3544_v28  ;;  %7228 = vrcp.f32 %v3210_v4  ;;  %v8926_v59 = vmul.f32 0.22140276, %v7217_v42  ;;  %v2726_v48 = vmul.f32 1.105171, %v7217_v42  ;;  %v3062_v7 = vadd.f32 1.105171, %v7217_v42 }
 0x16c   : > { %v7219_v0 = vpop.eup %7218  ;;  %5389 = vmatmul.f32.gmra.mxu3 %v3564_v5  ;;  %v2328_v27 = vmul.f32 1.442695, %v6606_v37  ;;  %v6604_v40 = vclamps-f32 %v1745_v10, 30.0  ;;  %v449_v61 = vsub.f32 %v8809_v3, %v8425_v30  ;;  %v469_v47 = vsub.f32 %v8835_v21, %v8425_v30 }
 0x16d   : > { %v7221_v11 = vpop.eup %7220  ;;  %v4774_v62 = vmul.f32 %v7219_v0, %v3766_v32  ;;  %v2894_v51 = vadd.f32 1.0, %v2726_v48  ;;  %v718_v22 = vsub.f32 %v8870_v35, %v8415_v25  ;;  %7230 = vpow2.f32 %v1432_v49 }
 0x16e   : > { %v7223_v44 = vpop.eup %7222  ;;  %v4772_v8 = vmul.f32 %v7221_v11, %v8914_v39  ;;  %v2324_v1 = vmul.f32 1.442695, %v6604_v40  ;;  %v861_v41 = vmul.f32 10.0, %v449_v61  ;;  %7232 = vpow2.f32 %v2328_v27 }
 0x16f   : > { %v7225_v9 = vpop.eup %7224  ;;  %5532 = vmatpush.xpose.msra.mxu3 %v4774_v62  ;;  %v3230_v55 = vmul.f32 %v3062_v7, %v2894_v51  ;;  %v3745_v52 = vmul.f32 0.22140276, %v7223_v44  ;;  %v3913_v56 = vmul.f32 1.105171, %v7223_v44  ;;  %v4249_v23 = vadd.f32 1.105171, %v7223_v44 }
 0x170   : > { %v7227_v32 = vpop.eup %7226  ;;  %5456 = vmatpush.xpose.msra.mxu1 %v4772_v8  ;;  %v3762_v45 = vmul.f32 0.22140276, %v7225_v9  ;;  %v3930_v38 = vmul.f32 1.105171, %v7225_v9  ;;  %v4266_v60 = vadd.f32 1.105171, %v7225_v9  ;;  %v735_v37 = vsub.f32 %v8854_v16, %v8425_v30 }
 0x171   : > { %v7229_v17 = vpop.eup %7228  ;;  %7234 = vrcp.f32 %v3230_v55  ;;  %v4081_v54 = vadd.f32 1.0, %v3913_v56  ;;  %v2539_v6 = vmul.f32 0.22140276, %v7227_v32  ;;  %v2707_v39 = vmul.f32 1.105171, %v7227_v32 }
 0x172   : > { %v3546_v63 = vmul.f32 %v7229_v17, %v8920_v34  ;;  %v4098_v57 = vadd.f32 1.0, %v3930_v38  ;;  %v3043_v53 = vadd.f32 1.105171, %v7227_v32  ;;  %7236 = vpow2.f32 %v2324_v1 }
 0x173   : > { %v4417_v29 = vmul.f32 %v4249_v23, %v4081_v54  ;;  %v2875_v43 = vadd.f32 1.0, %v2707_v39  ;;  %v6392_v28 = vclamps-f32 %v861_v41, 30.0  ;;  %v881_v4 = vmul.f32 10.0, %v469_v47  ;;  %v7231_v18 = vpop.eup %7230 }
 0x174   : > { %5278 = vmatmul.f32.gmra.mxu0 %v3546_v63  ;;  %v4434_v42 = vmul.f32 %v4266_v60, %v4098_v57  ;;  %v1726_v5 = vmul.f32 10.0, %v718_v22  ;;  %v450_v10 = vsub.f32 %v8840_v12, %v8425_v30  ;;  %v8940_v34 = vmul.f32 0.22140276, %v7231_v18  ;;  %v7233_v0 = vpop.eup %7232 }
 0x175   : > { %7238 = vrcp.f32 %v4417_v29  ;;  %v3211_v48 = vmul.f32 %v3043_v53, %v2875_v43  ;;  %v2727_v7 = vmul.f32 1.105171, %v7231_v18  ;;  %v3063_v49 = vadd.f32 1.105171, %v7231_v18 }
 0x176   : > { %7240 = vrcp.f32 %v4434_v42  ;;  %v1396_v27 = vmul.f32 1.442695, %v6392_v28  ;;  %v6412_v40 = vclamps-f32 %v881_v4, 30.0  ;;  %v8942_v62 = vmul.f32 0.22140276, %v7233_v0 }
 0x177   : > { %v7235_v61 = vpop.eup %7234  ;;  %7242 = vrcp.f32 %v3211_v48  ;;  %v2895_v11 = vadd.f32 1.0, %v2727_v7  ;;  %v3931_v51 = vmul.f32 1.105171, %v7233_v0  ;;  %v4267_v44 = vadd.f32 1.105171, %v7233_v0 }
 0x178   : > { %v7237_v47 = vpop.eup %7236  ;;  %v3566_v22 = vmul.f32 %v7235_v61, %v8926_v59  ;;  %7244 = vpow2.f32 %v1396_v27  ;;  %v1436_v8 = vmul.f32 1.442695, %v6412_v40  ;;  %v6585_v23 = vclamps-f32 %v1726_v5, 30.0 }
 0x179   : > { %v3231_v1 = vmul.f32 %v3063_v49, %v2895_v11  ;;  %v4099_v41 = vadd.f32 1.0, %v3931_v51  ;;  %v8945_v9 = vmul.f32 0.22140276, %v7237_v47  ;;  %v3929_v55 = vmul.f32 1.105171, %v7237_v47 }
 0x17a   : > { %5354 = vmatmul.f32.gmra.mxu2 %v3566_v22  ;;  %v4265_v56 = vadd.f32 1.105171, %v7237_v47  ;;  %7246 = vpow2.f32 %v1436_v8  ;;  %v1743_v32 = vmul.f32 10.0, %v735_v37  ;;  %v862_v54 = vmul.f32 10.0, %v450_v10 }
 0x17b   : > { %v7239_v38 = vpop.eup %7238  ;;  %7248 = vrcp.f32 %v3231_v1  ;;  %v4435_v60 = vmul.f32 %v4267_v44, %v4099_v41  ;;  %v4097_v17 = vadd.f32 1.0, %v3929_v55  ;;  %v2286_v63 = vmul.f32 1.442695, %v6585_v23 }
 0x17c   : > { %v7241_v39 = vpop.eup %7240  ;;  %v4753_v59 = vmul.f32 %v7239_v38, %v3745_v52  ;;  %v6602_v57 = vclamps-f32 %v1743_v32, 30.0  ;;  %v470_v53 = vsub.f32 %v8843_v26, %v8425_v30  ;;  %v6393_v4 = vclamps-f32 %v862_v54, 30.0 }
 0x17d   : > { %v7243_v29 = vpop.eup %7242  ;;  %v4770_v43 = vmul.f32 %v7241_v39, %v3762_v45  ;;  %7250 = vrcp.f32 %v4435_v60  ;;  %v4433_v28 = vmul.f32 %v4265_v56, %v4097_v17  ;;  %v736_v49 = vsub.f32 %v8856_v36, %v8425_v30 }
 0x17e   : > { %v7245_v18 = vpop.eup %7244  ;;  %5418 = vmatpush.xpose.msra.mxu0 %v4753_v59  ;;  %v3547_v42 = vmul.f32 %v7243_v29, %v2539_v6  ;;  %7252 = vpow2.f32 %v2286_v63  ;;  %v2320_v5 = vmul.f32 1.442695, %v6602_v57  ;;  %v882_v37 = vmul.f32 10.0, %v470_v53 }
 0x17f   : > { %5495 = vmatpush.xpose.msra.mxu2 %v4770_v43  ;;  %7254 = vrcp.f32 %v4433_v28  ;;  %v8949_v10 = vmul.f32 0.22140276, %v7245_v18  ;;  %v2709_v52 = vmul.f32 1.105171, %v7245_v18  ;;  %v3045_v48 = vadd.f32 1.105171, %v7245_v18 }
 0x180   : > { %v7247_v7 = vpop.eup %7246  ;;  %6706 = vmatmul.msk.f32.gmra.mxu1 %vm4873_vm6, %v3547_v42  ;;  %7256 = vpow2.f32 %v2320_v5  ;;  %v1398_v45 = vmul.f32 1.442695, %v6393_v4  ;;  %v6413_v0 = vclamps-f32 %v882_v37, 30.0  ;;  %v734_v11 = vsub.f32 %v8865_v20, %v8425_v30 }
 0x181   : > { %v7249_v6 = vpop.eup %7248  ;;  %v2877_v27 = vadd.f32 1.0, %v2709_v52  ;;  %v8955_v40 = vmul.f32 0.22140276, %v7247_v7  ;;  %v2729_v61 = vmul.f32 1.105171, %v7247_v7  ;;  %v1744_v41 = vmul.f32 10.0, %v736_v49 }
 0x182   : > { %v3567_v51 = vmul.f32 %v7249_v6, %v8940_v34  ;;  %v3065_v47 = vadd.f32 1.105171, %v7247_v7  ;;  %7258 = vpow2.f32 %v1398_v45  ;;  %v1438_v22 = vmul.f32 1.442695, %v6413_v0 }
 0x183   : > { %v7251_v44 = vpop.eup %7250  ;;  %v3213_v8 = vmul.f32 %v3045_v48, %v2877_v27  ;;  %v2897_v1 = vadd.f32 1.0, %v2729_v61  ;;  %v1742_v55 = vmul.f32 10.0, %v734_v11  ;;  %v452_v32 = vsub.f32 %v8809_v3, %v8415_v25 }
 0x184   : > { %v7253_v56 = vpop.eup %7252  ;;  %5392 = vmatmul.f32.gmra.mxu3 %v3567_v51  ;;  %v4771_v23 = vmul.f32 %v7251_v44, %v8942_v62  ;;  %7260 = vpow2.f32 %v1438_v22  ;;  %v472_v38 = vsub.f32 %v8835_v21, %v8415_v25  ;;  %v6603_v57 = vclamps-f32 %v1744_v41, 30.0 }
 0x185   : > { %v7255_v34 = vpop.eup %7254  ;;  %7262 = vrcp.f32 %v3213_v8  ;;  %v3233_v60 = vmul.f32 %v3065_v47, %v2897_v1  ;;  %v3742_v17 = vmul.f32 0.22140276, %v7253_v56  ;;  %v3910_v54 = vmul.f32 1.105171, %v7253_v56 }
 0x186   : > { %v7257_v39 = vpop.eup %7256  ;;  %5533 = vmatpush.xpose.msra.mxu3 %v4771_v23  ;;  %v4769_v59 = vmul.f32 %v7255_v34, %v8945_v9  ;;  %v4246_v63 = vadd.f32 1.105171, %v7253_v56  ;;  %v6601_v53 = vclamps-f32 %v1742_v55, 30.0  ;;  %v2322_v18 = vmul.f32 1.442695, %v6603_v57 }
 0x187   : > { %7264 = vrcp.f32 %v3233_v60  ;;  %v4078_v62 = vadd.f32 1.0, %v3910_v54  ;;  %v3759_v29 = vmul.f32 0.22140276, %v7257_v39  ;;  %v3927_v43 = vmul.f32 1.105171, %v7257_v39 }
 0x188   : > { %v7259_v28 = vpop.eup %7258  ;;  %5457 = vmatpush.xpose.msra.mxu1 %v4769_v59  ;;  %v4263_v4 = vadd.f32 1.105171, %v7257_v39  ;;  %v2318_v42 = vmul.f32 1.442695, %v6601_v53  ;;  %v715_v5 = vsub.f32 %v8870_v35, %v8425_v30  ;;  %7266 = vpow2.f32 %v2322_v18 }
 0x189   : > { %v4414_v37 = vmul.f32 %v4246_v63, %v4078_v62  ;;  %v4095_v52 = vadd.f32 1.0, %v3927_v43  ;;  %v2542_v48 = vmul.f32 0.22140276, %v7259_v28  ;;  %v2710_v7 = vmul.f32 1.105171, %v7259_v28 }
 0x18a   : > { %v7261_v9 = vpop.eup %7260  ;;  %v3046_v45 = vadd.f32 1.105171, %v7259_v28  ;;  %v864_v0 = vmul.f32 10.0, %v452_v32  ;;  %v884_v49 = vmul.f32 10.0, %v472_v38  ;;  %v1723_v23 = vmul.f32 10.0, %v715_v5 }
 0x18b   : > { %v7263_v6 = vpop.eup %7262  ;;  %7268 = vrcp.f32 %v4414_v37  ;;  %v4431_v27 = vmul.f32 %v4263_v4, %v4095_v52  ;;  %v2878_v61 = vadd.f32 1.0, %v2710_v7  ;;  %v8968_v11 = vmul.f32 0.22140276, %v7261_v9 }
 0x18c   : > { %v3549_v51 = vmul.f32 %v7263_v6, %v8949_v10  ;;  %v2730_v47 = vmul.f32 1.105171, %v7261_v9  ;;  %v3066_v22 = vadd.f32 1.105171, %v7261_v9  ;;  %7270 = vpow2.f32 %v2318_v42 }
 0x18d   : > { %v7265_v44 = vpop.eup %7264  ;;  %7272 = vrcp.f32 %v4431_v27  ;;  %v3214_v8 = vmul.f32 %v3046_v45, %v2878_v61  ;;  %v6395_v1 = vclamps-f32 %v864_v0, 30.0  ;;  %v6415_v41 = vclamps-f32 %v884_v49, 30.0 }
 0x18e   : > { %5281 = vmatmul.f32.gmra.mxu0 %v3549_v51  ;;  %v3569_v55 = vmul.f32 %v7265_v44, %v8955_v40  ;;  %v2898_v56 = vadd.f32 1.0, %v2730_v47  ;;  %v732_v32 = vsub.f32 %v8854_v16, %v8499_v33  ;;  %v453_v10 = vsub.f32 %v8840_v12, %v8415_v25  ;;  %v7267_v60 = vpop.eup %7266 }
 0x18f   : > { %7274 = vrcp.f32 %v3214_v8  ;;  %v1402_v38 = vmul.f32 1.442695, %v6395_v1  ;;  %v1442_v34 = vmul.f32 1.442695, %v6415_v41  ;;  %v6582_v39 = vclamps-f32 %v1723_v23, 30.0 }
 0x190   : > { %5357 = vmatmul.f32.gmra.mxu2 %v3569_v55  ;;  %v3234_v54 = vmul.f32 %v3066_v22, %v2898_v56  ;;  %v1740_v59 = vmul.f32 10.0, %v732_v32  ;;  %v473_v63 = vsub.f32 %v8843_v26, %v8415_v25  ;;  %v8978_v57 = vmul.f32 0.22140276, %v7267_v60 }
 0x191   : > { %v7269_v40 = vpop.eup %7268  ;;  %v3928_v53 = vmul.f32 1.105171, %v7267_v60  ;;  %v4264_v62 = vadd.f32 1.105171, %v7267_v60  ;;  %7276 = vpow2.f32 %v1402_v38  ;;  %v2280_v4 = vmul.f32 1.442695, %v6582_v39 }
 0x192   : > { %v7271_v43 = vpop.eup %7270  ;;  %v4750_v28 = vmul.f32 %v7269_v40, %v3742_v17  ;;  %7278 = vrcp.f32 %v3234_v54  ;;  %v6599_v18 = vclamps-f32 %v1740_v59, 30.0  ;;  %v865_v27 = vmul.f32 10.0, %v453_v10 }
 0x193   : > { %v7273_v42 = vpop.eup %7272  ;;  %v4096_v5 = vadd.f32 1.0, %v3928_v53  ;;  %v8980_v37 = vmul.f32 0.22140276, %v7271_v43  ;;  %v3926_v52 = vmul.f32 1.105171, %v7271_v43  ;;  %7280 = vpow2.f32 %v1442_v34 }
 0x194   : > { %5419 = vmatpush.xpose.msra.mxu0 %v4750_v28  ;;  %v4767_v7 = vmul.f32 %v7273_v42, %v3759_v29  ;;  %v4262_v9 = vadd.f32 1.105171, %v7271_v43  ;;  %7282 = vpow2.f32 %v2280_v4  ;;  %v2314_v45 = vmul.f32 1.442695, %v6599_v18 }
 0x195   : > { %v7275_v0 = vpop.eup %7274  ;;  %v4432_v49 = vmul.f32 %v4264_v62, %v4096_v5  ;;  %v4094_v6 = vadd.f32 1.0, %v3926_v52  ;;  %v885_v61 = vmul.f32 10.0, %v473_v63  ;;  %v733_v51 = vsub.f32 %v8856_v36, %v8499_v33 }
 0x196   : > { %5496 = vmatpush.xpose.msra.mxu2 %v4767_v7  ;;  %v3550_v17 = vmul.f32 %v7275_v0, %v2542_v48  ;;  %7284 = vpow2.f32 %v2314_v45  ;;  %v731_v47 = vsub.f32 %v8865_v20, %v8499_v33  ;;  %v6396_v44 = vclamps-f32 %v865_v27, 30.0 }
 0x197   : > { %v7277_v22 = vpop.eup %7276  ;;  %7286 = vrcp.f32 %v4432_v49  ;;  %v4430_v29 = vmul.f32 %v4262_v9, %v4094_v6  ;;  %v6416_v8 = vclamps-f32 %v885_v61, 30.0  ;;  %v455_v56 = vsub.f32 %v8809_v3, %v8413_v24 }
 0x198   : > { %v7279_v1 = vpop.eup %7278  ;;  %6707 = vmatmul.msk.f32.gmra.mxu1 %vm4873_vm6, %v3550_v17  ;;  %v8988_v41 = vmul.f32 0.22140276, %v7277_v22  ;;  %v2712_v55 = vmul.f32 1.105171, %v7277_v22  ;;  %v3048_v48 = vadd.f32 1.105171, %v7277_v22  ;;  %v475_v22 = vsub.f32 %v8835_v21, %v8413_v24 }
 0x199   : > { %v7281_v23 = vpop.eup %7280  ;;  %v3570_v32 = vmul.f32 %v7279_v1, %v8968_v11  ;;  %7288 = vrcp.f32 %v4430_v29  ;;  %v1404_v38 = vmul.f32 1.442695, %v6396_v44  ;;  %v1444_v34 = vmul.f32 1.442695, %v6416_v8 }
 0x19a   : > { %v7283_v10 = vpop.eup %7282  ;;  %v2880_v60 = vadd.f32 1.0, %v2712_v55  ;;  %v8993_v54 = vmul.f32 0.22140276, %v7281_v23  ;;  %v2732_v39 = vmul.f32 1.105171, %v7281_v23  ;;  %v1741_v59 = vmul.f32 10.0, %v733_v51 }
 0x19b   : > { %5395 = vmatmul.f32.gmra.mxu3 %v3570_v32  ;;  %v3068_v63 = vadd.f32 1.105171, %v7281_v23  ;;  %v8995_v40 = vmul.f32 0.22140276, %v7283_v10  ;;  %v3907_v53 = vmul.f32 1.105171, %v7283_v10  ;;  %7290 = vpow2.f32 %v1404_v38 }
 0x19c   : > { %v7285_v62 = vpop.eup %7284  ;;  %v3216_v43 = vmul.f32 %v3048_v48, %v2880_v60  ;;  %v2900_v28 = vadd.f32 1.0, %v2732_v39  ;;  %v4243_v4 = vadd.f32 1.105171, %v7283_v10  ;;  %7292 = vpow2.f32 %v1444_v34 }
 0x19d   : > { %v7287_v11 = vpop.eup %7286  ;;  %v4075_v18 = vadd.f32 1.0, %v3907_v53  ;;  %v8997_v42 = vmul.f32 0.22140276, %v7285_v62  ;;  %v3924_v5 = vmul.f32 1.105171, %v7285_v62  ;;  %v6600_v52 = vclamps-f32 %v1741_v59, 30.0 }
 0x19e   : > { %v4768_v7 = vmul.f32 %v7287_v11, %v8978_v57  ;;  %7294 = vrcp.f32 %v3216_v43  ;;  %v3236_v9 = vmul.f32 %v3068_v63, %v2900_v28  ;;  %v4260_v45 = vadd.f32 1.105171, %v7285_v62 }
 0x19f   : > { %v7289_v0 = vpop.eup %7288  ;;  %v4411_v49 = vmul.f32 %v4243_v4, %v4075_v18  ;;  %v4092_v6 = vadd.f32 1.0, %v3924_v5  ;;  %v2316_v27 = vmul.f32 1.442695, %v6600_v52  ;;  %v1739_v61 = vmul.f32 10.0, %v731_v47 }
 0x1a0   : > { %5534 = vmatpush.xpose.msra.mxu3 %v4768_v7  ;;  %v4766_v17 = vmul.f32 %v7289_v0, %v8980_v37  ;;  %7296 = vrcp.f32 %v3236_v9  ;;  %v867_v51 = vmul.f32 10.0, %v455_v56  ;;  %v712_v8 = vsub.f32 %v8870_v35, %v8499_v33 }
 0x1a1   : > { %v7291_v29 = vpop.eup %7290  ;;  %7298 = vrcp.f32 %v4411_v49  ;;  %v4428_v44 = vmul.f32 %v4260_v45, %v4092_v6  ;;  %v6598_v57 = vclamps-f32 %v1739_v61, 30.0  ;;  %v887_v60 = vmul.f32 10.0, %v475_v22 }
 0x1a2   : > { %v7293_v1 = vpop.eup %7292  ;;  %5458 = vmatpush.xpose.msra.mxu1 %v4766_v17  ;;  %v9005_v55 = vmul.f32 0.22140276, %v7291_v29  ;;  %v2713_v47 = vmul.f32 1.105171, %v7291_v29  ;;  %v3049_v48 = vadd.f32 1.105171, %v7291_v29  ;;  %7300 = vpow2.f32 %v2316_v27 }
 0x1a3   : > { %7302 = vrcp.f32 %v4428_v44  ;;  %v9007_v37 = vmul.f32 0.22140276, %v7293_v1  ;;  %v2733_v56 = vmul.f32 1.105171, %v7293_v1  ;;  %v3069_v23 = vadd.f32 1.105171, %v7293_v1 }
 0x1a4   : > { %v7295_v32 = vpop.eup %7294  ;;  %v2881_v38 = vadd.f32 1.0, %v2713_v47  ;;  %v2312_v34 = vmul.f32 1.442695, %v6598_v57  ;;  %v6398_v10 = vclamps-f32 %v867_v51, 30.0  ;;  %v1720_v63 = vmul.f32 10.0, %v712_v8 }
 0x1a5   : > { %v3552_v39 = vmul.f32 %v7295_v32, %v8988_v41  ;;  %v2901_v59 = vadd.f32 1.0, %v2733_v56  ;;  %v729_v53 = vsub.f32 %v8854_v16, %v8514_v50  ;;  %v6418_v4 = vclamps-f32 %v887_v60, 30.0 }
 0x1a6   : > { %v7297_v62 = vpop.eup %7296  ;;  %v3217_v43 = vmul.f32 %v3049_v48, %v2881_v38  ;;  %7304 = vpow2.f32 %v2312_v34  ;;  %v1408_v28 = vmul.f32 1.442695, %v6398_v10  ;;  %v6579_v52 = vclamps-f32 %v1720_v63, 30.0 }
 0x1a7   : > { %v7299_v11 = vpop.eup %7298  ;;  %5284 = vmatmul.f32.gmra.mxu0 %v3552_v39  ;;  %v3572_v18 = vmul.f32 %v7297_v62, %v8993_v54  ;;  %v3237_v5 = vmul.f32 %v3069_v23, %v2901_v59  ;;  %v1737_v7 = vmul.f32 10.0, %v729_v53  ;;  %v1448_v45 = vmul.f32 1.442695, %v6418_v4 }
 0x1a8   : > { %v7301_v9 = vpop.eup %7300  ;;  %v4747_v41 = vmul.f32 %v7299_v11, %v8995_v40  ;;  %7306 = vrcp.f32 %v3217_v43  ;;  %v456_v0 = vsub.f32 %v8840_v12, %v8413_v24  ;;  %v2274_v17 = vmul.f32 1.442695, %v6579_v52 }
 0x1a9   : > { %v7303_v49 = vpop.eup %7302  ;;  %5360 = vmatmul.f32.gmra.mxu2 %v3572_v18  ;;  %7308 = vrcp.f32 %v3237_v5  ;;  %v9016_v6 = vmul.f32 0.22140276, %v7301_v9  ;;  %v3925_v27 = vmul.f32 1.105171, %v7301_v9  ;;  %v4261_v61 = vadd.f32 1.105171, %v7301_v9 }
 0x1aa   : > { %5420 = vmatpush.xpose.msra.mxu0 %v4747_v41  ;;  %v4764_v54 = vmul.f32 %v7303_v49, %v8997_v42  ;;  %7310 = vpow2.f32 %v1408_v28  ;;  %v6596_v51 = vclamps-f32 %v1737_v7, 30.0  ;;  %v868_v40 = vmul.f32 10.0, %v456_v0 }
 0x1ab   : > { %v4093_v22 = vadd.f32 1.0, %v3925_v27  ;;  %7312 = vpow2.f32 %v1448_v45  ;;  %v476_v29 = vsub.f32 %v8843_v26, %v8413_v24  ;;  %v730_v8 = vsub.f32 %v8856_v36, %v8514_v50 }
 0x1ac   : > { %v7305_v44 = vpop.eup %7304  ;;  %5497 = vmatpush.xpose.msra.mxu2 %v4764_v54  ;;  %7314 = vpow2.f32 %v2274_v17  ;;  %v2308_v57 = vmul.f32 1.442695, %v6596_v51  ;;  %v728_v1 = vsub.f32 %v8865_v20, %v8514_v50  ;;  %v6399_v32 = vclamps-f32 %v868_v40, 30.0 }
 0x1ad   : > { %v4429_v42 = vmul.f32 %v4261_v61, %v4093_v22  ;;  %v9025_v47 = vmul.f32 0.22140276, %v7305_v44  ;;  %v3923_v48 = vmul.f32 1.105171, %v7305_v44  ;;  %v4259_v56 = vadd.f32 1.105171, %v7305_v44 }
 0x1ae   : > { %v7307_v23 = vpop.eup %7306  ;;  %7316 = vpow2.f32 %v2308_v57  ;;  %v888_v38 = vmul.f32 10.0, %v476_v29  ;;  %v1738_v34 = vmul.f32 10.0, %v730_v8  ;;  %v1736_v59 = vmul.f32 10.0, %v728_v1 }
 0x1af   : > { %v7309_v10 = vpop.eup %7308  ;;  %v3553_v60 = vmul.f32 %v7307_v23, %v9005_v55  ;;  %7318 = vrcp.f32 %v4429_v42  ;;  %v4091_v39 = vadd.f32 1.0, %v3923_v48  ;;  %v1410_v62 = vmul.f32 1.442695, %v6399_v32 }
 0x1b0   : > { %v7311_v63 = vpop.eup %7310  ;;  %v3573_v53 = vmul.f32 %v7309_v10, %v9007_v37  ;;  %v6419_v43 = vclamps-f32 %v888_v38, 30.0  ;;  %v6597_v28 = vclamps-f32 %v1738_v34, 30.0  ;;  %v6595_v17 = vclamps-f32 %v1736_v59, 30.0 }
 0x1b1   : > { %v7313_v4 = vpop.eup %7312  ;;  %6708 = vmatmul.msk.f32.gmra.mxu1 %vm4873_vm6, %v3553_v60  ;;  %v4427_v11 = vmul.f32 %v4259_v56, %v4091_v39  ;;  %v2547_v18 = vmul.f32 0.22140276, %v7311_v63  ;;  %v2715_v5 = vmul.f32 1.105171, %v7311_v63  ;;  %v3051_v52 = vadd.f32 1.105171, %v7311_v63 }
 0x1b2   : > { %v7315_v7 = vpop.eup %7314  ;;  %5398 = vmatmul.f32.gmra.mxu3 %v3573_v53  ;;  %v2567_v55 = vmul.f32 0.22140276, %v7313_v4  ;;  %v2735_v9 = vmul.f32 1.105171, %v7313_v4  ;;  %v3071_v41 = vadd.f32 1.105171, %v7313_v4  ;;  %7320 = vpow2.f32 %v1410_v62 }
 0x1b3   : > { %7322 = vrcp.f32 %v4427_v11  ;;  %v2883_v45 = vadd.f32 1.0, %v2715_v5  ;;  %v3736_v37 = vmul.f32 0.22140276, %v7315_v7  ;;  %v3904_v0 = vmul.f32 1.105171, %v7315_v7 }
 0x1b4   : > { %v7317_v49 = vpop.eup %7316  ;;  %v2903_v27 = vadd.f32 1.0, %v2735_v9  ;;  %v4240_v61 = vadd.f32 1.105171, %v7315_v7  ;;  %v1450_v54 = vmul.f32 1.442695, %v6419_v43  ;;  %v458_v38 = vsub.f32 %v8809_v3, %v8401_v19 }
 0x1b5   : > { %v7319_v51 = vpop.eup %7318  ;;  %v3219_v22 = vmul.f32 %v3051_v52, %v2883_v45  ;;  %v4072_v40 = vadd.f32 1.0, %v3904_v0  ;;  %v9031_v29 = vmul.f32 0.22140276, %v7317_v49  ;;  %v3921_v44 = vmul.f32 1.105171, %v7317_v49 }
 0x1b6   : > { %v4765_v57 = vmul.f32 %v7319_v51, %v9016_v6  ;;  %v3239_v8 = vmul.f32 %v3071_v41, %v2903_v27  ;;  %v4257_v1 = vadd.f32 1.105171, %v7317_v49  ;;  %7324 = vpow2.f32 %v1450_v54 }
 0x1b7   : > { %7326 = vrcp.f32 %v3219_v22  ;;  %v4408_v42 = vmul.f32 %v4240_v61, %v4072_v40  ;;  %v4089_v48 = vadd.f32 1.0, %v3921_v44  ;;  %v2310_v56 = vmul.f32 1.442695, %v6597_v28 }
 0x1b8   : > { %v7321_v23 = vpop.eup %7320  ;;  %5535 = vmatpush.xpose.msra.mxu3 %v4765_v57  ;;  %7328 = vrcp.f32 %v3239_v8  ;;  %v2306_v32 = vmul.f32 1.442695, %v6595_v17  ;;  %v478_v34 = vsub.f32 %v8835_v21, %v8401_v19  ;;  %v870_v53 = vmul.f32 10.0, %v458_v38 }
 0x1b9   : > { %v7323_v10 = vpop.eup %7322  ;;  %7330 = vrcp.f32 %v4408_v42  ;;  %v4425_v6 = vmul.f32 %v4257_v1, %v4089_v48  ;;  %v9038_v60 = vmul.f32 0.22140276, %v7321_v23  ;;  %v2716_v39 = vmul.f32 1.105171, %v7321_v23 }
 0x1ba   : > { %v4763_v59 = vmul.f32 %v7323_v10, %v9025_v47  ;;  %v3052_v63 = vadd.f32 1.105171, %v7321_v23  ;;  %7332 = vpow2.f32 %v2310_v56  ;;  %v890_v43 = vmul.f32 10.0, %v478_v34 }
 0x1bb   : > { %7334 = vrcp.f32 %v4425_v6  ;;  %v2884_v62 = vadd.f32 1.0, %v2716_v39  ;;  %v709_v3 = vsub.f32 %v8870_v35, %v8514_v50  ;;  %v6401_v21 = vclamps-f32 %v870_v53, 30.0 }
 0x1bc   : > { %v7325_v28 = vpop.eup %7324  ;;  %5459 = vmatpush.xpose.msra.mxu1 %v4763_v59  ;;  %7336 = vpow2.f32 %v2306_v32  ;;  %v726_v4 = vsub.f32 %v8854_v16, %v8512_v13  ;;  %v459_v11 = vsub.f32 %v8840_v12, %v8401_v19  ;;  %v6421_v49 = vclamps-f32 %v890_v43, 30.0 }
 0x1bd   : > { %v7327_v47 = vpop.eup %7326  ;;  %v3220_v5 = vmul.f32 %v3052_v63, %v2884_v62  ;;  %v9047_v52 = vmul.f32 0.22140276, %v7325_v28  ;;  %v2736_v7 = vmul.f32 1.105171, %v7325_v28  ;;  %v3072_v9 = vadd.f32 1.105171, %v7325_v28 }
 0x1be   : > { %v7329_v41 = vpop.eup %7328  ;;  %v3555_v45 = vmul.f32 %v7327_v47, %v2547_v18  ;;  %v1414_v0 = vmul.f32 1.442695, %v6401_v21  ;;  %v1717_v27 = vmul.f32 10.0, %v709_v3  ;;  %v1734_v51 = vmul.f32 10.0, %v726_v4 }
 0x1bf   : > { %v7331_v61 = vpop.eup %7330  ;;  %v3575_v54 = vmul.f32 %v7329_v41, %v2567_v55  ;;  %7338 = vrcp.f32 %v3220_v5  ;;  %v2904_v17 = vadd.f32 1.0, %v2736_v7  ;;  %v1454_v12 = vmul.f32 1.442695, %v6421_v49 }
 0x1c0   : > { %v7333_v16 = vpop.eup %7332  ;;  %5287 = vmatmul.f32.gmra.mxu0 %v3555_v45  ;;  %v4744_v22 = vmul.f32 %v7331_v61, %v3736_v37  ;;  %7340 = vpow2.f32 %v1414_v0  ;;  %v6576_v40 = vclamps-f32 %v1717_v27, 30.0  ;;  %v6593_v56 = vclamps-f32 %v1734_v51, 30.0 }
 0x1c1   : > { %v7335_v44 = vpop.eup %7334  ;;  %5363 = vmatmul.f32.gmra.mxu2 %v3575_v54  ;;  %v3240_v57 = vmul.f32 %v3072_v9, %v2904_v17  ;;  %v9049_v8 = vmul.f32 0.22140276, %v7333_v16  ;;  %v3922_v18 = vmul.f32 1.105171, %v7333_v16  ;;  %v4258_v1 = vadd.f32 1.105171, %v7333_v16 }
 0x1c2   : > { %v7337_v42 = vpop.eup %7336  ;;  %5421 = vmatpush.xpose.msra.mxu0 %v4744_v22  ;;  %v4761_v55 = vmul.f32 %v7335_v44, %v9031_v29  ;;  %7342 = vpow2.f32 %v1454_v12  ;;  %v2268_v48 = vmul.f32 1.442695, %v6576_v40  ;;  %v2302_v34 = vmul.f32 1.442695, %v6593_v56 }
 0x1c3   : > { %7344 = vrcp.f32 %v3240_v57  ;;  %v4090_v23 = vadd.f32 1.0, %v3922_v18  ;;  %v9052_v37 = vmul.f32 0.22140276, %v7337_v42  ;;  %v3920_v32 = vmul.f32 1.105171, %v7337_v42 }
 0x1c4   : > { %5498 = vmatpush.xpose.msra.mxu2 %v4761_v55  ;;  %v4256_v38 = vadd.f32 1.105171, %v7337_v42  ;;  %7346 = vpow2.f32 %v2268_v48  ;;  %v871_v10 = vmul.f32 10.0, %v459_v11  ;;  %v479_v63 = vsub.f32 %v8843_v26, %v8401_v19 }
 0x1c5   : > { %v7339_v6 = vpop.eup %7338  ;;  %v4426_v39 = vmul.f32 %v4258_v1, %v4090_v23  ;;  %v4088_v59 = vadd.f32 1.0, %v3920_v32  ;;  %v727_v29 = vsub.f32 %v8856_v36, %v8512_v13  ;;  %7348 = vpow2.f32 %v2302_v34 }
 0x1c6   : > { %v7341_v53 = vpop.eup %7340  ;;  %v3556_v62 = vmul.f32 %v7339_v6, %v9038_v60  ;;  %v6402_v43 = vclamps-f32 %v871_v10, 30.0  ;;  %v706_v3 = vsub.f32 %v8870_v35, %v8512_v13  ;;  %v891_v36 = vmul.f32 10.0, %v479_v63 }
 0x1c7   : > { %7350 = vrcp.f32 %v4426_v39  ;;  %v4424_v28 = vmul.f32 %v4256_v38, %v4088_v59  ;;  %v9061_v21 = vmul.f32 0.22140276, %v7341_v53  ;;  %v2718_v4 = vmul.f32 1.105171, %v7341_v53 }
 0x1c8   : > { %v7343_v11 = vpop.eup %7342  ;;  %6709 = vmatmul.msk.f32.gmra.mxu1 %vm4873_vm6, %v3556_v62  ;;  %v3054_v26 = vadd.f32 1.105171, %v7341_v53  ;;  %v1416_v47 = vmul.f32 1.442695, %v6402_v43  ;;  %v1735_v5 = vmul.f32 10.0, %v727_v29  ;;  %v6422_v49 = vclamps-f32 %v891_v36, 30.0 }
 0x1c9   : > { %v7345_v7 = vpop.eup %7344  ;;  %7352 = vrcp.f32 %v4424_v28  ;;  %v2886_v60 = vadd.f32 1.0, %v2718_v4  ;;  %v9065_v9 = vmul.f32 0.22140276, %v7343_v11  ;;  %v2738_v41 = vmul.f32 1.105171, %v7343_v11  ;;  %v8168_v28 = vld [vmem:[%s8373_s25] sm:$0xff] }
 0x1ca   : > { %v7347_v35 = vpop.eup %7346  ;;  %v3576_v45 = vmul.f32 %v7345_v7, %v9047_v52  ;;  %v3074_v0 = vadd.f32 1.105171, %v7343_v11  ;;  %7354 = vpow2.f32 %v1416_v47  ;;  %v1456_v22 = vmul.f32 1.442695, %v6422_v49 }
 0x1cb   : > { %v3222_v27 = vmul.f32 %v3054_v26, %v2886_v60  ;;  %v2906_v61 = vadd.f32 1.0, %v2738_v41  ;;  %v9068_v54 = vmul.f32 0.22140276, %v7347_v35  ;;  %v3901_v17 = vmul.f32 1.105171, %v7347_v35  ;;  %v7349_v51 = vpop.eup %7348 }
 0x1cc   : > { %5401 = vmatmul.f32.gmra.mxu3 %v3576_v45  ;;  %v4237_v16 = vadd.f32 1.105171, %v7347_v35  ;;  %v6594_v12 = vclamps-f32 %v1735_v5, 30.0  ;;  %v1714_v40 = vmul.f32 10.0, %v706_v3  ;;  %v9070_v1 = vmul.f32 0.22140276, %v7349_v51 }
 0x1cd   : > { %v7351_v44 = vpop.eup %7350  ;;  %7356 = vrcp.f32 %v3222_v27  ;;  %v3242_v57 = vmul.f32 %v3074_v0, %v2906_v61  ;;  %v4069_v18 = vadd.f32 1.0, %v3901_v17  ;;  %v3918_v42 = vmul.f32 1.105171, %v7349_v51 }
 0x1ce   : > { %v4762_v52 = vmul.f32 %v7351_v44, %v9049_v8  ;;  %v4254_v55 = vadd.f32 1.105171, %v7349_v51  ;;  %7358 = vpow2.f32 %v1456_v22  ;;  %v2304_v23 = vmul.f32 1.442695, %v6594_v12  ;;  %v9094_v51 = vld [vmem:[%s8379_s23] sm:$0xff] }
 0x1cf   : > { %v7353_v48 = vpop.eup %7352  ;;  %7360 = vrcp.f32 %v3242_v57  ;;  %v4405_v56 = vmul.f32 %v4237_v16, %v4069_v18  ;;  %v6573_v32 = vclamps-f32 %v1714_v40, 30.0  ;;  %v4086_v10 = vadd.f32 1.0, %v3918_v42 }
 0x1d0   : > { %v7355_v38 = vpop.eup %7354  ;;  %5536 = vmatpush.xpose.msra.mxu3 %v4762_v52  ;;  %v4760_v34 = vmul.f32 %v7353_v48, %v9052_v37  ;;  %v725_v6 = vsub.f32 %v8865_v20, %v8512_v13  ;;  %v9077_v39 = vperm.slane %v8826_v31, 2  ;;  %v346_v31 = vsel %vm345_vm7, %v8168_v28, %v8534_v2 }
 0x1d1   : > { %7362 = vrcp.f32 %v4405_v56  ;;  %v9079_v8 = vmul.f32 0.22140276, %v7355_v38  ;;  %v2719_v59 = vmul.f32 1.105171, %v7355_v38  ;;  %v3055_v63 = vadd.f32 1.105171, %v7355_v38 }
 0x1d2   : > { %5460 = vmatpush.xpose.msra.mxu1 %v4760_v34  ;;  %v4422_v29 = vmul.f32 %v4254_v55, %v4086_v10  ;;  %7364 = vpow2.f32 %v2304_v23  ;;  %v2262_v53 = vmul.f32 1.442695, %v6573_v32  ;;  %v1733_v62 = vmul.f32 10.0, %v725_v6 }
 0x1d3   : > { %v7357_v43 = vpop.eup %7356  ;;  %v2887_v37 = vadd.f32 1.0, %v2719_v59  ;;  %v462_v3 = vsub.f32 %v9077_v39, %v8512_v13  ;;  %v348_v26 = vsel %vm347_vm8, %v346_v31, %v8539_v58  ;;  %vm365_vm1 = vcmask 1046528  }
 0x1d4   : > { %v7359_v20 = vpop.eup %7358  ;;  %v3558_v4 = vmul.f32 %v7357_v43, %v9061_v21  ;;  %7366 = vrcp.f32 %v4422_v29  ;;  %v6592_v11 = vclamps-f32 %v1733_v62, 30.0  ;;  %v349_v49 = vrot.slane %v348_v26, 3 }
 0x1d5   : > { %v7361_v47 = vpop.eup %7360  ;;  %v3223_v36 = vmul.f32 %v3055_v63, %v2887_v37  ;;  %v9089_v5 = vmul.f32 0.22140276, %v7359_v20  ;;  %v2739_v7 = vmul.f32 1.105171, %v7359_v20  ;;  %v3075_v60 = vadd.f32 1.105171, %v7359_v20 }
 0x1d6   : > { %5290 = vmatmul.f32.gmra.mxu0 %v3558_v4  ;;  %v3578_v41 = vmul.f32 %v7361_v47, %v9065_v9  ;;  %7368 = vpow2.f32 %v2262_v53  ;;  %v2300_v35 = vmul.f32 1.442695, %v6592_v11  ;;  %v874_v45 = vmul.f32 10.0, %v462_v3 }
 0x1d7   : > { %v7363_v0 = vpop.eup %7362  ;;  %7370 = vrcp.f32 %v3223_v36  ;;  %v2907_v21 = vadd.f32 1.0, %v2739_v7  ;;  %v602_v9 = vsel %vm350_vm9, %v9094_v51, %v8397_v14  ;;  %v9101_v18 = vperm.slane %v349_v49, 1 }
 0x1d8   : > { %v7365_v27 = vpop.eup %7364  ;;  %5366 = vmatmul.f32.gmra.mxu2 %v3578_v41  ;;  %v4741_v61 = vmul.f32 %v7363_v0, %v9068_v54  ;;  %7372 = vpow2.f32 %v2300_v35  ;;  %v6405_v17 = vclamps-f32 %v874_v45, 30.0  ;;  %v603_v54 = vsel %vm352_vm10, %v602_v9, %v8399_v15 }
 0x1d9   : > { %v3243_v16 = vmul.f32 %v3075_v60, %v2907_v21  ;;  %v9099_v22 = vmul.f32 0.22140276, %v7365_v27  ;;  %v3919_v12 = vmul.f32 1.105171, %v7365_v27  ;;  %v4255_v40 = vadd.f32 1.105171, %v7365_v27 }
 0x1da   : > { %v7367_v44 = vpop.eup %7366  ;;  %5422 = vmatpush.xpose.msra.mxu0 %v4741_v61  ;;  %v1422_v57 = vmul.f32 1.442695, %v6405_v17  ;;  %v9105_v52 = vperm.slane %v349_v49, 0  ;;  %v9108_v48 = vrot.slane %v603_v54, 4  ;;  %v482_v23 = vsub.f32 %v9101_v18, %v8512_v13 }
 0x1db   : > { %v4758_v42 = vmul.f32 %v7367_v44, %v9070_v1  ;;  %7374 = vrcp.f32 %v3243_v16  ;;  %v4087_v55 = vadd.f32 1.0, %v3919_v12  ;;  %v9114_v38 = vperm.slane %v349_v49, 2 }
 0x1dc   : > { %v7369_v56 = vpop.eup %7368  ;;  %7376 = vpow2.f32 %v1422_v57  ;;  %v481_v32 = vsub.f32 %v9105_v52, %v8512_v13  ;;  %v894_v53 = vmul.f32 10.0, %v482_v23  ;;  %v9118_v62 = vperm.slane %v9108_v48, 2 }
 0x1dd   : > { %v7371_v34 = vpop.eup %7370  ;;  %5499 = vmatpush.xpose.msra.mxu2 %v4758_v42  ;;  %v4423_v10 = vmul.f32 %v4255_v40, %v4087_v55  ;;  %v3730_v6 = vmul.f32 0.22140276, %v7369_v56  ;;  %v3898_v59 = vmul.f32 1.105171, %v7369_v56  ;;  %v4234_v1 = vadd.f32 1.105171, %v7369_v56 }
 0x1de   : > { %v7373_v63 = vpop.eup %7372  ;;  %v3559_v29 = vmul.f32 %v7371_v34, %v9079_v8  ;;  %v893_v43 = vmul.f32 10.0, %v481_v32  ;;  %v6425_v20 = vclamps-f32 %v894_v53, 30.0  ;;  %v766_v4 = vsub.f32 %v9118_v62, %v8401_v19 }
 0x1df   : > { %7378 = vrcp.f32 %v4423_v10  ;;  %v4066_v37 = vadd.f32 1.0, %v3898_v59  ;;  %v3749_v3 = vmul.f32 0.22140276, %v7373_v63  ;;  %v3917_v28 = vmul.f32 1.105171, %v7373_v63 }
 0x1e0   : > { %6710 = vmatmul.msk.f32.gmra.mxu1 %vm4873_vm6, %v3559_v29  ;;  %v4253_v31 = vadd.f32 1.105171, %v7373_v63  ;;  %v6424_v11 = vclamps-f32 %v893_v43, 30.0  ;;  %v483_v36 = vsub.f32 %v9114_v38, %v8512_v13  ;;  %v1462_v41 = vmul.f32 1.442695, %v6425_v20 }
 0x1e1   : > { %v7375_v26 = vpop.eup %7374  ;;  %v4402_v8 = vmul.f32 %v4234_v1, %v4066_v37  ;;  %v4085_v47 = vadd.f32 1.0, %v3917_v28  ;;  %v1774_v35 = vmul.f32 10.0, %v766_v4  ;;  %v9134_v42 = vperm.slane %v9108_v48, 1 }
 0x1e2   : > { %v7377_v7 = vpop.eup %7376  ;;  %v3579_v60 = vmul.f32 %v7375_v26, %v9089_v5  ;;  %v1460_v45 = vmul.f32 1.442695, %v6424_v11  ;;  %v895_v17 = vmul.f32 10.0, %v483_v36  ;;  %v605_v5 = vsel %vm355_vm11, %v9094_v51, %v8397_v14 }
 0x1e3   : > { %7380 = vrcp.f32 %v4402_v8  ;;  %v4421_v0 = vmul.f32 %v4253_v31, %v4085_v47  ;;  %v2554_v21 = vmul.f32 0.22140276, %v7377_v7  ;;  %v2722_v49 = vmul.f32 1.105171, %v7377_v7 }
 0x1e4   : > { %5404 = vmatmul.f32.gmra.mxu3 %v3579_v60  ;;  %v3058_v27 = vadd.f32 1.105171, %v7377_v7  ;;  %7382 = vpow2.f32 %v1462_v41  ;;  %v6633_v61 = vclamps-f32 %v1774_v35, 30.0  ;;  %v6426_v44 = vclamps-f32 %v895_v17, 30.0 }
 0x1e5   : > { %v7379_v9 = vpop.eup %7378  ;;  %7384 = vrcp.f32 %v4421_v0  ;;  %v2890_v16 = vadd.f32 1.0, %v2722_v49  ;;  %v606_v54 = vsel %vm357_vm12, %v605_v5, %v8399_v15  ;;  %v465_v55 = vsub.f32 %v9077_v39, %v8514_v50 }
 0x1e6   : > { %v4759_v12 = vmul.f32 %v7379_v9, %v9099_v22  ;;  %v2382_v40 = vmul.f32 1.442695, %v6633_v61  ;;  %7386 = vpow2.f32 %v1460_v45  ;;  %v1464_v56 = vmul.f32 1.442695, %v6426_v44 }
 0x1e7   : > { %v3226_v57 = vmul.f32 %v3058_v27, %v2890_v16  ;;  %v9138_v23 = vrot.slane %v606_v54, 5  ;;  %v485_v51 = vsub.f32 %v9101_v18, %v8514_v50  ;;  %v765_v32 = vsub.f32 %v9134_v42, %v8401_v19 }
 0x1e8   : > { %5537 = vmatpush.xpose.msra.mxu3 %v4759_v12  ;;  %7388 = vpow2.f32 %v2382_v40  ;;  %v877_v34 = vmul.f32 10.0, %v465_v55  ;;  %v9145_v10 = vperm.slane %v9108_v48, 0  ;;  %vm367_vm2 = vcmask 1046529  }
 0x1e9   : > { %v7381_v22 = vpop.eup %7380  ;;  %7390 = vrcp.f32 %v3226_v57  ;;  %v9148_v63 = vperm.slane %v9138_v23, 0  ;;  %v897_v29 = vmul.f32 10.0, %v485_v51  ;;  %v1773_v11 = vmul.f32 10.0, %v765_v32 }
 0x1ea   : > { %v7383_v59 = vpop.eup %7382  ;;  %v4738_v1 = vmul.f32 %v7381_v22, %v3730_v6  ;;  %7392 = vpow2.f32 %v1464_v56  ;;  %v764_v31 = vsub.f32 %v9145_v10, %v8401_v19  ;;  %v6408_v6 = vclamps-f32 %v877_v34, 30.0 }
 0x1eb   : > { %v7385_v53 = vpop.eup %7384  ;;  %v2574_v43 = vmul.f32 0.22140276, %v7383_v59  ;;  %v2742_v37 = vmul.f32 1.105171, %v7383_v59  ;;  %v3078_v28 = vadd.f32 1.105171, %v7383_v59  ;;  %v785_v48 = vsub.f32 %v9148_v63, %v8401_v19 }
 0x1ec   : > { %v7387_v20 = vpop.eup %7386  ;;  %5423 = vmatpush.xpose.msra.mxu0 %v4738_v1  ;;  %v4757_v4 = vmul.f32 %v7385_v53, %v3749_v3  ;;  %v6428_v36 = vclamps-f32 %v897_v29, 30.0  ;;  %v6632_v35 = vclamps-f32 %v1773_v11, 30.0  ;;  %v1428_v45 = vmul.f32 1.442695, %v6408_v6 }
 0x1ed   : > { %v2910_v26 = vadd.f32 1.0, %v2742_v37  ;;  %v9154_v8 = vmul.f32 0.22140276, %v7387_v20  ;;  %v2741_v47 = vmul.f32 1.105171, %v7387_v20  ;;  %v1793_v41 = vmul.f32 10.0, %v785_v48 }
 0x1ee   : > { %v7389_v7 = vpop.eup %7388  ;;  %5461 = vmatpush.xpose.msra.mxu1 %v4757_v4  ;;  %v3077_v60 = vadd.f32 1.105171, %v7387_v20  ;;  %v2380_v12 = vmul.f32 1.442695, %v6632_v35  ;;  %v1468_v32 = vmul.f32 1.442695, %v6428_v36  ;;  %v763_v34 = vsub.f32 %v9118_v62, %v8413_v24 }
 0x1ef   : > { %v7391_v0 = vpop.eup %7390  ;;  %v3246_v49 = vmul.f32 %v3078_v28, %v2910_v26  ;;  %v3790_v27 = vmul.f32 0.22140276, %v7389_v7  ;;  %v3958_v3 = vmul.f32 1.105171, %v7389_v7  ;;  %v4294_v61 = vadd.f32 1.105171, %v7389_v7 }
 0x1f0   : > { %v7393_v17 = vpop.eup %7392  ;;  %v3562_v9 = vmul.f32 %v7391_v0, %v2554_v21  ;;  %v2909_v16 = vadd.f32 1.0, %v2741_v47  ;;  %v6652_v5 = vclamps-f32 %v1793_v41, 30.0  ;;  %v1772_v21 = vmul.f32 10.0, %v764_v31 }
 0x1f1   : > { %7394 = vrcp.f32 %v3246_v49  ;;  %v4126_v40 = vadd.f32 1.0, %v3958_v3  ;;  %v2575_v44 = vmul.f32 0.22140276, %v7393_v17  ;;  %v2743_v57 = vmul.f32 1.105171, %v7393_v17 }
 0x1f2   : > { %6711 = vmatmul.msk.f32.vlgmr.msra.gmra.mxu0 %vm4873_vm6, %v3562_v9  ;;  %v3245_v54 = vmul.f32 %v3077_v60, %v2909_v16  ;;  %v3079_v55 = vadd.f32 1.105171, %v7393_v17  ;;  %v2420_v56 = vmul.f32 1.442695, %v6652_v5  ;;  %7396 = vpow2.f32 %v2380_v12 }
 0x1f3   : > { %v4462_v51 = vmul.f32 %v4294_v61, %v4126_v40  ;;  %v2911_v22 = vadd.f32 1.0, %v2743_v57  ;;  %7398 = vpow2.f32 %v1428_v45  ;;  %v484_v59 = vsub.f32 %v9105_v52, %v8514_v50 }
 0x1f4   : > { %7400 = vrcp.f32 %v3245_v54  ;;  %v486_v29 = vsub.f32 %v9114_v38, %v8514_v50  ;;  %v782_v53 = vsub.f32 %v9148_v63, %v8413_v24  ;;  %v6631_v37 = vclamps-f32 %v1772_v21, 30.0 }
 0x1f5   : > { %7402 = vrcp.f32 %v4462_v51  ;;  %v3247_v1 = vmul.f32 %v3079_v55, %v2911_v22  ;;  %v1771_v28 = vmul.f32 10.0, %v763_v34  ;;  %v896_v20 = vmul.f32 10.0, %v484_v59 }
 0x1f6   : > { %7404 = vpow2.f32 %v2420_v56  ;;  %v898_v31 = vmul.f32 10.0, %v486_v29  ;;  %v1790_v48 = vmul.f32 10.0, %v782_v53  ;;  %v762_v11 = vsub.f32 %v9134_v42, %v8413_v24 }
 0x1f7   : > { %v7395_v4 = vpop.eup %7394  ;;  %7406 = vrcp.f32 %v3247_v1  ;;  %v2378_v47 = vmul.f32 1.442695, %v6631_v37  ;;  %v6630_v36 = vclamps-f32 %v1771_v28, 30.0  ;;  %v468_v45 = vsub.f32 %v9077_v39, %v8499_v33 }
 0x1f8   : > { %v7397_v6 = vpop.eup %7396  ;;  %v3582_v26 = vmul.f32 %v7395_v4, %v2574_v43  ;;  %7408 = vpow2.f32 %v1468_v32  ;;  %v6427_v5 = vclamps-f32 %v896_v20, 30.0  ;;  %v6429_v54 = vclamps-f32 %v898_v31, 30.0 }
 0x1f9   : > { %v7399_v7 = vpop.eup %7398  ;;  %v9168_v60 = vmul.f32 0.22140276, %v7397_v6  ;;  %v3957_v41 = vmul.f32 1.105171, %v7397_v6  ;;  %v4293_v35 = vadd.f32 1.105171, %v7397_v6  ;;  %7410 = vpow2.f32 %v2378_v47  ;;  %v5159_v47 = vpop.f32.mrf.mxu1 }
 0x1fa   : > { %v7401_v0 = vpop.eup %7400  ;;  %5500 = vmatmul.f32.vlgmr.msra.gmra.mxu2 %v3582_v26  ;;  %v9172_v49 = vmul.f32 0.22140276, %v7399_v7  ;;  %v2725_v3 = vmul.f32 1.105171, %v7399_v7  ;;  %v3061_v61 = vadd.f32 1.105171, %v7399_v7  ;;  %v5121_v26 = vpop.f32.mrf.mxu0 }
 0x1fb   : > { %v7403_v17 = vpop.eup %7402  ;;  %v3581_v43 = vmul.f32 %v7401_v0, %v9154_v8  ;;  %v4125_v9 = vadd.f32 1.0, %v3957_v41  ;;  %v2376_v16 = vmul.f32 1.442695, %v6630_v36  ;;  %v6649_v55 = vclamps-f32 %v1790_v48, 30.0 }
 0x1fc   : > { %v7405_v12 = vpop.eup %7404  ;;  %v4798_v40 = vmul.f32 %v7403_v17, %v3790_v27  ;;  %v2893_v57 = vadd.f32 1.0, %v2725_v3  ;;  %v1466_v8 = vmul.f32 1.442695, %v6427_v5  ;;  %v1470_v20 = vmul.f32 1.442695, %v6429_v54 }
 0x1fd   : > { %v7407_v56 = vpop.eup %7406  ;;  %5462 = vmatmul.f32.vlgmr.msra.gmra.mxu1 %v3581_v43  ;;  %v9175_v51 = vmul.f32 0.22140276, %v7405_v12  ;;  %v3977_v22 = vmul.f32 1.105171, %v7405_v12  ;;  %v4313_v32 = vadd.f32 1.105171, %v7405_v12  ;;  %v4461_v21 = vmul.f32 %v4293_v35, %v4125_v9 }
 0x1fe   : > { %v7409_v34 = vpop.eup %7408  ;;  %5645 = vmatpush.xpose.msrb.mxu2 %v4798_v40  ;;  %v3583_v59 = vmul.f32 %v7407_v56, %v2575_v44  ;;  %v3229_v1 = vmul.f32 %v3061_v61, %v2893_v57  ;;  %7412 = vpow2.f32 %v2376_v16  ;;  %v2414_v4 = vmul.f32 1.442695, %v6649_v55 }
 0x1ff   : > { %v4145_v29 = vadd.f32 1.0, %v3977_v22  ;;  %7414 = vrcp.f32 %v4461_v21  ;;  %v9177_v53 = vmul.f32 0.22140276, %v7409_v34  ;;  %v2745_v27 = vmul.f32 1.105171, %v7409_v34  ;;  %v7411_v37 = vpop.eup %7410 }
 0x200   : > { %6718 = vmatmul.msk.f32.vlgmr.msra.gmra.mxu3 %vm4873_vm6, %v3583_v59  ;;  %7416 = vrcp.f32 %v3229_v1  ;;  %v3081_v28 = vadd.f32 1.105171, %v7409_v34  ;;  %v9181_v6 = vmul.f32 0.22140276, %v7411_v37  ;;  %v3956_v44 = vmul.f32 1.105171, %v7411_v37 }
 0x201   : > { %v4481_v31 = vmul.f32 %v4313_v32, %v4145_v29  ;;  %v2913_v48 = vadd.f32 1.0, %v2745_v27  ;;  %v4292_v36 = vadd.f32 1.105171, %v7411_v37  ;;  %7418 = vpow2.f32 %v1466_v8 }
 0x202   : > { %v1770_v7 = vmul.f32 10.0, %v762_v11  ;;  %v9183_v41 = vadd.f32 %v5159_v47, %v5121_v26  ;;  %v4124_v0 = vadd.f32 1.0, %v3956_v44  ;;  %v880_v3 = vmul.f32 10.0, %v468_v45 }
 0x203   : > { %7420 = vrcp.f32 %v4481_v31  ;;  %v3249_v35 = vmul.f32 %v3081_v28, %v2913_v48  ;;  %v488_v43 = vsub.f32 %v9101_v18, %v8499_v33  ;;  %v761_v9 = vsub.f32 %v9145_v10, %v8413_v24 }
 0x204   : > { %v7413_v61 = vpop.eup %7412  ;;  %7422 = vpow2.f32 %v1470_v20  ;;  %v6629_v17 = vclamps-f32 %v1770_v7, 30.0  ;;  %v4460_v5 = vmul.f32 %v4292_v36, %v4124_v0  ;;  %v6411_v22 = vclamps-f32 %v880_v3, 30.0 }
 0x205   : > { %v7415_v16 = vpop.eup %7414  ;;  %7424 = vrcp.f32 %v3249_v35  ;;  %v9189_v12 = vmul.f32 0.22140276, %v7413_v61  ;;  %v3955_v11 = vmul.f32 1.105171, %v7413_v61  ;;  %v4291_v54 = vadd.f32 1.105171, %v7413_v61 }
 0x206   : > { %v7417_v40 = vpop.eup %7416  ;;  %v4797_v57 = vmul.f32 %v7415_v16, %v9168_v60  ;;  %7426 = vpow2.f32 %v2414_v4  ;;  %v2374_v45 = vmul.f32 1.442695, %v6629_v17  ;;  %v900_v21 = vmul.f32 10.0, %v488_v43 }
 0x207   : > { %v3565_v55 = vmul.f32 %v7417_v40, %v9172_v49  ;;  %7428 = vrcp.f32 %v4460_v5  ;;  %v4123_v56 = vadd.f32 1.0, %v3955_v11  ;;  %v7419_v32 = vpop.eup %7418  ;;  %v1769_v34 = vmul.f32 10.0, %v761_v9 }
 0x208   : > { %5607 = vmatpush.xpose.msrb.mxu1 %v4797_v57  ;;  %7430 = vpow2.f32 %v2374_v45  ;;  %v760_v59 = vsub.f32 %v9118_v62, %v8415_v25  ;;  %v9197_v8 = vmul.f32 0.22140276, %v7419_v32  ;;  %v2744_v29 = vmul.f32 1.105171, %v7419_v32 }
 0x209   : > { %v7421_v1 = vpop.eup %7420  ;;  %6712 = vmatmul.msk.f32.gmra.mxu0 %vm4873_vm6, %v3565_v55  ;;  %v4459_v60 = vmul.f32 %v4291_v54, %v4123_v56  ;;  %v3080_v49 = vadd.f32 1.105171, %v7419_v32  ;;  %v1434_v28 = vmul.f32 1.442695, %v6411_v22  ;;  %v6431_v20 = vclamps-f32 %v900_v21, 30.0 }
 0x20a   : > { %v7423_v27 = vpop.eup %7422  ;;  %v4817_v37 = vmul.f32 %v7421_v1, %v9175_v51  ;;  %v6628_v4 = vclamps-f32 %v1769_v34, 30.0  ;;  %v2912_v48 = vadd.f32 1.0, %v2744_v29  ;;  %v1768_v45 = vmul.f32 10.0, %v760_v59 }
 0x20b   : > { %v7425_v31 = vpop.eup %7424  ;;  %7432 = vrcp.f32 %v4459_v60  ;;  %v9200_v44 = vmul.f32 0.22140276, %v7423_v27  ;;  %v2746_v26 = vmul.f32 1.105171, %v7423_v27  ;;  %v3082_v7 = vadd.f32 1.105171, %v7423_v27 }
 0x20c   : > { %v7427_v47 = vpop.eup %7426  ;;  %5683 = vmatpush.xpose.msrb.mxu3 %v4817_v37  ;;  %v3585_v36 = vmul.f32 %v7425_v31, %v9177_v53  ;;  %7434 = vpow2.f32 %v1434_v28  ;;  %v1474_v35 = vmul.f32 1.442695, %v6431_v20  ;;  %v3248_v3 = vmul.f32 %v3080_v49, %v2912_v48 }
 0x20d   : > { %v7429_v0 = vpop.eup %7428  ;;  %v2914_v61 = vadd.f32 1.0, %v2746_v26  ;;  %v9203_v51 = vmul.f32 0.22140276, %v7427_v47  ;;  %v3974_v17 = vmul.f32 1.105171, %v7427_v47  ;;  %v487_v22 = vsub.f32 %v9105_v52, %v8499_v33 }
 0x20e   : > { %v7431_v43 = vpop.eup %7430  ;;  %5503 = vmatmul.f32.gmra.mxu2 %v3585_v36  ;;  %v4796_v9 = vmul.f32 %v7429_v0, %v9181_v6  ;;  %v4310_v16 = vadd.f32 1.105171, %v7427_v47  ;;  %7436 = vpow2.f32 %v1474_v35  ;;  %v2372_v5 = vmul.f32 1.442695, %v6628_v4 }
 0x20f   : > { %7438 = vrcp.f32 %v3248_v3  ;;  %v3250_v11 = vmul.f32 %v3082_v7, %v2914_v61  ;;  %v4142_v40 = vadd.f32 1.0, %v3974_v17  ;;  %v9206_v53 = vmul.f32 0.22140276, %v7431_v43 }
 0x210   : > { %5569 = vmatpush.xpose.msrb.mxu0 %v4796_v9  ;;  %v3954_v57 = vmul.f32 1.105171, %v7431_v43  ;;  %v4290_v54 = vadd.f32 1.105171, %v7431_v43  ;;  %7440 = vpow2.f32 %v2372_v5  ;;  %v489_v6 = vsub.f32 %v9114_v38, %v8499_v33 }
 0x211   : > { %v7433_v55 = vpop.eup %7432  ;;  %7442 = vrcp.f32 %v3250_v11  ;;  %v4478_v56 = vmul.f32 %v4310_v16, %v4142_v40  ;;  %v6627_v1 = vclamps-f32 %v1768_v45, 30.0  ;;  %v779_v60 = vsub.f32 %v9148_v63, %v8415_v25  ;;  %v5197_v45 = vpop.f32.mrf.mxu2 }
 0x212   : > { %v7435_v32 = vpop.eup %7434  ;;  %v4795_v21 = vmul.f32 %v7433_v55, %v9189_v12  ;;  %v4122_v34 = vadd.f32 1.0, %v3954_v57  ;;  %v899_v20 = vmul.f32 10.0, %v487_v22  ;;  %v901_v4 = vmul.f32 10.0, %v489_v6  ;;  %v5124_v6 = vpop.f32.mrf.mxu0 }
 0x213   : > { %7444 = vrcp.f32 %v4478_v56  ;;  %v9215_v29 = vmul.f32 0.22140276, %v7435_v32  ;;  %v2728_v59 = vmul.f32 1.105171, %v7435_v32  ;;  %v3064_v49 = vadd.f32 1.105171, %v7435_v32  ;;  %v5162_v32 = vpop.f32.mrf.mxu1 }
 0x214   : > { %v7437_v27 = vpop.eup %7436  ;;  %5646 = vmatpush.xpose.msrb.mxu2 %v4795_v21  ;;  %v4458_v37 = vmul.f32 %v4290_v54, %v4122_v34  ;;  %v2370_v28 = vmul.f32 1.442695, %v6627_v1  ;;  %v1787_v47 = vmul.f32 10.0, %v779_v60  ;;  %v6430_v0 = vclamps-f32 %v899_v20, 30.0 }
 0x215   : > { %v7439_v31 = vpop.eup %7438  ;;  %v2896_v48 = vadd.f32 1.0, %v2728_v59  ;;  %v9217_v26 = vmul.f32 0.22140276, %v7437_v27  ;;  %v2748_v12 = vmul.f32 1.105171, %v7437_v27  ;;  %v8291_v1 = vmov 0.0  }
 0x216   : > { %v7441_v36 = vpop.eup %7440  ;;  %v3584_v7 = vmul.f32 %v7439_v31, %v9197_v8  ;;  %7446 = vrcp.f32 %v4458_v37  ;;  %v3084_v35 = vadd.f32 1.105171, %v7437_v27  ;;  %v1472_v11 = vmul.f32 1.442695, %v6430_v0  ;;  %234 = vst.msk [vmem:[#allocation2] sm:$0xff] %vm233_vm13, %v8291_v1 }
 0x217   : > { %v7443_v3 = vpop.eup %7442  ;;  %v3232_v61 = vmul.f32 %v3064_v49, %v2896_v48  ;;  %v2916_v17 = vadd.f32 1.0, %v2748_v12  ;;  %v9220_v43 = vmul.f32 0.22140276, %v7441_v36  ;;  %v3953_v9 = vmul.f32 1.105171, %v7441_v36  ;;  %235 = vst.msk [vmem:[#allocation2 + $0x8] sm:$0xff] %vm233_vm13, %v8291_v1 }
 0x218   : > { %5465 = vmatmul.f32.gmra.mxu1 %v3584_v7  ;;  %v3586_v16 = vmul.f32 %v7443_v3, %v9200_v44  ;;  %v4289_v5 = vadd.f32 1.105171, %v7441_v36  ;;  %7448 = vpow2.f32 %v2370_v28  ;;  %v6432_v8 = vclamps-f32 %v901_v4, 30.0  ;;  %236 = vst.msk [vmem:[#allocation2 + $0x10] sm:$0xff] %vm233_vm13, %v8291_v1 }
 0x219   : > { %v7445_v40 = vpop.eup %7444  ;;  %7450 = vrcp.f32 %v3232_v61  ;;  %v3252_v57 = vmul.f32 %v3084_v35, %v2916_v17  ;;  %v4121_v54 = vadd.f32 1.0, %v3953_v9  ;;  %v6646_v56 = vclamps-f32 %v1787_v47, 30.0  ;;  %237 = vst.msk [vmem:[#allocation2 + $0x18] sm:$0xff] %vm233_vm13, %v8291_v1 }
 0x21a   : > { %6719 = vmatmul.msk.f32.gmra.mxu3 %vm4873_vm6, %v3586_v16  ;;  %v4814_v55 = vmul.f32 %v7445_v40, %v9203_v51  ;;  %7452 = vpow2.f32 %v1472_v11  ;;  %v1476_v22 = vmul.f32 1.442695, %v6432_v8  ;;  %v5198_v60 = vadd.f32 %v5197_v45, %v9183_v41  ;;  %238 = vst.msk [vmem:[#allocation2 + $0x20] sm:$0xff] %vm233_vm13, %v8291_v1 }
 0x21b   : > { %7454 = vrcp.f32 %v3252_v57  ;;  %v4457_v44 = vmul.f32 %v4289_v5, %v4121_v54  ;;  %v2408_v34 = vmul.f32 1.442695, %v6646_v56  ;;  %v759_v51 = vsub.f32 %v9134_v42, %v8415_v25  ;;  %239 = vst.msk [vmem:[#allocation2 + $0x28] sm:$0xff] %vm233_vm13, %v8291_v1 }
 0x21c   : > { %v7447_v21 = vpop.eup %7446  ;;  %5684 = vmatpush.xpose.msrb.mxu3 %v4814_v55  ;;  %v9231_v59 = vadd.f32 %v5162_v32, %v5124_v6  ;;  %v471_v27 = vsub.f32 %v9077_v39, %v8425_v30  ;;  %v491_v37 = vsub.f32 %v9101_v18, %v8425_v30  ;;  %v757_v20 = vsub.f32 %v9118_v62, %v8425_v30 }
 0x21d   : > { %v4794_v49 = vmul.f32 %v7447_v21, %v9206_v53  ;;  %7456 = vrcp.f32 %v4457_v44  ;;  %v1767_v28 = vmul.f32 10.0, %v759_v51  ;;  %v758_v53 = vsub.f32 %v9145_v10, %v8415_v25  ;;  %v5048_v45 = vld [vmem:[#allocation2] sm:$0xff]  ;;  %242 = vst.msk [vmem:[#allocation2 + $0x38] sm:$0xff] %vm233_vm13, %v8291_v1 }
 0x21e   : > { %v7449_v41 = vpop.eup %7448  ;;  %7458 = vpow2.f32 %v1476_v22  ;;  %v883_v35 = vmul.f32 10.0, %v471_v27  ;;  %v903_v0 = vmul.f32 10.0, %v491_v37  ;;  %243 = vst.msk [vmem:[#allocation2 + $0x40] sm:$0xff] %vm233_vm13, %v8291_v1 }
 0x21f   : > { %v7451_v4 = vpop.eup %7450  ;;  %5608 = vmatpush.xpose.msrb.mxu1 %v4794_v49  ;;  %v9247_v31 = vmul.f32 0.22140276, %v7449_v41  ;;  %v3952_v48 = vmul.f32 1.105171, %v7449_v41  ;;  %v4288_v12 = vadd.f32 1.105171, %v7449_v41  ;;  %7460 = vpow2.f32 %v2408_v34 }
 0x220   : > { %v7453_v47 = vpop.eup %7452  ;;  %v3568_v36 = vmul.f32 %v7451_v4, %v9215_v29  ;;  %v6626_v7 = vclamps-f32 %v1767_v28, 30.0  ;;  %v490_v29 = vsub.f32 %v9105_v52, %v8425_v30  ;;  %v6414_v40 = vclamps-f32 %v883_v35, 30.0  ;;  %244 = vst.msk [vmem:[#allocation2 + $0x48] sm:$0xff] %vm233_vm13, %v8291_v1 }
 0x221   : > { %v7455_v3 = vpop.eup %7454  ;;  %v4120_v61 = vadd.f32 1.0, %v3952_v48  ;;  %v9258_v17 = vmul.f32 0.22140276, %v7453_v47  ;;  %v2747_v9 = vmul.f32 1.105171, %v7453_v47  ;;  %v6434_v55 = vclamps-f32 %v903_v0, 30.0 }
 0x222   : > { %6713 = vmatmul.msk.f32.gmra.mxu0 %vm4873_vm6, %v3568_v36  ;;  %v3588_v16 = vmul.f32 %v7455_v3, %v9217_v26  ;;  %v3083_v5 = vadd.f32 1.105171, %v7453_v47  ;;  %v2368_v11 = vmul.f32 1.442695, %v6626_v7  ;;  %v1766_v56 = vmul.f32 10.0, %v758_v53  ;;  %245 = vst.msk [vmem:[#allocation2 + $0x50] sm:$0xff] %vm233_vm13, %v8291_v1 }
 0x223   : > { %v7457_v57 = vpop.eup %7456  ;;  %v4456_v54 = vmul.f32 %v4288_v12, %v4120_v61  ;;  %v2915_v8 = vadd.f32 1.0, %v2747_v9  ;;  %v6016_v26 = vadd.f32 %v5198_v60, %v5048_v45  ;;  %v1440_v6 = vmul.f32 1.442695, %v6414_v40  ;;  %246 = vst.msk [vmem:[#allocation2 + $0x58] sm:$0xff] %vm233_vm13, %v8291_v1 }
 0x224   : > { %v7459_v44 = vpop.eup %7458  ;;  %5506 = vmatmul.f32.gmra.mxu2 %v3588_v16  ;;  %v4793_v22 = vmul.f32 %v7457_v57, %v9220_v43  ;;  %7462 = vpow2.f32 %v2368_v11  ;;  %v1480_v41 = vmul.f32 1.442695, %v6434_v55  ;;  %v6625_v53 = vclamps-f32 %v1766_v56, 30.0  ;;  %247 = vst.msk [vmem:[#allocation2 + $0x60] sm:$0xff] %vm233_vm13, %v8291_v1  ;;  %v5200_v55 = vpop.f32.mrf.mxu2 }
 0x225   : > { %v7461_v32 = vpop.eup %7460  ;;  %7464 = vrcp.f32 %v4456_v54  ;;  %v3251_v21 = vmul.f32 %v3083_v5, %v2915_v8  ;;  %v9280_v34 = vmul.f32 0.22140276, %v7459_v44  ;;  %v2749_v51 = vmul.f32 1.105171, %v7459_v44  ;;  %6073 = vst.msk [vmem:[#allocation2] sm:$0xff] %vm233_vm13, %v6016_v26 }
 0x226   : > { %5570 = vmatpush.xpose.msrb.mxu0 %v4793_v22  ;;  %v3085_v43 = vadd.f32 1.105171, %v7459_v44  ;;  %v9284_v49 = vmul.f32 0.22140276, %v7461_v32  ;;  %v3971_v60 = vmul.f32 1.105171, %v7461_v32  ;;  %7466 = vpow2.f32 %v1440_v6 }
 0x227   : > { %7468 = vrcp.f32 %v3251_v21  ;;  %v2917_v27 = vadd.f32 1.0, %v2749_v51  ;;  %v4307_v37 = vadd.f32 1.105171, %v7461_v32  ;;  %v1765_v4 = vmul.f32 10.0, %v757_v20  ;;  %249 = vst.msk [vmem:[#allocation2 + $0x70] sm:$0xff] %vm233_vm13, %v8291_v1 }
 0x228   : > { %v4139_v28 = vadd.f32 1.0, %v3971_v60  ;;  %v902_v48 = vmul.f32 10.0, %v490_v29  ;;  %7470 = vpow2.f32 %v1480_v41  ;;  %v492_v47 = vsub.f32 %v9114_v38, %v8425_v30  ;;  %250 = vst.msk [vmem:[#allocation2 + $0x78] sm:$0xff] %vm233_vm13, %v8291_v1  ;;  %v5049_v60 = vld [vmem:[#allocation2 + $0x8] sm:$0xff] }
 0x229   : > { %v3253_v12 = vmul.f32 %v3085_v43, %v2917_v27  ;;  %v776_v36 = vsub.f32 %v9148_v63, %v8425_v30  ;;  %v2366_v0 = vmul.f32 1.442695, %v6625_v53  ;;  %v6624_v3 = vclamps-f32 %v1765_v4, 30.0  ;;  %251 = vst.msk [vmem:[#allocation2 + $0x80] sm:$0xff] %vm233_vm13, %v8291_v1 }
 0x22a   : > { %v7463_v7 = vpop.eup %7462  ;;  %v4475_v35 = vmul.f32 %v4307_v37, %v4139_v28  ;;  %v6433_v20 = vclamps-f32 %v902_v48, 30.0  ;;  %v904_v16 = vmul.f32 10.0, %v492_v47  ;;  %252 = vst.msk [vmem:[#allocation2 + $0x88] sm:$0xff] %vm233_vm13, %v8291_v1  ;;  %v5201_v37 = vadd.f32 %v5200_v55, %v9231_v59  ;;  %v5165_v59 = vpop.f32.mrf.mxu1 }
 0x22b   : > { %v7465_v61 = vpop.eup %7464  ;;  %7472 = vrcp.f32 %v3253_v12  ;;  %v9300_v9 = vmul.f32 0.22140276, %v7463_v7  ;;  %v3951_v29 = vmul.f32 1.105171, %v7463_v7  ;;  %v4287_v40 = vadd.f32 1.105171, %v7463_v7 }
 0x22c   : > { %v7467_v5 = vpop.eup %7466  ;;  %v4792_v11 = vmul.f32 %v7465_v61, %v9247_v31  ;;  %7474 = vrcp.f32 %v4475_v35  ;;  %v2364_v57 = vmul.f32 1.442695, %v6624_v3  ;;  %v6133_v44 = vld [vmem:[#allocation2] sm:$0xff]  ;;  %v1478_v26 = vmul.f32 1.442695, %v6433_v20  ;;  %253 = vst.msk [vmem:[#allocation2 + $0x90] sm:$0xff] %vm233_vm13, %v8291_v1  ;;  %v5127_v35 = vpop.f32.mrf.mxu0 }
 0x22d   : > { %v7469_v54 = vpop.eup %7468  ;;  %v4119_v8 = vadd.f32 1.0, %v3951_v29  ;;  %v9312_v45 = vmul.f32 0.22140276, %v7467_v5  ;;  %v2731_v31 = vmul.f32 1.105171, %v7467_v5  ;;  %7476 = vpow2.f32 %v2366_v0  ;;  %6189 = vst.msk [vmem:[%s9306_s28] sm:$0xff] %vm233_vm13, %v6133_v44 }
 0x22e   : > { %5647 = vmatpush.xpose.msrb.mxu2 %v4792_v11  ;;  %v3587_v56 = vmul.f32 %v7469_v54, %v9258_v17  ;;  %v3067_v22 = vadd.f32 1.105171, %v7467_v5  ;;  %7478 = vpow2.f32 %v2364_v57  ;;  %v7471_v6 = vpop.eup %7470  ;;  %v6435_v51 = vclamps-f32 %v904_v16, 30.0  ;;  %254 = vst.msk [vmem:[#allocation2 + $0x98] sm:$0xff] %vm233_vm13, %v8291_v1 }
 0x22f   : > { %v4455_v32 = vmul.f32 %v4287_v40, %v4119_v8  ;;  %v2899_v21 = vadd.f32 1.0, %v2731_v31  ;;  %v1784_v43 = vmul.f32 10.0, %v776_v36  ;;  %v9321_v17 = vmul.f32 0.22140276, %v7471_v6  ;;  %256 = vst.msk [vmem:[#allocation2 + $0xa8] sm:$0xff] %vm233_vm13, %v8291_v1 }
 0x230   : > { %5468 = vmatmul.f32.gmra.mxu1 %v3587_v56  ;;  %v2751_v27 = vmul.f32 1.105171, %v7471_v6  ;;  %7480 = vpow2.f32 %v1478_v26  ;;  %v3087_v53 = vadd.f32 1.105171, %v7471_v6  ;;  %v1482_v4 = vmul.f32 1.442695, %v6435_v51 }
 0x231   : > { %v7473_v41 = vpop.eup %7472  ;;  %7482 = vrcp.f32 %v4455_v32  ;;  %v3235_v28 = vmul.f32 %v3067_v22, %v2899_v21  ;;  %v6643_v36 = vclamps-f32 %v1784_v43, 30.0  ;;  %v9329_v7 = vadd.f32 %v5201_v37, %v5049_v60  ;;  %257 = vst.msk [vmem:[#allocation2 + $0xb0] sm:$0xff] %vm233_vm13, %v8291_v1 }
 0x232   : > { %v7475_v48 = vpop.eup %7474  ;;  %v3589_v12 = vmul.f32 %v7473_v41, %v9280_v34  ;;  %v2919_v47 = vadd.f32 1.0, %v2751_v27  ;;  %v756_v20 = vsub.f32 %v9134_v42, %v8425_v30  ;;  %v9336_v34 = vadd.f32 %v5165_v59, %v5127_v35  ;;  %258 = vst.msk [vmem:[#allocation2 + $0xb8] sm:$0xff] %vm233_vm13, %v8291_v1 }
 0x233   : > { %v7477_v0 = vpop.eup %7476  ;;  %v4811_v3 = vmul.f32 %v7475_v48, %v9284_v49  ;;  %7484 = vrcp.f32 %v3235_v28  ;;  %259 = vst.msk [vmem:[#allocation2 + $0xc0] sm:$0xff] %vm233_vm13, %v8291_v1  ;;  %v474_v57 = vsub.f32 %v9077_v39, %v8415_v25  ;;  %v494_v6 = vsub.f32 %v9101_v18, %v8415_v25 }
 0x234   : > { %v7479_v61 = vpop.eup %7478  ;;  %6720 = vmatmul.msk.f32.gmra.mxu3 %vm4873_vm6, %v3589_v12  ;;  %v3255_v29 = vmul.f32 %v3087_v53, %v2919_v47  ;;  %v9342_v16 = vmul.f32 0.22140276, %v7477_v0  ;;  %v3950_v49 = vmul.f32 1.105171, %v7477_v0  ;;  %7486 = vpow2.f32 %v1482_v4  ;;  %260 = vst.msk [vmem:[#allocation2 + $0xc8] sm:$0xff] %vm233_vm13, %v8291_v1 }
 0x235   : > { %5685 = vmatpush.xpose.msrb.mxu3 %v4811_v3  ;;  %v4286_v5 = vadd.f32 1.105171, %v7477_v0  ;;  %v9346_v11 = vmul.f32 0.22140276, %v7479_v61  ;;  %v1764_v40 = vmul.f32 10.0, %v756_v20  ;;  %261 = vst.msk [vmem:[#allocation2 + $0xd0] sm:$0xff] %vm233_vm13, %v8291_v1  ;;  %v755_v28 = vsub.f32 %v9145_v10, %v8425_v30 }
 0x236   : > { %v7481_v54 = vpop.eup %7480  ;;  %7488 = vrcp.f32 %v3255_v29  ;;  %v4118_v8 = vadd.f32 1.0, %v3950_v49  ;;  %v3949_v31 = vmul.f32 1.105171, %v7479_v61  ;;  %v4285_v55 = vadd.f32 1.105171, %v7479_v61  ;;  %263 = vst.msk [vmem:[#allocation2 + $0xe0] sm:$0xff] %vm233_vm13, %v8291_v1 }
 0x237   : > { %v7483_v56 = vpop.eup %7482  ;;  %v9354_v44 = vmul.f32 0.22140276, %v7481_v54  ;;  %v2750_v22 = vmul.f32 1.105171, %v7481_v54  ;;  %v6623_v26 = vclamps-f32 %v1764_v40, 30.0  ;;  %264 = vst.msk [vmem:[#allocation2 + $0xe8] sm:$0xff] %vm233_vm13, %v8291_v1 }
 0x238   : > { %v4791_v32 = vmul.f32 %v7483_v56, %v9300_v9  ;;  %v4454_v21 = vmul.f32 %v4286_v5, %v4118_v8  ;;  %v4117_v51 = vadd.f32 1.0, %v3949_v31  ;;  %v3086_v43 = vadd.f32 1.105171, %v7481_v54  ;;  %265 = vst.msk [vmem:[#allocation2 + $0xf0] sm:$0xff] %vm233_vm13, %v8291_v1 }
 0x239   : > { %v7485_v60 = vpop.eup %7484  ;;  %v2918_v27 = vadd.f32 1.0, %v2750_v22  ;;  %v2402_v37 = vmul.f32 1.442695, %v6643_v36  ;;  %v2362_v41 = vmul.f32 1.442695, %v6623_v26  ;;  %v886_v48 = vmul.f32 10.0, %v474_v57 }
 0x23a   : > { %v7487_v53 = vpop.eup %7486  ;;  %5609 = vmatpush.xpose.msrb.mxu1 %v4791_v32  ;;  %v3571_v9 = vmul.f32 %v7485_v60, %v9312_v45  ;;  %7490 = vrcp.f32 %v4454_v21  ;;  %v4453_v4 = vmul.f32 %v4285_v55, %v4117_v51  ;;  %266 = vst.msk [vmem:[#allocation2 + $0xf8] sm:$0xff] %vm233_vm13, %v8291_v1  ;;  %v906_v0 = vmul.f32 10.0, %v494_v6 }
 0x23b   : > { %v3254_v12 = vmul.f32 %v3086_v43, %v2918_v27  ;;  %v9370_v47 = vmul.f32 0.22140276, %v7487_v53  ;;  %v2752_v36 = vmul.f32 1.105171, %v7487_v53  ;;  %7492 = vpow2.f32 %v2402_v37  ;;  %267 = vst.msk [vmem:[#allocation2 + $0x100] sm:$0xff] %vm233_vm13, %v8291_v1 }
 0x23c   : > { %v7489_v35 = vpop.eup %7488  ;;  %6714 = vmatmul.msk.f32.gmra.mxu0 %vm4873_vm6, %v3571_v9  ;;  %7494 = vrcp.f32 %v4453_v4  ;;  %v3088_v45 = vadd.f32 1.105171, %v7487_v53  ;;  %v6417_v59 = vclamps-f32 %v886_v48, 30.0  ;;  %268 = vst.msk [vmem:[#allocation2 + $0x108] sm:$0xff] %vm233_vm13, %v8291_v1  ;;  %v1763_v61 = vmul.f32 10.0, %v755_v28 }
 0x23d   : > { %v3591_v3 = vmul.f32 %v7489_v35, %v9321_v17  ;;  %7496 = vrcp.f32 %v3254_v12  ;;  %v2920_v20 = vadd.f32 1.0, %v2752_v36  ;;  %270 = vst.msk [vmem:[#allocation2 + $0x118] sm:$0xff] %vm233_vm13, %v8291_v1  ;;  %v6437_v49 = vclamps-f32 %v906_v0, 30.0  ;;  %v5203_v35 = vpop.f32.mrf.mxu2 }
 0x23e   : > { %7498 = vpow2.f32 %v2362_v41  ;;  %v1446_v29 = vmul.f32 1.442695, %v6417_v59  ;;  %v754_v5 = vsub.f32 %v9118_v62, %v8499_v33  ;;  %271 = vst.msk [vmem:[#allocation2 + $0x120] sm:$0xff] %vm233_vm13, %v8291_v1  ;;  %v6622_v57 = vclamps-f32 %v1763_v61, 30.0 }
 0x23f   : > { %5509 = vmatmul.f32.gmra.mxu2 %v3591_v3  ;;  %v3256_v40 = vmul.f32 %v3088_v45, %v2920_v20  ;;  %v493_v17 = vsub.f32 %v9105_v52, %v8415_v25  ;;  %v495_v54 = vsub.f32 %v9114_v38, %v8415_v25  ;;  %272 = vst.msk [vmem:[#allocation2 + $0x128] sm:$0xff] %vm233_vm13, %v8291_v1  ;;  %v1486_v31 = vmul.f32 1.442695, %v6437_v49 }
 0x240   : > { %v7491_v8 = vpop.eup %7490  ;;  %7500 = vpow2.f32 %v1446_v29  ;;  %v1762_v55 = vmul.f32 10.0, %v754_v5  ;;  %v773_v56 = vsub.f32 %v9148_v63, %v8499_v33  ;;  %273 = vst.msk [vmem:[#allocation2 + $0x130] sm:$0xff] %vm233_vm13, %v8291_v1  ;;  %v2360_v6 = vmul.f32 1.442695, %v6622_v57 }
 0x241   : > { %v7493_v22 = vpop.eup %7492  ;;  %v4790_v26 = vmul.f32 %v7491_v8, %v9342_v16  ;;  %7502 = vrcp.f32 %v3256_v40  ;;  %v905_v32 = vmul.f32 10.0, %v493_v17  ;;  %274 = vst.msk [vmem:[#allocation2 + $0x138] sm:$0xff] %vm233_vm13, %v8291_v1  ;;  %v907_v48 = vmul.f32 10.0, %v495_v54  ;;  %v5050_v8 = vld [vmem:[#allocation2 + $0x10] sm:$0xff] }
 0x242   : > { %v7495_v21 = vpop.eup %7494  ;;  %v9398_v51 = vmul.f32 0.22140276, %v7493_v22  ;;  %v3968_v43 = vmul.f32 1.105171, %v7493_v22  ;;  %7504 = vpow2.f32 %v1486_v31  ;;  %v6621_v60 = vclamps-f32 %v1762_v55, 30.0  ;;  %275 = vst.msk [vmem:[#allocation2 + $0x140] sm:$0xff] %vm233_vm13, %v8291_v1 }
 0x243   : > { %v7497_v27 = vpop.eup %7496  ;;  %5571 = vmatpush.xpose.msrb.mxu0 %v4790_v26  ;;  %v4789_v37 = vmul.f32 %v7495_v21, %v9346_v11  ;;  %v4304_v16 = vadd.f32 1.105171, %v7493_v22  ;;  %7506 = vpow2.f32 %v2360_v6  ;;  %v6436_v41 = vclamps-f32 %v905_v32, 30.0  ;;  %277 = vst.msk [vmem:[#allocation2 + $0x150] sm:$0xff] %vm233_vm13, %v8291_v1 }
 0x244   : > { %v7499_v28 = vpop.eup %7498  ;;  %v3590_v53 = vmul.f32 %v7497_v27, %v9354_v44  ;;  %v4136_v9 = vadd.f32 1.0, %v3968_v43  ;;  %v2358_v4 = vmul.f32 1.442695, %v6621_v60  ;;  %278 = vst.msk [vmem:[#allocation2 + $0x158] sm:$0xff] %vm233_vm13, %v8291_v1  ;;  %v1781_v11 = vmul.f32 10.0, %v773_v56 }
 0x245   : > { %5648 = vmatpush.xpose.msrb.mxu2 %v4789_v37  ;;  %v9408_v12 = vmul.f32 0.22140276, %v7499_v28  ;;  %v3948_v36 = vmul.f32 1.105171, %v7499_v28  ;;  %v753_v45 = vsub.f32 %v9134_v42, %v8499_v33  ;;  %279 = vst.msk [vmem:[#allocation2 + $0x160] sm:$0xff] %vm233_vm13, %v8291_v1  ;;  %v5204_v5 = vadd.f32 %v5203_v35, %v9336_v34 }
 0x246   : > { %v7501_v59 = vpop.eup %7500  ;;  %5471 = vmatmul.f32.gmra.mxu1 %v3590_v53  ;;  %v4472_v44 = vmul.f32 %v4304_v16, %v4136_v9  ;;  %v4284_v0 = vadd.f32 1.105171, %v7499_v28  ;;  %7508 = vpow2.f32 %v2358_v4  ;;  %v1484_v3 = vmul.f32 1.442695, %v6436_v41  ;;  %280 = vst.msk [vmem:[#allocation2 + $0x168] sm:$0xff] %vm233_vm13, %v8291_v1 }
 0x247   : > { %v7503_v20 = vpop.eup %7502  ;;  %v4116_v61 = vadd.f32 1.0, %v3948_v36  ;;  %v9416_v29 = vmul.f32 0.22140276, %v7501_v59  ;;  %v2734_v49 = vmul.f32 1.105171, %v7501_v59  ;;  %281 = vst.msk [vmem:[#allocation2 + $0x170] sm:$0xff] %vm233_vm13, %v8291_v1  ;;  %v6018_v16 = vadd.f32 %v5204_v5, %v5050_v8 }
 0x248   : > { %v7505_v40 = vpop.eup %7504  ;;  %v3592_v57 = vmul.f32 %v7503_v20, %v9370_v47  ;;  %7510 = vrcp.f32 %v4472_v44  ;;  %v3070_v17 = vadd.f32 1.105171, %v7501_v59  ;;  %v6438_v54 = vclamps-f32 %v907_v48, 30.0  ;;  %282 = vst.msk [vmem:[#allocation2 + $0x178] sm:$0xff] %vm233_vm13, %v8291_v1  ;;  %v5130_v44 = vpop.f32.mrf.mxu0 }
 0x249   : > { %v7507_v31 = vpop.eup %7506  ;;  %v4452_v55 = vmul.f32 %v4284_v0, %v4116_v61  ;;  %v2902_v56 = vadd.f32 1.0, %v2734_v49  ;;  %v9424_v22 = vmul.f32 0.22140276, %v7505_v40  ;;  %v2754_v26 = vmul.f32 1.105171, %v7505_v40  ;;  %284 = vst.msk [vmem:[#allocation2 + $0x188] sm:$0xff] %vm233_vm13, %v8291_v1  ;;  %v5168_v0 = vpop.f32.mrf.mxu1 }
 0x24a   : > { %6721 = vmatmul.msk.f32.gmra.mxu3 %vm4873_vm6, %v3592_v57  ;;  %v3090_v34 = vadd.f32 1.105171, %v7505_v40  ;;  %v9430_v47 = vmul.f32 0.22140276, %v7507_v31  ;;  %7512 = vpow2.f32 %v1484_v3  ;;  %v6640_v6 = vclamps-f32 %v1781_v11, 30.0  ;;  %285 = vst.msk [vmem:[#allocation2 + $0x190] sm:$0xff] %vm233_vm13, %v8291_v1 }
 0x24b   : > { %7514 = vrcp.f32 %v4452_v55  ;;  %v3238_v32 = vmul.f32 %v3070_v17, %v2902_v56  ;;  %v2922_v21 = vadd.f32 1.0, %v2754_v26  ;;  %v3947_v43 = vmul.f32 1.105171, %v7507_v31  ;;  %286 = vst.msk [vmem:[#allocation2 + $0x198] sm:$0xff] %vm233_vm13, %v8291_v1 }
 0x24c   : > { %v7509_v60 = vpop.eup %7508  ;;  %v4283_v27 = vadd.f32 1.105171, %v7507_v31  ;;  %v1488_v37 = vmul.f32 1.442695, %v6438_v54  ;;  %v1761_v41 = vmul.f32 10.0, %v753_v45  ;;  %287 = vst.msk [vmem:[#allocation2 + $0x1a0] sm:$0xff] %vm233_vm13, %v8291_v1  ;;  %v9447_v49 = vadd.f32 %v5168_v0, %v5130_v44 }
 0x24d   : > { %7516 = vrcp.f32 %v3238_v32  ;;  %v3258_v28 = vmul.f32 %v3090_v34, %v2922_v21  ;;  %v4115_v53 = vadd.f32 1.0, %v3947_v43  ;;  %v9438_v9 = vmul.f32 0.22140276, %v7509_v60  ;;  %288 = vst.msk [vmem:[#allocation2 + $0x1a8] sm:$0xff] %vm233_vm13, %v8291_v1 }
 0x24e   : > { %v7511_v4 = vpop.eup %7510  ;;  %v3946_v48 = vmul.f32 1.105171, %v7509_v60  ;;  %v4282_v36 = vadd.f32 1.105171, %v7509_v60  ;;  %7518 = vpow2.f32 %v1488_v37  ;;  %v6620_v11 = vclamps-f32 %v1761_v41, 30.0  ;;  %289 = vst.msk [vmem:[#allocation2 + $0x1b0] sm:$0xff] %vm233_vm13, %v8291_v1 }
 0x24f   : > { %v4808_v35 = vmul.f32 %v7511_v4, %v9398_v51  ;;  %7520 = vrcp.f32 %v3258_v28  ;;  %v4451_v45 = vmul.f32 %v4283_v27, %v4115_v53  ;;  %v2396_v59 = vmul.f32 1.442695, %v6640_v6  ;;  %6074 = vst.msk [vmem:[#allocation2 + $0x8] sm:$0xff] %vm233_vm13, %v9329_v7 }
 0x250   : > { %v7513_v3 = vpop.eup %7512  ;;  %v4114_v20 = vadd.f32 1.0, %v3946_v48  ;;  %v2356_v61 = vmul.f32 1.442695, %v6620_v11  ;;  %v477_v5 = vsub.f32 %v9077_v39, %v8413_v24  ;;  %6075 = vst.msk [vmem:[#allocation2 + $0x10] sm:$0xff] %vm233_vm13, %v6018_v16  ;;  %v497_v56 = vsub.f32 %v9101_v18, %v8413_v24 }
 0x251   : > { %v7515_v40 = vpop.eup %7514  ;;  %5686 = vmatpush.xpose.msrb.mxu3 %v4808_v35  ;;  %7522 = vrcp.f32 %v4451_v45  ;;  %v9451_v51 = vmul.f32 0.22140276, %v7513_v3  ;;  %v2753_v57 = vmul.f32 1.105171, %v7513_v3  ;;  %v3089_v17 = vadd.f32 1.105171, %v7513_v3 }
 0x252   : > { %v4788_v54 = vmul.f32 %v7515_v40, %v9408_v12  ;;  %v4450_v8 = vmul.f32 %v4282_v36, %v4114_v20  ;;  %7524 = vpow2.f32 %v2396_v59  ;;  %v889_v7 = vmul.f32 10.0, %v477_v5  ;;  %241 = vst.msk [vmem:[#allocation2 + $0x30] sm:$0x3] %vm240_vm0, %v8291_v1 }
 0x253   : > { %v7517_v31 = vpop.eup %7516  ;;  %v2921_v55 = vadd.f32 1.0, %v2753_v57  ;;  %7526 = vpow2.f32 %v2356_v61  ;;  %v752_v26 = vsub.f32 %v9145_v10, %v8499_v33  ;;  %v751_v32 = vsub.f32 %v9118_v62, %v8514_v50  ;;  %248 = vst.msk [vmem:[#allocation2 + $0x68] sm:$0x3] %vm240_vm0, %v8291_v1 }
 0x254   : > { %v7519_v34 = vpop.eup %7518  ;;  %5610 = vmatpush.xpose.msrb.mxu1 %v4788_v54  ;;  %v3574_v6 = vmul.f32 %v7517_v31, %v9416_v29  ;;  %7528 = vrcp.f32 %v4450_v8  ;;  %v6420_v12 = vclamps-f32 %v889_v7, 30.0  ;;  %v909_v28 = vmul.f32 10.0, %v497_v56  ;;  %255 = vst.msk [vmem:[#allocation2 + $0xa0] sm:$0x3] %vm240_vm0, %v8291_v1 }
 0x255   : > { %v7521_v21 = vpop.eup %7520  ;;  %v3257_v43 = vmul.f32 %v3089_v17, %v2921_v55  ;;  %v9462_v60 = vmul.f32 0.22140276, %v7519_v34  ;;  %v2755_v27 = vmul.f32 1.105171, %v7519_v34  ;;  %v3091_v37 = vadd.f32 1.105171, %v7519_v34 }
 0x256   : > { %6715 = vmatmul.msk.f32.gmra.mxu0 %vm4873_vm6, %v3574_v6  ;;  %v3594_v16 = vmul.f32 %v7521_v21, %v9424_v22  ;;  %v1452_v41 = vmul.f32 1.442695, %v6420_v12  ;;  %v1760_v29 = vmul.f32 10.0, %v752_v26  ;;  %v6134_v4 = vld [vmem:[#allocation2 + $0x8] sm:$0xff]  ;;  %v1759_v36 = vmul.f32 10.0, %v751_v32 }
 0x257   : > { %v7523_v53 = vpop.eup %7522  ;;  %7530 = vrcp.f32 %v3257_v43  ;;  %v2923_v48 = vadd.f32 1.0, %v2755_v27  ;;  %v496_v11 = vsub.f32 %v9105_v52, %v8413_v24  ;;  %6190 = vst.msk [vmem:[%s9306_s28 + $0x8] sm:$0xff] %vm233_vm13, %v6134_v4  ;;  %v6440_v59 = vclamps-f32 %v909_v28, 30.0  ;;  %v6135_v40 = vld [vmem:[#allocation2 + $0x10] sm:$0xff] }
 0x258   : > { %v7525_v35 = vpop.eup %7524  ;;  %5512 = vmatmul.f32.gmra.mxu2 %v3594_v16  ;;  %v4787_v45 = vmul.f32 %v7523_v53, %v9430_v47  ;;  %7532 = vpow2.f32 %v1452_v41  ;;  %v6619_v22 = vclamps-f32 %v1760_v29, 30.0  ;;  %v6618_v54 = vclamps-f32 %v1759_v36, 30.0  ;;  %6191 = vst.msk [vmem:[%s9306_s28 + $0x10] sm:$0xff] %vm233_vm13, %v6135_v40  ;;  %v5206_v41 = vpop.f32.mrf.mxu2 }
 0x259   : > { %v7527_v44 = vpop.eup %7526  ;;  %v3259_v0 = vmul.f32 %v3091_v37, %v2923_v48  ;;  %v9472_v3 = vmul.f32 0.22140276, %v7525_v35  ;;  %v3965_v20 = vmul.f32 1.105171, %v7525_v35  ;;  %v4301_v61 = vadd.f32 1.105171, %v7525_v35 }
 0x25a   : > { %v7529_v5 = vpop.eup %7528  ;;  %5572 = vmatpush.xpose.msrb.mxu0 %v4787_v45  ;;  %v9474_v57 = vmul.f32 0.22140276, %v7527_v44  ;;  %v3945_v17 = vmul.f32 1.105171, %v7527_v44  ;;  %v498_v47 = vsub.f32 %v9114_v38, %v8413_v24  ;;  %v4281_v31 = vadd.f32 1.105171, %v7527_v44 }
 0x25b   : > { %v4786_v8 = vmul.f32 %v7529_v5, %v9438_v9  ;;  %7534 = vrcp.f32 %v3259_v0  ;;  %v4133_v7 = vadd.f32 1.0, %v3965_v20  ;;  %v1492_v56 = vmul.f32 1.442695, %v6440_v59  ;;  %262 = vst.msk [vmem:[#allocation2 + $0xd8] sm:$0x3] %vm240_vm0, %v8291_v1 }
 0x25c   : > { %v4113_v55 = vadd.f32 1.0, %v3945_v17  ;;  %v2354_v26 = vmul.f32 1.442695, %v6619_v22  ;;  %v908_v34 = vmul.f32 10.0, %v496_v11  ;;  %v2352_v32 = vmul.f32 1.442695, %v6618_v54 }
 0x25d   : > { %v7531_v6 = vpop.eup %7530  ;;  %5649 = vmatpush.xpose.msrb.mxu2 %v4786_v8  ;;  %v4469_v12 = vmul.f32 %v4301_v61, %v4133_v7  ;;  %v910_v21 = vmul.f32 10.0, %v498_v47  ;;  %v770_v43 = vsub.f32 %v9148_v63, %v8514_v50  ;;  %7536 = vpow2.f32 %v1492_v56  ;;  %v5051_v11 = vld [vmem:[#allocation2 + $0x18] sm:$0xff]  ;;  %269 = vst.msk [vmem:[#allocation2 + $0x110] sm:$0x3] %vm240_vm0, %v8291_v1 }
 0x25e   : > { %v7533_v27 = vpop.eup %7532  ;;  %v3593_v9 = vmul.f32 %v7531_v6, %v9451_v51  ;;  %v4449_v37 = vmul.f32 %v4281_v31, %v4113_v55  ;;  %v6439_v16 = vclamps-f32 %v908_v34, 30.0  ;;  %v5207_v51 = vadd.f32 %v5206_v41, %v9447_v49  ;;  %v5133_v31 = vpop.f32.mrf.mxu0  ;;  %276 = vst.msk [vmem:[#allocation2 + $0x148] sm:$0x3] %vm240_vm0, %v8291_v1 }
 0x25f   : > { %7538 = vrcp.f32 %v4469_v12  ;;  %v9484_v28 = vmul.f32 0.22140276, %v7533_v27  ;;  %v2737_v29 = vmul.f32 1.105171, %v7533_v27  ;;  %v3073_v53 = vadd.f32 1.105171, %v7533_v27  ;;  %v5171_v55 = vpop.f32.mrf.mxu1 }
 0x260   : > { %5474 = vmatmul.f32.gmra.mxu1 %v3593_v9  ;;  %7540 = vrcp.f32 %v4449_v37  ;;  %v1490_v4 = vmul.f32 1.442695, %v6439_v16  ;;  %v6441_v48 = vclamps-f32 %v910_v21, 30.0  ;;  %v1778_v36 = vmul.f32 10.0, %v770_v43  ;;  %283 = vst.msk [vmem:[#allocation2 + $0x180] sm:$0x3] %vm240_vm0, %v8291_v1 }
 0x261   : > { %v7535_v35 = vpop.eup %7534  ;;  %v2905_v45 = vadd.f32 1.0, %v2737_v29  ;;  %7542 = vpow2.f32 %v2354_v26  ;;  %v750_v59 = vsub.f32 %v9134_v42, %v8514_v50  ;;  %v6019_v61 = vadd.f32 %v5207_v51, %v5051_v11  ;;  %290 = vst.msk [vmem:[#allocation2 + $0x1b8] sm:$0x3] %vm240_vm0, %v8291_v1 }
 0x262   : > { %v3595_v22 = vmul.f32 %v7535_v35, %v9462_v60  ;;  %7544 = vpow2.f32 %v2352_v32  ;;  %v1494_v44 = vmul.f32 1.442695, %v6441_v48  ;;  %v6637_v0 = vclamps-f32 %v1778_v36, 30.0 }
 0x263   : > { %v3241_v20 = vmul.f32 %v3073_v53, %v2905_v45  ;;  %7546 = vpow2.f32 %v1490_v4  ;;  %v9490_v5 = vmul.f32 10.0, %v750_v59  ;;  %v7537_v40 = vpop.eup %7536  ;;  %v480_v49 = vsub.f32 %v9077_v39, %v8401_v19  ;;  %6076 = vst.msk [vmem:[#allocation2 + $0x18] sm:$0xff] %vm233_vm13, %v6019_v61 }
 0x264   : > { %6722 = vmatmul.msk.f32.gmra.mxu3 %vm4873_vm6, %v3595_v22  ;;  %7548 = vpow2.f32 %v1494_v44  ;;  %v2390_v17 = vmul.f32 1.442695, %v6637_v0  ;;  %v500_v60 = vsub.f32 %v9101_v18, %v8401_v19  ;;  %v9498_v47 = vmul.f32 0.22140276, %v7537_v40 }
 0x265   : > { %v7539_v54 = vpop.eup %7538  ;;  %7550 = vrcp.f32 %v3241_v20  ;;  %v2757_v8 = vmul.f32 1.105171, %v7537_v40  ;;  %v3093_v7 = vadd.f32 1.105171, %v7537_v40  ;;  %v6617_v34 = vclamps-f32 %v9490_v5, 30.0 }
 0x266   : > { %v7541_v56 = vpop.eup %7540  ;;  %v4805_v26 = vmul.f32 %v7539_v54, %v9472_v3  ;;  %7552 = vpow2.f32 %v2390_v17  ;;  %v9503_v39 = vadd.f32 %v5171_v55, %v5133_v31  ;;  %v892_v32 = vmul.f32 10.0, %v480_v49 }
 0x267   : > { %v7543_v6 = vpop.eup %7542  ;;  %v4785_v18 = vmul.f32 %v7541_v56, %v9474_v57  ;;  %v2925_v12 = vadd.f32 1.0, %v2757_v8  ;;  %v912_v21 = vmul.f32 10.0, %v500_v60  ;;  %v749_v3 = vsub.f32 %v9145_v10, %v8514_v50 }
 0x268   : > { %v7545_v43 = vpop.eup %7544  ;;  %5687 = vmatpush.xpose.msrb.mxu3 %v4805_v26  ;;  %v9506_v27 = vmul.f32 0.22140276, %v7543_v6  ;;  %v3944_v9 = vmul.f32 1.105171, %v7543_v6  ;;  %v4280_v37 = vadd.f32 1.105171, %v7543_v6 }
 0x269   : > { %v7547_v16 = vpop.eup %7546  ;;  %5611 = vmatpush.xpose.msrb.mxu1 %v4785_v18  ;;  %v3261_v41 = vmul.f32 %v3093_v7, %v2925_v12  ;;  %v3775_v29 = vmul.f32 0.22140276, %v7545_v43  ;;  %v3943_v53 = vmul.f32 1.105171, %v7545_v43  ;;  %v4279_v4 = vadd.f32 1.105171, %v7545_v43 }
 0x26a   : > { %v7549_v48 = vpop.eup %7548  ;;  %v4112_v57 = vadd.f32 1.0, %v3944_v9  ;;  %v9510_v36 = vmul.f32 0.22140276, %v7547_v16  ;;  %v2756_v11 = vmul.f32 1.105171, %v7547_v16  ;;  %v6423_v35 = vclamps-f32 %v892_v32, 30.0 }
 0x26b   : > { %v7551_v45 = vpop.eup %7550  ;;  %7554 = vrcp.f32 %v3261_v41  ;;  %v4111_v51 = vadd.f32 1.0, %v3943_v53  ;;  %v3092_v59 = vadd.f32 1.105171, %v7547_v16  ;;  %v9512_v22 = vmul.f32 0.22140276, %v7549_v48  ;;  %v6136_v31 = vld [vmem:[#allocation2 + $0x18] sm:$0xff] }
 0x26c   : > { %v7553_v44 = vpop.eup %7552  ;;  %v3577_v0 = vmul.f32 %v7551_v45, %v9484_v28  ;;  %v4448_v20 = vmul.f32 %v4280_v37, %v4112_v57  ;;  %v2924_v61 = vadd.f32 1.0, %v2756_v11  ;;  %v2758_v5 = vmul.f32 1.105171, %v7549_v48  ;;  %6192 = vst.msk [vmem:[%s9306_s28 + $0x18] sm:$0xff] %vm233_vm13, %v6136_v31 }
 0x26d   : > { %v4447_v40 = vmul.f32 %v4279_v4, %v4111_v51  ;;  %v3094_v17 = vadd.f32 1.105171, %v7549_v48  ;;  %v9515_v49 = vmul.f32 0.22140276, %v7553_v44  ;;  %v3962_v60 = vmul.f32 1.105171, %v7553_v44 }
 0x26e   : > { %6716 = vmatmul.msk.f32.gmra.mxu0 %vm4873_vm6, %v3577_v0  ;;  %7556 = vrcp.f32 %v4448_v20  ;;  %v3260_v54 = vmul.f32 %v3092_v59, %v2924_v61  ;;  %v2926_v8 = vadd.f32 1.0, %v2758_v5  ;;  %v4298_v7 = vadd.f32 1.105171, %v7553_v44 }
 0x26f   : > { %7558 = vrcp.f32 %v4447_v40  ;;  %v4130_v55 = vadd.f32 1.0, %v3962_v60  ;;  %v2350_v28 = vmul.f32 1.442695, %v6617_v34  ;;  %v1458_v56 = vmul.f32 1.442695, %v6423_v35 }
 0x270   : > { %7560 = vrcp.f32 %v3260_v54  ;;  %v3262_v26 = vmul.f32 %v3094_v17, %v2926_v8  ;;  %v6443_v6 = vclamps-f32 %v912_v21, 30.0  ;;  %v1757_v18 = vmul.f32 10.0, %v749_v3 }
 0x271   : > { %v7555_v12 = vpop.eup %7554  ;;  %v4466_v32 = vmul.f32 %v4298_v7, %v4130_v55  ;;  %7562 = vpow2.f32 %v2350_v28  ;;  %v748_v43 = vsub.f32 %v9118_v62, %v8512_v13  ;;  %v499_v9 = vsub.f32 %v9105_v52, %v8401_v19 }
 0x272   : > { %v3597_v37 = vmul.f32 %v7555_v12, %v9498_v47  ;;  %7564 = vrcp.f32 %v3262_v26  ;;  %v1498_v16 = vmul.f32 1.442695, %v6443_v6  ;;  %v6616_v41 = vclamps-f32 %v1757_v18, 30.0  ;;  %v5209_v26 = vpop.f32.mrf.mxu2  ;;  %v8170_v6 = vld [vmem:[%s8373_s25] sm:$0xff] }
 0x273   : > { %7566 = vrcp.f32 %v4466_v32  ;;  %v1756_v34 = vmul.f32 10.0, %v748_v43  ;;  %v911_v53 = vmul.f32 10.0, %v499_v9  ;;  %v501_v21 = vsub.f32 %v9114_v38, %v8401_v19 }
 0x274   : > { %v7557_v3 = vpop.eup %7556  ;;  %5515 = vmatmul.f32.gmra.mxu2 %v3597_v37  ;;  %7568 = vpow2.f32 %v1458_v56  ;;  %v2348_v4 = vmul.f32 1.442695, %v6616_v41  ;;  %v767_v62 = vsub.f32 %v9148_v63, %v8512_v13  ;;  %v746_v52 = vsub.f32 %v9145_v10, %v8512_v13  ;;  %v5052_v41 = vld [vmem:[#allocation2 + $0x20] sm:$0xff] }
 0x275   : > { %v7559_v47 = vpop.eup %7558  ;;  %v4784_v48 = vmul.f32 %v7557_v3, %v9506_v27  ;;  %7570 = vpow2.f32 %v1498_v16  ;;  %v6615_v57 = vclamps-f32 %v1756_v34, 30.0  ;;  %v6442_v11 = vclamps-f32 %v911_v53, 30.0 }
 0x276   : > { %v7561_v35 = vpop.eup %7560  ;;  %v4783_v45 = vmul.f32 %v7559_v47, %v3775_v29  ;;  %7572 = vpow2.f32 %v2348_v4  ;;  %v913_v38 = vmul.f32 10.0, %v501_v21  ;;  %v1775_v51 = vmul.f32 10.0, %v767_v62 }
 0x277   : > { %v7563_v59 = vpop.eup %7562  ;;  %5573 = vmatpush.xpose.msrb.mxu0 %v4784_v48  ;;  %v3596_v44 = vmul.f32 %v7561_v35, %v9510_v36  ;;  %v2346_v0 = vmul.f32 1.442695, %v6615_v57  ;;  %v1496_v63 = vmul.f32 1.442695, %v6442_v11  ;;  %v1754_v20 = vmul.f32 10.0, %v746_v52 }
 0x278   : > { %v7565_v61 = vpop.eup %7564  ;;  %5650 = vmatpush.xpose.msrb.mxu2 %v4783_v45  ;;  %v9534_v10 = vmul.f32 0.22140276, %v7563_v59  ;;  %v3942_v27 = vmul.f32 1.105171, %v7563_v59  ;;  %v4278_v5 = vadd.f32 1.105171, %v7563_v59  ;;  %v747_v40 = vsub.f32 %v9134_v42, %v8512_v13 }
 0x279   : > { %v7567_v29 = vpop.eup %7566  ;;  %5477 = vmatmul.f32.gmra.mxu1 %v3596_v44  ;;  %v3598_v17 = vmul.f32 %v7565_v61, %v9512_v22  ;;  %7574 = vpow2.f32 %v2346_v0  ;;  %v6444_v60 = vclamps-f32 %v913_v38, 30.0  ;;  %v6634_v36 = vclamps-f32 %v1775_v51, 30.0  ;;  %v9554_v51 = vpop.f32.mrf.mxu3 }
 0x27a   : > { %v7569_v54 = vpop.eup %7568  ;;  %v4802_v8 = vmul.f32 %v7567_v29, %v9515_v49  ;;  %v4110_v7 = vadd.f32 1.0, %v3942_v27  ;;  %7576 = vpow2.f32 %v1496_v63  ;;  %v6613_v31 = vclamps-f32 %v1754_v20, 30.0  ;;  %v5136_v20 = vpop.f32.mrf.mxu0 }
 0x27b   : > { %v7571_v55 = vpop.eup %7570  ;;  %6723 = vmatmul.msk.f32.gmra.mxu3 %vm4873_vm6, %v3598_v17  ;;  %v9542_v28 = vmul.f32 0.22140276, %v7569_v54  ;;  %v2740_v42 = vmul.f32 1.105171, %v7569_v54  ;;  %v3076_v56 = vadd.f32 1.105171, %v7569_v54  ;;  %v351_v22 = vsel %vm350_vm9, %v8170_v6, %v8534_v2  ;;  %v5174_v27 = vpop.f32.mrf.mxu1 }
 0x27c   : > { %v7573_v18 = vpop.eup %7572  ;;  %5688 = vmatpush.xpose.msrb.mxu3 %v4802_v8  ;;  %v4446_v12 = vmul.f32 %v4278_v5, %v4110_v7  ;;  %v9547_v49 = vmul.f32 0.22140276, %v7571_v55  ;;  %v2760_v32 = vmul.f32 1.105171, %v7571_v55  ;;  %v3096_v43 = vadd.f32 1.105171, %v7571_v55 }
 0x27d   : > { %v2908_v9 = vadd.f32 1.0, %v2740_v42  ;;  %v9549_v37 = vmul.f32 0.22140276, %v7573_v18  ;;  %v3941_v16 = vmul.f32 1.105171, %v7573_v18  ;;  %v5210_v34 = vadd.f32 %v5209_v26, %v9503_v39 }
 0x27e   : > { %7578 = vrcp.f32 %v4446_v12  ;;  %v2928_v53 = vadd.f32 1.0, %v2760_v32  ;;  %v4277_v21 = vadd.f32 1.105171, %v7573_v18  ;;  %v1500_v3 = vmul.f32 1.442695, %v6444_v60 }
 0x27f   : > { %v7575_v4 = vpop.eup %7574  ;;  %v3244_v62 = vmul.f32 %v3076_v56, %v2908_v9  ;;  %v4109_v52 = vadd.f32 1.0, %v3941_v16  ;;  %v2384_v47 = vmul.f32 1.442695, %v6634_v36  ;;  %v6020_v48 = vadd.f32 %v5210_v34, %v5052_v41 }
 0x280   : > { %v7577_v57 = vpop.eup %7576  ;;  %v3264_v11 = vmul.f32 %v3096_v43, %v2928_v53  ;;  %v9552_v35 = vmul.f32 0.22140276, %v7575_v4  ;;  %v3940_v45 = vmul.f32 1.105171, %v7575_v4  ;;  %v4276_v38 = vadd.f32 1.105171, %v7575_v4 }
 0x281   : > { %7580 = vrcp.f32 %v3244_v62  ;;  %v4445_v59 = vmul.f32 %v4277_v21, %v4109_v52  ;;  %v9556_v39 = vmul.f32 0.22140276, %v7577_v57  ;;  %v2759_v44 = vmul.f32 1.105171, %v7577_v57  ;;  %6077 = vst.msk [vmem:[#allocation2 + $0x20] sm:$0xff] %vm233_vm13, %v6020_v48  ;;  %v9594_v62 = vpop.f32.mrf.mxu3 }
 0x282   : > { %7582 = vrcp.f32 %v3264_v11  ;;  %v4108_v0 = vadd.f32 1.0, %v3940_v45  ;;  %v3095_v63 = vadd.f32 1.105171, %v7577_v57  ;;  %v2342_v61 = vmul.f32 1.442695, %v6613_v31 }
 0x283   : > { %7584 = vrcp.f32 %v4445_v59  ;;  %v2927_v5 = vadd.f32 1.0, %v2759_v44  ;;  %v1755_v29 = vmul.f32 10.0, %v747_v40  ;;  %v9559_v17 = vadd.f32 %v5174_v27, %v5136_v20 }
 0x284   : > { %v7579_v60 = vpop.eup %7578  ;;  %v4444_v36 = vmul.f32 %v4276_v38, %v4108_v0  ;;  %7586 = vpow2.f32 %v1500_v3  ;;  %v353_v54 = vsel %vm352_vm10, %v351_v22, %v8539_v58  ;;  %v356_v8 = vsel %vm355_vm11, %v8170_v6, %v8534_v2  ;;  %v8171_v22 = vld [vmem:[%s8379_s23] sm:$0xff] }
 0x285   : > { %v4782_v7 = vmul.f32 %v7579_v60, %v9534_v10  ;;  %v3263_v55 = vmul.f32 %v3095_v63, %v2927_v5  ;;  %7588 = vpow2.f32 %v2384_v47  ;;  %v6614_v31 = vclamps-f32 %v1755_v29, 30.0 }
 0x286   : > { %7590 = vrcp.f32 %v4444_v36  ;;  %v354_v42 = vrot.slane %v353_v54, 4  ;;  %v9568_v40 = vsel %vm357_vm12, %v356_v8, %v8539_v58  ;;  %v608_v10 = vsel %vm360_vm14, %v8171_v22, %v8397_v14 }
 0x287   : > { %v7581_v56 = vpop.eup %7580  ;;  %5612 = vmatpush.xpose.msrb.mxu1 %v4782_v7  ;;  %7592 = vrcp.f32 %v3263_v55  ;;  %v2344_v26 = vmul.f32 1.442695, %v6614_v31  ;;  %v609_v41 = vsel %vm362_vm15, %v8399_v15, %v608_v10 }
 0x288   : > { %v7583_v6 = vpop.eup %7582  ;;  %v3580_v18 = vmul.f32 %v7581_v56, %v9542_v28  ;;  %v6137_v12 = vld [vmem:[#allocation2 + $0x20] sm:$0xff]  ;;  %7594 = vpow2.f32 %v2342_v61  ;;  %v9574_v32 = vperm.slane %v354_v42, 0  ;;  %v9576_v43 = vperm.slane %v354_v42, 2 }
 0x289   : > { %v7585_v9 = vpop.eup %7584  ;;  %v3600_v16 = vmul.f32 %v7583_v6, %v9547_v49  ;;  %6193 = vst.msk [vmem:[%s9306_s28 + $0x20] sm:$0xff] %vm233_vm13, %v6137_v12  ;;  %7596 = vpow2.f32 %v2344_v26  ;;  %v9583_v34 = vperm.slane %v354_v42, 1  ;;  %v9592_v3 = vrot.slane %v609_v41, 6 }
 0x28a   : > { %v7587_v53 = vpop.eup %7586  ;;  %6717 = vmatmul.msk.f32.gmra.mxu0 %vm4873_vm6, %v3580_v18  ;;  %v4781_v28 = vmul.f32 %v7585_v9, %v9549_v37  ;;  %v502_v21 = vsub.f32 %v9574_v32, %v8512_v13  ;;  %v504_v49 = vsub.f32 %v9576_v43, %v8512_v13  ;;  %v505_v59 = vsub.f32 %v9574_v32, %v8514_v50 }
 0x28b   : > { %v7589_v4 = vpop.eup %7588  ;;  %5518 = vmatmul.f32.gmra.mxu2 %v3600_v16  ;;  %v9596_v52 = vmul.f32 0.22140276, %v7587_v53  ;;  %v2761_v47 = vmul.f32 1.105171, %v7587_v53  ;;  %v3097_v48 = vadd.f32 1.105171, %v7587_v53  ;;  %v503_v57 = vsub.f32 %v9583_v34, %v8512_v13 }
 0x28c   : > { %v7591_v37 = vpop.eup %7590  ;;  %5574 = vmatpush.xpose.msrb.mxu0 %v4781_v28  ;;  %v3791_v11 = vmul.f32 0.22140276, %v7589_v4  ;;  %v3959_v45 = vmul.f32 1.105171, %v7589_v4  ;;  %v4295_v38 = vadd.f32 1.105171, %v7589_v4 }
 0x28d   : > { %v7593_v44 = vpop.eup %7592  ;;  %v4780_v0 = vmul.f32 %v7591_v37, %v9552_v35  ;;  %v2929_v63 = vadd.f32 1.0, %v2761_v47  ;;  %v914_v20 = vmul.f32 10.0, %v502_v21  ;;  %v916_v61 = vmul.f32 10.0, %v504_v49  ;;  %v9617_v47 = vpop.f32.mrf.mxu3 }
 0x28e   : > { %v7595_v27 = vpop.eup %7594  ;;  %v3599_v5 = vmul.f32 %v7593_v44, %v9556_v39  ;;  %v4127_v29 = vadd.f32 1.0, %v3959_v45  ;;  %v9605_v60 = vperm.slane %v9592_v3, 0  ;;  %v915_v36 = vmul.f32 10.0, %v503_v57  ;;  %v5212_v37 = vpop.f32.mrf.mxu2  ;;  %v5053_v44 = vld [vmem:[#allocation2 + $0x28] sm:$0xff] }
 0x28f   : > { %v7597_v54 = vpop.eup %7596  ;;  %5651 = vmatpush.xpose.msrb.mxu2 %v4780_v0  ;;  %v3265_v8 = vmul.f32 %v3097_v48, %v2929_v63  ;;  %v3770_v7 = vmul.f32 0.22140276, %v7595_v27  ;;  %v3938_v55 = vmul.f32 1.105171, %v7595_v27  ;;  %v4274_v31 = vadd.f32 1.105171, %v7595_v27 }
 0x290   : > { %5480 = vmatmul.f32.gmra.mxu1 %v3599_v5  ;;  %v4463_v42 = vmul.f32 %v4295_v38, %v4127_v29  ;;  %v9607_v35 = vmul.f32 0.22140276, %v7597_v54  ;;  %v3939_v56 = vmul.f32 1.105171, %v7597_v54  ;;  %v4275_v26 = vadd.f32 1.105171, %v7597_v54 }
 0x291   : > { %7598 = vrcp.f32 %v3265_v8  ;;  %v4106_v22 = vadd.f32 1.0, %v3938_v55  ;;  %v6445_v39 = vclamps-f32 %v914_v20, 30.0  ;;  %v6447_v10 = vclamps-f32 %v916_v61, 30.0 }
 0x292   : > { %7600 = vrcp.f32 %v4463_v42  ;;  %v4107_v6 = vadd.f32 1.0, %v3939_v56  ;;  %v806_v18 = vsub.f32 %v9605_v60, %v8401_v19  ;;  %v6446_v12 = vclamps-f32 %v915_v36, 30.0 }
 0x293   : > { %v4442_v9 = vmul.f32 %v4274_v31, %v4106_v22  ;;  %v1502_v16 = vmul.f32 1.442695, %v6445_v39  ;;  %v1506_v41 = vmul.f32 1.442695, %v6447_v10  ;;  %v9612_v53 = vrot.slane %v9568_v40, 5 }
 0x294   : > { %v4443_v28 = vmul.f32 %v4275_v26, %v4107_v6  ;;  %v1814_v21 = vmul.f32 10.0, %v806_v18  ;;  %v1504_v49 = vmul.f32 1.442695, %v6446_v12  ;;  %v9615_v4 = vperm.slane %v9592_v3, 1  ;;  %v5139_v18 = vpop.f32.mrf.mxu0 }
 0x295   : > { %7602 = vrcp.f32 %v4442_v9  ;;  %v9620_v48 = vperm.slane %v9612_v53, 0  ;;  %v9623_v57 = vperm.slane %v9612_v53, 2  ;;  %v9626_v45 = vperm.slane %v9138_v23, 2  ;;  %v5177_v9 = vpop.f32.mrf.mxu1 }
 0x296   : > { %7604 = vrcp.f32 %v4443_v28  ;;  %v6673_v40 = vclamps-f32 %v1814_v21, 30.0  ;;  %v807_v38 = vsub.f32 %v9615_v4, %v8401_v19  ;;  %v5213_v0 = vadd.f32 %v5212_v37, %v9559_v17 }
 0x297   : > { %v7599_v63 = vpop.eup %7598  ;;  %7606 = vpow2.f32 %v1502_v16  ;;  %v523_v20 = vsub.f32 %v9620_v48, %v8512_v13  ;;  %v787_v61 = vsub.f32 %v9626_v45, %v8401_v19  ;;  %v917_v27 = vmul.f32 10.0, %v505_v59 }
 0x298   : > { %v7601_v5 = vpop.eup %7600  ;;  %v3601_v29 = vmul.f32 %v7599_v63, %v9596_v52  ;;  %7608 = vpow2.f32 %v1506_v41  ;;  %v2462_v36 = vmul.f32 1.442695, %v6673_v40  ;;  %v1815_v54 = vmul.f32 10.0, %v807_v38 }
 0x299   : > { %v4799_v8 = vmul.f32 %v7601_v5, %v3791_v11  ;;  %7610 = vpow2.f32 %v1504_v49  ;;  %v935_v55 = vmul.f32 10.0, %v523_v20  ;;  %v6021_v31 = vadd.f32 %v5213_v0, %v5053_v44  ;;  %v9651_v0 = vpop.f32.mrf.mxu3 }
 0x29a   : > { %6724 = vmatmul.msk.f32.gmra.mxu3 %vm4873_vm6, %v3601_v29  ;;  %7612 = vpow2.f32 %v2462_v36  ;;  %v6674_v17 = vclamps-f32 %v1815_v54, 30.0  ;;  %v1795_v42 = vmul.f32 10.0, %v787_v61  ;;  %v6448_v56 = vclamps-f32 %v917_v27, 30.0 }
 0x29b   : > { %v7603_v26 = vpop.eup %7602  ;;  %5689 = vmatpush.xpose.msrb.mxu3 %v4799_v8  ;;  %v6466_v59 = vclamps-f32 %v935_v55, 30.0  ;;  %6078 = vst.msk [vmem:[#allocation2 + $0x28] sm:$0xff] %vm233_vm13, %v6021_v31  ;;  %v507_v52 = vsub.f32 %v9576_v43, %v8514_v50  ;;  %v9642_v11 = vperm.slane %v9138_v23, 1  ;;  %v803_v22 = vsub.f32 %v9605_v60, %v8413_v24 }
 0x29c   : > { %v7605_v39 = vpop.eup %7604  ;;  %v4778_v10 = vmul.f32 %v7603_v26, %v3770_v7  ;;  %v2464_v6 = vmul.f32 1.442695, %v6674_v17  ;;  %v6654_v12 = vclamps-f32 %v1795_v42, 30.0  ;;  %v1508_v16 = vmul.f32 1.442695, %v6448_v56 }
 0x29d   : > { %v7607_v41 = vpop.eup %7606  ;;  %v4779_v28 = vmul.f32 %v7605_v39, %v9607_v35  ;;  %v1544_v21 = vmul.f32 1.442695, %v6466_v59  ;;  %v9647_v49 = vadd.f32 %v5177_v9, %v5139_v18  ;;  %v919_v37 = vmul.f32 10.0, %v507_v52 }
 0x29e   : > { %v7609_v40 = vpop.eup %7608  ;;  %5575 = vmatpush.xpose.msrb.mxu0 %v4778_v10  ;;  %v9649_v23 = vmul.f32 0.22140276, %v7607_v41  ;;  %v2762_v38 = vmul.f32 1.105171, %v7607_v41  ;;  %v3098_v44 = vadd.f32 1.105171, %v7607_v41  ;;  %7614 = vpow2.f32 %v2464_v6 }
 0x29f   : > { %v7611_v7 = vpop.eup %7610  ;;  %5613 = vmatpush.xpose.msrb.mxu1 %v4779_v28  ;;  %v2596_v63 = vmul.f32 0.22140276, %v7609_v40  ;;  %v2764_v20 = vmul.f32 1.105171, %v7609_v40  ;;  %v3100_v61 = vadd.f32 1.105171, %v7609_v40  ;;  %7616 = vpow2.f32 %v1544_v21 }
 0x2a0   : > { %v7613_v35 = vpop.eup %7612  ;;  %v2930_v27 = vadd.f32 1.0, %v2762_v38  ;;  %v2595_v5 = vmul.f32 0.22140276, %v7611_v7  ;;  %v2763_v29 = vmul.f32 1.105171, %v7611_v7  ;;  %7618 = vpow2.f32 %v1508_v16 }
 0x2a1   : > { %v2932_v36 = vadd.f32 1.0, %v2764_v20  ;;  %v9653_v54 = vmul.f32 0.22140276, %v7613_v35  ;;  %v3998_v8 = vmul.f32 1.105171, %v7613_v35  ;;  %v6450_v55 = vclamps-f32 %v919_v37, 30.0 }
 0x2a2   : > { %v3266_v31 = vmul.f32 %v3098_v44, %v2930_v27  ;;  %v4334_v17 = vadd.f32 1.105171, %v7613_v35  ;;  %v2931_v42 = vadd.f32 1.0, %v2763_v29  ;;  %v3099_v56 = vadd.f32 1.105171, %v7611_v7  ;;  %v6138_v26 = vld [vmem:[#allocation2 + $0x28] sm:$0xff]  ;;  %v9665_v29 = vpop.f32.mrf.mxu3 }
 0x2a3   : > { %v3268_v59 = vmul.f32 %v3100_v61, %v2932_v36  ;;  %v4166_v52 = vadd.f32 1.0, %v3998_v8  ;;  %6194 = vst.msk [vmem:[%s9306_s28 + $0x28] sm:$0xff] %vm233_vm13, %v6138_v26  ;;  %v2424_v39 = vmul.f32 1.442695, %v6654_v12  ;;  %v1512_v10 = vmul.f32 1.442695, %v6450_v55 }
 0x2a4   : > { %v7615_v6 = vpop.eup %7614  ;;  %7620 = vrcp.f32 %v3266_v31  ;;  %v3267_v18 = vmul.f32 %v3099_v56, %v2931_v42  ;;  %v786_v9 = vsub.f32 %v9642_v11, %v8401_v19  ;;  %v1811_v16 = vmul.f32 10.0, %v803_v22 }
 0x2a5   : > { %v7617_v41 = vpop.eup %7616  ;;  %7622 = vrcp.f32 %v3268_v59  ;;  %v4502_v28 = vmul.f32 %v4334_v17, %v4166_v52  ;;  %v9659_v21 = vmul.f32 0.22140276, %v7615_v6  ;;  %v3999_v37 = vmul.f32 1.105171, %v7615_v6 }
 0x2a6   : > { %v7619_v40 = vpop.eup %7618  ;;  %7624 = vrcp.f32 %v3267_v18  ;;  %v9661_v38 = vmul.f32 0.22140276, %v7617_v41  ;;  %v2783_v44 = vmul.f32 1.105171, %v7617_v41  ;;  %v3119_v12 = vadd.f32 1.105171, %v7617_v41 }
 0x2a7   : > { %7626 = vrcp.f32 %v4502_v28  ;;  %v4167_v7 = vadd.f32 1.0, %v3999_v37  ;;  %v4335_v20 = vadd.f32 1.105171, %v7615_v6  ;;  %v9663_v61 = vmul.f32 0.22140276, %v7619_v40 }
 0x2a8   : > { %v2951_v35 = vadd.f32 1.0, %v2783_v44  ;;  %7628 = vpow2.f32 %v2424_v39  ;;  %v2765_v22 = vmul.f32 1.105171, %v7619_v40  ;;  %v3101_v27 = vadd.f32 1.105171, %v7619_v40 }
 0x2a9   : > { %v4503_v36 = vmul.f32 %v4335_v20, %v4167_v7  ;;  %7630 = vpow2.f32 %v1512_v10  ;;  %v1794_v8 = vmul.f32 10.0, %v786_v9  ;;  %v6670_v55 = vclamps-f32 %v1811_v16, 30.0 }
 0x2aa   : > { %v7621_v31 = vpop.eup %7620  ;;  %v3287_v17 = vmul.f32 %v3119_v12, %v2951_v35  ;;  %v2933_v42 = vadd.f32 1.0, %v2765_v22  ;;  %v506_v56 = vsub.f32 %v9583_v34, %v8514_v50  ;;  %v526_v26 = vsub.f32 %v9620_v48, %v8514_v50  ;;  %v5215_v22 = vpop.f32.mrf.mxu2 }
 0x2ab   : > { %v7623_v59 = vpop.eup %7622  ;;  %v3602_v52 = vmul.f32 %v7621_v31, %v9649_v23  ;;  %7632 = vrcp.f32 %v4503_v36  ;;  %v6653_v39 = vclamps-f32 %v1794_v8, 30.0  ;;  %v2456_v6 = vmul.f32 1.442695, %v6670_v55 }
 0x2ac   : > { %v7625_v18 = vpop.eup %7624  ;;  %v3604_v41 = vmul.f32 %v7623_v59, %v2596_v63  ;;  %7634 = vrcp.f32 %v3287_v17  ;;  %v3269_v10 = vmul.f32 %v3101_v27, %v2933_v42  ;;  %v918_v9 = vmul.f32 10.0, %v506_v56  ;;  %v5273_v56 = vpop.f32.mrf.mxu0 }
 0x2ad   : > { %v7627_v16 = vpop.eup %7626  ;;  %5576 = vmatmul.f32.vlgmr.msrb.gmra.mxu0 %v3602_v52  ;;  %v3603_v28 = vmul.f32 %v7625_v18, %v2595_v5  ;;  %v2422_v37 = vmul.f32 1.442695, %v6653_v39  ;;  %7636 = vpow2.f32 %v2456_v6  ;;  %v938_v40 = vmul.f32 10.0, %v526_v26 }
 0x2ae   : > { %v7629_v44 = vpop.eup %7628  ;;  %6725 = vmatmul.msk.f32.vlgmr.msrb.gmra.mxu2 %vm4873_vm6, %v3604_v41  ;;  %v4838_v23 = vmul.f32 %v7627_v16, %v9653_v54  ;;  %7638 = vrcp.f32 %v3269_v10  ;;  %v6449_v12 = vclamps-f32 %v918_v9, 30.0  ;;  %v804_v63 = vsub.f32 %v9615_v4, %v8413_v24  ;;  %v9684_v41 = vpop.f32.mrf.mxu3 }
 0x2af   : > { %v7631_v7 = vpop.eup %7630  ;;  %5614 = vmatmul.f32.vlgmr.msrb.gmra.mxu1 %v3603_v28  ;;  %v9677_v20 = vmul.f32 0.22140276, %v7629_v44  ;;  %v3979_v35 = vmul.f32 1.105171, %v7629_v44  ;;  %v4315_v5 = vadd.f32 1.105171, %v7629_v44  ;;  %7640 = vpow2.f32 %v2422_v37 }
 0x2b0   : > { %5797 = vmatpush.xpose.msra.mxu2 %v4838_v23  ;;  %v9679_v27 = vmul.f32 0.22140276, %v7631_v7  ;;  %v2767_v36 = vmul.f32 1.105171, %v7631_v7  ;;  %v3103_v8 = vadd.f32 1.105171, %v7631_v7  ;;  %v5216_v39 = vadd.f32 %v5215_v22, %v9647_v49 }
 0x2b1   : > { %v7633_v55 = vpop.eup %7632  ;;  %v4147_v54 = vadd.f32 1.0, %v3979_v35  ;;  %v1510_v31 = vmul.f32 1.442695, %v6449_v12  ;;  %v6469_v17 = vclamps-f32 %v938_v40, 30.0  ;;  %v1812_v42 = vmul.f32 10.0, %v804_v63  ;;  %v5311_v12 = vpop.f32.mrf.mxu1 }
 0x2b2   : > { %v7635_v26 = vpop.eup %7634  ;;  %v4839_v59 = vmul.f32 %v7633_v55, %v9659_v21  ;;  %v2935_v52 = vadd.f32 1.0, %v2767_v36  ;;  %v5274_v40 = vadd.f32 %v5273_v56, %v9554_v51  ;;  %v784_v23 = vsub.f32 %v9626_v45, %v8413_v24 }
 0x2b3   : > { %v7637_v6 = vpop.eup %7636  ;;  %v3623_v18 = vmul.f32 %v7635_v26, %v9661_v38  ;;  %v4483_v10 = vmul.f32 %v4315_v5, %v4147_v54  ;;  %7642 = vpow2.f32 %v1510_v31  ;;  %v1550_v9 = vmul.f32 1.442695, %v6469_v17 }
 0x2b4   : > { %v7639_v16 = vpop.eup %7638  ;;  %5835 = vmatpush.xpose.msra.mxu3 %v4839_v59  ;;  %v3271_v28 = vmul.f32 %v3103_v8, %v2935_v52  ;;  %v3995_v37 = vmul.f32 1.105171, %v7637_v6  ;;  %v4331_v21 = vadd.f32 1.105171, %v7637_v6  ;;  %v6671_v38 = vclamps-f32 %v1812_v42, 30.0  ;;  %v5055_v8 = vld [vmem:[#allocation2 + $0x38] sm:$0xff] }
 0x2b5   : > { %v7641_v44 = vpop.eup %7640  ;;  %5690 = vmatmul.f32.vlgmr.msrb.gmra.mxu3 %v3623_v18  ;;  %7644 = vrcp.f32 %v4483_v10  ;;  %v3605_v49 = vmul.f32 %v7639_v16, %v9663_v61  ;;  %v9694_v35 = vmul.f32 0.22140276, %v7637_v6  ;;  %v1792_v61 = vmul.f32 10.0, %v784_v23  ;;  %v5054_v10 = vld [vmem:[#allocation2 + $0x30] sm:$0x3] }
 0x2b6   : > { %7646 = vrcp.f32 %v3271_v28  ;;  %v3978_v63 = vmul.f32 1.105171, %v7641_v44  ;;  %v4314_v7 = vadd.f32 1.105171, %v7641_v44  ;;  %v4163_v51 = vadd.f32 1.0, %v3995_v37  ;;  %v9720_v23 = vpop.f32.mrf.mxu3 }
 0x2b7   : > { %5579 = vmatmul.f32.gmra.mxu0 %v3605_v49  ;;  %7648 = vpow2.f32 %v1550_v9  ;;  %v2458_v5 = vmul.f32 1.442695, %v6671_v38  ;;  %v9698_v22 = vmul.f32 0.22140276, %v7641_v44  ;;  %v5312_v55 = vadd.f32 %v5311_v12, %v5274_v40 }
 0x2b8   : > { %v4146_v36 = vadd.f32 1.0, %v3978_v63  ;;  %v508_v54 = vsub.f32 %v9574_v32, %v8499_v33  ;;  %v4499_v17 = vmul.f32 %v4331_v21, %v4163_v51  ;;  %v6651_v42 = vclamps-f32 %v1792_v61, 30.0 }
 0x2b9   : > { %v7643_v31 = vpop.eup %7642  ;;  %7650 = vpow2.f32 %v2458_v5  ;;  %v510_v56 = vsub.f32 %v9576_v43, %v8499_v33  ;;  %v783_v6 = vsub.f32 %v9642_v11, %v8413_v24  ;;  %v6023_v16 = vadd.f32 %v5312_v55, %v5055_v8 }
 0x2ba   : > { %v4482_v26 = vmul.f32 %v4314_v7, %v4146_v36  ;;  %v2766_v59 = vmul.f32 1.105171, %v7643_v31  ;;  %v3102_v52 = vadd.f32 1.105171, %v7643_v31  ;;  %7652 = vrcp.f32 %v4499_v17 }
 0x2bb   : > { %v7645_v18 = vpop.eup %7644  ;;  %v2418_v9 = vmul.f32 1.442695, %v6651_v42  ;;  %v800_v28 = vsub.f32 %v9605_v60, %v8415_v25  ;;  %v6022_v44 = vadd.f32 %v5216_v39, %v5054_v10  ;;  %v920_v12 = vmul.f32 10.0, %v508_v54  ;;  %6081 = vst.msk [vmem:[#allocation2 + $0x38] sm:$0xff] %vm233_vm13, %v6023_v16 }
 0x2bc   : > { %v7647_v37 = vpop.eup %7646  ;;  %v4819_v21 = vmul.f32 %v7645_v18, %v9677_v20  ;;  %7654 = vrcp.f32 %v4482_v26  ;;  %v2934_v40 = vadd.f32 1.0, %v2766_v59  ;;  %v922_v63 = vmul.f32 10.0, %v510_v56 }
 0x2bd   : > { %v7649_v49 = vpop.eup %7648  ;;  %v3607_v38 = vmul.f32 %v7647_v37, %v9679_v27  ;;  %7656 = vpow2.f32 %v2418_v9  ;;  %v2598_v7 = vmul.f32 0.22140276, %v7643_v31  ;;  %6080 = vst.msk [vmem:[#allocation2 + $0x30] sm:$0x3] %vm240_vm0, %v6022_v44  ;;  %v6451_v27 = vclamps-f32 %v920_v12, 30.0 }
 0x2be   : > { %5759 = vmatpush.xpose.msra.mxu1 %v4819_v21  ;;  %v3270_v20 = vmul.f32 %v3102_v52, %v2934_v40  ;;  %v2786_v51 = vmul.f32 1.105171, %v7649_v49  ;;  %v3122_v5 = vadd.f32 1.105171, %v7649_v49  ;;  %v6453_v61 = vclamps-f32 %v922_v63, 30.0 }
 0x2bf   : > { %v7651_v39 = vpop.eup %7650  ;;  %6726 = vmatmul.msk.f32.gmra.mxu2 %vm4873_vm6, %v3607_v38  ;;  %v1791_v36 = vmul.f32 10.0, %v783_v6  ;;  %v1808_v1 = vmul.f32 10.0, %v800_v28  ;;  %v2618_v8 = vmul.f32 0.22140276, %v7649_v49  ;;  %v1514_v42 = vmul.f32 1.442695, %v6451_v27 }
 0x2c0   : > { %7658 = vrcp.f32 %v3270_v20  ;;  %v2954_v55 = vadd.f32 1.0, %v2786_v51  ;;  %v3996_v54 = vmul.f32 1.105171, %v7651_v39  ;;  %v7653_v31 = vpop.eup %7652  ;;  %v4332_v17 = vadd.f32 1.105171, %v7651_v39 }
 0x2c1   : > { %v1518_v56 = vmul.f32 1.442695, %v6453_v61  ;;  %v509_v26 = vsub.f32 %v9583_v34, %v8499_v33  ;;  %v4835_v52 = vmul.f32 %v7653_v31, %v9694_v35  ;;  %v6650_v6 = vclamps-f32 %v1791_v36, 30.0  ;;  %v5276_v61 = vpop.f32.mrf.mxu0  ;;  %v5387_v36 = vpop.f32.mrf.mxu3 }
 0x2c2   : > { %v7655_v59 = vpop.eup %7654  ;;  %v3290_v18 = vmul.f32 %v3122_v5, %v2954_v55  ;;  %v4164_v10 = vadd.f32 1.0, %v3996_v54  ;;  %7660 = vpow2.f32 %v1514_v42  ;;  %v6667_v37 = vclamps-f32 %v1808_v1, 30.0 }
 0x2c3   : > { %v7657_v9 = vpop.eup %7656  ;;  %v4818_v28 = vmul.f32 %v7655_v59, %v9698_v22  ;;  %v921_v21 = vmul.f32 10.0, %v509_v26  ;;  %5798 = vmatpush.xpose.msra.mxu2 %v4835_v52  ;;  %v3828_v16 = vmul.f32 0.22140276, %v7651_v39  ;;  %v2416_v38 = vmul.f32 1.442695, %v6650_v6  ;;  %v6140_v39 = vld [vmem:[#allocation2 + $0x38] sm:$0xff] }
 0x2c4   : > { %7662 = vrcp.f32 %v3290_v18  ;;  %v4500_v40 = vmul.f32 %v4332_v17, %v4164_v10  ;;  %v3976_v44 = vmul.f32 1.105171, %v7657_v9  ;;  %v4312_v49 = vadd.f32 1.105171, %v7657_v9  ;;  %v6139_v63 = vld [vmem:[#allocation2 + $0x30] sm:$0x3] }
 0x2c5   : > { %5721 = vmatpush.xpose.msra.mxu0 %v4818_v28  ;;  %7664 = vpow2.f32 %v1518_v56  ;;  %v2450_v35 = vmul.f32 1.442695, %v6667_v37  ;;  %v6452_v22 = vclamps-f32 %v921_v21, 30.0  ;;  %v529_v51 = vsub.f32 %v9620_v48, %v8499_v33  ;;  %6195 = vst.msk [vmem:[%s9306_s28 + $0x30] sm:$0x3] %vm240_vm0, %v6139_v63  ;;  %v5349_v56 = vpop.f32.mrf.mxu2 }
 0x2c6   : > { %v7659_v12 = vpop.eup %7658  ;;  %7666 = vrcp.f32 %v4500_v40  ;;  %v4144_v20 = vadd.f32 1.0, %v3976_v44  ;;  %v801_v27 = vsub.f32 %v9615_v4, %v8415_v25  ;;  %v781_v1 = vsub.f32 %v9626_v45, %v8415_v25  ;;  %6196 = vst.msk [vmem:[%s9306_s28 + $0x38] sm:$0xff] %vm233_vm13, %v6140_v39 }
 0x2c7   : > { %v3606_v5 = vmul.f32 %v7659_v12, %v2598_v7  ;;  %7668 = vpow2.f32 %v2416_v38  ;;  %v1516_v54 = vmul.f32 1.442695, %v6452_v22  ;;  %v941_v31 = vmul.f32 10.0, %v529_v51 }
 0x2c8   : > { %v4480_v55 = vmul.f32 %v4312_v49, %v4144_v20  ;;  %7670 = vpow2.f32 %v2450_v35  ;;  %v7661_v17 = vpop.eup %7660  ;;  %v3808_v7 = vmul.f32 0.22140276, %v7657_v9  ;;  %v1809_v42 = vmul.f32 10.0, %v801_v27 }
 0x2c9   : > { %5617 = vmatmul.f32.gmra.mxu1 %v3606_v5  ;;  %v5277_v26 = vadd.f32 %v5276_v61, %v9594_v62  ;;  %v1789_v59 = vmul.f32 10.0, %v781_v1  ;;  %v2768_v18 = vmul.f32 1.105171, %v7661_v17  ;;  %v3104_v10 = vadd.f32 1.105171, %v7661_v17 }
 0x2ca   : > { %v7663_v52 = vpop.eup %7662  ;;  %7672 = vrcp.f32 %v4480_v55  ;;  %v9741_v6 = vadd.f32 %v5387_v36, %v5349_v56  ;;  %v6472_v21 = vclamps-f32 %v941_v31, 30.0  ;;  %v6668_v40 = vclamps-f32 %v1809_v42, 30.0 }
 0x2cb   : > { %v7665_v28 = vpop.eup %7664  ;;  %v3626_v37 = vmul.f32 %v7663_v52, %v2618_v8  ;;  %7674 = vpow2.f32 %v1516_v54  ;;  %v2600_v49 = vmul.f32 0.22140276, %v7661_v17  ;;  %v2936_v38 = vadd.f32 1.0, %v2768_v18 }
 0x2cc   : > { %v7667_v44 = vpop.eup %7666  ;;  %v2770_v9 = vmul.f32 1.105171, %v7665_v28  ;;  %v6648_v35 = vclamps-f32 %v1789_v59, 30.0  ;;  %v3106_v63 = vadd.f32 1.105171, %v7665_v28 }
 0x2cd   : > { %v7669_v12 = vpop.eup %7668  ;;  %5693 = vmatmul.f32.gmra.mxu3 %v3626_v37  ;;  %v4836_v62 = vmul.f32 %v7667_v44, %v3828_v16  ;;  %v1556_v20 = vmul.f32 1.442695, %v6472_v21  ;;  %v2452_v22 = vmul.f32 1.442695, %v6668_v40  ;;  %v3272_v5 = vmul.f32 %v3104_v10, %v2936_v38  ;;  %v5314_v16 = vpop.f32.mrf.mxu1  ;;  %v5056_v37 = vld [vmem:[#allocation2 + $0x40] sm:$0xff] }
 0x2ce   : > { %v7671_v51 = vpop.eup %7670  ;;  %v2602_v39 = vmul.f32 0.22140276, %v7665_v28  ;;  %v2938_v27 = vadd.f32 1.0, %v2770_v9  ;;  %v3975_v61 = vmul.f32 1.105171, %v7669_v12  ;;  %v5315_v44 = vadd.f32 %v5314_v16, %v5277_v26 }
 0x2cf   : > { %5836 = vmatpush.xpose.msra.mxu3 %v4836_v62  ;;  %v9743_v8 = vmul.f32 0.22140276, %v7669_v12  ;;  %v4311_v36 = vadd.f32 1.105171, %v7669_v12  ;;  %v3992_v1 = vmul.f32 1.105171, %v7671_v51  ;;  %7676 = vpow2.f32 %v1556_v20 }
 0x2d0   : > { %v7673_v55 = vpop.eup %7672  ;;  %7678 = vrcp.f32 %v3272_v5  ;;  %v3274_v54 = vmul.f32 %v3106_v63, %v2938_v27  ;;  %v4143_v31 = vadd.f32 1.0, %v3975_v61  ;;  %v4328_v17 = vadd.f32 1.105171, %v7671_v51 }
 0x2d1   : > { %v7675_v42 = vpop.eup %7674  ;;  %v4816_v56 = vmul.f32 %v7673_v55, %v3808_v7  ;;  %v4160_v59 = vadd.f32 1.0, %v3992_v1  ;;  %7680 = vpow2.f32 %v2452_v22  ;;  %v2412_v52 = vmul.f32 1.442695, %v6648_v35 }
 0x2d2   : > { %7682 = vrcp.f32 %v3274_v54  ;;  %v4479_v18 = vmul.f32 %v4311_v36, %v4143_v31  ;;  %v3824_v10 = vmul.f32 0.22140276, %v7671_v51  ;;  %v2769_v28 = vmul.f32 1.105171, %v7675_v42 }
 0x2d3   : > { %5760 = vmatpush.xpose.msra.mxu1 %v4816_v56  ;;  %v4496_v21 = vmul.f32 %v4328_v17, %v4160_v59  ;;  %v3105_v40 = vadd.f32 1.105171, %v7675_v42  ;;  %7684 = vpow2.f32 %v2412_v52  ;;  %v511_v9 = vsub.f32 %v9574_v32, %v8425_v30 }
 0x2d4   : > { %7686 = vrcp.f32 %v4479_v18  ;;  %v2937_v38 = vadd.f32 1.0, %v2769_v28  ;;  %v513_v7 = vsub.f32 %v9576_v43, %v8425_v30  ;;  %v2601_v35 = vmul.f32 0.22140276, %v7675_v42 }
 0x2d5   : > { %v7677_v12 = vpop.eup %7676  ;;  %7688 = vrcp.f32 %v4496_v21  ;;  %v6024_v62 = vadd.f32 %v5315_v44, %v5056_v37  ;;  %v780_v63 = vsub.f32 %v9642_v11, %v8415_v25  ;;  %v797_v26 = vsub.f32 %v9605_v60, %v8425_v30 }
 0x2d6   : > { %v7679_v20 = vpop.eup %7678  ;;  %v3273_v22 = vmul.f32 %v3105_v40, %v2937_v38  ;;  %v2789_v51 = vmul.f32 1.105171, %v7677_v12  ;;  %v3125_v5 = vadd.f32 1.105171, %v7677_v12  ;;  %v9753_v36 = vmul.f32 0.22140276, %v7677_v12 }
 0x2d7   : > { %v7681_v27 = vpop.eup %7680  ;;  %v3608_v61 = vmul.f32 %v7679_v20, %v2600_v49  ;;  %6082 = vst.msk [vmem:[#allocation2 + $0x40] sm:$0xff] %vm233_vm13, %v6024_v62  ;;  %v923_v1 = vmul.f32 10.0, %v511_v9  ;;  %v925_v55 = vmul.f32 10.0, %v513_v7  ;;  %v1788_v16 = vmul.f32 10.0, %v780_v63 }
 0x2d8   : > { %v7683_v54 = vpop.eup %7682  ;;  %7690 = vrcp.f32 %v3273_v22  ;;  %v2957_v31 = vadd.f32 1.0, %v2789_v51  ;;  %v3993_v17 = vmul.f32 1.105171, %v7681_v27  ;;  %v4329_v59 = vadd.f32 1.105171, %v7681_v27 }
 0x2d9   : > { %v7685_v42 = vpop.eup %7684  ;;  %5582 = vmatmul.f32.gmra.mxu0 %v3608_v61  ;;  %v3610_v56 = vmul.f32 %v7683_v54, %v2602_v39  ;;  %v6454_v52 = vclamps-f32 %v923_v1, 30.0  ;;  %v6456_v18 = vclamps-f32 %v925_v55, 30.0  ;;  %v3825_v49 = vmul.f32 0.22140276, %v7681_v27 }
 0x2da   : > { %v7687_v28 = vpop.eup %7686  ;;  %v3293_v37 = vmul.f32 %v3125_v5, %v2957_v31  ;;  %v4161_v21 = vadd.f32 1.0, %v3993_v17  ;;  %v3973_v40 = vmul.f32 1.105171, %v7685_v42  ;;  %v4309_v9 = vadd.f32 1.105171, %v7685_v42 }
 0x2db   : > { %v7689_v44 = vpop.eup %7688  ;;  %6727 = vmatmul.msk.f32.gmra.mxu2 %vm4873_vm6, %v3610_v56  ;;  %v4815_v38 = vmul.f32 %v7687_v28, %v9743_v8  ;;  %v1520_v7 = vmul.f32 1.442695, %v6454_v52  ;;  %v1524_v12 = vmul.f32 1.442695, %v6456_v18  ;;  %v6647_v20 = vclamps-f32 %v1788_v16, 30.0 }
 0x2dc   : > { %v4832_v62 = vmul.f32 %v7689_v44, %v3824_v10  ;;  %7692 = vrcp.f32 %v3293_v37  ;;  %v4497_v39 = vmul.f32 %v4329_v59, %v4161_v21  ;;  %v4141_v63 = vadd.f32 1.0, %v3973_v40  ;;  %v5279_v59 = vpop.f32.mrf.mxu0 }
 0x2dd   : > { %5722 = vmatpush.xpose.msra.mxu0 %v4815_v38  ;;  %7694 = vpow2.f32 %v1520_v7  ;;  %v1805_v22 = vmul.f32 10.0, %v797_v26  ;;  %v512_v51 = vsub.f32 %v9583_v34, %v8425_v30  ;;  %v532_v61 = vsub.f32 %v9620_v48, %v8425_v30 }
 0x2de   : > { %v7691_v5 = vpop.eup %7690  ;;  %5799 = vmatpush.xpose.msra.mxu2 %v4832_v62  ;;  %7696 = vrcp.f32 %v4497_v39  ;;  %v4477_v27 = vmul.f32 %v4309_v9, %v4141_v63  ;;  %v6141_v8 = vld [vmem:[#allocation2 + $0x40] sm:$0xff]  ;;  %v798_v10 = vsub.f32 %v9615_v4, %v8425_v30  ;;  %v2410_v55 = vmul.f32 1.442695, %v6647_v20  ;;  %v5317_v39 = vpop.f32.mrf.mxu1 }
 0x2df   : > { %v3609_v1 = vmul.f32 %v7691_v5, %v2601_v35  ;;  %6197 = vst.msk [vmem:[%s9306_s28 + $0x40] sm:$0xff] %vm233_vm13, %v6141_v8  ;;  %7698 = vpow2.f32 %v1524_v12  ;;  %v6664_v26 = vclamps-f32 %v1805_v22, 30.0  ;;  %v924_v54 = vmul.f32 10.0, %v512_v51 }
 0x2e0   : > { %7700 = vrcp.f32 %v4477_v27  ;;  %v944_v31 = vmul.f32 10.0, %v532_v61  ;;  %v1806_v17 = vmul.f32 10.0, %v798_v10  ;;  %v3805_v16 = vmul.f32 0.22140276, %v7685_v42 }
 0x2e1   : > { %5620 = vmatmul.f32.gmra.mxu1 %v3609_v1  ;;  %7702 = vpow2.f32 %v2410_v55  ;;  %v2444_v56 = vmul.f32 1.442695, %v6664_v26  ;;  %v778_v52 = vsub.f32 %v9626_v45, %v8425_v30  ;;  %v6455_v28 = vclamps-f32 %v924_v54, 30.0  ;;  %v5057_v54 = vld [vmem:[#allocation2 + $0x48] sm:$0xff] }
 0x2e2   : > { %v7693_v18 = vpop.eup %7692  ;;  %v6475_v35 = vclamps-f32 %v944_v31, 30.0  ;;  %v6665_v37 = vclamps-f32 %v1806_v17, 30.0  ;;  %v514_v21 = vsub.f32 %v9574_v32, %v8415_v25  ;;  %v5280_v38 = vadd.f32 %v5279_v59, %v9617_v47 }
 0x2e3   : > { %v7695_v40 = vpop.eup %7694  ;;  %v3629_v44 = vmul.f32 %v7693_v18, %v9753_v36  ;;  %7704 = vpow2.f32 %v2444_v56  ;;  %v1786_v42 = vmul.f32 10.0, %v778_v52  ;;  %v516_v63 = vsub.f32 %v9576_v43, %v8415_v25 }
 0x2e4   : > { %v7697_v9 = vpop.eup %7696  ;;  %v9773_v7 = vmul.f32 0.22140276, %v7695_v40  ;;  %v2771_v12 = vmul.f32 1.105171, %v7695_v40  ;;  %v3107_v62 = vadd.f32 1.105171, %v7695_v40  ;;  %v5318_v31 = vadd.f32 %v5317_v39, %v5280_v38 }
 0x2e5   : > { %v7699_v20 = vpop.eup %7698  ;;  %5696 = vmatmul.f32.gmra.mxu3 %v3629_v44  ;;  %v4833_v22 = vmul.f32 %v7697_v9, %v3825_v49  ;;  %v1522_v51 = vmul.f32 1.442695, %v6455_v28  ;;  %v1562_v5 = vmul.f32 1.442695, %v6475_v35  ;;  %v2446_v27 = vmul.f32 1.442695, %v6665_v37 }
 0x2e6   : > { %v7701_v36 = vpop.eup %7700  ;;  %v2939_v8 = vadd.f32 1.0, %v2771_v12  ;;  %v9777_v61 = vmul.f32 0.22140276, %v7699_v20  ;;  %v2773_v47 = vmul.f32 1.105171, %v7699_v20  ;;  %v6645_v10 = vclamps-f32 %v1786_v42, 30.0 }
 0x2e7   : > { %v7703_v1 = vpop.eup %7702  ;;  %5837 = vmatpush.xpose.msra.mxu3 %v4833_v22  ;;  %v4813_v55 = vmul.f32 %v7701_v36, %v3805_v16  ;;  %v3109_v26 = vadd.f32 1.105171, %v7699_v20  ;;  %7706 = vpow2.f32 %v1522_v51  ;;  %v6025_v35 = vadd.f32 %v5318_v31, %v5057_v54  ;;  %v5390_v22 = vpop.f32.mrf.mxu3 }
 0x2e8   : > { %v3275_v17 = vmul.f32 %v3107_v62, %v2939_v8  ;;  %v2941_v56 = vadd.f32 1.0, %v2773_v47  ;;  %v9779_v59 = vmul.f32 0.22140276, %v7703_v1  ;;  %v3972_v49 = vmul.f32 1.105171, %v7703_v1 }
 0x2e9   : > { %v7705_v52 = vpop.eup %7704  ;;  %5761 = vmatpush.xpose.msra.mxu1 %v4813_v55  ;;  %v4308_v18 = vadd.f32 1.105171, %v7703_v1  ;;  %7708 = vpow2.f32 %v1562_v5  ;;  %v2406_v28 = vmul.f32 1.442695, %v6645_v10  ;;  %6083 = vst.msk [vmem:[#allocation2 + $0x48] sm:$0xff] %vm233_vm13, %v6025_v35  ;;  %v926_v38 = vmul.f32 10.0, %v514_v21  ;;  %v5352_v10 = vpop.f32.mrf.mxu2 }
 0x2ea   : > { %7710 = vrcp.f32 %v3275_v17  ;;  %v3277_v37 = vmul.f32 %v3109_v26, %v2941_v56  ;;  %v4140_v40 = vadd.f32 1.0, %v3972_v49  ;;  %v9781_v44 = vmul.f32 0.22140276, %v7705_v52 }
 0x2eb   : > { %v3989_v16 = vmul.f32 1.105171, %v7705_v52  ;;  %v4325_v42 = vadd.f32 1.105171, %v7705_v52  ;;  %7712 = vpow2.f32 %v2446_v27  ;;  %v928_v12 = vmul.f32 10.0, %v516_v63 }
 0x2ec   : > { %7714 = vrcp.f32 %v3277_v37  ;;  %v4476_v9 = vmul.f32 %v4308_v18, %v4140_v40  ;;  %v777_v62 = vsub.f32 %v9642_v11, %v8425_v30  ;;  %v6457_v51 = vclamps-f32 %v926_v38, 30.0 }
 0x2ed   : > { %v7707_v39 = vpop.eup %7706  ;;  %v4157_v20 = vadd.f32 1.0, %v3989_v16  ;;  %7716 = vpow2.f32 %v2406_v28  ;;  %v794_v5 = vsub.f32 %v9605_v60, %v8499_v33  ;;  %v6459_v1 = vclamps-f32 %v928_v12, 30.0 }
 0x2ee   : > { %7718 = vrcp.f32 %v4476_v9  ;;  %v9788_v36 = vmul.f32 0.22140276, %v7707_v39  ;;  %v2772_v27 = vmul.f32 1.105171, %v7707_v39  ;;  %v3108_v8 = vadd.f32 1.105171, %v7707_v39 }
 0x2ef   : > { %v7709_v21 = vpop.eup %7708  ;;  %v4493_v47 = vmul.f32 %v4325_v42, %v4157_v20  ;;  %v1526_v63 = vmul.f32 1.442695, %v6457_v51  ;;  %v1785_v55 = vmul.f32 10.0, %v777_v62  ;;  %v9792_v56 = vadd.f32 %v5390_v22, %v5352_v10 }
 0x2f0   : > { %v7711_v26 = vpop.eup %7710  ;;  %v2940_v54 = vadd.f32 1.0, %v2772_v27  ;;  %v9790_v31 = vmul.f32 0.22140276, %v7709_v21  ;;  %v2792_v17 = vmul.f32 1.105171, %v7709_v21  ;;  %v6142_v42 = vld [vmem:[#allocation2 + $0x48] sm:$0xff] }
 0x2f1   : > { %v7713_v49 = vpop.eup %7712  ;;  %v3611_v52 = vmul.f32 %v7711_v26, %v9773_v7  ;;  %7720 = vrcp.f32 %v4493_v47  ;;  %v3128_v18 = vadd.f32 1.105171, %v7709_v21  ;;  %v1530_v28 = vmul.f32 1.442695, %v6459_v1  ;;  %6198 = vst.msk [vmem:[%s9306_s28 + $0x48] sm:$0xff] %vm233_vm13, %v6142_v42 }
 0x2f2   : > { %v7715_v35 = vpop.eup %7714  ;;  %v3276_v37 = vmul.f32 %v3108_v8, %v2940_v54  ;;  %v2960_v40 = vadd.f32 1.0, %v2792_v17  ;;  %v3990_v16 = vmul.f32 1.105171, %v7713_v49  ;;  %v1802_v38 = vmul.f32 10.0, %v794_v5 }
 0x2f3   : > { %v7717_v9 = vpop.eup %7716  ;;  %5585 = vmatmul.f32.gmra.mxu0 %v3611_v52  ;;  %v3613_v12 = vmul.f32 %v7715_v35, %v9777_v61  ;;  %v4326_v62 = vadd.f32 1.105171, %v7713_v49  ;;  %7722 = vpow2.f32 %v1526_v63  ;;  %v6644_v39 = vclamps-f32 %v1785_v55, 30.0 }
 0x2f4   : > { %v7719_v20 = vpop.eup %7718  ;;  %7724 = vrcp.f32 %v3276_v37  ;;  %v3296_v7 = vmul.f32 %v3128_v18, %v2960_v40  ;;  %v3822_v22 = vmul.f32 0.22140276, %v7713_v49  ;;  %v4158_v51 = vadd.f32 1.0, %v3990_v16 }
 0x2f5   : > { %6728 = vmatmul.msk.f32.gmra.mxu2 %vm4873_vm6, %v3613_v12  ;;  %v4812_v27 = vmul.f32 %v7719_v20, %v9779_v59  ;;  %v3970_v5 = vmul.f32 1.105171, %v7717_v9  ;;  %v4306_v8 = vadd.f32 1.105171, %v7717_v9  ;;  %7726 = vpow2.f32 %v1530_v28 }
 0x2f6   : > { %7728 = vrcp.f32 %v3296_v7  ;;  %v4494_v61 = vmul.f32 %v4326_v62, %v4158_v51  ;;  %v2404_v21 = vmul.f32 1.442695, %v6644_v39  ;;  %v6661_v47 = vclamps-f32 %v1802_v38, 30.0  ;;  %v5282_v51 = vpop.f32.mrf.mxu0 }
 0x2f7   : > { %v7721_v10 = vpop.eup %7720  ;;  %5723 = vmatpush.xpose.msra.mxu0 %v4812_v27  ;;  %v3802_v63 = vmul.f32 0.22140276, %v7717_v9  ;;  %v4138_v1 = vadd.f32 1.0, %v3970_v5  ;;  %v515_v55 = vsub.f32 %v9583_v34, %v8415_v25  ;;  %v535_v26 = vsub.f32 %v9620_v48, %v8415_v25 }
 0x2f8   : > { %v4829_v54 = vmul.f32 %v7721_v10, %v9781_v44  ;;  %7730 = vrcp.f32 %v4494_v61  ;;  %v2438_v59 = vmul.f32 1.442695, %v6661_v47  ;;  %v795_v17 = vsub.f32 %v9615_v4, %v8499_v33 }
 0x2f9   : > { %v7723_v49 = vpop.eup %7722  ;;  %v4474_v52 = vmul.f32 %v4306_v8, %v4138_v1  ;;  %7732 = vpow2.f32 %v2404_v21  ;;  %v927_v18 = vmul.f32 10.0, %v515_v55  ;;  %v947_v28 = vmul.f32 10.0, %v535_v26  ;;  %v5393_v21 = vpop.f32.mrf.mxu3 }
 0x2fa   : > { %v7725_v35 = vpop.eup %7724  ;;  %5800 = vmatpush.xpose.msra.mxu2 %v4829_v54  ;;  %v2774_v37 = vmul.f32 1.105171, %v7723_v49  ;;  %v3110_v40 = vadd.f32 1.105171, %v7723_v49  ;;  %7734 = vpow2.f32 %v2438_v59  ;;  %v775_v16 = vsub.f32 %v9626_v45, %v8499_v33  ;;  %v5355_v59 = vpop.f32.mrf.mxu2 }
 0x2fb   : > { %v7727_v42 = vpop.eup %7726  ;;  %v3612_v44 = vmul.f32 %v7725_v35, %v9788_v36  ;;  %7736 = vrcp.f32 %v4474_v52  ;;  %v6458_v38 = vclamps-f32 %v927_v18, 30.0  ;;  %v6478_v9 = vclamps-f32 %v947_v28, 30.0  ;;  %v5320_v35 = vpop.f32.mrf.mxu1 }
 0x2fc   : > { %v7729_v12 = vpop.eup %7728  ;;  %v2606_v62 = vmul.f32 0.22140276, %v7723_v49  ;;  %v2942_v39 = vadd.f32 1.0, %v2774_v37  ;;  %v2776_v20 = vmul.f32 1.105171, %v7727_v42  ;;  %v1803_v7 = vmul.f32 10.0, %v795_v17 }
 0x2fd   : > { %5623 = vmatmul.f32.gmra.mxu1 %v3612_v44  ;;  %v3632_v27 = vmul.f32 %v7729_v12, %v9790_v31  ;;  %v3112_v5 = vadd.f32 1.105171, %v7727_v42  ;;  %v1528_v8 = vmul.f32 1.442695, %v6458_v38  ;;  %v1568_v61 = vmul.f32 1.442695, %v6478_v9 }
 0x2fe   : > { %v7731_v47 = vpop.eup %7730  ;;  %v3278_v10 = vmul.f32 %v3110_v40, %v2942_v39  ;;  %v2608_v1 = vmul.f32 0.22140276, %v7727_v42  ;;  %v2944_v36 = vadd.f32 1.0, %v2776_v20  ;;  %v6662_v55 = vclamps-f32 %v1803_v7, 30.0  ;;  %v5058_v12 = vld [vmem:[#allocation2 + $0x50] sm:$0xff] }
 0x2ff   : > { %v7733_v26 = vpop.eup %7732  ;;  %5699 = vmatmul.f32.gmra.mxu3 %v3632_v27  ;;  %v4830_v54 = vmul.f32 %v7731_v47, %v3822_v22  ;;  %7738 = vpow2.f32 %v1528_v8  ;;  %v5283_v17 = vadd.f32 %v5282_v51, %v9651_v0  ;;  %v1783_v49 = vmul.f32 10.0, %v775_v16 }
 0x300   : > { %v7735_v52 = vpop.eup %7734  ;;  %7740 = vrcp.f32 %v3278_v10  ;;  %v3280_v31 = vmul.f32 %v3112_v5, %v2944_v36  ;;  %v3969_v18 = vmul.f32 1.105171, %v7733_v26  ;;  %v9813_v28 = vadd.f32 %v5393_v21, %v5355_v59 }
 0x301   : > { %v7737_v37 = vpop.eup %7736  ;;  %5838 = vmatpush.xpose.msra.mxu3 %v4830_v54  ;;  %v3801_v40 = vmul.f32 0.22140276, %v7733_v26  ;;  %v4305_v42 = vadd.f32 1.105171, %v7733_v26  ;;  %v3986_v44 = vmul.f32 1.105171, %v7735_v52  ;;  %7742 = vpow2.f32 %v1568_v61 }
 0x302   : > { %v4810_v38 = vmul.f32 %v7737_v37, %v3802_v63  ;;  %7744 = vrcp.f32 %v3280_v31  ;;  %v4137_v22 = vadd.f32 1.0, %v3969_v18  ;;  %v4322_v9 = vadd.f32 1.105171, %v7735_v52 }
 0x303   : > { %v4154_v0 = vadd.f32 1.0, %v3986_v44  ;;  %v2440_v16 = vmul.f32 1.442695, %v6662_v55  ;;  %v6642_v39 = vclamps-f32 %v1783_v49, 30.0  ;;  %v5321_v20 = vadd.f32 %v5320_v35, %v5283_v17 }
 0x304   : > { %5762 = vmatpush.xpose.msra.mxu1 %v4810_v38  ;;  %v4473_v7 = vmul.f32 %v4305_v42, %v4137_v22  ;;  %v3818_v51 = vmul.f32 0.22140276, %v7735_v52  ;;  %v517_v27 = vsub.f32 %v9574_v32, %v8413_v24  ;;  %v519_v5 = vsub.f32 %v9576_v43, %v8413_v24 }
 0x305   : > { %v7739_v8 = vpop.eup %7738  ;;  %v4490_v61 = vmul.f32 %v4322_v9, %v4154_v0  ;;  %7746 = vpow2.f32 %v2440_v16  ;;  %v2400_v63 = vmul.f32 1.442695, %v6642_v39  ;;  %v6026_v21 = vadd.f32 %v5321_v20, %v5058_v12 }
 0x306   : > { %v7741_v47 = vpop.eup %7740  ;;  %7748 = vrcp.f32 %v4473_v7  ;;  %v2775_v10 = vmul.f32 1.105171, %v7739_v8  ;;  %v3111_v36 = vadd.f32 1.105171, %v7739_v8  ;;  %v774_v55 = vsub.f32 %v9642_v11, %v8499_v33 }
 0x307   : > { %v7743_v26 = vpop.eup %7742  ;;  %v3614_v54 = vmul.f32 %v7741_v47, %v2606_v62  ;;  %7750 = vrcp.f32 %v4490_v61  ;;  %6084 = vst.msk [vmem:[#allocation2 + $0x50] sm:$0xff] %vm233_vm13, %v6026_v21  ;;  %v929_v59 = vmul.f32 10.0, %v517_v27  ;;  %v931_v17 = vmul.f32 10.0, %v519_v5 }
 0x308   : > { %v7745_v49 = vpop.eup %7744  ;;  %v2607_v52 = vmul.f32 0.22140276, %v7739_v8  ;;  %v2943_v31 = vadd.f32 1.0, %v2775_v10  ;;  %v2795_v18 = vmul.f32 1.105171, %v7743_v26  ;;  %7752 = vpow2.f32 %v2400_v63 }
 0x309   : > { %5588 = vmatmul.f32.gmra.mxu0 %v3614_v54  ;;  %v3616_v35 = vmul.f32 %v7745_v49, %v2608_v1  ;;  %v3131_v37 = vadd.f32 1.105171, %v7743_v26  ;;  %v6460_v42 = vclamps-f32 %v929_v59, 30.0  ;;  %v6462_v44 = vclamps-f32 %v931_v17, 30.0 }
 0x30a   : > { %v3279_v38 = vmul.f32 %v3111_v36, %v2943_v31  ;;  %v2963_v22 = vadd.f32 1.0, %v2795_v18  ;;  %v1782_v9 = vmul.f32 10.0, %v774_v55  ;;  %v791_v62 = vsub.f32 %v9605_v60, %v8514_v50 }
 0x30b   : > { %v7747_v12 = vpop.eup %7746  ;;  %6729 = vmatmul.msk.f32.gmra.mxu2 %vm4873_vm6, %v3616_v35  ;;  %v2627_v0 = vmul.f32 0.22140276, %v7743_v26  ;;  %v1532_v16 = vmul.f32 1.442695, %v6460_v42  ;;  %v1536_v39 = vmul.f32 1.442695, %v6462_v44  ;;  %v518_v20 = vsub.f32 %v9583_v34, %v8413_v24 }
 0x30c   : > { %v7749_v1 = vpop.eup %7748  ;;  %7754 = vrcp.f32 %v3279_v38  ;;  %v3299_v7 = vmul.f32 %v3131_v37, %v2963_v22  ;;  %v3987_v27 = vmul.f32 1.105171, %v7747_v12  ;;  %v538_v5 = vsub.f32 %v9620_v48, %v8413_v24 }
 0x30d   : > { %v7751_v8 = vpop.eup %7750  ;;  %v4809_v61 = vmul.f32 %v7749_v1, %v3801_v40  ;;  %v4323_v63 = vadd.f32 1.105171, %v7747_v12  ;;  %7756 = vpow2.f32 %v1532_v16  ;;  %v6641_v21 = vclamps-f32 %v1782_v9, 30.0 }
 0x30e   : > { %v7753_v47 = vpop.eup %7752  ;;  %v4826_v10 = vmul.f32 %v7751_v8, %v3818_v51  ;;  %7758 = vrcp.f32 %v3299_v7  ;;  %v4155_v36 = vadd.f32 1.0, %v3987_v27  ;;  %v6143_v55 = vld [vmem:[#allocation2 + $0x50] sm:$0xff]  ;;  %v1799_v26 = vmul.f32 10.0, %v791_v62  ;;  %v5285_v27 = vpop.f32.mrf.mxu0 }
 0x30f   : > { %5724 = vmatpush.xpose.msra.mxu0 %v4809_v61  ;;  %v3819_v54 = vmul.f32 0.22140276, %v7747_v12  ;;  %v3967_v59 = vmul.f32 1.105171, %v7753_v47  ;;  %v4303_v17 = vadd.f32 1.105171, %v7753_v47  ;;  %7760 = vpow2.f32 %v1536_v39 }
 0x310   : > { %5801 = vmatpush.xpose.msra.mxu2 %v4826_v10  ;;  %v4491_v49 = vmul.f32 %v4323_v63, %v4155_v36  ;;  %6199 = vst.msk [vmem:[%s9306_s28 + $0x50] sm:$0xff] %vm233_vm13, %v6143_v55  ;;  %v2398_v40 = vmul.f32 1.442695, %v6641_v21  ;;  %v6658_v31 = vclamps-f32 %v1799_v26, 30.0  ;;  %v930_v18 = vmul.f32 10.0, %v518_v20  ;;  %v5323_v55 = vpop.f32.mrf.mxu1 }
 0x311   : > { %v3799_v35 = vmul.f32 0.22140276, %v7753_v47  ;;  %v4135_v37 = vadd.f32 1.0, %v3967_v59  ;;  %v950_v42 = vmul.f32 10.0, %v538_v5  ;;  %v792_v51 = vsub.f32 %v9615_v4, %v8514_v50 }
 0x312   : > { %v7755_v44 = vpop.eup %7754  ;;  %7762 = vrcp.f32 %v4491_v49  ;;  %v2432_v38 = vmul.f32 1.442695, %v6658_v31  ;;  %v6461_v22 = vclamps-f32 %v930_v18, 30.0  ;;  %v772_v9 = vsub.f32 %v9626_v45, %v8514_v50 }
 0x313   : > { %v7757_v62 = vpop.eup %7756  ;;  %v3615_v12 = vmul.f32 %v7755_v44, %v2607_v52  ;;  %v4471_v16 = vmul.f32 %v4303_v17, %v4135_v37  ;;  %7764 = vpow2.f32 %v2398_v40  ;;  %v6481_v39 = vclamps-f32 %v950_v42, 30.0 }
 0x314   : > { %v7759_v1 = vpop.eup %7758  ;;  %v2777_v20 = vmul.f32 1.105171, %v7757_v62  ;;  %v3113_v7 = vadd.f32 1.105171, %v7757_v62  ;;  %7766 = vpow2.f32 %v2432_v38  ;;  %v520_v5 = vsub.f32 %v9574_v32, %v8401_v19 }
 0x315   : > { %v7761_v8 = vpop.eup %7760  ;;  %5626 = vmatmul.f32.gmra.mxu1 %v3615_v12  ;;  %v3635_v61 = vmul.f32 %v7759_v1, %v2627_v0  ;;  %7768 = vrcp.f32 %v4471_v16  ;;  %v1534_v63 = vmul.f32 1.442695, %v6461_v22  ;;  %v1574_v21 = vmul.f32 1.442695, %v6481_v39  ;;  %v5059_v0 = vld [vmem:[#allocation2 + $0x58] sm:$0xff] }
 0x316   : > { %v2609_v47 = vmul.f32 0.22140276, %v7757_v62  ;;  %v2945_v10 = vadd.f32 1.0, %v2777_v20  ;;  %v2779_v52 = vmul.f32 1.105171, %v7761_v8  ;;  %v1800_v36 = vmul.f32 10.0, %v792_v51 }
 0x317   : > { %5702 = vmatmul.f32.gmra.mxu3 %v3635_v61  ;;  %v2611_v26 = vmul.f32 0.22140276, %v7761_v8  ;;  %v3115_v59 = vadd.f32 1.105171, %v7761_v8  ;;  %7770 = vpow2.f32 %v1534_v63  ;;  %v5286_v17 = vadd.f32 %v5285_v27, %v9665_v29 }
 0x318   : > { %v7763_v49 = vpop.eup %7762  ;;  %v3281_v40 = vmul.f32 %v3113_v7, %v2945_v10  ;;  %v2947_v32 = vadd.f32 1.0, %v2779_v52  ;;  %7772 = vpow2.f32 %v1574_v21  ;;  %v6659_v31 = vclamps-f32 %v1800_v36, 30.0 }
 0x319   : > { %v7765_v18 = vpop.eup %7764  ;;  %v4827_v37 = vmul.f32 %v7763_v49, %v3819_v54  ;;  %v1780_v42 = vmul.f32 10.0, %v772_v9  ;;  %v5324_v44 = vadd.f32 %v5323_v55, %v5286_v17  ;;  %v932_v38 = vmul.f32 10.0, %v520_v5 }
 0x31a   : > { %v7767_v22 = vpop.eup %7766  ;;  %7774 = vrcp.f32 %v3281_v40  ;;  %v3283_v51 = vmul.f32 %v3115_v59, %v2947_v32  ;;  %v9839_v62 = vmul.f32 0.22140276, %v7765_v18  ;;  %v3966_v12 = vmul.f32 1.105171, %v7765_v18 }
 0x31b   : > { %v7769_v16 = vpop.eup %7768  ;;  %5839 = vmatpush.xpose.msra.mxu3 %v4827_v37  ;;  %v4302_v29 = vadd.f32 1.105171, %v7765_v18  ;;  %v9841_v39 = vmul.f32 0.22140276, %v7767_v22  ;;  %v3983_v1 = vmul.f32 1.105171, %v7767_v22  ;;  %v6027_v20 = vadd.f32 %v5324_v44, %v5059_v0 }
 0x31c   : > { %v4807_v7 = vmul.f32 %v7769_v16, %v3799_v35  ;;  %7776 = vrcp.f32 %v3283_v51  ;;  %v4134_v27 = vadd.f32 1.0, %v3966_v12  ;;  %v4319_v54 = vadd.f32 1.105171, %v7767_v22 }
 0x31d   : > { %v7771_v9 = vpop.eup %7770  ;;  %v4151_v8 = vadd.f32 1.0, %v3983_v1  ;;  %v2434_v5 = vmul.f32 1.442695, %v6659_v31  ;;  %v6639_v61 = vclamps-f32 %v1780_v42, 30.0  ;;  %6085 = vst.msk [vmem:[#allocation2 + $0x58] sm:$0xff] %vm233_vm13, %v6027_v20  ;;  %v6463_v63 = vclamps-f32 %v932_v38, 30.0 }
 0x31e   : > { %v7773_v21 = vpop.eup %7772  ;;  %5763 = vmatpush.xpose.msra.mxu1 %v4807_v7  ;;  %v4470_v10 = vmul.f32 %v4302_v29, %v4134_v27  ;;  %v9844_v52 = vmul.f32 0.22140276, %v7771_v9  ;;  %v2778_v36 = vmul.f32 1.105171, %v7771_v9  ;;  %v3114_v55 = vadd.f32 1.105171, %v7771_v9  ;;  %v5396_v29 = vpop.f32.mrf.mxu3 }
 0x31f   : > { %v4487_v59 = vmul.f32 %v4319_v54, %v4151_v8  ;;  %v9846_v17 = vmul.f32 0.22140276, %v7773_v21  ;;  %v2798_v35 = vmul.f32 1.105171, %v7773_v21  ;;  %v3134_v49 = vadd.f32 1.105171, %v7773_v21  ;;  %v5358_v27 = vpop.f32.mrf.mxu2 }
 0x320   : > { %v7775_v40 = vpop.eup %7774  ;;  %7778 = vrcp.f32 %v4470_v10  ;;  %v2946_v32 = vadd.f32 1.0, %v2778_v36  ;;  %v2394_v31 = vmul.f32 1.442695, %v6639_v61  ;;  %v1538_v0 = vmul.f32 1.442695, %v6463_v63 }
 0x321   : > { %v3617_v18 = vmul.f32 %v7775_v40, %v2609_v47  ;;  %7780 = vrcp.f32 %v4487_v59  ;;  %v2966_v37 = vadd.f32 1.0, %v2798_v35  ;;  %v522_v42 = vsub.f32 %v9576_v43, %v8401_v19 }
 0x322   : > { %v7777_v44 = vpop.eup %7776  ;;  %v3282_v38 = vmul.f32 %v3114_v55, %v2946_v32  ;;  %7782 = vpow2.f32 %v2434_v5  ;;  %v771_v22 = vsub.f32 %v9642_v11, %v8514_v50  ;;  %v788_v51 = vsub.f32 %v9605_v60, %v8512_v13 }
 0x323   : > { %5591 = vmatmul.f32.gmra.mxu0 %v3617_v18  ;;  %v3619_v12 = vmul.f32 %v7777_v44, %v2611_v26  ;;  %v3302_v16 = vmul.f32 %v3134_v49, %v2966_v37  ;;  %7784 = vpow2.f32 %v2394_v31  ;;  %v934_v47 = vmul.f32 10.0, %v522_v42 }
 0x324   : > { %7786 = vrcp.f32 %v3282_v38  ;;  %v6144_v1 = vld [vmem:[#allocation2 + $0x58] sm:$0xff]  ;;  %v1779_v20 = vmul.f32 10.0, %v771_v22  ;;  %v1796_v43 = vmul.f32 10.0, %v788_v51  ;;  %v521_v7 = vsub.f32 %v9583_v34, %v8401_v19 }
 0x325   : > { %6730 = vmatmul.msk.f32.gmra.mxu2 %vm4873_vm6, %v3619_v12  ;;  %7788 = vrcp.f32 %v3302_v16  ;;  %6200 = vst.msk [vmem:[%s9306_s28 + $0x58] sm:$0xff] %vm233_vm13, %v6144_v1  ;;  %v6465_v60 = vclamps-f32 %v934_v47, 30.0  ;;  %v541_v26 = vsub.f32 %v9620_v48, %v8401_v19  ;;  %v789_v54 = vsub.f32 %v9615_v4, %v8512_v13  ;;  %v5288_v47 = vpop.f32.mrf.mxu0 }
 0x326   : > { %v7779_v9 = vpop.eup %7778  ;;  %7790 = vpow2.f32 %v1538_v0  ;;  %v6638_v8 = vclamps-f32 %v1779_v20, 30.0  ;;  %v6655_v5 = vclamps-f32 %v1796_v43, 30.0  ;;  %v933_v61 = vmul.f32 10.0, %v521_v7 }
 0x327   : > { %v7781_v34 = vpop.eup %7780  ;;  %v4806_v63 = vmul.f32 %v7779_v9, %v9839_v62  ;;  %v1542_v21 = vmul.f32 1.442695, %v6465_v60  ;;  %v953_v10 = vmul.f32 10.0, %v541_v26  ;;  %v1797_v36 = vmul.f32 10.0, %v789_v54 }
 0x328   : > { %v7783_v55 = vpop.eup %7782  ;;  %v4823_v59 = vmul.f32 %v7781_v34, %v9841_v39  ;;  %v2392_v35 = vmul.f32 1.442695, %v6638_v8  ;;  %v2426_v49 = vmul.f32 1.442695, %v6655_v5  ;;  %v6464_v48 = vclamps-f32 %v933_v61, 30.0 }
 0x329   : > { %v7785_v40 = vpop.eup %7784  ;;  %5725 = vmatpush.xpose.msra.mxu0 %v4806_v63  ;;  %v3984_v4 = vmul.f32 1.105171, %v7783_v55  ;;  %v4320_v32 = vadd.f32 1.105171, %v7783_v55  ;;  %v9866_v31 = vadd.f32 %v5396_v29, %v5358_v27  ;;  %7792 = vpow2.f32 %v1542_v21  ;;  %v5399_v27 = vpop.f32.mrf.mxu3 }
 0x32a   : > { %v7787_v0 = vpop.eup %7786  ;;  %5802 = vmatpush.xpose.msra.mxu2 %v4823_v59  ;;  %v3816_v18 = vmul.f32 0.22140276, %v7783_v55  ;;  %v3964_v62 = vmul.f32 1.105171, %v7785_v40  ;;  %v4300_v37 = vadd.f32 1.105171, %v7785_v40  ;;  %7794 = vpow2.f32 %v2392_v35 }
 0x32b   : > { %v7789_v42 = vpop.eup %7788  ;;  %v3618_v44 = vmul.f32 %v7787_v0, %v9844_v52  ;;  %v4152_v39 = vadd.f32 1.0, %v3984_v4  ;;  %7796 = vpow2.f32 %v2426_v49  ;;  %v1540_v38 = vmul.f32 1.442695, %v6464_v48 }
 0x32c   : > { %v7791_v22 = vpop.eup %7790  ;;  %v3638_v51 = vmul.f32 %v7789_v42, %v9846_v17  ;;  %v4132_v12 = vadd.f32 1.0, %v3964_v62  ;;  %v6484_v16 = vclamps-f32 %v953_v10, 30.0  ;;  %v6656_v29 = vclamps-f32 %v1797_v36, 30.0  ;;  %v5361_v17 = vpop.f32.mrf.mxu2 }
 0x32d   : > { %5629 = vmatmul.f32.gmra.mxu1 %v3618_v44  ;;  %v4488_v1 = vmul.f32 %v4320_v32, %v4152_v39  ;;  %v3796_v20 = vmul.f32 0.22140276, %v7785_v40  ;;  %v2780_v43 = vmul.f32 1.105171, %v7791_v22  ;;  %v3116_v7 = vadd.f32 1.105171, %v7791_v22 }
 0x32e   : > { %5705 = vmatmul.f32.gmra.mxu3 %v3638_v51  ;;  %v4468_v60 = vmul.f32 %v4300_v37, %v4132_v12  ;;  %v2612_v26 = vmul.f32 0.22140276, %v7791_v22  ;;  %7798 = vpow2.f32 %v1540_v38  ;;  %v1580_v52 = vmul.f32 1.442695, %v6484_v16  ;;  %v5326_v12 = vpop.f32.mrf.mxu1 }
 0x32f   : > { %v7793_v54 = vpop.eup %7792  ;;  %7800 = vrcp.f32 %v4488_v1  ;;  %v2948_v9 = vadd.f32 1.0, %v2780_v43  ;;  %v2428_v8 = vmul.f32 1.442695, %v6656_v29  ;;  %v5289_v5 = vadd.f32 %v5288_v47, %v9684_v41 }
 0x330   : > { %v7795_v61 = vpop.eup %7794  ;;  %7802 = vrcp.f32 %v4468_v60  ;;  %v2782_v34 = vmul.f32 1.105171, %v7793_v54  ;;  %v3118_v63 = vadd.f32 1.105171, %v7793_v54  ;;  %v9871_v21 = vadd.f32 %v5399_v27, %v5361_v17  ;;  %v5060_v27 = vld [vmem:[#allocation2 + $0x60] sm:$0xff] }
 0x331   : > { %v7797_v10 = vpop.eup %7796  ;;  %v3284_v36 = vmul.f32 %v3116_v7, %v2948_v9  ;;  %v2614_v55 = vmul.f32 0.22140276, %v7793_v54  ;;  %v3963_v59 = vmul.f32 1.105171, %v7795_v61  ;;  %v4299_v35 = vadd.f32 1.105171, %v7795_v61 }
 0x332   : > { %v2950_v49 = vadd.f32 1.0, %v2782_v34  ;;  %v9873_v48 = vmul.f32 0.22140276, %v7795_v61  ;;  %v3980_v40 = vmul.f32 1.105171, %v7797_v10  ;;  %7804 = vpow2.f32 %v1580_v52 }
 0x333   : > { %7806 = vrcp.f32 %v3284_v36  ;;  %v4131_v4 = vadd.f32 1.0, %v3963_v59  ;;  %v4316_v32 = vadd.f32 1.105171, %v7797_v10  ;;  %v768_v41 = vsub.f32 %v9642_v11, %v8512_v13 }
 0x334   : > { %v7799_v0 = vpop.eup %7798  ;;  %v3286_v62 = vmul.f32 %v3118_v63, %v2950_v49  ;;  %v4148_v37 = vadd.f32 1.0, %v3980_v40  ;;  %7808 = vpow2.f32 %v2428_v8  ;;  %v769_v42 = vsub.f32 %v9626_v45, %v8512_v13 }
 0x335   : > { %v7801_v44 = vpop.eup %7800  ;;  %v4467_v39 = vmul.f32 %v4299_v35, %v4131_v4  ;;  %v3812_v38 = vmul.f32 0.22140276, %v7797_v10  ;;  %v2781_v22 = vmul.f32 1.105171, %v7799_v0  ;;  %v3117_v51 = vadd.f32 1.105171, %v7799_v0 }
 0x336   : > { %v7803_v16 = vpop.eup %7802  ;;  %v4824_v29 = vmul.f32 %v7801_v44, %v3816_v18  ;;  %7810 = vrcp.f32 %v3286_v62  ;;  %v4484_v47 = vmul.f32 %v4316_v32, %v4148_v37  ;;  %v1776_v1 = vmul.f32 10.0, %v768_v41  ;;  %v8172_v62 = vld [vmem:[%s8373_s25] sm:$0xff] }
 0x337   : > { %v4804_v43 = vmul.f32 %v7803_v16, %v3796_v20  ;;  %7812 = vrcp.f32 %v4467_v39  ;;  %v2949_v11 = vadd.f32 1.0, %v2781_v22  ;;  %v1777_v7 = vmul.f32 10.0, %v769_v42 }
 0x338   : > { %v7805_v60 = vpop.eup %7804  ;;  %5840 = vmatpush.xpose.msra.mxu3 %v4824_v29  ;;  %7814 = vrcp.f32 %v4484_v47  ;;  %v6635_v45 = vclamps-f32 %v1776_v1, 30.0  ;;  %v5327_v52 = vadd.f32 %v5326_v12, %v5289_v5  ;;  %v9880_v54 = vperm.slane %v9612_v53, 1  ;;  %v8173_v1 = vld [vmem:[%s8379_s23] sm:$0xff] }
 0x339   : > { %v7807_v9 = vpop.eup %7806  ;;  %5764 = vmatpush.xpose.msra.mxu1 %v4804_v43  ;;  %v2613_v8 = vmul.f32 0.22140276, %v7799_v0  ;;  %v3285_v18 = vmul.f32 %v3117_v51, %v2949_v11  ;;  %v2801_v17 = vmul.f32 1.105171, %v7805_v60  ;;  %v3137_v61 = vadd.f32 1.105171, %v7805_v60 }
 0x33a   : > { %v7809_v34 = vpop.eup %7808  ;;  %v3620_v20 = vmul.f32 %v7807_v9, %v2612_v26  ;;  %v2386_v63 = vmul.f32 1.442695, %v6635_v45  ;;  %v6636_v10 = vclamps-f32 %v1777_v7, 30.0  ;;  %v6028_v36 = vadd.f32 %v5327_v52, %v5060_v27 }
 0x33b   : > { %7816 = vrcp.f32 %v3285_v18  ;;  %v2633_v59 = vmul.f32 0.22140276, %v7805_v60  ;;  %v2969_v35 = vadd.f32 1.0, %v2801_v17  ;;  %v3981_v49 = vmul.f32 1.105171, %v7809_v34 }
 0x33c   : > { %v7811_v5 = vpop.eup %7810  ;;  %5594 = vmatmul.f32.gmra.mxu0 %v3620_v20  ;;  %v4317_v53 = vadd.f32 1.105171, %v7809_v34  ;;  %7818 = vpow2.f32 %v2386_v63  ;;  %v2388_v40 = vmul.f32 1.442695, %v6636_v10  ;;  %6086 = vst.msk [vmem:[#allocation2 + $0x60] sm:$0xff] %vm233_vm13, %v6028_v36  ;;  %v524_v4 = vsub.f32 %v9880_v54, %v8512_v13 }
 0x33d   : > { %v7813_v32 = vpop.eup %7812  ;;  %v3622_v26 = vmul.f32 %v7811_v5, %v2614_v55  ;;  %v3305_v41 = vmul.f32 %v3137_v61, %v2969_v35  ;;  %v4149_v0 = vadd.f32 1.0, %v3981_v49  ;;  %v361_v37 = vsel %vm360_vm14, %v8172_v62, %v8534_v2 }
 0x33e   : > { %v7815_v42 = vpop.eup %7814  ;;  %v4803_v44 = vmul.f32 %v7813_v32, %v9873_v48  ;;  %7820 = vpow2.f32 %v2388_v40  ;;  %v936_v39 = vmul.f32 10.0, %v524_v4  ;;  %v363_v22 = vsel %vm362_vm15, %v8539_v58, %v361_v37 }
 0x33f   : > { %6731 = vmatmul.msk.f32.gmra.mxu2 %vm4873_vm6, %v3622_v26  ;;  %v4820_v51 = vmul.f32 %v7815_v42, %v3812_v38  ;;  %7822 = vrcp.f32 %v3305_v41  ;;  %v4485_v55 = vmul.f32 %v4317_v53, %v4149_v0  ;;  %v9893_v12 = vrot.slane %v363_v22, 6 }
 0x340   : > { %5726 = vmatpush.xpose.msra.mxu0 %v4803_v44  ;;  %v6467_v16 = vclamps-f32 %v936_v39, 30.0  ;;  %v525_v48 = vsub.f32 %v9623_v57, %v8512_v13  ;;  %v611_v38 = vsel %vm365_vm1, %v8397_v14, %v8173_v1  ;;  %v3813_v52 = vmul.f32 0.22140276, %v7809_v34  ;;  %v5291_v39 = vpop.f32.mrf.mxu0  ;;  %v5329_v1 = vpop.f32.mrf.mxu1 }
 0x341   : > { %v7817_v29 = vpop.eup %7816  ;;  %5803 = vmatpush.xpose.msra.mxu2 %v4820_v51  ;;  %7824 = vrcp.f32 %v4485_v55  ;;  %v9898_v47 = vperm.slane %v9893_v12, 0  ;;  %v9904_v43 = vperm.slane %v9893_v12, 1  ;;  %v612_v60 = vsel %vm367_vm2, %v8399_v15, %v611_v38 }
 0x342   : > { %v7819_v11 = vpop.eup %7818  ;;  %v3621_v7 = vmul.f32 %v7817_v29, %v2613_v8  ;;  %v1546_v27 = vmul.f32 1.442695, %v6467_v16  ;;  %v937_v45 = vmul.f32 10.0, %v525_v48  ;;  %v613_v20 = vrot.slane %v612_v60, 7 }
 0x343   : > { %v3960_v9 = vmul.f32 1.105171, %v7819_v11  ;;  %v4296_v18 = vadd.f32 1.105171, %v7819_v11  ;;  %v544_v17 = vsub.f32 %v9898_v47, %v8512_v13  ;;  %v6145_v14 = vld [vmem:[#allocation2 + $0x60] sm:$0xff]  ;;  %v545_v8 = vsub.f32 %v9904_v43, %v8512_v13 }
 0x344   : > { %v7821_v61 = vpop.eup %7820  ;;  %5632 = vmatmul.f32.gmra.mxu1 %v3621_v7  ;;  %7826 = vpow2.f32 %v1546_v27  ;;  %v6468_v63 = vclamps-f32 %v937_v45, 30.0  ;;  %v3792_v36 = vmul.f32 0.22140276, %v7819_v11  ;;  %6201 = vst.msk [vmem:[%s9306_s28 + $0x60] sm:$0xff] %vm233_vm13, %v6145_v14  ;;  %v527_v34 = vsub.f32 %v9880_v54, %v8514_v50 }
 0x345   : > { %v7823_v10 = vpop.eup %7822  ;;  %v4128_v15 = vadd.f32 1.0, %v3960_v9  ;;  %v3961_v35 = vmul.f32 1.105171, %v7821_v61  ;;  %v4297_v5 = vadd.f32 1.105171, %v7821_v61  ;;  %v956_v53 = vmul.f32 10.0, %v544_v17 }
 0x346   : > { %v3641_v49 = vmul.f32 %v7823_v10, %v2633_v59  ;;  %v9916_v40 = vperm.slane %v613_v20, 1  ;;  %v1548_v41 = vmul.f32 1.442695, %v6468_v63  ;;  %v957_v0 = vmul.f32 10.0, %v545_v8 }
 0x347   : > { %v7825_v4 = vpop.eup %7824  ;;  %v4464_v32 = vmul.f32 %v4296_v18, %v4128_v15  ;;  %v4129_v26 = vadd.f32 1.0, %v3961_v35  ;;  %v6487_v37 = vclamps-f32 %v956_v53, 30.0  ;;  %v9920_v44 = vperm.slane %v613_v20, 2 }
 0x348   : > { %5708 = vmatmul.f32.gmra.mxu3 %v3641_v49  ;;  %v4821_v62 = vmul.f32 %v7825_v4, %v3813_v52  ;;  %v828_v42 = vsub.f32 %v9916_v40, %v8401_v19  ;;  %v6488_v22 = vclamps-f32 %v957_v0, 30.0  ;;  %v5292_v51 = vadd.f32 %v5291_v39, %v9720_v23  ;;  %v5061_v52 = vld [vmem:[#allocation2 + $0x68] sm:$0x3] }
 0x349   : > { %7828 = vrcp.f32 %v4464_v32  ;;  %v4465_v59 = vmul.f32 %v4297_v5, %v4129_v26  ;;  %v1586_v16 = vmul.f32 1.442695, %v6487_v37  ;;  %v829_v29 = vsub.f32 %v9920_v44, %v8401_v19 }
 0x34a   : > { %v7827_v55 = vpop.eup %7826  ;;  %5841 = vmatpush.xpose.msra.mxu3 %v4821_v62  ;;  %v1836_v48 = vmul.f32 10.0, %v828_v42  ;;  %7830 = vpow2.f32 %v1548_v41  ;;  %v3793_v38 = vmul.f32 0.22140276, %v7821_v61  ;;  %v1588_v60 = vmul.f32 1.442695, %v6488_v22  ;;  %v5364_v42 = vpop.f32.mrf.mxu2 }
 0x34b   : > { %7832 = vrcp.f32 %v4465_v59  ;;  %v2784_v11 = vmul.f32 1.105171, %v7827_v55  ;;  %v3120_v7 = vadd.f32 1.105171, %v7827_v55  ;;  %v1837_v45 = vmul.f32 10.0, %v829_v29 }
 0x34c   : > { %7834 = vpow2.f32 %v1586_v16  ;;  %v6695_v27 = vclamps-f32 %v1836_v48, 30.0  ;;  %v2616_v9 = vmul.f32 0.22140276, %v7827_v55  ;;  %v9925_v18 = vperm.slane %v613_v20, 0  ;;  %v5402_v20 = vpop.f32.mrf.mxu3 }
 0x34d   : > { %v2952_v23 = vadd.f32 1.0, %v2784_v11  ;;  %v5330_v17 = vadd.f32 %v5329_v1, %v5292_v51  ;;  %7836 = vpow2.f32 %v1588_v60  ;;  %v6696_v63 = vclamps-f32 %v1837_v45, 30.0 }
 0x34e   : > { %v2506_v14 = vmul.f32 1.442695, %v6695_v27  ;;  %v939_v8 = vmul.f32 10.0, %v527_v34  ;;  %v827_v61 = vsub.f32 %v9925_v18, %v8401_v19  ;;  %v547_v49 = vsub.f32 %v9898_v47, %v8514_v50 }
 0x34f   : > { %v7829_v10 = vpop.eup %7828  ;;  %v3288_v15 = vmul.f32 %v3120_v7, %v2952_v23  ;;  %v6029_v35 = vadd.f32 %v5330_v17, %v5061_v52  ;;  %v2508_v4 = vmul.f32 1.442695, %v6696_v63  ;;  %v9936_v55 = vadd.f32 %v5402_v20, %v5364_v42 }
 0x350   : > { %v7831_v5 = vpop.eup %7830  ;;  %v4800_v53 = vmul.f32 %v7829_v10, %v3792_v36  ;;  %7838 = vpow2.f32 %v2506_v14  ;;  %v6470_v32 = vclamps-f32 %v939_v8, 30.0  ;;  %v1835_v39 = vmul.f32 10.0, %v827_v61 }
 0x351   : > { %v7833_v26 = vpop.eup %7832  ;;  %7840 = vrcp.f32 %v3288_v15  ;;  %v9931_v41 = vmul.f32 0.22140276, %v7831_v5  ;;  %v2785_v34 = vmul.f32 1.105171, %v7831_v5  ;;  %v3121_v0 = vadd.f32 1.105171, %v7831_v5 }
 0x352   : > { %v7835_v62 = vpop.eup %7834  ;;  %5727 = vmatpush.xpose.msra.mxu0 %v4800_v53  ;;  %v4801_v37 = vmul.f32 %v7833_v26, %v3793_v38  ;;  %7842 = vpow2.f32 %v2508_v4  ;;  %6087 = vst.msk [vmem:[#allocation2 + $0x68] sm:$0x3] %vm240_vm0, %v6029_v35  ;;  %v1552_v59 = vmul.f32 1.442695, %v6470_v32  ;;  %v6694_v29 = vclamps-f32 %v1835_v39, 30.0 }
 0x353   : > { %v9934_v36 = vmul.f32 0.22140276, %v7835_v62  ;;  %v2804_v22 = vmul.f32 1.105171, %v7835_v62  ;;  %v3140_v51 = vadd.f32 1.105171, %v7835_v62  ;;  %v7837_v16 = vpop.eup %7836  ;;  %v825_v27 = vsub.f32 %v9916_v40, %v8413_v24 }
 0x354   : > { %5765 = vmatpush.xpose.msra.mxu1 %v4801_v37  ;;  %v2953_v48 = vadd.f32 1.0, %v2785_v34  ;;  %7844 = vpow2.f32 %v1552_v59  ;;  %v959_v1 = vmul.f32 10.0, %v547_v49  ;;  %v2805_v38 = vmul.f32 1.105171, %v7837_v16 }
 0x355   : > { %v2972_v11 = vadd.f32 1.0, %v2804_v22  ;;  %v9939_v7 = vperm.slane %v9592_v3, 2  ;;  %v3141_v52 = vadd.f32 1.105171, %v7837_v16  ;;  %v2504_v23 = vmul.f32 1.442695, %v6694_v29 }
 0x356   : > { %v7839_v60 = vpop.eup %7838  ;;  %v3289_v45 = vmul.f32 %v3121_v0, %v2953_v48  ;;  %v6490_v17 = vclamps-f32 %v959_v1, 30.0  ;;  %v2637_v15 = vmul.f32 0.22140276, %v7837_v16  ;;  %v2973_v49 = vadd.f32 1.0, %v2805_v38 }
 0x357   : > { %v7841_v14 = vpop.eup %7840  ;;  %v3308_v63 = vmul.f32 %v3140_v51, %v2972_v11  ;;  %v4020_v8 = vmul.f32 1.105171, %v7839_v60  ;;  %v4356_v10 = vadd.f32 1.105171, %v7839_v60  ;;  %v3852_v5 = vmul.f32 0.22140276, %v7839_v60 }
 0x358   : > { %v7843_v61 = vpop.eup %7842  ;;  %v3624_v35 = vmul.f32 %v7841_v14, %v2616_v9  ;;  %7846 = vrcp.f32 %v3289_v45  ;;  %v1592_v3 = vmul.f32 1.442695, %v6490_v17  ;;  %v3309_v32 = vmul.f32 %v3141_v52, %v2973_v49 }
 0x359   : > { %7848 = vrcp.f32 %v3308_v63  ;;  %v4188_v53 = vadd.f32 1.0, %v4020_v8  ;;  %v4021_v4 = vmul.f32 1.105171, %v7843_v61  ;;  %v4357_v26 = vadd.f32 1.105171, %v7843_v61 }
 0x35a   : > { %v7845_v20 = vpop.eup %7844  ;;  %5728 = vmatmul.f32.vlgmr.msra.gmra.mxu0 %v3624_v35  ;;  %7850 = vpow2.f32 %v2504_v23  ;;  %v6146_v34 = vld [vmem:[#allocation2 + $0x68] sm:$0x3]  ;;  %v808_v0 = vsub.f32 %v9939_v7, %v8401_v19  ;;  %v3853_v37 = vmul.f32 0.22140276, %v7843_v61  ;;  %v1833_v51 = vmul.f32 10.0, %v825_v27 }
 0x35b   : > { %v4524_v62 = vmul.f32 %v4356_v10, %v4188_v53  ;;  %v4189_v9 = vadd.f32 1.0, %v4021_v4  ;;  %6202 = vst.msk [vmem:[%s9306_s28 + $0x68] sm:$0x3] %vm240_vm0, %v6146_v34  ;;  %7852 = vpow2.f32 %v1592_v3  ;;  %v2787_v42 = vmul.f32 1.105171, %v7845_v20 }
 0x35c   : > { %7854 = vrcp.f32 %v3309_v32  ;;  %v3123_v39 = vadd.f32 1.105171, %v7845_v20  ;;  %v1816_v59 = vmul.f32 10.0, %v808_v0  ;;  %v528_v16 = vsub.f32 %v9623_v57, %v8514_v50 }
 0x35d   : > { %7856 = vrcp.f32 %v4524_v62  ;;  %v4525_v22 = vmul.f32 %v4357_v26, %v4189_v9  ;;  %v2619_v29 = vmul.f32 0.22140276, %v7845_v20  ;;  %v2955_v1 = vadd.f32 1.0, %v2787_v42 }
 0x35e   : > { %v7847_v48 = vpop.eup %7846  ;;  %v6675_v11 = vclamps-f32 %v1816_v59, 30.0  ;;  %v548_v38 = vsub.f32 %v9904_v43, %v8514_v50  ;;  %v6692_v52 = vclamps-f32 %v1833_v51, 30.0  ;;  %v940_v23 = vmul.f32 10.0, %v528_v16 }
 0x35f   : > { %v7849_v60 = vpop.eup %7848  ;;  %v3625_v45 = vmul.f32 %v7847_v48, %v9931_v41  ;;  %7858 = vrcp.f32 %v4525_v22  ;;  %v3291_v27 = vmul.f32 %v3123_v39, %v2955_v1  ;;  %v826_v41 = vsub.f32 %v9920_v44, %v8413_v24  ;;  %v5425_v39 = vpop.f32.mrf.mxu0 }
 0x360   : > { %v7851_v17 = vpop.eup %7850  ;;  %v3644_v14 = vmul.f32 %v7849_v60, %v9934_v36  ;;  %v2466_v63 = vmul.f32 1.442695, %v6675_v11  ;;  %v960_v8 = vmul.f32 10.0, %v548_v38  ;;  %v824_v36 = vsub.f32 %v9925_v18, %v8413_v24 }
 0x361   : > { %v7853_v10 = vpop.eup %7852  ;;  %6732 = vmatmul.msk.f32.vlgmr.msra.gmra.mxu1 %vm4873_vm6, %v3625_v45  ;;  %v9955_v61 = vmul.f32 0.22140276, %v7851_v17  ;;  %v4019_v35 = vmul.f32 1.105171, %v7851_v17  ;;  %v4355_v49 = vadd.f32 1.105171, %v7851_v17  ;;  %7860 = vrcp.f32 %v3291_v27 }
 0x362   : > { %v7855_v3 = vpop.eup %7854  ;;  %5804 = vmatmul.f32.vlgmr.msra.gmra.mxu2 %v3644_v14  ;;  %v2807_v53 = vmul.f32 1.105171, %v7853_v10  ;;  %v3143_v4 = vadd.f32 1.105171, %v7853_v10  ;;  %7862 = vpow2.f32 %v2466_v63  ;;  %v2500_v34 = vmul.f32 1.442695, %v6692_v52 }
 0x363   : > { %v7857_v20 = vpop.eup %7856  ;;  %v3645_v32 = vmul.f32 %v7855_v3, %v2637_v15  ;;  %v4187_v26 = vadd.f32 1.0, %v4019_v35  ;;  %v6471_v9 = vclamps-f32 %v940_v23, 30.0  ;;  %v6491_v42 = vclamps-f32 %v960_v8, 30.0  ;;  %v5062_v15 = vld [vmem:[#allocation2 + $0x70] sm:$0xff] }
 0x364   : > { %v4860_v0 = vmul.f32 %v7857_v20, %v3852_v5  ;;  %v2975_v62 = vadd.f32 1.0, %v2807_v53  ;;  %v2639_v51 = vmul.f32 0.22140276, %v7853_v10  ;;  %7864 = vpow2.f32 %v2500_v34 }
 0x365   : > { %v7859_v59 = vpop.eup %7858  ;;  %5842 = vmatmul.f32.vlgmr.msra.gmra.mxu3 %v3645_v32  ;;  %v4523_v22 = vmul.f32 %v4355_v49, %v4187_v26  ;;  %v1834_v16 = vmul.f32 10.0, %v826_v41  ;;  %v1554_v11 = vmul.f32 1.442695, %v6471_v9  ;;  %v1594_v38 = vmul.f32 1.442695, %v6491_v42 }
 0x366   : > { %5949 = vmatpush.xpose.msrb.mxu2 %v4860_v0  ;;  %v4861_v48 = vmul.f32 %v7859_v59, %v3853_v37  ;;  %v3311_v1 = vmul.f32 %v3143_v4, %v2975_v62  ;;  %v5426_v5 = vadd.f32 %v5425_v39, %v9741_v6  ;;  %v1832_v45 = vmul.f32 10.0, %v824_v36 }
 0x367   : > { %7866 = vrcp.f32 %v4523_v22  ;;  %v6693_v60 = vclamps-f32 %v1834_v16, 30.0  ;;  %v7861_v52 = vpop.eup %7860  ;;  %v530_v23 = vsub.f32 %v9880_v54, %v8499_v33  ;;  %v550_v17 = vsub.f32 %v9898_v47, %v8499_v33 }
 0x368   : > { %5987 = vmatpush.xpose.msrb.mxu3 %v4861_v48  ;;  %7868 = vrcp.f32 %v3311_v1  ;;  %v805_v37 = vsub.f32 %v9939_v7, %v8413_v24  ;;  %v7863_v14 = vpop.eup %7862  ;;  %v3627_v27 = vmul.f32 %v7861_v52, %v2619_v29  ;;  %v6030_v8 = vadd.f32 %v5426_v5, %v5062_v15 }
 0x369   : > { %7870 = vpow2.f32 %v1554_v11  ;;  %v2502_v63 = vmul.f32 1.442695, %v6693_v60  ;;  %v9968_v10 = vmul.f32 0.22140276, %v7863_v14  ;;  %v4000_v6 = vmul.f32 1.105171, %v7863_v14 }
 0x36a   : > { %v4336_v35 = vadd.f32 1.105171, %v7863_v14  ;;  %7872 = vpow2.f32 %v1594_v38  ;;  %v7865_v49 = vpop.eup %7864  ;;  %5731 = vmatmul.f32.gmra.mxu0 %v3627_v27  ;;  %6088 = vst.msk [vmem:[#allocation2 + $0x70] sm:$0xff] %vm233_vm13, %v6030_v8  ;;  %v6691_v41 = vclamps-f32 %v1832_v45, 30.0  ;;  %v942_v3 = vmul.f32 10.0, %v530_v23  ;;  %v9980_v14 = vpop.f32.mrf.mxu2 }
 0x36b   : > { %7874 = vpow2.f32 %v2502_v63  ;;  %v962_v53 = vmul.f32 10.0, %v550_v17  ;;  %v4168_v4 = vadd.f32 1.0, %v4000_v6  ;;  %v9971_v36 = vmul.f32 0.22140276, %v7865_v49 }
 0x36c   : > { %v4017_v29 = vmul.f32 1.105171, %v7865_v49  ;;  %v1813_v20 = vmul.f32 10.0, %v805_v37  ;;  %v4353_v26 = vadd.f32 1.105171, %v7865_v49  ;;  %v6473_v0 = vclamps-f32 %v942_v3, 30.0  ;;  %v9984_v49 = vpop.f32.mrf.mxu3 }
 0x36d   : > { %v7867_v32 = vpop.eup %7866  ;;  %v2498_v34 = vmul.f32 1.442695, %v6691_v41  ;;  %v6493_v62 = vclamps-f32 %v962_v53, 30.0  ;;  %v4504_v39 = vmul.f32 %v4336_v35, %v4168_v4  ;;  %v822_v3 = vsub.f32 %v9916_v40, %v8415_v25 }
 0x36e   : > { %v7869_v9 = vpop.eup %7868  ;;  %v4859_v42 = vmul.f32 %v7867_v32, %v9955_v61  ;;  %v4185_v59 = vadd.f32 1.0, %v4017_v29  ;;  %v6672_v22 = vclamps-f32 %v1813_v20, 30.0  ;;  %v1558_v1 = vmul.f32 1.442695, %v6473_v0 }
 0x36f   : > { %v7871_v16 = vpop.eup %7870  ;;  %v3647_v48 = vmul.f32 %v7869_v9, %v2639_v51  ;;  %7876 = vpow2.f32 %v2498_v34  ;;  %v1598_v11 = vmul.f32 1.442695, %v6493_v62  ;;  %v531_v53 = vsub.f32 %v9623_v57, %v8499_v33 }
 0x370   : > { %v7873_v38 = vpop.eup %7872  ;;  %5911 = vmatpush.xpose.msrb.mxu1 %v4859_v42  ;;  %7878 = vrcp.f32 %v4504_v39  ;;  %v4521_v15 = vmul.f32 %v4353_v26, %v4185_v59  ;;  %v9974_v60 = vmul.f32 0.22140276, %v7871_v16  ;;  %v2788_v5 = vmul.f32 1.105171, %v7871_v16 }
 0x371   : > { %v7875_v45 = vpop.eup %7874  ;;  %5807 = vmatmul.f32.gmra.mxu2 %v3647_v48  ;;  %v3124_v52 = vadd.f32 1.105171, %v7871_v16  ;;  %v9976_v61 = vmul.f32 0.22140276, %v7873_v38  ;;  %v2808_v23 = vmul.f32 1.105171, %v7873_v38  ;;  %7880 = vpow2.f32 %v1558_v1 }
 0x372   : > { %7882 = vrcp.f32 %v4521_v15  ;;  %v2956_v51 = vadd.f32 1.0, %v2788_v5  ;;  %v3144_v17 = vadd.f32 1.105171, %v7873_v38  ;;  %v9978_v37 = vmul.f32 0.22140276, %v7875_v45  ;;  %v6147_v27 = vld [vmem:[#allocation2 + $0x70] sm:$0xff] }
 0x373   : > { %v2976_v63 = vadd.f32 1.0, %v2808_v23  ;;  %v4018_v8 = vmul.f32 1.105171, %v7875_v45  ;;  %v4354_v6 = vadd.f32 1.105171, %v7875_v45  ;;  %6203 = vst.msk [vmem:[%s9306_s28 + $0x70] sm:$0xff] %vm233_vm13, %v6147_v27  ;;  %7884 = vpow2.f32 %v1598_v11 }
 0x374   : > { %v3292_v35 = vmul.f32 %v3124_v52, %v2956_v51  ;;  %v2460_v41 = vmul.f32 1.442695, %v6672_v22  ;;  %v551_v32 = vsub.f32 %v9904_v43, %v8499_v33  ;;  %v823_v26 = vsub.f32 %v9920_v44, %v8415_v25 }
 0x375   : > { %v7877_v4 = vpop.eup %7876  ;;  %v3312_v29 = vmul.f32 %v3144_v17, %v2976_v63  ;;  %v4186_v20 = vadd.f32 1.0, %v4018_v8  ;;  %v1830_v22 = vmul.f32 10.0, %v822_v3  ;;  %v943_v63 = vmul.f32 10.0, %v531_v53 }
 0x376   : > { %v7879_v34 = vpop.eup %7878  ;;  %7886 = vrcp.f32 %v3292_v35  ;;  %v9994_v0 = vmul.f32 0.22140276, %v7877_v4  ;;  %v4016_v62 = vmul.f32 1.105171, %v7877_v4  ;;  %v4352_v9 = vadd.f32 1.105171, %v7877_v4  ;;  %v5501_v4 = vpop.f32.mrf.mxu2 }
 0x377   : > { %v7881_v42 = vpop.eup %7880  ;;  %v4840_v39 = vmul.f32 %v7879_v34, %v9968_v10  ;;  %7888 = vrcp.f32 %v3312_v29  ;;  %v4522_v59 = vmul.f32 %v4354_v6, %v4186_v20  ;;  %v6689_v45 = vclamps-f32 %v1830_v22, 30.0  ;;  %v5463_v20 = vpop.f32.mrf.mxu1 }
 0x378   : > { %v7883_v16 = vpop.eup %7882  ;;  %v4184_v48 = vadd.f32 1.0, %v4016_v62  ;;  %v9997_v1 = vmul.f32 0.22140276, %v7881_v42  ;;  %v2790_v11 = vmul.f32 1.105171, %v7881_v42  ;;  %7890 = vpow2.f32 %v2460_v41 }
 0x379   : > { %v7885_v38 = vpop.eup %7884  ;;  %5873 = vmatpush.xpose.msrb.mxu0 %v4840_v39  ;;  %v4857_v15 = vmul.f32 %v7883_v16, %v9971_v36  ;;  %7892 = vrcp.f32 %v4522_v59  ;;  %v3126_v5 = vadd.f32 1.105171, %v7881_v42  ;;  %v2494_v27 = vmul.f32 1.442695, %v6689_v45  ;;  %v5539_v59 = vpop.f32.mrf.mxu3 }
 0x37a   : > { %v4520_v52 = vmul.f32 %v4352_v9, %v4184_v48  ;;  %v2958_v23 = vadd.f32 1.0, %v2790_v11  ;;  %v10000_v51 = vmul.f32 0.22140276, %v7885_v38  ;;  %v2810_v10 = vmul.f32 1.105171, %v7885_v38 }
 0x37b   : > { %5950 = vmatpush.xpose.msrb.mxu2 %v4857_v15  ;;  %v3146_v17 = vadd.f32 1.105171, %v7885_v38  ;;  %v963_v8 = vmul.f32 10.0, %v551_v32  ;;  %v1831_v3 = vmul.f32 10.0, %v823_v26  ;;  %v6474_v34 = vclamps-f32 %v943_v63, 30.0  ;;  %v5428_v32 = vpop.f32.mrf.mxu0  ;;  %v5063_v15 = vld [vmem:[#allocation2 + $0x78] sm:$0xff] }
 0x37c   : > { %v7887_v6 = vpop.eup %7886  ;;  %7894 = vrcp.f32 %v4520_v52  ;;  %v3294_v35 = vmul.f32 %v3126_v5, %v2958_v23  ;;  %v2978_v41 = vadd.f32 1.0, %v2810_v10  ;;  %v5502_v48 = vadd.f32 %v5501_v4, %v5463_v20 }
 0x37d   : > { %v7889_v36 = vpop.eup %7888  ;;  %v3628_v29 = vmul.f32 %v7887_v6, %v9974_v60  ;;  %7896 = vpow2.f32 %v2494_v27  ;;  %v6494_v62 = vclamps-f32 %v963_v8, 30.0  ;;  %v6690_v53 = vclamps-f32 %v1831_v3, 30.0 }
 0x37e   : > { %v7891_v9 = vpop.eup %7890  ;;  %v3648_v42 = vmul.f32 %v7889_v36, %v9976_v61  ;;  %7898 = vrcp.f32 %v3294_v35  ;;  %v3314_v39 = vmul.f32 %v3146_v17, %v2978_v41  ;;  %v1560_v38 = vmul.f32 1.442695, %v6474_v34  ;;  %v5069_v17 = vld [vmem:[#allocation2 + $0xa8] sm:$0xff] }
 0x37f   : > { %v7893_v22 = vpop.eup %7892  ;;  %6733 = vmatmul.msk.f32.gmra.mxu1 %vm4873_vm6, %v3628_v29  ;;  %v10006_v26 = vmul.f32 0.22140276, %v7891_v9  ;;  %v3997_v16 = vmul.f32 1.105171, %v7891_v9  ;;  %v4333_v60 = vadd.f32 1.105171, %v7891_v9  ;;  %v5429_v52 = vadd.f32 %v5428_v32, %v9792_v56 }
 0x380   : > { %5845 = vmatmul.f32.gmra.mxu3 %v3648_v42  ;;  %v4858_v11 = vmul.f32 %v7893_v22, %v9978_v37  ;;  %7900 = vrcp.f32 %v3314_v39  ;;  %v1600_v61 = vmul.f32 1.442695, %v6494_v62  ;;  %v2496_v45 = vmul.f32 1.442695, %v6690_v53 }
 0x381   : > { %v4165_v5 = vadd.f32 1.0, %v3997_v16  ;;  %v5540_v23 = vadd.f32 %v5539_v59, %v5502_v48  ;;  %7902 = vpow2.f32 %v1560_v38  ;;  %v821_v27 = vsub.f32 %v9925_v18, %v8415_v25 }
 0x382   : > { %v7895_v10 = vpop.eup %7894  ;;  %5988 = vmatpush.xpose.msrb.mxu3 %v4858_v11  ;;  %v533_v63 = vsub.f32 %v9880_v54, %v8425_v30  ;;  %v553_v37 = vsub.f32 %v9898_v47, %v8425_v30  ;;  %7904 = vpow2.f32 %v1600_v61  ;;  %v6031_v56 = vadd.f32 %v5429_v52, %v5063_v15 }
 0x383   : > { %v7897_v8 = vpop.eup %7896  ;;  %v4856_v6 = vmul.f32 %v7895_v10, %v9994_v0  ;;  %v4501_v35 = vmul.f32 %v4333_v60, %v4165_v5  ;;  %7906 = vpow2.f32 %v2496_v45  ;;  %v6037_v20 = vadd.f32 %v5540_v23, %v5069_v17 }
 0x384   : > { %v7899_v41 = vpop.eup %7898  ;;  %v10017_v3 = vmul.f32 0.22140276, %v7897_v8  ;;  %v4014_v4 = vmul.f32 1.105171, %v7897_v8  ;;  %v4350_v36 = vadd.f32 1.105171, %v7897_v8  ;;  %v802_v39 = vsub.f32 %v9939_v7, %v8415_v25 }
 0x385   : > { %5912 = vmatpush.xpose.msrb.mxu1 %v4856_v6  ;;  %v3630_v29 = vmul.f32 %v7899_v41, %v9997_v1  ;;  %7908 = vrcp.f32 %v4501_v35  ;;  %6089 = vst.msk [vmem:[#allocation2 + $0x78] sm:$0xff] %vm233_vm13, %v6031_v56  ;;  %v1829_v34 = vmul.f32 10.0, %v821_v27  ;;  %v945_v0 = vmul.f32 10.0, %v533_v63 }
 0x386   : > { %v7901_v62 = vpop.eup %7900  ;;  %v4182_v9 = vadd.f32 1.0, %v4014_v4  ;;  %v965_v42 = vmul.f32 10.0, %v553_v37  ;;  %6095 = vst.msk [vmem:[#allocation2 + $0xa8] sm:$0xff] %vm233_vm13, %v6037_v20  ;;  %v819_v1 = vsub.f32 %v9916_v40, %v8425_v30  ;;  %v534_v59 = vsub.f32 %v9623_v57, %v8425_v30 }
 0x387   : > { %5734 = vmatmul.f32.gmra.mxu0 %v3630_v29  ;;  %v3650_v53 = vmul.f32 %v7901_v62, %v10000_v51  ;;  %v6688_v32 = vclamps-f32 %v1829_v34, 30.0  ;;  %v7903_v22 = vpop.eup %7902  ;;  %v6476_v60 = vclamps-f32 %v945_v0, 30.0  ;;  %v1810_v11 = vmul.f32 10.0, %v802_v39 }
 0x388   : > { %v4518_v16 = vmul.f32 %v4350_v36, %v4182_v9  ;;  %v6496_v48 = vclamps-f32 %v965_v42, 30.0  ;;  %v7905_v38 = vpop.eup %7904  ;;  %v10029_v61 = vmul.f32 0.22140276, %v7903_v22  ;;  %v2791_v15 = vmul.f32 1.105171, %v7903_v22 }
 0x389   : > { %5810 = vmatmul.f32.gmra.mxu2 %v3650_v53  ;;  %v3127_v51 = vadd.f32 1.105171, %v7903_v22  ;;  %v554_v5 = vsub.f32 %v9904_v43, %v8425_v30  ;;  %v7907_v45 = vpop.eup %7906  ;;  %v10033_v52 = vmul.f32 0.22140276, %v7905_v38  ;;  %v2811_v23 = vmul.f32 1.105171, %v7905_v38 }
 0x38a   : > { %7910 = vrcp.f32 %v4518_v16  ;;  %v3147_v10 = vadd.f32 1.105171, %v7905_v38  ;;  %v2959_v27 = vadd.f32 1.0, %v2791_v15  ;;  %v10035_v63 = vmul.f32 0.22140276, %v7907_v45 }
 0x38b   : > { %v7909_v17 = vpop.eup %7908  ;;  %v4015_v37 = vmul.f32 1.105171, %v7907_v45  ;;  %v6669_v8 = vclamps-f32 %v1810_v11, 30.0  ;;  %v2979_v35 = vadd.f32 1.0, %v2811_v23  ;;  %v4351_v56 = vadd.f32 1.105171, %v7907_v45  ;;  %v5542_v45 = vpop.f32.mrf.mxu3 }
 0x38c   : > { %v4837_v6 = vmul.f32 %v7909_v17, %v10006_v26  ;;  %v6148_v41 = vld [vmem:[#allocation2 + $0x78] sm:$0xff]  ;;  %v2492_v4 = vmul.f32 1.442695, %v6688_v32  ;;  %v3295_v36 = vmul.f32 %v3127_v51, %v2959_v27  ;;  %v1564_v20 = vmul.f32 1.442695, %v6476_v60  ;;  %v5504_v60 = vpop.f32.mrf.mxu2  ;;  %v5064_v27 = vld [vmem:[#allocation2 + $0x80] sm:$0xff] }
 0x38d   : > { %v4183_v29 = vadd.f32 1.0, %v4015_v37  ;;  %6204 = vst.msk [vmem:[%s9306_s28 + $0x78] sm:$0xff] %vm233_vm13, %v6148_v41  ;;  %v1604_v34 = vmul.f32 1.442695, %v6496_v48  ;;  %v3315_v62 = vmul.f32 %v3147_v10, %v2979_v35  ;;  %v6154_v9 = vld [vmem:[#allocation2 + $0xa8] sm:$0xff]  ;;  %v1827_v42 = vmul.f32 10.0, %v819_v1  ;;  %v5431_v48 = vpop.f32.mrf.mxu0  ;;  %v5466_v1 = vpop.f32.mrf.mxu1 }
 0x38e   : > { %5874 = vmatpush.xpose.msrb.mxu0 %v4837_v6  ;;  %7912 = vpow2.f32 %v2492_v4  ;;  %v2454_v0 = vmul.f32 1.442695, %v6669_v8  ;;  %6210 = vst.msk [vmem:[%s9306_s28 + $0xa8] sm:$0xff] %vm233_vm13, %v6154_v9  ;;  %v946_v26 = vmul.f32 10.0, %v534_v59  ;;  %v966_v53 = vmul.f32 10.0, %v554_v5 }
 0x38f   : > { %7914 = vrcp.f32 %v3295_v36  ;;  %v4519_v39 = vmul.f32 %v4351_v56, %v4183_v29  ;;  %v6686_v32 = vclamps-f32 %v1827_v42, 30.0  ;;  %v820_v16 = vsub.f32 %v9920_v44, %v8425_v30 }
 0x390   : > { %v7911_v22 = vpop.eup %7910  ;;  %7916 = vrcp.f32 %v3315_v62  ;;  %v818_v11 = vsub.f32 %v9925_v18, %v8425_v30  ;;  %v6477_v15 = vclamps-f32 %v946_v26, 30.0  ;;  %v6497_v51 = vclamps-f32 %v966_v53, 30.0 }
 0x391   : > { %v4854_v38 = vmul.f32 %v7911_v22, %v10017_v3  ;;  %7918 = vrcp.f32 %v4519_v39  ;;  %v2488_v59 = vmul.f32 1.442695, %v6686_v32  ;;  %v1828_v5 = vmul.f32 10.0, %v820_v16  ;;  %v5070_v3 = vld [vmem:[#allocation2 + $0xb0] sm:$0xff] }
 0x392   : > { %7920 = vpow2.f32 %v1564_v20  ;;  %v5505_v23 = vadd.f32 %v5504_v60, %v5466_v1  ;;  %v1566_v10 = vmul.f32 1.442695, %v6477_v15  ;;  %v1606_v17 = vmul.f32 1.442695, %v6497_v51 }
 0x393   : > { %5951 = vmatpush.xpose.msrb.mxu2 %v4854_v38  ;;  %7922 = vpow2.f32 %v1604_v34  ;;  %v5432_v37 = vadd.f32 %v5431_v48, %v9813_v28  ;;  %v6687_v6 = vclamps-f32 %v1828_v5, 30.0  ;;  %v10048_v56 = vmul.f32 10.0, %v818_v11 }
 0x394   : > { %v7913_v8 = vpop.eup %7912  ;;  %7924 = vpow2.f32 %v2454_v0  ;;  %v5543_v35 = vadd.f32 %v5542_v45, %v5505_v23  ;;  %v536_v22 = vsub.f32 %v9880_v54, %v8415_v25  ;;  %v556_v15 = vsub.f32 %v9898_v47, %v8415_v25 }
 0x395   : > { %v7915_v41 = vpop.eup %7914  ;;  %v10050_v4 = vmul.f32 0.22140276, %v7913_v8  ;;  %v4013_v36 = vmul.f32 1.105171, %v7913_v8  ;;  %v4349_v29 = vadd.f32 1.105171, %v7913_v8  ;;  %7926 = vpow2.f32 %v2488_v59 }
 0x396   : > { %v7917_v20 = vpop.eup %7916  ;;  %v3631_v34 = vmul.f32 %v7915_v41, %v10029_v61  ;;  %7928 = vpow2.f32 %v1566_v10  ;;  %v2490_v62 = vmul.f32 1.442695, %v6687_v6  ;;  %v6032_v9 = vadd.f32 %v5432_v37, %v5064_v27 }
 0x397   : > { %v7919_v28 = vpop.eup %7918  ;;  %v3651_v0 = vmul.f32 %v7917_v20, %v10033_v52  ;;  %v4181_v42 = vadd.f32 1.0, %v4013_v36  ;;  %7930 = vpow2.f32 %v1606_v17  ;;  %v6038_v39 = vadd.f32 %v5543_v35, %v5070_v3 }
 0x398   : > { %v7921_v26 = vpop.eup %7920  ;;  %6734 = vmatmul.msk.f32.gmra.mxu1 %vm4873_vm6, %v3631_v34  ;;  %v4855_v53 = vmul.f32 %v7919_v28, %v10035_v63  ;;  %7932 = vpow2.f32 %v2490_v62  ;;  %6090 = vst.msk [vmem:[#allocation2 + $0x80] sm:$0xff] %vm233_vm13, %v6032_v9  ;;  %v6685_v61 = vclamps-f32 %v10048_v56, 30.0  ;;  %v948_v37 = vmul.f32 10.0, %v536_v22 }
 0x399   : > { %v7923_v32 = vpop.eup %7922  ;;  %5848 = vmatmul.f32.gmra.mxu3 %v3651_v0  ;;  %v4517_v52 = vmul.f32 %v4349_v29, %v4181_v42  ;;  %v10061_v16 = vmul.f32 0.22140276, %v7921_v26  ;;  %v2793_v60 = vmul.f32 1.105171, %v7921_v26  ;;  %v3129_v48 = vadd.f32 1.105171, %v7921_v26 }
 0x39a   : > { %v7925_v11 = vpop.eup %7924  ;;  %5989 = vmatpush.xpose.msrb.mxu3 %v4855_v53  ;;  %v10063_v38 = vmul.f32 0.22140276, %v7923_v32  ;;  %v2813_v63 = vmul.f32 1.105171, %v7923_v32  ;;  %v3149_v1 = vadd.f32 1.105171, %v7923_v32 }
 0x39b   : > { %v7927_v51 = vpop.eup %7926  ;;  %7934 = vrcp.f32 %v4517_v52  ;;  %v2961_v45 = vadd.f32 1.0, %v2793_v60  ;;  %v10067_v59 = vmul.f32 0.22140276, %v7925_v11  ;;  %v3994_v5 = vmul.f32 1.105171, %v7925_v11  ;;  %6096 = vst.msk [vmem:[#allocation2 + $0xb0] sm:$0xff] %vm233_vm13, %v6038_v39 }
 0x39c   : > { %v7929_v23 = vpop.eup %7928  ;;  %v2981_v10 = vadd.f32 1.0, %v2813_v63  ;;  %v4330_v17 = vadd.f32 1.105171, %v7925_v11  ;;  %v10070_v27 = vmul.f32 0.22140276, %v7927_v51 }
 0x39d   : > { %v7931_v8 = vpop.eup %7930  ;;  %v3297_v6 = vmul.f32 %v3129_v48, %v2961_v45  ;;  %v4162_v3 = vadd.f32 1.0, %v3994_v5  ;;  %v4011_v35 = vmul.f32 1.105171, %v7927_v51  ;;  %v4347_v56 = vadd.f32 1.105171, %v7927_v51 }
 0x39e   : > { %v7933_v41 = vpop.eup %7932  ;;  %v3317_v36 = vmul.f32 %v3149_v1, %v2981_v10  ;;  %v10072_v29 = vmul.f32 0.22140276, %v7929_v23  ;;  %v2794_v20 = vmul.f32 1.105171, %v7929_v23  ;;  %v3130_v34 = vadd.f32 1.105171, %v7929_v23 }
 0x39f   : > { %7936 = vrcp.f32 %v3297_v6  ;;  %v4498_v62 = vmul.f32 %v4330_v17, %v4162_v3  ;;  %v4179_v9 = vadd.f32 1.0, %v4011_v35  ;;  %v10074_v28 = vmul.f32 0.22140276, %v7931_v8  ;;  %v6149_v0 = vld [vmem:[#allocation2 + $0x80] sm:$0xff] }
 0x3a0   : > { %7938 = vrcp.f32 %v3317_v36  ;;  %v2962_v42 = vadd.f32 1.0, %v2794_v20  ;;  %v2814_v39 = vmul.f32 1.105171, %v7931_v8  ;;  %v3150_v26 = vadd.f32 1.105171, %v7931_v8  ;;  %6205 = vst.msk [vmem:[%s9306_s28 + $0x80] sm:$0xff] %vm233_vm13, %v6149_v0 }
 0x3a1   : > { %v7935_v53 = vpop.eup %7934  ;;  %7940 = vrcp.f32 %v4498_v62  ;;  %v4515_v22 = vmul.f32 %v4347_v56, %v4179_v9  ;;  %v10078_v32 = vmul.f32 0.22140276, %v7933_v41  ;;  %v4012_v52 = vmul.f32 1.105171, %v7933_v41 }
 0x3a2   : > { %v4853_v60 = vmul.f32 %v7935_v53, %v10050_v4  ;;  %v3298_v48 = vmul.f32 %v3130_v34, %v2962_v42  ;;  %v2982_v11 = vadd.f32 1.0, %v2814_v39  ;;  %v4348_v63 = vadd.f32 1.105171, %v7933_v41  ;;  %v6155_v1 = vld [vmem:[#allocation2 + $0xb0] sm:$0xff] }
 0x3a3   : > { %7942 = vrcp.f32 %v4515_v22  ;;  %v4180_v51 = vadd.f32 1.0, %v4012_v52  ;;  %6211 = vst.msk [vmem:[%s9306_s28 + $0xb0] sm:$0xff] %vm233_vm13, %v6155_v1  ;;  %v2486_v45 = vmul.f32 1.442695, %v6685_v61  ;;  %v6479_v5 = vclamps-f32 %v948_v37, 30.0  ;;  %v5507_v1 = vpop.f32.mrf.mxu2 }
 0x3a4   : > { %5913 = vmatpush.xpose.msrb.mxu1 %v4853_v60  ;;  %7944 = vrcp.f32 %v3298_v48  ;;  %v3318_v23 = vmul.f32 %v3150_v26, %v2982_v11  ;;  %v968_v10 = vmul.f32 10.0, %v556_v15  ;;  %v799_v17 = vsub.f32 %v9939_v7, %v8425_v30 }
 0x3a5   : > { %v7937_v8 = vpop.eup %7936  ;;  %v4516_v6 = vmul.f32 %v4348_v63, %v4180_v51  ;;  %7946 = vpow2.f32 %v2486_v45  ;;  %v1570_v4 = vmul.f32 1.442695, %v6479_v5  ;;  %v816_v3 = vsub.f32 %v9916_v40, %v8499_v33 }
 0x3a6   : > { %v7939_v35 = vpop.eup %7938  ;;  %v3633_v56 = vmul.f32 %v7937_v8, %v10061_v16  ;;  %7948 = vrcp.f32 %v3318_v23  ;;  %v6499_v61 = vclamps-f32 %v968_v10, 30.0  ;;  %v1807_v37 = vmul.f32 10.0, %v799_v17  ;;  %v5469_v17 = vpop.f32.mrf.mxu1 }
 0x3a7   : > { %v7941_v41 = vpop.eup %7940  ;;  %v3653_v36 = vmul.f32 %v7939_v35, %v10063_v38  ;;  %7950 = vrcp.f32 %v4516_v6  ;;  %v1824_v15 = vmul.f32 10.0, %v816_v3  ;;  %v537_v20 = vsub.f32 %v9623_v57, %v8415_v25  ;;  %v5434_v6 = vpop.f32.mrf.mxu0 }
 0x3a8   : > { %5737 = vmatmul.f32.gmra.mxu0 %v3633_v56  ;;  %v4834_v34 = vmul.f32 %v7941_v41, %v10067_v59  ;;  %7952 = vpow2.f32 %v1570_v4  ;;  %v1610_v62 = vmul.f32 1.442695, %v6499_v61  ;;  %v6666_v9 = vclamps-f32 %v1807_v37, 30.0  ;;  %v5065_v37 = vld [vmem:[#allocation2 + $0x88] sm:$0xff]  ;;  %v5545_v41 = vpop.f32.mrf.mxu3 }
 0x3a9   : > { %v7943_v0 = vpop.eup %7942  ;;  %5813 = vmatmul.f32.gmra.mxu2 %v3653_v36  ;;  %v6683_v16 = vclamps-f32 %v1824_v15, 30.0  ;;  %v949_v42 = vmul.f32 10.0, %v537_v20  ;;  %v557_v39 = vsub.f32 %v9904_v43, %v8415_v25  ;;  %v817_v38 = vsub.f32 %v9920_v44, %v8499_v33 }
 0x3aa   : > { %v7945_v26 = vpop.eup %7944  ;;  %5875 = vmatpush.xpose.msrb.mxu0 %v4834_v34  ;;  %v4851_v53 = vmul.f32 %v7943_v0, %v10070_v27  ;;  %7954 = vpow2.f32 %v1610_v62  ;;  %v2448_v22 = vmul.f32 1.442695, %v6666_v9  ;;  %v815_v59 = vsub.f32 %v9925_v18, %v8499_v33 }
 0x3ab   : > { %v7947_v52 = vpop.eup %7946  ;;  %v3634_v60 = vmul.f32 %v7945_v26, %v10072_v29  ;;  %v2482_v48 = vmul.f32 1.442695, %v6683_v16  ;;  %v6480_v11 = vclamps-f32 %v949_v42, 30.0  ;;  %v969_v63 = vmul.f32 10.0, %v557_v39 }
 0x3ac   : > { %v7949_v51 = vpop.eup %7948  ;;  %5952 = vmatpush.xpose.msrb.mxu2 %v4851_v53  ;;  %v10100_v45 = vmul.f32 0.22140276, %v7947_v52  ;;  %v4010_v5 = vmul.f32 1.105171, %v7947_v52  ;;  %v4346_v23 = vadd.f32 1.105171, %v7947_v52  ;;  %7956 = vpow2.f32 %v2448_v22 }
 0x3ad   : > { %v7951_v27 = vpop.eup %7950  ;;  %6735 = vmatmul.msk.f32.gmra.mxu1 %vm4873_vm6, %v3634_v60  ;;  %v3654_v10 = vmul.f32 %v7949_v51, %v10074_v28  ;;  %7958 = vpow2.f32 %v2482_v48  ;;  %v1572_v29 = vmul.f32 1.442695, %v6480_v11  ;;  %v6500_v8 = vclamps-f32 %v969_v63, 30.0 }
 0x3ae   : > { %v7953_v4 = vpop.eup %7952  ;;  %v4852_v3 = vmul.f32 %v7951_v27, %v10078_v32  ;;  %v4178_v35 = vadd.f32 1.0, %v4010_v5  ;;  %v1825_v56 = vmul.f32 10.0, %v817_v38  ;;  %v5508_v61 = vadd.f32 %v5507_v1, %v5469_v17  ;;  %v5071_v1 = vld [vmem:[#allocation2 + $0xb8] sm:$0xff] }
 0x3af   : > { %5851 = vmatmul.f32.gmra.mxu3 %v3654_v10  ;;  %v10106_v36 = vmul.f32 0.22140276, %v7953_v4  ;;  %v2796_v15 = vmul.f32 1.105171, %v7953_v4  ;;  %v3132_v20 = vadd.f32 1.105171, %v7953_v4  ;;  %7960 = vpow2.f32 %v1572_v29 }
 0x3b0   : > { %v7955_v28 = vpop.eup %7954  ;;  %5990 = vmatpush.xpose.msrb.mxu3 %v4852_v3  ;;  %v4514_v34 = vmul.f32 %v4346_v23, %v4178_v35  ;;  %v1612_v62 = vmul.f32 1.442695, %v6500_v8  ;;  %v6684_v9 = vclamps-f32 %v1825_v56, 30.0  ;;  %v5435_v0 = vadd.f32 %v5434_v6, %v9866_v31 }
 0x3b1   : > { %v2964_v16 = vadd.f32 1.0, %v2796_v15  ;;  %v10109_v32 = vmul.f32 0.22140276, %v7955_v28  ;;  %v2816_v42 = vmul.f32 1.105171, %v7955_v28  ;;  %v5546_v39 = vadd.f32 %v5545_v41, %v5508_v61 }
 0x3b2   : > { %v7957_v38 = vpop.eup %7956  ;;  %7962 = vrcp.f32 %v4514_v34  ;;  %v3152_v26 = vadd.f32 1.105171, %v7955_v28  ;;  %v2484_v53 = vmul.f32 1.442695, %v6684_v9  ;;  %v6033_v22 = vadd.f32 %v5435_v0, %v5065_v37 }
 0x3b3   : > { %v7959_v52 = vpop.eup %7958  ;;  %v3300_v60 = vmul.f32 %v3132_v20, %v2964_v16  ;;  %v2984_v48 = vadd.f32 1.0, %v2816_v42  ;;  %v10111_v11 = vmul.f32 0.22140276, %v7957_v38  ;;  %v3991_v63 = vmul.f32 1.105171, %v7957_v38 }
 0x3b4   : > { %v4327_v51 = vadd.f32 1.105171, %v7957_v38  ;;  %v10113_v5 = vmul.f32 0.22140276, %v7959_v52  ;;  %v4008_v31 = vmul.f32 1.105171, %v7959_v52  ;;  %7964 = vpow2.f32 %v1612_v62 }
 0x3b5   : > { %v7961_v23 = vpop.eup %7960  ;;  %7966 = vrcp.f32 %v3300_v60  ;;  %v3320_v27 = vmul.f32 %v3152_v26, %v2984_v48  ;;  %v4159_v10 = vadd.f32 1.0, %v3991_v63  ;;  %v4344_v17 = vadd.f32 1.105171, %v7959_v52  ;;  %6091 = vst.msk [vmem:[#allocation2 + $0x88] sm:$0xff] %vm233_vm13, %v6033_v22 }
 0x3b6   : > { %v4176_v29 = vadd.f32 1.0, %v4008_v31  ;;  %v10116_v8 = vmul.f32 0.22140276, %v7961_v23  ;;  %v2797_v6 = vmul.f32 1.105171, %v7961_v23  ;;  %7968 = vpow2.f32 %v2484_v53 }
 0x3b7   : > { %7970 = vrcp.f32 %v3320_v27  ;;  %v4495_v4 = vmul.f32 %v4327_v51, %v4159_v10  ;;  %v3133_v3 = vadd.f32 1.105171, %v7961_v23  ;;  %v6039_v35 = vadd.f32 %v5546_v39, %v5071_v1 }
 0x3b8   : > { %v7963_v56 = vpop.eup %7962  ;;  %v4512_v61 = vmul.f32 %v4344_v17, %v4176_v29  ;;  %v2965_v37 = vadd.f32 1.0, %v2797_v6  ;;  %v1823_v41 = vmul.f32 10.0, %v815_v59  ;;  %v539_v15 = vsub.f32 %v9880_v54, %v8413_v24 }
 0x3b9   : > { %v4850_v20 = vmul.f32 %v7963_v56, %v10100_v45  ;;  %7972 = vrcp.f32 %v4495_v4  ;;  %6097 = vst.msk [vmem:[#allocation2 + $0xb8] sm:$0xff] %vm233_vm13, %v6039_v35  ;;  %v559_v28 = vsub.f32 %v9898_v47, %v8413_v24  ;;  %v796_v34 = vsub.f32 %v9939_v7, %v8499_v33 }
 0x3ba   : > { %v7965_v62 = vpop.eup %7964  ;;  %7974 = vrcp.f32 %v4512_v61  ;;  %v3301_v9 = vmul.f32 %v3133_v3, %v2965_v37  ;;  %v6682_v0 = vclamps-f32 %v1823_v41, 30.0  ;;  %v951_v16 = vmul.f32 10.0, %v539_v15 }
 0x3bb   : > { %v7967_v59 = vpop.eup %7966  ;;  %5914 = vmatpush.xpose.msrb.mxu1 %v4850_v20  ;;  %v10129_v42 = vmul.f32 0.22140276, %v7965_v62  ;;  %v2817_v45 = vmul.f32 1.105171, %v7965_v62  ;;  %v3153_v39 = vadd.f32 1.105171, %v7965_v62  ;;  %v813_v38 = vsub.f32 %v9916_v40, %v8514_v50 }
 0x3bc   : > { %v7969_v26 = vpop.eup %7968  ;;  %v3636_v53 = vmul.f32 %v7967_v59, %v10106_v36  ;;  %7976 = vrcp.f32 %v3301_v9  ;;  %v6150_v22 = vld [vmem:[#allocation2 + $0x88] sm:$0xff]  ;;  %v2480_v52 = vmul.f32 1.442695, %v6682_v0  ;;  %v6482_v60 = vclamps-f32 %v951_v16, 30.0  ;;  %v5510_v16 = vpop.f32.mrf.mxu2 }
 0x3bd   : > { %v7971_v48 = vpop.eup %7970  ;;  %v2985_v63 = vadd.f32 1.0, %v2817_v45  ;;  %v10134_v1 = vmul.f32 0.22140276, %v7969_v26  ;;  %v4009_v51 = vmul.f32 1.105171, %v7969_v26  ;;  %6206 = vst.msk [vmem:[%s9306_s28 + $0x88] sm:$0xff] %vm233_vm13, %v6150_v22  ;;  %v540_v31 = vsub.f32 %v9623_v57, %v8413_v24  ;;  %v5437_v22 = vpop.f32.mrf.mxu0 }
 0x3be   : > { %5740 = vmatmul.f32.gmra.mxu0 %v3636_v53  ;;  %v3656_v23 = vmul.f32 %v7971_v48, %v10109_v32  ;;  %v4345_v27 = vadd.f32 1.105171, %v7969_v26  ;;  %7978 = vpow2.f32 %v2480_v52  ;;  %v1576_v36 = vmul.f32 1.442695, %v6482_v60 }
 0x3bf   : > { %v7973_v10 = vpop.eup %7972  ;;  %v3321_v17 = vmul.f32 %v3153_v39, %v2985_v63  ;;  %v4177_v29 = vadd.f32 1.0, %v4009_v51  ;;  %v971_v6 = vmul.f32 10.0, %v559_v28  ;;  %v1804_v4 = vmul.f32 10.0, %v796_v34  ;;  %v5472_v39 = vpop.f32.mrf.mxu1 }
 0x3c0   : > { %v7975_v3 = vpop.eup %7974  ;;  %5816 = vmatmul.f32.gmra.mxu2 %v3656_v23  ;;  %v4831_v35 = vmul.f32 %v7973_v10, %v10111_v11  ;;  %v6156_v56 = vld [vmem:[#allocation2 + $0xb8] sm:$0xff]  ;;  %7980 = vpow2.f32 %v1576_v36  ;;  %v1821_v61 = vmul.f32 10.0, %v813_v38  ;;  %v952_v37 = vmul.f32 10.0, %v540_v31  ;;  %v5066_v31 = vld [vmem:[#allocation2 + $0x90] sm:$0xff]  ;;  %v5548_v10 = vpop.f32.mrf.mxu3 }
 0x3c1   : > { %v4848_v41 = vmul.f32 %v7975_v3, %v10113_v5  ;;  %7982 = vrcp.f32 %v3321_v17  ;;  %v4513_v32 = vmul.f32 %v4345_v27, %v4177_v29  ;;  %6212 = vst.msk [vmem:[%s9306_s28 + $0xb8] sm:$0xff] %vm233_vm13, %v6156_v56  ;;  %v6502_v15 = vclamps-f32 %v971_v6, 30.0 }
 0x3c2   : > { %v7977_v20 = vpop.eup %7976  ;;  %5876 = vmatpush.xpose.msrb.mxu0 %v4831_v35  ;;  %v6663_v62 = vclamps-f32 %v1804_v4, 30.0  ;;  %v6680_v28 = vclamps-f32 %v1821_v61, 30.0  ;;  %v6483_v34 = vclamps-f32 %v952_v37, 30.0  ;;  %v560_v9 = vsub.f32 %v9904_v43, %v8413_v24 }
 0x3c3   : > { %5953 = vmatpush.xpose.msrb.mxu2 %v4848_v41  ;;  %v3637_v11 = vmul.f32 %v7977_v20, %v10116_v8  ;;  %7984 = vrcp.f32 %v4513_v32  ;;  %v1616_v0 = vmul.f32 1.442695, %v6502_v15  ;;  %v814_v5 = vsub.f32 %v9920_v44, %v8514_v50 }
 0x3c4   : > { %v7979_v59 = vpop.eup %7978  ;;  %v10152_v45 = vadd.f32 %v9984_v49, %v9980_v14  ;;  %v2442_v38 = vmul.f32 1.442695, %v6663_v62  ;;  %v2476_v26 = vmul.f32 1.442695, %v6680_v28  ;;  %v1578_v53 = vmul.f32 1.442695, %v6483_v34 }
 0x3c5   : > { %6736 = vmatmul.msk.f32.gmra.mxu1 %vm4873_vm6, %v3637_v11  ;;  %v4007_v8 = vmul.f32 1.105171, %v7979_v59  ;;  %v4343_v52 = vadd.f32 1.105171, %v7979_v59  ;;  %7986 = vpow2.f32 %v1616_v0  ;;  %v5511_v60 = vadd.f32 %v5510_v16, %v5472_v39  ;;  %v5072_v11 = vld [vmem:[#allocation2 + $0xc0] sm:$0xff] }
 0x3c6   : > { %v7981_v48 = vpop.eup %7980  ;;  %7988 = vpow2.f32 %v2442_v38  ;;  %v972_v63 = vmul.f32 10.0, %v560_v9  ;;  %v1822_v51 = vmul.f32 10.0, %v814_v5  ;;  %v5438_v14 = vadd.f32 %v5437_v22, %v9871_v21 }
 0x3c7   : > { %v7983_v49 = vpop.eup %7982  ;;  %v3839_v23 = vmul.f32 0.22140276, %v7979_v59  ;;  %v4175_v27 = vadd.f32 1.0, %v4007_v8  ;;  %v2799_v36 = vmul.f32 1.105171, %v7981_v48  ;;  %7990 = vpow2.f32 %v2476_v26 }
 0x3c8   : > { %v3657_v17 = vmul.f32 %v7983_v49, %v10129_v42  ;;  %v3135_v29 = vadd.f32 1.105171, %v7981_v48  ;;  %7992 = vpow2.f32 %v1578_v53  ;;  %v6503_v6 = vclamps-f32 %v972_v63, 30.0 }
 0x3c9   : > { %v7985_v4 = vpop.eup %7984  ;;  %v4511_v3 = vmul.f32 %v4343_v52, %v4175_v27  ;;  %v2967_v35 = vadd.f32 1.0, %v2799_v36  ;;  %v6681_v56 = vclamps-f32 %v1822_v51, 30.0  ;;  %v6034_v61 = vadd.f32 %v5438_v14, %v5066_v31 }
 0x3ca   : > { %5854 = vmatmul.f32.gmra.mxu3 %v3657_v17  ;;  %v4849_v37 = vmul.f32 %v7985_v4, %v10134_v1  ;;  %v2631_v21 = vmul.f32 0.22140276, %v7981_v48  ;;  %v1618_v41 = vmul.f32 1.442695, %v6503_v6  ;;  %v5549_v32 = vadd.f32 %v5548_v10, %v5511_v60 }
 0x3cb   : > { %v7987_v15 = vpop.eup %7986  ;;  %7994 = vrcp.f32 %v4511_v3  ;;  %v3303_v20 = vmul.f32 %v3135_v29, %v2967_v35  ;;  %v2478_v62 = vmul.f32 1.442695, %v6681_v56  ;;  %6092 = vst.msk [vmem:[#allocation2 + $0x90] sm:$0xff] %vm233_vm13, %v6034_v61  ;;  %v812_v42 = vsub.f32 %v9925_v18, %v8514_v50 }
 0x3cc   : > { %v7989_v28 = vpop.eup %7988  ;;  %5991 = vmatpush.xpose.msrb.mxu3 %v4849_v37  ;;  %v2819_v34 = vmul.f32 1.105171, %v7987_v15  ;;  %v3155_v9 = vadd.f32 1.105171, %v7987_v15  ;;  %7996 = vpow2.f32 %v1618_v41  ;;  %v542_v1 = vsub.f32 %v9880_v54, %v8401_v19 }
 0x3cd   : > { %v7991_v0 = vpop.eup %7990  ;;  %7998 = vrcp.f32 %v3303_v20  ;;  %v2651_v5 = vmul.f32 0.22140276, %v7987_v15  ;;  %v3988_v16 = vmul.f32 1.105171, %v7989_v28  ;;  %v4324_v59 = vadd.f32 1.105171, %v7989_v28 }
 0x3ce   : > { %v7993_v39 = vpop.eup %7992  ;;  %v2987_v38 = vadd.f32 1.0, %v2819_v34  ;;  %v3820_v26 = vmul.f32 0.22140276, %v7989_v28  ;;  %v4005_v53 = vmul.f32 1.105171, %v7991_v0  ;;  %8000 = vpow2.f32 %v2478_v62 }
 0x3cf   : > { %v4156_v22 = vadd.f32 1.0, %v3988_v16  ;;  %v3837_v8 = vmul.f32 0.22140276, %v7991_v0  ;;  %v4341_v52 = vadd.f32 1.105171, %v7991_v0  ;;  %v6040_v60 = vadd.f32 %v5549_v32, %v5072_v11 }
 0x3d0   : > { %v3323_v48 = vmul.f32 %v3155_v9, %v2987_v38  ;;  %v4173_v63 = vadd.f32 1.0, %v4005_v53  ;;  %v2800_v51 = vmul.f32 1.105171, %v7993_v39  ;;  %v3136_v31 = vadd.f32 1.105171, %v7993_v39 }
 0x3d1   : > { %v7995_v14 = vpop.eup %7994  ;;  %v4492_v54 = vmul.f32 %v4324_v59, %v4156_v22  ;;  %6098 = vst.msk [vmem:[#allocation2 + $0xc0] sm:$0xff] %vm233_vm13, %v6040_v60  ;;  %v1820_v49 = vmul.f32 10.0, %v812_v42  ;;  %v954_v27 = vmul.f32 10.0, %v542_v1  ;;  %v562_v36 = vsub.f32 %v9898_v47, %v8401_v19 }
 0x3d2   : > { %v7997_v10 = vpop.eup %7996  ;;  %v4847_v17 = vmul.f32 %v7995_v14, %v3839_v23  ;;  %8002 = vrcp.f32 %v3323_v48  ;;  %v4509_v29 = vmul.f32 %v4341_v52, %v4173_v63  ;;  %v2968_v6 = vadd.f32 1.0, %v2800_v51  ;;  %v6151_v4 = vld [vmem:[#allocation2 + $0x90] sm:$0xff] }
 0x3d3   : > { %v7999_v3 = vpop.eup %7998  ;;  %8004 = vrcp.f32 %v4492_v54  ;;  %v2632_v35 = vmul.f32 0.22140276, %v7993_v39  ;;  %v2820_v56 = vmul.f32 1.105171, %v7997_v10  ;;  %v3156_v61 = vadd.f32 1.105171, %v7997_v10 }
 0x3d4   : > { %v8001_v37 = vpop.eup %8000  ;;  %5915 = vmatpush.xpose.msrb.mxu1 %v4847_v17  ;;  %v3639_v41 = vmul.f32 %v7999_v3, %v2631_v21  ;;  %8006 = vrcp.f32 %v4509_v29  ;;  %v3304_v32 = vmul.f32 %v3136_v31, %v2968_v6  ;;  %6207 = vst.msk [vmem:[%s9306_s28 + $0x90] sm:$0xff] %vm233_vm13, %v6151_v4  ;;  %v6679_v47 = vclamps-f32 %v1820_v49, 30.0  ;;  %v5513_v49 = vpop.f32.mrf.mxu2 }
 0x3d5   : > { %v2652_v15 = vmul.f32 0.22140276, %v7997_v10  ;;  %v2988_v20 = vadd.f32 1.0, %v2820_v56  ;;  %v4006_v23 = vmul.f32 1.105171, %v8001_v37  ;;  %v6485_v62 = vclamps-f32 %v954_v27, 30.0  ;;  %v5475_v17 = vpop.f32.mrf.mxu1  ;;  %v5440_v6 = vpop.f32.mrf.mxu0 }
 0x3d6   : > { %5743 = vmatmul.f32.gmra.mxu0 %v3639_v41  ;;  %8008 = vrcp.f32 %v3304_v32  ;;  %v4342_v42 = vadd.f32 1.105171, %v8001_v37  ;;  %v2474_v28 = vmul.f32 1.442695, %v6679_v47  ;;  %v974_v34 = vmul.f32 10.0, %v562_v36 }
 0x3d7   : > { %v3324_v9 = vmul.f32 %v3156_v61, %v2988_v20  ;;  %v4174_v11 = vadd.f32 1.0, %v4006_v23  ;;  %v1582_v1 = vmul.f32 1.442695, %v6485_v62  ;;  %v793_v21 = vsub.f32 %v9939_v7, %v8514_v50  ;;  %v5067_v62 = vld [vmem:[#allocation2 + $0x98] sm:$0xff] }
 0x3d8   : > { %v8003_v0 = vpop.eup %8002  ;;  %v6157_v16 = vld [vmem:[#allocation2 + $0xc0] sm:$0xff]  ;;  %8010 = vpow2.f32 %v2474_v28  ;;  %v6505_v59 = vclamps-f32 %v974_v34, 30.0  ;;  %v810_v39 = vsub.f32 %v9916_v40, %v8512_v13  ;;  %v543_v38 = vsub.f32 %v9623_v57, %v8401_v19 }
 0x3d9   : > { %v8005_v53 = vpop.eup %8004  ;;  %v3659_v22 = vmul.f32 %v8003_v0, %v2651_v5  ;;  %8012 = vrcp.f32 %v3324_v9  ;;  %v4510_v52 = vmul.f32 %v4342_v42, %v4174_v11  ;;  %6213 = vst.msk [vmem:[%s9306_s28 + $0xc0] sm:$0xff] %vm233_vm13, %v6157_v16  ;;  %v1801_v60 = vmul.f32 10.0, %v793_v21 }
 0x3da   : > { %v8007_v48 = vpop.eup %8006  ;;  %v4828_v63 = vmul.f32 %v8005_v53, %v3820_v26  ;;  %8014 = vpow2.f32 %v1582_v1  ;;  %v1622_v51 = vmul.f32 1.442695, %v6505_v59  ;;  %v1818_v31 = vmul.f32 10.0, %v810_v39  ;;  %v5551_v59 = vpop.f32.mrf.mxu3 }
 0x3db   : > { %5819 = vmatmul.f32.gmra.mxu2 %v3659_v22  ;;  %v4845_v14 = vmul.f32 %v8007_v48, %v3837_v8  ;;  %8016 = vrcp.f32 %v4510_v52  ;;  %v6660_v54 = vclamps-f32 %v1801_v60, 30.0  ;;  %v955_v40 = vmul.f32 10.0, %v543_v38 }
 0x3dc   : > { %v8009_v27 = vpop.eup %8008  ;;  %5877 = vmatpush.xpose.msrb.mxu0 %v4828_v63  ;;  %8018 = vpow2.f32 %v1622_v51  ;;  %v6677_v57 = vclamps-f32 %v1818_v31, 30.0  ;;  %v563_v5 = vsub.f32 %v9904_v43, %v8401_v19  ;;  %v811_v36 = vsub.f32 %v9920_v44, %v8512_v13  ;;  %v5073_v51 = vld [vmem:[#allocation2 + $0xc8] sm:$0xff] }
 0x3dd   : > { %5954 = vmatpush.xpose.msrb.mxu2 %v4845_v14  ;;  %v3640_v26 = vmul.f32 %v8009_v27, %v2632_v35  ;;  %v3838_v10 = vmul.f32 0.22140276, %v8001_v37  ;;  %v2436_v29 = vmul.f32 1.442695, %v6660_v54  ;;  %v6486_v8 = vclamps-f32 %v955_v40, 30.0 }
 0x3de   : > { %v8011_v4 = vpop.eup %8010  ;;  %v2470_v3 = vmul.f32 1.442695, %v6677_v57  ;;  %v975_v56 = vmul.f32 10.0, %v563_v5  ;;  %v1819_v61 = vmul.f32 10.0, %v811_v36  ;;  %v5514_v41 = vadd.f32 %v5513_v49, %v5475_v17 }
 0x3df   : > { %v8013_v32 = vpop.eup %8012  ;;  %6737 = vmatmul.msk.f32.gmra.mxu1 %vm4873_vm6, %v3640_v26  ;;  %v4004_v43 = vmul.f32 1.105171, %v8011_v4  ;;  %v4340_v47 = vadd.f32 1.105171, %v8011_v4  ;;  %8020 = vpow2.f32 %v2436_v29  ;;  %v5441_v44 = vadd.f32 %v5440_v6, %v9936_v55 }
 0x3e0   : > { %v8015_v35 = vpop.eup %8014  ;;  %v3660_v37 = vmul.f32 %v8013_v32, %v2652_v15  ;;  %8022 = vpow2.f32 %v2470_v3  ;;  %v1584_v20 = vmul.f32 1.442695, %v6486_v8  ;;  %v6506_v23 = vclamps-f32 %v975_v56, 30.0 }
 0x3e1   : > { %v8017_v42 = vpop.eup %8016  ;;  %v3836_v28 = vmul.f32 0.22140276, %v8011_v4  ;;  %v4172_v34 = vadd.f32 1.0, %v4004_v43  ;;  %v2802_v9 = vmul.f32 1.105171, %v8015_v35  ;;  %v6678_v11 = vclamps-f32 %v1819_v61, 30.0 }
 0x3e2   : > { %v8019_v1 = vpop.eup %8018  ;;  %5857 = vmatmul.f32.gmra.mxu3 %v3660_v37  ;;  %v4846_v21 = vmul.f32 %v8017_v42, %v3838_v10  ;;  %v3138_v0 = vadd.f32 1.105171, %v8015_v35  ;;  %8024 = vpow2.f32 %v1584_v20  ;;  %v1624_v16 = vmul.f32 1.442695, %v6506_v23 }
 0x3e3   : > { %v4508_v39 = vmul.f32 %v4340_v47, %v4172_v34  ;;  %v2634_v55 = vmul.f32 0.22140276, %v8015_v35  ;;  %v2970_v38 = vadd.f32 1.0, %v2802_v9  ;;  %v2822_v15 = vmul.f32 1.105171, %v8019_v1 }
 0x3e4   : > { %5992 = vmatpush.xpose.msrb.mxu3 %v4846_v21  ;;  %v3158_v53 = vadd.f32 1.105171, %v8019_v1  ;;  %8026 = vpow2.f32 %v1624_v16  ;;  %v2472_v22 = vmul.f32 1.442695, %v6678_v11  ;;  %v6035_v52 = vadd.f32 %v5441_v44, %v5067_v62 }
 0x3e5   : > { %v8021_v60 = vpop.eup %8020  ;;  %8028 = vrcp.f32 %v4508_v39  ;;  %v3306_v48 = vmul.f32 %v3138_v0, %v2970_v38  ;;  %v2990_v63 = vadd.f32 1.0, %v2822_v15  ;;  %v5552_v31 = vadd.f32 %v5551_v59, %v5514_v41 }
 0x3e6   : > { %v8023_v14 = vpop.eup %8022  ;;  %v2654_v54 = vmul.f32 0.22140276, %v8019_v1  ;;  %v3985_v40 = vmul.f32 1.105171, %v8021_v60  ;;  %v4321_v49 = vadd.f32 1.105171, %v8021_v60  ;;  %8030 = vpow2.f32 %v2472_v22 }
 0x3e7   : > { %8032 = vrcp.f32 %v3306_v48  ;;  %v3326_v27 = vmul.f32 %v3158_v53, %v2990_v63  ;;  %v10184_v57 = vmul.f32 0.22140276, %v8021_v60  ;;  %v4002_v5 = vmul.f32 1.105171, %v8023_v14  ;;  %6093 = vst.msk [vmem:[#allocation2 + $0x98] sm:$0xff] %vm233_vm13, %v6035_v52  ;;  %v8174_v52 = vld [vmem:[%s8373_s25] sm:$0xff] }
 0x3e8   : > { %v8025_v36 = vpop.eup %8024  ;;  %v4153_v26 = vadd.f32 1.0, %v3985_v40  ;;  %v4338_v10 = vadd.f32 1.105171, %v8023_v14  ;;  %v6041_v17 = vadd.f32 %v5552_v31, %v5073_v51  ;;  %v790_v29 = vsub.f32 %v9939_v7, %v8512_v13 }
 0x3e9   : > { %8034 = vrcp.f32 %v3326_v27  ;;  %v3834_v8 = vmul.f32 0.22140276, %v8023_v14  ;;  %v4170_v6 = vadd.f32 1.0, %v4002_v5  ;;  %v2803_v4 = vmul.f32 1.105171, %v8025_v36 }
 0x3ea   : > { %v8027_v3 = vpop.eup %8026  ;;  %v4489_v56 = vmul.f32 %v4321_v49, %v4153_v26  ;;  %v3139_v61 = vadd.f32 1.105171, %v8025_v36  ;;  %6099 = vst.msk [vmem:[#allocation2 + $0xc8] sm:$0xff] %vm233_vm13, %v6041_v17  ;;  %v1798_v41 = vmul.f32 10.0, %v790_v29  ;;  %v809_v32 = vsub.f32 %v9925_v18, %v8512_v13  ;;  %v5478_v17 = vpop.f32.mrf.mxu1 }
 0x3eb   : > { %v8029_v43 = vpop.eup %8028  ;;  %v4506_v47 = vmul.f32 %v4338_v10, %v4170_v6  ;;  %v2635_v44 = vmul.f32 0.22140276, %v8025_v36  ;;  %v2971_v35 = vadd.f32 1.0, %v2803_v4  ;;  %v2823_v37 = vmul.f32 1.105171, %v8027_v3 }
 0x3ec   : > { %v8031_v20 = vpop.eup %8030  ;;  %v4844_v7 = vmul.f32 %v8029_v43, %v3836_v28  ;;  %8036 = vrcp.f32 %v4489_v56  ;;  %v3159_v23 = vadd.f32 1.105171, %v8027_v3  ;;  %v6657_v62 = vclamps-f32 %v1798_v41, 30.0 }
 0x3ed   : > { %v8033_v42 = vpop.eup %8032  ;;  %8038 = vrcp.f32 %v4506_v47  ;;  %v3307_v34 = vmul.f32 %v3139_v61, %v2971_v35  ;;  %v2655_v9 = vmul.f32 0.22140276, %v8027_v3  ;;  %v2991_v11 = vadd.f32 1.0, %v2823_v37 }
 0x3ee   : > { %5916 = vmatpush.xpose.msrb.mxu1 %v4844_v7  ;;  %v3642_v1 = vmul.f32 %v8033_v42, %v2634_v55  ;;  %v4003_v18 = vmul.f32 1.105171, %v8031_v20  ;;  %v4339_v21 = vadd.f32 1.105171, %v8031_v20  ;;  %v6152_v0 = vld [vmem:[#allocation2 + $0x98] sm:$0xff]  ;;  %v1817_v16 = vmul.f32 10.0, %v809_v32 }
 0x3ef   : > { %v8035_v59 = vpop.eup %8034  ;;  %8040 = vrcp.f32 %v3307_v34  ;;  %v3327_v39 = vmul.f32 %v3159_v23, %v2991_v11  ;;  %6208 = vst.msk [vmem:[%s9306_s28 + $0x98] sm:$0xff] %vm233_vm13, %v6152_v0  ;;  %v2430_v28 = vmul.f32 1.442695, %v6657_v62  ;;  %v10195_v38 = vperm.slane %v9893_v12, 2  ;;  %v5516_v34 = vpop.f32.mrf.mxu2  ;;  %v5068_v0 = vld [vmem:[#allocation2 + $0xa0] sm:$0x3] }
 0x3f0   : > { %5746 = vmatmul.f32.gmra.mxu0 %v3642_v1  ;;  %v3662_v15 = vmul.f32 %v8035_v59, %v2654_v54  ;;  %v4171_v53 = vadd.f32 1.0, %v4003_v18  ;;  %v6676_v22 = vclamps-f32 %v1817_v16, 30.0  ;;  %v366_v55 = vsel %vm365_vm1, %v8534_v2, %v8174_v52  ;;  %v5443_v11 = vpop.f32.mrf.mxu0  ;;  %v5554_v59 = vpop.f32.mrf.mxu3 }
 0x3f1   : > { %8042 = vrcp.f32 %v3327_v39  ;;  %v6158_v60 = vld [vmem:[#allocation2 + $0xc8] sm:$0xff]  ;;  %v546_v48 = vsub.f32 %v10195_v38, %v8512_v13  ;;  %v368_v63 = vsel %vm367_vm2, %v8539_v58, %v366_v55  ;;  %v549_v12 = vsub.f32 %v10195_v38, %v8514_v50  ;;  %v5074_v55 = vld [vmem:[#allocation2 + $0xd0] sm:$0xff] }
 0x3f2   : > { %v8037_v51 = vpop.eup %8036  ;;  %5822 = vmatmul.f32.gmra.mxu2 %v3662_v15  ;;  %v4507_v31 = vmul.f32 %v4339_v21, %v4171_v53  ;;  %6214 = vst.msk [vmem:[%s9306_s28 + $0xc8] sm:$0xff] %vm233_vm13, %v6158_v60  ;;  %8044 = vpow2.f32 %v2430_v28  ;;  %v2468_v14 = vmul.f32 1.442695, %v6676_v22  ;;  %v369_v54 = vrot.slane %v368_v63, 7 }
 0x3f3   : > { %v8039_v2 = vpop.eup %8038  ;;  %v4825_v40 = vmul.f32 %v8037_v51, %v10184_v57  ;;  %v3835_v49 = vmul.f32 0.22140276, %v8031_v20  ;;  %v958_v27 = vmul.f32 10.0, %v546_v48  ;;  %v961_v5 = vmul.f32 10.0, %v549_v12 }
 0x3f4   : > { %v4842_v36 = vmul.f32 %v8039_v2, %v3834_v8  ;;  %8046 = vrcp.f32 %v4507_v31  ;;  %v10209_v58 = vperm.slane %v369_v54, 1  ;;  %v10211_v26 = vperm.slane %v369_v54, 2 }
 0x3f5   : > { %v8041_v10 = vpop.eup %8040  ;;  %5878 = vmatpush.xpose.msrb.mxu0 %v4825_v40  ;;  %8048 = vpow2.f32 %v2468_v14  ;;  %v6489_v29 = vclamps-f32 %v958_v27, 30.0  ;;  %v10213_v6 = vperm.slane %v369_v54, 0  ;;  %v6492_v4 = vclamps-f32 %v961_v5, 30.0  ;;  %v5481_v27 = vpop.f32.mrf.mxu1 }
 0x3f6   : > { %5955 = vmatpush.xpose.msrb.mxu2 %v4842_v36  ;;  %v3643_v3 = vmul.f32 %v8041_v10, %v2635_v44  ;;  %v566_v57 = vsub.f32 %v10209_v58, %v8512_v13  ;;  %v567_v8 = vsub.f32 %v10211_v26, %v8512_v13  ;;  %v569_v56 = vsub.f32 %v10209_v58, %v8514_v50 }
 0x3f7   : > { %v8043_v61 = vpop.eup %8042  ;;  %v1590_v41 = vmul.f32 1.442695, %v6489_v29  ;;  %v565_v32 = vsub.f32 %v10213_v6, %v8512_v13  ;;  %v1596_v43 = vmul.f32 1.442695, %v6492_v4  ;;  %v570_v47 = vsub.f32 %v10211_v26, %v8514_v50 }
 0x3f8   : > { %v8045_v35 = vpop.eup %8044  ;;  %6738 = vmatmul.msk.f32.gmra.mxu1 %vm4873_vm6, %v3643_v3  ;;  %v3663_v44 = vmul.f32 %v8043_v61, %v2655_v9  ;;  %v978_v37 = vmul.f32 10.0, %v566_v57  ;;  %v979_v20 = vmul.f32 10.0, %v567_v8  ;;  %v981_v7 = vmul.f32 10.0, %v569_v56  ;;  %v5519_v56 = vpop.f32.mrf.mxu2 }
 0x3f9   : > { %v10227_v23 = vmul.f32 0.22140276, %v8045_v35  ;;  %v3982_v62 = vmul.f32 1.105171, %v8045_v35  ;;  %v4318_v42 = vadd.f32 1.105171, %v8045_v35  ;;  %8050 = vpow2.f32 %v1590_v41 }
 0x3fa   : > { %v8047_v13 = vpop.eup %8046  ;;  %5860 = vmatmul.f32.gmra.mxu3 %v3663_v44  ;;  %v6509_v1 = vclamps-f32 %v978_v37, 30.0  ;;  %v6510_v18 = vclamps-f32 %v979_v20, 30.0  ;;  %v5517_v21 = vadd.f32 %v5516_v34, %v5478_v17  ;;  %v5444_v16 = vadd.f32 %v5443_v11, %v10152_v45  ;;  %v5075_v20 = vld [vmem:[#allocation2 + $0xd8] sm:$0x3] }
 0x3fb   : > { %v8049_v9 = vpop.eup %8048  ;;  %v4843_v39 = vmul.f32 %v8047_v13, %v3835_v49  ;;  %v4150_v28 = vadd.f32 1.0, %v3982_v62  ;;  %v977_v15 = vmul.f32 10.0, %v565_v32  ;;  %8052 = vpow2.f32 %v1596_v43  ;;  %v5557_v43 = vpop.f32.mrf.mxu3 }
 0x3fc   : > { %v4001_v53 = vmul.f32 1.105171, %v8049_v9  ;;  %v4337_v22 = vadd.f32 1.105171, %v8049_v9  ;;  %v6036_v52 = vadd.f32 %v5444_v16, %v5068_v0  ;;  %v552_v60 = vsub.f32 %v10195_v38, %v8499_v33 }
 0x3fd   : > { %5993 = vmatpush.xpose.msrb.mxu3 %v4843_v39  ;;  %v4486_v48 = vmul.f32 %v4318_v42, %v4150_v28  ;;  %v3833_v63 = vmul.f32 0.22140276, %v8049_v9  ;;  %v1630_v12 = vmul.f32 1.442695, %v6509_v1  ;;  %v5555_v51 = vadd.f32 %v5554_v59, %v5517_v21 }
 0x3fe   : > { %v4169_v31 = vadd.f32 1.0, %v4001_v53  ;;  %6094 = vst.msk [vmem:[#allocation2 + $0xa0] sm:$0x3] %vm240_vm0, %v6036_v52  ;;  %v6508_v45 = vclamps-f32 %v977_v15, 30.0  ;;  %v6512_v14 = vclamps-f32 %v981_v7, 30.0  ;;  %v982_v54 = vmul.f32 10.0, %v570_v47 }
 0x3ff   : > { %v8051_v2 = vpop.eup %8050  ;;  %8054 = vrcp.f32 %v4486_v48  ;;  %v1632_v40 = vmul.f32 1.442695, %v6510_v18  ;;  %v6042_v49 = vadd.f32 %v5555_v51, %v5074_v55  ;;  %v568_v5 = vsub.f32 %v10213_v6, %v8514_v50  ;;  %v5577_v55 = vpop.f32.mrf.mxu0 }
 0x400   : > { %v4505_v36 = vmul.f32 %v4337_v22, %v4169_v31  ;;  %v2806_v10 = vmul.f32 1.105171, %v8051_v2  ;;  %v3142_v17 = vadd.f32 1.105171, %v8051_v2  ;;  %v964_v29 = vmul.f32 10.0, %v552_v60  ;;  %v5615_v48 = vpop.f32.mrf.mxu1 }
 0x401   : > { %v8053_v4 = vpop.eup %8052  ;;  %8056 = vpow2.f32 %v1630_v12  ;;  %6100 = vst.msk [vmem:[#allocation2 + $0xd0] sm:$0xff] %vm233_vm13, %v6042_v49  ;;  %v1628_v3 = vmul.f32 1.442695, %v6508_v45  ;;  %v1636_v57 = vmul.f32 1.442695, %v6512_v14  ;;  %v6513_v8 = vclamps-f32 %v982_v54, 30.0 }
 0x402   : > { %8058 = vrcp.f32 %v4505_v36  ;;  %v2638_v61 = vmul.f32 0.22140276, %v8051_v2  ;;  %v2974_v41 = vadd.f32 1.0, %v2806_v10  ;;  %v2809_v32 = vmul.f32 1.105171, %v8053_v4 }
 0x403   : > { %8060 = vpow2.f32 %v1632_v40  ;;  %v3145_v47 = vadd.f32 1.105171, %v8053_v4  ;;  %v1638_v50 = vmul.f32 1.442695, %v6513_v8  ;;  %v5520_v35 = vadd.f32 %v5519_v56, %v5481_v27 }
 0x404   : > { %v3310_v44 = vmul.f32 %v3142_v17, %v2974_v41  ;;  %8062 = vpow2.f32 %v1628_v3  ;;  %v2977_v37 = vadd.f32 1.0, %v2809_v32  ;;  %v980_v7 = vmul.f32 10.0, %v568_v5 }
 0x405   : > { %v8055_v62 = vpop.eup %8054  ;;  %v6153_v42 = vld [vmem:[#allocation2 + $0xa0] sm:$0x3]  ;;  %v10236_v34 = vmul.f32 0.22140276, %v8053_v4  ;;  %8064 = vpow2.f32 %v1636_v57  ;;  %v5558_v11 = vadd.f32 %v5557_v43, %v5520_v35  ;;  %v6495_v13 = vclamps-f32 %v964_v29, 30.0 }
 0x406   : > { %v4822_v1 = vmul.f32 %v8055_v62, %v10227_v23  ;;  %8066 = vrcp.f32 %v3310_v44  ;;  %6209 = vst.msk [vmem:[%s9306_s28 + $0xa0] sm:$0x3] %vm240_vm0, %v6153_v42  ;;  %v3313_v18 = vmul.f32 %v3145_v47, %v2977_v37  ;;  %v6511_v21 = vclamps-f32 %v980_v7, 30.0 }
 0x407   : > { %v8057_v0 = vpop.eup %8056  ;;  %8068 = vpow2.f32 %v1638_v50  ;;  %v6043_v16 = vadd.f32 %v5558_v11, %v5075_v20  ;;  %v1602_v59 = vmul.f32 1.442695, %v6495_v13  ;;  %v572_v9 = vsub.f32 %v10209_v58, %v8499_v33 }
 0x408   : > { %v8059_v39 = vpop.eup %8058  ;;  %5879 = vmatpush.xpose.msrb.mxu0 %v4822_v1  ;;  %v10243_v28 = vmul.f32 0.22140276, %v8057_v0  ;;  %v2826_v15 = vmul.f32 1.105171, %v8057_v0  ;;  %v3162_v53 = vadd.f32 1.105171, %v8057_v0  ;;  %8070 = vrcp.f32 %v3313_v18 }
 0x409   : > { %v8061_v23 = vpop.eup %8060  ;;  %v4841_v22 = vmul.f32 %v8059_v39, %v3833_v63  ;;  %v6159_v52 = vld [vmem:[#allocation2 + $0xd0] sm:$0xff]  ;;  %6101 = vst.msk [vmem:[#allocation2 + $0xd8] sm:$0x3] %vm240_vm0, %v6043_v16  ;;  %v1634_v60 = vmul.f32 1.442695, %v6511_v21  ;;  %8072 = vpow2.f32 %v1602_v59  ;;  %v984_v12 = vmul.f32 10.0, %v572_v9 }
 0x40a   : > { %v8063_v51 = vpop.eup %8062  ;;  %v2994_v31 = vadd.f32 1.0, %v2826_v15  ;;  %v10246_v45 = vmul.f32 0.22140276, %v8061_v23  ;;  %v2827_v14 = vmul.f32 1.105171, %v8061_v23  ;;  %6215 = vst.msk [vmem:[%s9306_s28 + $0xd0] sm:$0xff] %vm233_vm13, %v6159_v52  ;;  %v5616_v54 = vadd.f32 %v5615_v48, %v5577_v55 }
 0x40b   : > { %v8065_v2 = vpop.eup %8064  ;;  %5917 = vmatpush.xpose.msrb.mxu1 %v4841_v22  ;;  %v3163_v40 = vadd.f32 1.105171, %v8061_v23  ;;  %v2825_v63 = vmul.f32 1.105171, %v8063_v51  ;;  %8074 = vpow2.f32 %v1634_v60  ;;  %v573_v49 = vsub.f32 %v10211_v26, %v8499_v33 }
 0x40c   : > { %v8067_v27 = vpop.eup %8066  ;;  %v3330_v5 = vmul.f32 %v3162_v53, %v2994_v31  ;;  %v2995_v36 = vadd.f32 1.0, %v2827_v14  ;;  %v2657_v10 = vmul.f32 0.22140276, %v8063_v51  ;;  %v3161_v17 = vadd.f32 1.105171, %v8063_v51  ;;  %v5618_v51 = vpop.f32.mrf.mxu1 }
 0x40d   : > { %v8069_v29 = vpop.eup %8068  ;;  %v3646_v4 = vmul.f32 %v8067_v27, %v2638_v61  ;;  %v2993_v3 = vadd.f32 1.0, %v2825_v63  ;;  %v2829_v57 = vmul.f32 1.105171, %v8065_v2  ;;  %v3165_v8 = vadd.f32 1.105171, %v8065_v2  ;;  %v5653_v61 = vpop.f32.mrf.mxu2 }
 0x40e   : > { %v8071_v56 = vpop.eup %8070  ;;  %8076 = vrcp.f32 %v3330_v5  ;;  %v3331_v41 = vmul.f32 %v3163_v40, %v2995_v36  ;;  %v10252_v32 = vmul.f32 0.22140276, %v8065_v2  ;;  %v2830_v43 = vmul.f32 1.105171, %v8069_v29 }
 0x40f   : > { %v8073_v47 = vpop.eup %8072  ;;  %6739 = vmatmul.msk.f32.vlgmr.msrb.gmra.mxu0 %vm4873_vm6, %v3646_v4  ;;  %v3329_v50 = vmul.f32 %v3161_v17, %v2993_v3  ;;  %v2997_v35 = vadd.f32 1.0, %v2829_v57  ;;  %v10256_v44 = vmul.f32 0.22140276, %v8069_v29  ;;  %v3166_v37 = vadd.f32 1.105171, %v8069_v29 }
 0x410   : > { %8078 = vrcp.f32 %v3331_v41  ;;  %v3649_v20 = vmul.f32 %v8071_v56, %v10236_v34  ;;  %v2998_v7 = vadd.f32 1.0, %v2830_v43  ;;  %v6160_v62 = vld [vmem:[#allocation2 + $0xd8] sm:$0x3]  ;;  %v6515_v42 = vclamps-f32 %v984_v12, 30.0  ;;  %v5076_v34 = vld [vmem:[#allocation2 + $0xe0] sm:$0xff]  ;;  %v5580_v12 = vpop.f32.mrf.mxu0  ;;  %v5077_v43 = vld [vmem:[#allocation2 + $0xe8] sm:$0xff] }
 0x411   : > { %v8075_v11 = vpop.eup %8074  ;;  %8080 = vrcp.f32 %v3329_v50  ;;  %v3333_v13 = vmul.f32 %v3165_v8, %v2997_v35  ;;  %6216 = vst.msk [vmem:[%s9306_s28 + $0xd8] sm:$0x3] %vm240_vm0, %v6160_v62  ;;  %v2812_v1 = vmul.f32 1.105171, %v8073_v47  ;;  %v3148_v18 = vadd.f32 1.105171, %v8073_v47  ;;  %v10280_v8 = vpop.f32.mrf.mxu3 }
 0x412   : > { %v3334_v21 = vmul.f32 %v3166_v37, %v2998_v7  ;;  %v2828_v0 = vmul.f32 1.105171, %v8075_v11  ;;  %v3164_v16 = vadd.f32 1.105171, %v8075_v11  ;;  %v10261_v59 = vmul.f32 0.22140276, %v8073_v47 }
 0x413   : > { %8082 = vrcp.f32 %v3333_v13  ;;  %v2980_v9 = vadd.f32 1.0, %v2812_v1  ;;  %v1642_v39 = vmul.f32 1.442695, %v6515_v42  ;;  %v985_v15 = vmul.f32 10.0, %v573_v49 }
 0x414   : > { %v8077_v53 = vpop.eup %8076  ;;  %8084 = vrcp.f32 %v3334_v21  ;;  %v2996_v23 = vadd.f32 1.0, %v2828_v0  ;;  %v5654_v22 = vadd.f32 %v5653_v61, %v5616_v54  ;;  %v571_v52 = vsub.f32 %v10213_v6, %v8499_v33 }
 0x415   : > { %v3666_v55 = vmul.f32 %v8077_v53, %v10243_v28  ;;  %v3316_v60 = vmul.f32 %v3148_v18, %v2980_v9  ;;  %8086 = vpow2.f32 %v1642_v39  ;;  %v6516_v48 = vclamps-f32 %v985_v15, 30.0  ;;  %v5656_v4 = vpop.f32.mrf.mxu2 }
 0x416   : > { %v8079_v31 = vpop.eup %8078  ;;  %v3332_v14 = vmul.f32 %v3164_v16, %v2996_v23  ;;  %v6044_v2 = vadd.f32 %v5654_v22, %v5076_v34  ;;  %v983_v40 = vmul.f32 10.0, %v571_v52  ;;  %v5619_v63 = vadd.f32 %v5618_v51, %v5580_v12 }
 0x417   : > { %v8081_v49 = vpop.eup %8080  ;;  %5956 = vmatmul.f32.vlgmr.msrb.gmra.mxu2 %v3666_v55  ;;  %v3667_v27 = vmul.f32 %v8079_v31, %v10246_v45  ;;  %6740 = vmatmul.msk.f32.gmra.mxu0 %vm4873_vm6, %v3649_v20  ;;  %8088 = vrcp.f32 %v3316_v60  ;;  %v1644_v33 = vmul.f32 1.442695, %v6516_v48  ;;  %v555_v28 = vsub.f32 %v10195_v38, %v8425_v30  ;;  %v5621_v31 = vpop.f32.mrf.mxu1 }
 0x418   : > { %v3665_v54 = vmul.f32 %v8081_v49, %v2657_v10  ;;  %8090 = vrcp.f32 %v3332_v14  ;;  %6102 = vst.msk [vmem:[#allocation2 + $0xe0] sm:$0xff] %vm233_vm13, %v6044_v2  ;;  %v6514_v5 = vclamps-f32 %v983_v40, 30.0  ;;  %v575_v36 = vsub.f32 %v10209_v58, %v8425_v30  ;;  %v5583_v51 = vpop.f32.mrf.mxu0 }
 0x419   : > { %v8083_v17 = vpop.eup %8082  ;;  %6746 = vmatmul.msk.f32.vlgmr.msrb.gmra.mxu3 %vm4873_vm6, %v3667_v27  ;;  %8092 = vpow2.f32 %v1644_v33  ;;  %v967_v45 = vmul.f32 10.0, %v555_v28  ;;  %v576_v29 = vsub.f32 %v10211_v26, %v8425_v30  ;;  %v574_v10 = vsub.f32 %v10213_v6, %v8425_v30  ;;  %v10300_v33 = vpop.f32.mrf.mxu3 }
 0x41a   : > { %v8085_v3 = vpop.eup %8084  ;;  %5918 = vmatmul.f32.vlgmr.msrb.gmra.mxu1 %v3665_v54  ;;  %v2660_v57 = vmul.f32 0.22140276, %v8075_v11  ;;  %v1640_v56 = vmul.f32 1.442695, %v6514_v5  ;;  %v987_v41 = vmul.f32 10.0, %v575_v36  ;;  %v5657_v47 = vadd.f32 %v5656_v4, %v5619_v63 }
 0x41b   : > { %v8087_v50 = vpop.eup %8086  ;;  %v3669_v35 = vmul.f32 %v8083_v17, %v10252_v32  ;;  %v6498_v37 = vclamps-f32 %v967_v45, 30.0  ;;  %v988_v61 = vmul.f32 10.0, %v576_v29  ;;  %v986_v20 = vmul.f32 10.0, %v574_v10 }
 0x41c   : > { %v3670_v7 = vmul.f32 %v8085_v3, %v10256_v44  ;;  %v2832_v62 = vmul.f32 1.105171, %v8087_v50  ;;  %v3168_v42 = vadd.f32 1.105171, %v8087_v50  ;;  %8094 = vpow2.f32 %v1640_v56 }
 0x41d   : > { %v8089_v30 = vpop.eup %8088  ;;  %v1608_v13 = vmul.f32 1.442695, %v6498_v37  ;;  %v6518_v11 = vclamps-f32 %v987_v41, 30.0  ;;  %v6519_v1 = vclamps-f32 %v988_v61, 30.0  ;;  %v6045_v18 = vadd.f32 %v5657_v47, %v5077_v43 }
 0x41e   : > { %v8091_v21 = vpop.eup %8090  ;;  %v3652_v0 = vmul.f32 %v8089_v30, %v10261_v59  ;;  %v3000_v16 = vadd.f32 1.0, %v2832_v62  ;;  %v6517_v9 = vclamps-f32 %v986_v20, 30.0  ;;  %v2664_v53 = vmul.f32 0.22140276, %v8087_v50 }
 0x41f   : > { %v8093_v32 = vpop.eup %8092  ;;  %5959 = vmatmul.f32.gmra.mxu2 %v3669_v35  ;;  %v3668_v39 = vmul.f32 %v8091_v21, %v2660_v57  ;;  %v6161_v15 = vld [vmem:[#allocation2 + $0xe0] sm:$0xff]  ;;  %8096 = vpow2.f32 %v1608_v13  ;;  %v1648_v44 = vmul.f32 1.442695, %v6518_v11  ;;  %v1650_v34 = vmul.f32 1.442695, %v6519_v1  ;;  %6103 = vst.msk [vmem:[#allocation2 + $0xe8] sm:$0xff] %vm233_vm13, %v6045_v18  ;;  %v5659_v13 = vpop.f32.mrf.mxu2 }
 0x420   : > { %6741 = vmatmul.msk.f32.gmra.mxu0 %vm4873_vm6, %v3652_v0  ;;  %v3336_v23 = vmul.f32 %v3168_v42, %v3000_v16  ;;  %v2833_v22 = vmul.f32 1.105171, %v8093_v32  ;;  %v3169_v52 = vadd.f32 1.105171, %v8093_v32  ;;  %6217 = vst.msk [vmem:[%s9306_s28 + $0xe0] sm:$0xff] %vm233_vm13, %v6161_v15  ;;  %v558_v55 = vsub.f32 %v10195_v38, %v8415_v25 }
 0x421   : > { %6747 = vmatmul.msk.f32.gmra.mxu3 %vm4873_vm6, %v3670_v7  ;;  %8098 = vpow2.f32 %v1648_v44  ;;  %v1646_v59 = vmul.f32 1.442695, %v6517_v9  ;;  %v578_v60 = vsub.f32 %v10209_v58, %v8415_v25  ;;  %v579_v14 = vsub.f32 %v10211_v26, %v8415_v25 }
 0x422   : > { %v8095_v48 = vpop.eup %8094  ;;  %5921 = vmatmul.f32.gmra.mxu1 %v3668_v39  ;;  %8100 = vrcp.f32 %v3336_v23  ;;  %v3001_v12 = vadd.f32 1.0, %v2833_v22  ;;  %v577_v2 = vsub.f32 %v10213_v6, %v8415_v25  ;;  %v5622_v49 = vadd.f32 %v5621_v31, %v5583_v51  ;;  %v5624_v31 = vpop.f32.mrf.mxu1 }
 0x423   : > { %v2831_v40 = vmul.f32 1.105171, %v8095_v48  ;;  %v3167_v63 = vadd.f32 1.105171, %v8095_v48  ;;  %8102 = vpow2.f32 %v1650_v34  ;;  %v970_v28 = vmul.f32 10.0, %v558_v55  ;;  %v5586_v55 = vpop.f32.mrf.mxu0 }
 0x424   : > { %v3337_v27 = vmul.f32 %v3169_v52, %v3001_v12  ;;  %8104 = vpow2.f32 %v1646_v59  ;;  %v990_v54 = vmul.f32 10.0, %v578_v60  ;;  %v2665_v36 = vmul.f32 0.22140276, %v8093_v32  ;;  %v5078_v59 = vld [vmem:[#allocation2 + $0xf0] sm:$0xff]  ;;  %v10310_v12 = vpop.f32.mrf.mxu3 }
 0x425   : > { %v8097_v5 = vpop.eup %8096  ;;  %v2663_v17 = vmul.f32 0.22140276, %v8095_v48  ;;  %v2999_v45 = vadd.f32 1.0, %v2831_v40  ;;  %v991_v29 = vmul.f32 10.0, %v579_v14  ;;  %v989_v25 = vmul.f32 10.0, %v577_v2 }
 0x426   : > { %8106 = vrcp.f32 %v3337_v27  ;;  %v2815_v4 = vmul.f32 1.105171, %v8097_v5  ;;  %v3151_v10 = vadd.f32 1.105171, %v8097_v5  ;;  %v10302_v56 = vmul.f32 0.22140276, %v8097_v5 }
 0x427   : > { %v8099_v3 = vpop.eup %8098  ;;  %v3335_v57 = vmul.f32 %v3167_v63, %v2999_v45  ;;  %v6162_v41 = vld [vmem:[#allocation2 + $0xe8] sm:$0xff]  ;;  %v6501_v43 = vclamps-f32 %v970_v28, 30.0  ;;  %v561_v47 = vsub.f32 %v10195_v38, %v8413_v24  ;;  %v6521_v61 = vclamps-f32 %v990_v54, 30.0 }
 0x428   : > { %v8101_v50 = vpop.eup %8100  ;;  %v2983_v35 = vadd.f32 1.0, %v2815_v4  ;;  %v2835_v37 = vmul.f32 1.105171, %v8099_v3  ;;  %6218 = vst.msk [vmem:[%s9306_s28 + $0xe8] sm:$0xff] %vm233_vm13, %v6162_v41  ;;  %v6522_v20 = vclamps-f32 %v991_v29, 30.0  ;;  %v581_v32 = vsub.f32 %v10209_v58, %v8413_v24  ;;  %v5662_v41 = vpop.f32.mrf.mxu2 }
 0x429   : > { %v8103_v7 = vpop.eup %8102  ;;  %v3672_v62 = vmul.f32 %v8101_v50, %v2664_v53  ;;  %8108 = vrcp.f32 %v3335_v57  ;;  %v3171_v42 = vadd.f32 1.105171, %v8099_v3  ;;  %v1614_v30 = vmul.f32 1.442695, %v6501_v43 }
 0x42a   : > { %v8105_v11 = vpop.eup %8104  ;;  %v3319_v1 = vmul.f32 %v3151_v10, %v2983_v35  ;;  %v2667_v18 = vmul.f32 0.22140276, %v8099_v3  ;;  %v3003_v21 = vadd.f32 1.0, %v2835_v37  ;;  %v2836_v0 = vmul.f32 1.105171, %v8103_v7  ;;  %v5079_v37 = vld [vmem:[#allocation2 + $0xf8] sm:$0xff] }
 0x42b   : > { %5962 = vmatmul.f32.gmra.mxu2 %v3672_v62  ;;  %v3172_v16 = vadd.f32 1.105171, %v8103_v7  ;;  %v2834_v9 = vmul.f32 1.105171, %v8105_v11  ;;  %8110 = vpow2.f32 %v1614_v30  ;;  %v3170_v34 = vadd.f32 1.105171, %v8105_v11 }
 0x42c   : > { %v8107_v39 = vpop.eup %8106  ;;  %8112 = vrcp.f32 %v3319_v1  ;;  %v3339_v15 = vmul.f32 %v3171_v42, %v3003_v21  ;;  %v3004_v44 = vadd.f32 1.0, %v2836_v0  ;;  %v1654_v22 = vmul.f32 1.442695, %v6521_v61 }
 0x42d   : > { %v3673_v53 = vmul.f32 %v8107_v39, %v2665_v36  ;;  %v3002_v23 = vadd.f32 1.0, %v2834_v9  ;;  %v1656_v52 = vmul.f32 1.442695, %v6522_v20  ;;  %v5660_v48 = vadd.f32 %v5659_v13, %v5622_v49 }
 0x42e   : > { %8114 = vrcp.f32 %v3339_v15  ;;  %v3340_v60 = vmul.f32 %v3172_v16, %v3004_v44  ;;  %v6520_v51 = vclamps-f32 %v989_v25, 30.0  ;;  %v5625_v40 = vadd.f32 %v5624_v31, %v5586_v55 }
 0x42f   : > { %v8109_v14 = vpop.eup %8108  ;;  %6748 = vmatmul.msk.f32.gmra.mxu3 %vm4873_vm6, %v3673_v53  ;;  %v3338_v2 = vmul.f32 %v3170_v34, %v3002_v23  ;;  %8116 = vpow2.f32 %v1654_v22  ;;  %v973_v63 = vmul.f32 10.0, %v561_v47  ;;  %v6046_v28 = vadd.f32 %v5660_v48, %v5078_v59  ;;  %v10324_v34 = vpop.f32.mrf.mxu3 }
 0x430   : > { %v3671_v27 = vmul.f32 %v8109_v14, %v2663_v17  ;;  %8118 = vrcp.f32 %v3340_v60  ;;  %v1652_v54 = vmul.f32 1.442695, %v6520_v51  ;;  %v993_v49 = vmul.f32 10.0, %v581_v32  ;;  %v5589_v32 = vpop.f32.mrf.mxu0 }
 0x431   : > { %v8111_v5 = vpop.eup %8110  ;;  %8120 = vrcp.f32 %v3338_v2  ;;  %v6504_v36 = vclamps-f32 %v973_v63, 30.0  ;;  %v582_v45 = vsub.f32 %v10211_v26, %v8413_v24  ;;  %v2668_v4 = vmul.f32 0.22140276, %v8103_v7  ;;  %6104 = vst.msk [vmem:[#allocation2 + $0xf0] sm:$0xff] %vm233_vm13, %v6046_v28 }
 0x432   : > { %v8113_v29 = vpop.eup %8112  ;;  %5924 = vmatmul.f32.gmra.mxu1 %v3671_v27  ;;  %v2818_v10 = vmul.f32 1.105171, %v8111_v5  ;;  %v3154_v25 = vadd.f32 1.105171, %v8111_v5  ;;  %8122 = vpow2.f32 %v1656_v52  ;;  %v6524_v57 = vclamps-f32 %v993_v49, 30.0 }
 0x433   : > { %v3655_v3 = vmul.f32 %v8113_v29, %v10302_v56  ;;  %8124 = vpow2.f32 %v1652_v54  ;;  %v1620_v17 = vmul.f32 1.442695, %v6504_v36  ;;  %v2666_v47 = vmul.f32 0.22140276, %v8105_v11 }
 0x434   : > { %v8115_v43 = vpop.eup %8114  ;;  %v2986_v50 = vadd.f32 1.0, %v2818_v10  ;;  %v994_v35 = vmul.f32 10.0, %v582_v45  ;;  %v5663_v61 = vadd.f32 %v5662_v41, %v5625_v40  ;;  %v1660_v62 = vmul.f32 1.442695, %v6524_v57 }
 0x435   : > { %v8117_v20 = vpop.eup %8116  ;;  %6742 = vmatmul.msk.f32.gmra.mxu0 %vm4873_vm6, %v3655_v3  ;;  %v3675_v7 = vmul.f32 %v8115_v43, %v2667_v18  ;;  %8126 = vpow2.f32 %v1620_v17  ;;  %v580_v56 = vsub.f32 %v10213_v6, %v8413_v24  ;;  %v2650_v30 = vmul.f32 0.22140276, %v8111_v5  ;;  %v5627_v24 = vpop.f32.mrf.mxu1 }
 0x436   : > { %v8119_v42 = vpop.eup %8118  ;;  %v3322_v13 = vmul.f32 %v3154_v25, %v2986_v50  ;;  %v2838_v1 = vmul.f32 1.105171, %v8117_v20  ;;  %v3174_v21 = vadd.f32 1.105171, %v8117_v20  ;;  %8128 = vpow2.f32 %v1660_v62 }
 0x437   : > { %v8121_v11 = vpop.eup %8120  ;;  %5965 = vmatmul.f32.gmra.mxu2 %v3675_v7  ;;  %v3676_v0 = vmul.f32 %v8119_v42, %v2668_v4  ;;  %v6525_v16 = vclamps-f32 %v994_v35, 30.0  ;;  %v6047_v9 = vadd.f32 %v5663_v61, %v5079_v37  ;;  %v10322_v18 = vmul.f32 0.22140276, %v8117_v20  ;;  %v5665_v37 = vpop.f32.mrf.mxu2  ;;  %v5080_v42 = vld [vmem:[#allocation2 + $0x100] sm:$0xff] }
 0x438   : > { %v8123_v39 = vpop.eup %8122  ;;  %v3674_v15 = vmul.f32 %v8121_v11, %v2666_v47  ;;  %8130 = vrcp.f32 %v3322_v13  ;;  %v3006_v44 = vadd.f32 1.0, %v2838_v1  ;;  %v992_v52 = vmul.f32 10.0, %v580_v56  ;;  %v6163_v48 = vld [vmem:[#allocation2 + $0xf0] sm:$0xff]  ;;  %v5592_v61 = vpop.f32.mrf.mxu0 }
 0x439   : > { %v8125_v53 = vpop.eup %8124  ;;  %6749 = vmatmul.msk.f32.gmra.mxu3 %vm4873_vm6, %v3676_v0  ;;  %v2839_v23 = vmul.f32 1.105171, %v8123_v39  ;;  %v3175_v22 = vadd.f32 1.105171, %v8123_v39  ;;  %v564_v59 = vsub.f32 %v10195_v38, %v8401_v19  ;;  %v10330_v60 = vmul.f32 0.22140276, %v8123_v39  ;;  %v10345_v13 = vpop.f32.mrf.mxu3 }
 0x43a   : > { %5927 = vmatmul.f32.gmra.mxu1 %v3674_v15  ;;  %v3342_v55 = vmul.f32 %v3174_v21, %v3006_v44  ;;  %v2837_v51 = vmul.f32 1.105171, %v8125_v53  ;;  %6105 = vst.msk [vmem:[#allocation2 + $0xf8] sm:$0xff] %vm233_vm13, %v6047_v9  ;;  %v5628_v31 = vadd.f32 %v5627_v24, %v5589_v32  ;;  %v3173_v40 = vadd.f32 1.105171, %v8125_v53 }
 0x43b   : > { %v8127_v14 = vpop.eup %8126  ;;  %v3007_v2 = vadd.f32 1.0, %v2839_v23  ;;  %6219 = vst.msk [vmem:[%s9306_s28 + $0xf0] sm:$0xff] %vm233_vm13, %v6163_v48  ;;  %v1662_v63 = vmul.f32 1.442695, %v6525_v16  ;;  %v584_v27 = vsub.f32 %v10209_v58, %v8401_v19  ;;  %v585_v54 = vsub.f32 %v10211_v26, %v8401_v19 }
 0x43c   : > { %8132 = vrcp.f32 %v3342_v55  ;;  %v3005_v38 = vadd.f32 1.0, %v2837_v51  ;;  %v2821_v28 = vmul.f32 1.105171, %v8127_v14  ;;  %v8129_v5 = vpop.eup %8128  ;;  %v3157_v49 = vadd.f32 1.105171, %v8127_v14 }
 0x43d   : > { %v3343_v36 = vmul.f32 %v3175_v22, %v3007_v2  ;;  %8134 = vpow2.f32 %v1662_v63  ;;  %v6523_v45 = vclamps-f32 %v992_v52, 30.0  ;;  %v2669_v4 = vmul.f32 0.22140276, %v8125_v53  ;;  %v5630_v1 = vpop.f32.mrf.mxu1 }
 0x43e   : > { %v8131_v29 = vpop.eup %8130  ;;  %v3341_v10 = vmul.f32 %v3173_v40, %v3005_v38  ;;  %v2989_v25 = vadd.f32 1.0, %v2821_v28  ;;  %v2841_v3 = vmul.f32 1.105171, %v8129_v5  ;;  %v3177_v57 = vadd.f32 1.105171, %v8129_v5 }
 0x43f   : > { %v3658_v17 = vmul.f32 %v8131_v29, %v2650_v30  ;;  %8136 = vrcp.f32 %v3343_v36  ;;  %v1658_v58 = vmul.f32 1.442695, %v6523_v45  ;;  %v976_v47 = vmul.f32 10.0, %v564_v59  ;;  %v5668_v38 = vpop.f32.mrf.mxu2 }
 0x440   : > { %8138 = vrcp.f32 %v3341_v10  ;;  %v3325_v41 = vmul.f32 %v3157_v49, %v2989_v25  ;;  %v3009_v43 = vadd.f32 1.0, %v2841_v3  ;;  %v996_v50 = vmul.f32 10.0, %v584_v27  ;;  %v5081_v27 = vld [vmem:[#allocation2 + $0x108] sm:$0xff]  ;;  %v5595_v28 = vpop.f32.mrf.mxu0 }
 0x441   : > { %6743 = vmatmul.msk.f32.gmra.mxu0 %vm4873_vm6, %v3658_v17  ;;  %v6164_v26 = vld [vmem:[#allocation2 + $0xf8] sm:$0xff]  ;;  %8140 = vpow2.f32 %v1658_v58  ;;  %v997_v35 = vmul.f32 10.0, %v585_v54  ;;  %v583_v20 = vsub.f32 %v10213_v6, %v8401_v19  ;;  %v6507_v56 = vclamps-f32 %v976_v47, 30.0  ;;  %v10352_v49 = vpop.f32.mrf.mxu3 }
 0x442   : > { %v8133_v7 = vpop.eup %8132  ;;  %8142 = vrcp.f32 %v3325_v41  ;;  %v3345_v62 = vmul.f32 %v3177_v57, %v3009_v43  ;;  %6220 = vst.msk [vmem:[%s9306_s28 + $0xf8] sm:$0xff] %vm233_vm13, %v6164_v26  ;;  %v5666_v30 = vadd.f32 %v5665_v37, %v5628_v31  ;;  %v6527_v0 = vclamps-f32 %v996_v50, 30.0 }
 0x443   : > { %v8135_v21 = vpop.eup %8134  ;;  %v3678_v11 = vmul.f32 %v8133_v7, %v10322_v18  ;;  %v6528_v16 = vclamps-f32 %v997_v35, 30.0  ;;  %v995_v9 = vmul.f32 10.0, %v583_v20  ;;  %v2653_v39 = vmul.f32 0.22140276, %v8127_v14 }
 0x444   : > { %8144 = vrcp.f32 %v3345_v62  ;;  %v2842_v32 = vmul.f32 1.105171, %v8135_v21  ;;  %v3178_v19 = vadd.f32 1.105171, %v8135_v21  ;;  %v1626_v15 = vmul.f32 1.442695, %v6507_v56 }
 0x445   : > { %v8137_v6 = vpop.eup %8136  ;;  %5968 = vmatmul.f32.gmra.mxu2 %v3678_v11  ;;  %v1666_v44 = vmul.f32 1.442695, %v6527_v0  ;;  %v6048_v24 = vadd.f32 %v5666_v30, %v5080_v42  ;;  %v6526_v52 = vclamps-f32 %v995_v9, 30.0  ;;  %v5631_v59 = vadd.f32 %v5630_v1, %v5592_v61  ;;  %v5633_v45 = vpop.f32.mrf.mxu1 }
 0x446   : > { %v8139_v53 = vpop.eup %8138  ;;  %v3679_v23 = vmul.f32 %v8137_v6, %v10330_v60  ;;  %v3010_v22 = vadd.f32 1.0, %v2842_v32  ;;  %v2673_v48 = vmul.f32 0.22140276, %v8129_v5  ;;  %8146 = vpow2.f32 %v1626_v15 }
 0x447   : > { %v8141_v55 = vpop.eup %8140  ;;  %v3677_v18 = vmul.f32 %v8139_v53, %v2669_v4  ;;  %v1668_v51 = vmul.f32 1.442695, %v6528_v16  ;;  %6106 = vst.msk [vmem:[#allocation2 + $0x100] sm:$0xff] %vm233_vm13, %v6048_v24  ;;  %8148 = vpow2.f32 %v1666_v44  ;;  %v1664_v60 = vmul.f32 1.442695, %v6526_v52  ;;  %v5671_v7 = vpop.f32.mrf.mxu2 }
 0x448   : > { %v8143_v31 = vpop.eup %8142  ;;  %6750 = vmatmul.msk.f32.gmra.mxu3 %vm4873_vm6, %v3679_v23  ;;  %v3346_v14 = vmul.f32 %v3178_v19, %v3010_v22  ;;  %v2840_v2 = vmul.f32 1.105171, %v8141_v55  ;;  %v3176_v40 = vadd.f32 1.105171, %v8141_v55  ;;  %v5669_v36 = vadd.f32 %v5668_v38, %v5631_v59  ;;  %v5729_v62 = vpop.f32.mrf.mxu0  ;;  %v5083_v59 = vld [vmem:[#allocation2 + $0x118] sm:$0xff] }
 0x449   : > { %5930 = vmatmul.f32.gmra.mxu1 %v3677_v18  ;;  %v3661_v63 = vmul.f32 %v8143_v31, %v2653_v39  ;;  %v2674_v3 = vmul.f32 0.22140276, %v8135_v21  ;;  %v5634_v43 = vadd.f32 %v5633_v45, %v5595_v28  ;;  %v2672_v61 = vmul.f32 0.22140276, %v8141_v55  ;;  %v5082_v21 = vld [vmem:[#allocation2 + $0x110] sm:$0x3]  ;;  %v10359_v11 = vpop.f32.mrf.mxu3 }
 0x44a   : > { %v8145_v54 = vpop.eup %8144  ;;  %8150 = vrcp.f32 %v3346_v14  ;;  %v3008_v5 = vadd.f32 1.0, %v2840_v2  ;;  %v6049_v10 = vadd.f32 %v5669_v36, %v5081_v27  ;;  %v5730_v23 = vadd.f32 %v5729_v62, %v10280_v8  ;;  %v5084_v28 = vld [vmem:[#allocation2 + $0x120] sm:$0xff]  ;;  %v5086_v62 = vld [vmem:[#allocation2 + $0x130] sm:$0xff] }
 0x44b   : > { %6744 = vmatmul.msk.f32.gmra.mxu0 %vm4873_vm6, %v3661_v63  ;;  %v3681_v29 = vmul.f32 %v8145_v54, %v2673_v48  ;;  %8152 = vpow2.f32 %v1668_v51  ;;  %v5672_v32 = vadd.f32 %v5671_v7, %v5634_v43 }
 0x44c   : > { %v3344_v4 = vmul.f32 %v3176_v40, %v3008_v5  ;;  %8154 = vpow2.f32 %v1664_v60  ;;  %v8147_v25 = vpop.eup %8146  ;;  %6107 = vst.msk [vmem:[#allocation2 + $0x108] sm:$0xff] %vm233_vm13, %v6049_v10 }
 0x44d   : > { %5971 = vmatmul.f32.gmra.mxu2 %v3681_v29  ;;  %v2824_v17 = vmul.f32 1.105171, %v8147_v25  ;;  %v3160_v57 = vadd.f32 1.105171, %v8147_v25  ;;  %v8149_v58 = vpop.eup %8148  ;;  %v5767_v0 = vpop.f32.mrf.mxu1  ;;  %v6050_v53 = vadd.f32 %v5672_v32, %v5082_v21  ;;  %v2656_v55 = vmul.f32 0.22140276, %v8147_v25 }
 0x44e   : > { %8156 = vrcp.f32 %v3344_v4  ;;  %v6165_v41 = vld [vmem:[#allocation2 + $0x100] sm:$0xff]  ;;  %v2844_v50 = vmul.f32 1.105171, %v8149_v58  ;;  %v3180_v20 = vadd.f32 1.105171, %v8149_v58  ;;  %v5768_v48 = vadd.f32 %v5767_v0, %v5730_v23 }
 0x44f   : > { %v2992_v26 = vadd.f32 1.0, %v2824_v17  ;;  %6221 = vst.msk [vmem:[%s9306_s28 + $0x100] sm:$0xff] %vm233_vm13, %v6165_v41  ;;  %v2676_v51 = vmul.f32 0.22140276, %v8149_v58  ;;  %v10367_v14 = vpop.f32.mrf.mxu2 }
 0x450   : > { %v8151_v47 = vpop.eup %8150  ;;  %v3012_v30 = vadd.f32 1.0, %v2844_v50  ;;  %6108 = vst.msk [vmem:[#allocation2 + $0x110] sm:$0x3] %vm240_vm0, %v6050_v53  ;;  %v6051_v31 = vadd.f32 %v5768_v48, %v5083_v59  ;;  %v5732_v2 = vpop.f32.mrf.mxu0  ;;  %v5088_v53 = vld [vmem:[#allocation2 + $0x140] sm:$0xff] }
 0x451   : > { %v8153_v35 = vpop.eup %8152  ;;  %v3682_v37 = vmul.f32 %v8151_v47, %v2674_v3  ;;  %v3328_v42 = vmul.f32 %v3160_v57, %v2992_v26  ;;  %v5733_v40 = vadd.f32 %v5732_v2, %v10300_v33  ;;  %v10370_v63 = vpop.f32.mrf.mxu3  ;;  %v5085_v26 = vld [vmem:[#allocation2 + $0x128] sm:$0xff] }
 0x452   : > { %v8155_v56 = vpop.eup %8154  ;;  %v2845_v1 = vmul.f32 1.105171, %v8153_v35  ;;  %v3181_v16 = vadd.f32 1.105171, %v8153_v35  ;;  %v3348_v6 = vmul.f32 %v3180_v20, %v3012_v30  ;;  %v2677_v38 = vmul.f32 0.22140276, %v8153_v35 }
 0x453   : > { %6751 = vmatmul.msk.f32.gmra.mxu3 %vm4873_vm6, %v3682_v37  ;;  %v2843_v9 = vmul.f32 1.105171, %v8155_v56  ;;  %8158 = vrcp.f32 %v3328_v42  ;;  %v3179_v15 = vadd.f32 1.105171, %v8155_v56  ;;  %v6166_v52 = vld [vmem:[#allocation2 + $0x108] sm:$0xff]  ;;  %6109 = vst.msk [vmem:[#allocation2 + $0x118] sm:$0xff] %vm233_vm13, %v6051_v31 }
 0x454   : > { %v8157_v19 = vpop.eup %8156  ;;  %v3013_v39 = vadd.f32 1.0, %v2845_v1  ;;  %8160 = vrcp.f32 %v3348_v6  ;;  %6222 = vst.msk [vmem:[%s9306_s28 + $0x108] sm:$0xff] %vm233_vm13, %v6166_v52  ;;  %v2675_v5 = vmul.f32 0.22140276, %v8155_v56 }
 0x455   : > { %v3680_v44 = vmul.f32 %v8157_v19, %v2672_v61  ;;  %v3011_v24 = vadd.f32 1.0, %v2843_v9  ;;  %v5770_v60 = vpop.f32.mrf.mxu1  ;;  %v5087_v9 = vld [vmem:[#allocation2 + $0x138] sm:$0xff] }
 0x456   : > { %v3349_v22 = vmul.f32 %v3181_v16, %v3013_v39  ;;  %v5771_v36 = vadd.f32 %v5770_v60, %v5733_v40 }
 0x457   : > { %5933 = vmatmul.f32.gmra.mxu1 %v3680_v44  ;;  %v3347_v18 = vmul.f32 %v3179_v15, %v3011_v24  ;;  %v6167_v25 = vld [vmem:[#allocation2 + $0x110] sm:$0x3]  ;;  %v10380_v17 = vpop.f32.mrf.mxu2 }
 0x458   : > { %8162 = vrcp.f32 %v3349_v22  ;;  %v6052_v4 = vadd.f32 %v5771_v36, %v5084_v28  ;;  %6223 = vst.msk [vmem:[%s9306_s28 + $0x110] sm:$0x3] %vm240_vm0, %v6167_v25  ;;  %v5735_v57 = vpop.f32.mrf.mxu0 }
 0x459   : > { %8164 = vrcp.f32 %v3347_v18  ;;  %v8159_v8 = vpop.eup %8158  ;;  %v5736_v41 = vadd.f32 %v5735_v57, %v10310_v12  ;;  %v10383_v43 = vpop.f32.mrf.mxu3 }
 0x45a   : > { %v3664_v27 = vmul.f32 %v8159_v8, %v2656_v55  ;;  %v8161_v54 = vpop.eup %8160  ;;  %6110 = vst.msk [vmem:[#allocation2 + $0x120] sm:$0xff] %vm233_vm13, %v6052_v4  ;;  %v6168_v58 = vld [vmem:[#allocation2 + $0x118] sm:$0xff] }
 0x45b   : > { %v3684_v45 = vmul.f32 %v8161_v54, %v2676_v51  ;;  %6224 = vst.msk [vmem:[%s9306_s28 + $0x118] sm:$0xff] %vm233_vm13, %v6168_v58  ;;  %v5089_v51 = vld [vmem:[#allocation2 + $0x148] sm:$0x3] }
 0x45c   : > { %6745 = vmatmul.msk.f32.gmra.mxu0 %vm4873_vm6, %v3664_v27  ;;  %v5844_v27 = vadd.f32 %v10370_v63, %v10367_v14  ;;  %v5097_v58 = vld [vmem:[#allocation2 + $0x188] sm:$0xff] }
 0x45d   : > { %5974 = vmatmul.f32.gmra.mxu2 %v3684_v45  ;;  %v5773_v47 = vpop.f32.mrf.mxu1  ;;  %v5847_v45 = vadd.f32 %v10383_v43, %v10380_v17  ;;  %v5092_v17 = vld [vmem:[#allocation2 + $0x160] sm:$0xff] }
 0x45e   : > { %v8163_v29 = vpop.eup %8162  ;;  %v5774_v50 = vadd.f32 %v5773_v47, %v5736_v41 }
 0x45f   : > { %v8165_v33 = vpop.eup %8164  ;;  %v3685_v10 = vmul.f32 %v8163_v29, %v2677_v38  ;;  %v10390_v37 = vpop.f32.mrf.mxu2  ;;  %v5091_v29 = vld [vmem:[#allocation2 + $0x158] sm:$0xff] }
 0x460   : > { %v3683_v3 = vmul.f32 %v8165_v33, %v2675_v5  ;;  %v6053_v46 = vadd.f32 %v5774_v50, %v5085_v26  ;;  %v5738_v61 = vpop.f32.mrf.mxu0 }
 0x461   : > { %6752 = vmatmul.msk.f32.gmra.mxu3 %vm4873_vm6, %v3685_v10  ;;  %v6169_v35 = vld [vmem:[#allocation2 + $0x120] sm:$0xff]  ;;  %v5739_v20 = vadd.f32 %v5738_v61, %v10324_v34  ;;  %v10393_v12 = vpop.f32.mrf.mxu3 }
 0x462   : > { %5936 = vmatmul.f32.gmra.mxu1 %v3683_v3  ;;  %6111 = vst.msk [vmem:[#allocation2 + $0x128] sm:$0xff] %vm233_vm13, %v6053_v46  ;;  %v5850_v57 = vadd.f32 %v10393_v12, %v10390_v37  ;;  %v5098_v37 = vld [vmem:[#allocation2 + $0x190] sm:$0xff] }
 0x463   : > { %6225 = vst.msk [vmem:[%s9306_s28 + $0x120] sm:$0xff] %vm233_vm13, %v6169_v35 }
 0x465   : > { %v5776_v7 = vpop.f32.mrf.mxu1 }
 0x466   : > { %v5777_v56 = vadd.f32 %v5776_v7, %v5739_v20 }
 0x467   : > { %v10398_v1 = vpop.f32.mrf.mxu2 }
 0x468   : > { %v6054_v42 = vadd.f32 %v5777_v56, %v5086_v62  ;;  %v5741_v21 = vpop.f32.mrf.mxu0 }
 0x469   : > { %v6170_v30 = vld [vmem:[#allocation2 + $0x128] sm:$0xff]  ;;  %v5742_v0 = vadd.f32 %v5741_v21, %v10345_v13  ;;  %v10401_v16 = vpop.f32.mrf.mxu3 }
 0x46a   : > { %6226 = vst.msk [vmem:[%s9306_s28 + $0x128] sm:$0xff] %vm233_vm13, %v6170_v30 }
 0x46b   : > { %6112 = vst.msk [vmem:[#allocation2 + $0x130] sm:$0xff] %vm233_vm13, %v6054_v42 }
 0x46d   : > { %v5779_v34 = vpop.f32.mrf.mxu1 }
 0x46e   : > { %v5780_v32 = vadd.f32 %v5779_v34, %v5742_v0 }
 0x46f   : > { %v10406_v39 = vpop.f32.mrf.mxu2 }
 0x470   : > { %v6055_v19 = vadd.f32 %v5780_v32, %v5087_v9  ;;  %v5744_v15 = vpop.f32.mrf.mxu0  ;;  %v5853_v9 = vadd.f32 %v10401_v16, %v10398_v1  ;;  %v5100_v16 = vld [vmem:[#allocation2 + $0x1a0] sm:$0xff] }
 0x471   : > { %v5745_v44 = vadd.f32 %v5744_v15, %v10352_v49  ;;  %v10409_v24 = vpop.f32.mrf.mxu3  ;;  %v5099_v15 = vld [vmem:[#allocation2 + $0x198] sm:$0xff] }
 0x472   : > { %v6171_v6 = vld [vmem:[#allocation2 + $0x130] sm:$0xff]  ;;  %6113 = vst.msk [vmem:[#allocation2 + $0x138] sm:$0xff] %vm233_vm13, %v6055_v19  ;;  %v5093_v19 = vld [vmem:[#allocation2 + $0x168] sm:$0xff] }
 0x473   : > { %6227 = vst.msk [vmem:[%s9306_s28 + $0x130] sm:$0xff] %vm233_vm13, %v6171_v6 }
 0x475   : > { %v5782_v13 = vpop.f32.mrf.mxu1 }
 0x476   : > { %v5783_v23 = vadd.f32 %v5782_v13, %v5745_v44 }
 0x477   : > { %v10414_v59 = vpop.f32.mrf.mxu2 }
 0x478   : > { %v6056_v22 = vadd.f32 %v5783_v23, %v5088_v53  ;;  %v5747_v55 = vpop.f32.mrf.mxu0 }
 0x479   : > { %v6172_v52 = vld [vmem:[#allocation2 + $0x138] sm:$0xff]  ;;  %v5748_v18 = vadd.f32 %v5747_v55, %v10359_v11  ;;  %v10417_v48 = vpop.f32.mrf.mxu3  ;;  %v5090_v11 = vld [vmem:[#allocation2 + $0x150] sm:$0xff] }
 0x47a   : > { %6228 = vst.msk [vmem:[%s9306_s28 + $0x138] sm:$0xff] %vm233_vm13, %v6172_v52 }
 0x47b   : > { %6114 = vst.msk [vmem:[#allocation2 + $0x140] sm:$0xff] %vm233_vm13, %v6056_v22 }
 0x47d   : > { %v5785_v49 = vpop.f32.mrf.mxu1 }
 0x47e   : > { %v5786_v31 = vadd.f32 %v5785_v49, %v5748_v18  ;;  %v5856_v49 = vadd.f32 %v10409_v24, %v10406_v39  ;;  %v5859_v39 = vadd.f32 %v10417_v48, %v10414_v59 }
 0x47f   : > { %v5823_v40 = vpop.f32.mrf.mxu2 }
 0x480   : > { %v6057_v2 = vadd.f32 %v5786_v31, %v5089_v51 }
 0x481   : > { %v5861_v60 = vpop.f32.mrf.mxu3 }
 0x482   : > { %v6173_v8 = vld [vmem:[#allocation2 + $0x140] sm:$0xff]  ;;  %6115 = vst.msk [vmem:[#allocation2 + $0x148] sm:$0x3] %vm240_vm0, %v6057_v2  ;;  %v10424_v38 = vadd.f32 %v5861_v60, %v5823_v40  ;;  %v5094_v2 = vld [vmem:[#allocation2 + $0x170] sm:$0xff] }
 0x483   : > { %6229 = vst.msk [vmem:[%s9306_s28 + $0x140] sm:$0xff] %vm233_vm13, %v6173_v8 }
 0x489   : > { %v6174_v5 = vld [vmem:[#allocation2 + $0x148] sm:$0x3] }
 0x48a   : > { %6230 = vst.msk [vmem:[%s9306_s28 + $0x148] sm:$0x3] %vm240_vm0, %v6174_v5  ;;  %v5095_v5 = vld [vmem:[#allocation2 + $0x178] sm:$0xff] }
 0x48c   : > { %v5881_v28 = vpop.f32.mrf.mxu0 }
 0x48d   : > { %v5882_v54 = vadd.f32 %v5881_v28, %v5844_v27 }
 0x48f   : > { %v6058_v36 = vadd.f32 %v5882_v54, %v5090_v11 }
 0x491   : > { %6116 = vst.msk [vmem:[#allocation2 + $0x150] sm:$0xff] %vm233_vm13, %v6058_v36 }
 0x494   : > { %v5884_v4 = vpop.f32.mrf.mxu0 }
 0x495   : > { %v5885_v33 = vadd.f32 %v5884_v4, %v5847_v45 }
 0x497   : > { %v5919_v10 = vpop.f32.mrf.mxu1  ;;  %v6059_v14 = vadd.f32 %v5885_v33, %v5091_v29 }
 0x498   : > { %v6175_v63 = vld [vmem:[#allocation2 + $0x150] sm:$0xff] }
 0x499   : > { %6231 = vst.msk [vmem:[%s9306_s28 + $0x150] sm:$0xff] %vm233_vm13, %v6175_v63 }
 0x49a   : > { %v5957_v25 = vpop.f32.mrf.mxu2  ;;  %6117 = vst.msk [vmem:[#allocation2 + $0x158] sm:$0xff] %vm233_vm13, %v6059_v14 }
 0x49b   : > { %v5958_v3 = vadd.f32 %v5957_v25, %v5919_v10  ;;  %v5101_v10 = vld [vmem:[#allocation2 + $0x1a8] sm:$0xff] }
 0x49c   : > { %v5995_v41 = vpop.f32.mrf.mxu3 }
 0x49d   : > { %v5996_v47 = vadd.f32 %v5995_v41, %v5958_v3  ;;  %v5887_v43 = vpop.f32.mrf.mxu0 }
 0x49e   : > { %v5888_v26 = vadd.f32 %v5887_v43, %v5850_v57 }
 0x49f   : > { %v6065_v50 = vadd.f32 %v5996_v47, %v5097_v58  ;;  %v5922_v46 = vpop.f32.mrf.mxu1  ;;  %v5102_v58 = vld [vmem:[#allocation2 + $0x1b0] sm:$0xff] }
 0x4a0   : > { %v6060_v35 = vadd.f32 %v5888_v26, %v5092_v17  ;;  %v5096_v26 = vld [vmem:[#allocation2 + $0x180] sm:$0x3] }
 0x4a1   : > { %v6176_v61 = vld [vmem:[#allocation2 + $0x158] sm:$0xff]  ;;  %6123 = vst.msk [vmem:[#allocation2 + $0x188] sm:$0xff] %vm233_vm13, %v6065_v50 }
 0x4a2   : > { %6232 = vst.msk [vmem:[%s9306_s28 + $0x158] sm:$0xff] %vm233_vm13, %v6176_v61  ;;  %v5960_v20 = vpop.f32.mrf.mxu2 }
 0x4a3   : > { %v5961_v7 = vadd.f32 %v5960_v20, %v5922_v46  ;;  %6118 = vst.msk [vmem:[#allocation2 + $0x160] sm:$0xff] %vm233_vm13, %v6060_v35 }
 0x4a4   : > { %v5998_v12 = vpop.f32.mrf.mxu3 }
 0x4a5   : > { %v5999_v62 = vadd.f32 %v5998_v12, %v5961_v7  ;;  %v5103_v12 = vld [vmem:[#allocation2 + $0x1b8] sm:$0x3] }
 0x4a7   : > { %v6066_v56 = vadd.f32 %v5999_v62, %v5098_v37 }
 0x4a8   : > { %v6182_v42 = vld [vmem:[#allocation2 + $0x188] sm:$0xff] }
 0x4a9   : > { %6238 = vst.msk [vmem:[%s9306_s28 + $0x188] sm:$0xff] %vm233_vm13, %v6182_v42 }
 0x4aa   : > { %v6177_v30 = vld [vmem:[#allocation2 + $0x160] sm:$0xff]  ;;  %6124 = vst.msk [vmem:[#allocation2 + $0x190] sm:$0xff] %vm233_vm13, %v6066_v56 }
 0x4ab   : > { %6233 = vst.msk [vmem:[%s9306_s28 + $0x160] sm:$0xff] %vm233_vm13, %v6177_v30 }
 0x4ae   : > { %v5963_v21 = vpop.f32.mrf.mxu2 }
 0x4af   : > { %v5925_v0 = vpop.f32.mrf.mxu1 }
 0x4b0   : > { %v5964_v34 = vadd.f32 %v5963_v21, %v5925_v0 }
 0x4b1   : > { %v6183_v32 = vld [vmem:[#allocation2 + $0x190] sm:$0xff] }
 0x4b2   : > { %6239 = vst.msk [vmem:[%s9306_s28 + $0x190] sm:$0xff] %vm233_vm13, %v6183_v32  ;;  %v5890_v6 = vpop.f32.mrf.mxu0  ;;  %v6001_v44 = vpop.f32.mrf.mxu3 }
 0x4b3   : > { %v5891_v13 = vadd.f32 %v5890_v6, %v5853_v9  ;;  %v6002_v53 = vadd.f32 %v6001_v44, %v5964_v34 }
 0x4b5   : > { %v6061_v23 = vadd.f32 %v5891_v13, %v5093_v19  ;;  %v6067_v22 = vadd.f32 %v6002_v53, %v5099_v15 }
 0x4b7   : > { %6119 = vst.msk [vmem:[#allocation2 + $0x168] sm:$0xff] %vm233_vm13, %v6061_v23  ;;  %v5928_v52 = vpop.f32.mrf.mxu1 }
 0x4b8   : > { %6125 = vst.msk [vmem:[#allocation2 + $0x198] sm:$0xff] %vm233_vm13, %v6067_v22 }
 0x4ba   : > { %v5966_v55 = vpop.f32.mrf.mxu2 }
 0x4bb   : > { %v5967_v1 = vadd.f32 %v5966_v55, %v5928_v52 }
 0x4bc   : > { %v6004_v18 = vpop.f32.mrf.mxu3 }
 0x4bd   : > { %v6005_v51 = vadd.f32 %v6004_v18, %v5967_v1 }
 0x4be   : > { %v6178_v31 = vld [vmem:[#allocation2 + $0x168] sm:$0xff]  ;;  %v5893_v8 = vpop.f32.mrf.mxu0 }
 0x4bf   : > { %6234 = vst.msk [vmem:[%s9306_s28 + $0x168] sm:$0xff] %vm233_vm13, %v6178_v31  ;;  %v6184_v40 = vld [vmem:[#allocation2 + $0x198] sm:$0xff]  ;;  %v5894_v60 = vadd.f32 %v5893_v8, %v5856_v49  ;;  %v6068_v27 = vadd.f32 %v6005_v51, %v5100_v16 }
 0x4c0   : > { %6240 = vst.msk [vmem:[%s9306_s28 + $0x198] sm:$0xff] %vm233_vm13, %v6184_v40 }
 0x4c1   : > { %v6062_v11 = vadd.f32 %v5894_v60, %v5094_v2  ;;  %6126 = vst.msk [vmem:[#allocation2 + $0x1a0] sm:$0xff] %vm233_vm13, %v6068_v27 }
 0x4c3   : > { %6120 = vst.msk [vmem:[#allocation2 + $0x170] sm:$0xff] %vm233_vm13, %v6062_v11 }
 0x4c6   : > { %v5931_v28 = vpop.f32.mrf.mxu1 }
 0x4c8   : > { %v6185_v24 = vld [vmem:[#allocation2 + $0x1a0] sm:$0xff]  ;;  %v5969_v54 = vpop.f32.mrf.mxu2  ;;  %v5896_v36 = vpop.f32.mrf.mxu0 }
 0x4c9   : > { %6241 = vst.msk [vmem:[%s9306_s28 + $0x1a0] sm:$0xff] %vm233_vm13, %v6185_v24  ;;  %v5970_v45 = vadd.f32 %v5969_v54, %v5931_v28  ;;  %v5897_v29 = vadd.f32 %v5896_v36, %v5859_v39 }
 0x4ca   : > { %v6179_v4 = vld [vmem:[#allocation2 + $0x170] sm:$0xff] }
 0x4cb   : > { %6235 = vst.msk [vmem:[%s9306_s28 + $0x170] sm:$0xff] %vm233_vm13, %v6179_v4  ;;  %v6063_v33 = vadd.f32 %v5897_v29, %v5095_v5  ;;  %v6007_v14 = vpop.f32.mrf.mxu3 }
 0x4cc   : > { %v6008_v63 = vadd.f32 %v6007_v14, %v5970_v45 }
 0x4cd   : > { %6121 = vst.msk [vmem:[#allocation2 + $0x178] sm:$0xff] %vm233_vm13, %v6063_v33 }
 0x4ce   : > { %v6069_v59 = vadd.f32 %v6008_v63, %v5101_v10 }
 0x4d0   : > { %6127 = vst.msk [vmem:[#allocation2 + $0x1a8] sm:$0xff] %vm233_vm13, %v6069_v59  ;;  %v5972_v48 = vpop.f32.mrf.mxu2 }
 0x4d4   : > { %v6180_v25 = vld [vmem:[#allocation2 + $0x178] sm:$0xff]  ;;  %v5934_v3 = vpop.f32.mrf.mxu1 }
 0x4d5   : > { %6236 = vst.msk [vmem:[%s9306_s28 + $0x178] sm:$0xff] %vm233_vm13, %v6180_v25  ;;  %v5973_v57 = vadd.f32 %v5972_v48, %v5934_v3 }
 0x4d6   : > { %v6010_v41 = vpop.f32.mrf.mxu3 }
 0x4d7   : > { %v6186_v47 = vld [vmem:[#allocation2 + $0x1a8] sm:$0xff]  ;;  %v6011_v17 = vadd.f32 %v6010_v41, %v5973_v57 }
 0x4d8   : > { %6242 = vst.msk [vmem:[%s9306_s28 + $0x1a8] sm:$0xff] %vm233_vm13, %v6186_v47 }
 0x4d9   : > { %v6070_v43 = vadd.f32 %v6011_v17, %v5102_v58  ;;  %v5899_v50 = vpop.f32.mrf.mxu0 }
 0x4da   : > { %v5900_v46 = vadd.f32 %v5899_v50, %v10424_v38 }
 0x4db   : > { %6128 = vst.msk [vmem:[#allocation2 + $0x1b0] sm:$0xff] %vm233_vm13, %v6070_v43 }
 0x4dc   : > { %v6064_v35 = vadd.f32 %v5900_v46, %v5096_v26 }
 0x4de   : > { %6122 = vst.msk [vmem:[#allocation2 + $0x180] sm:$0x3] %vm240_vm0, %v6064_v35 }
 0x4df   : > { %v5937_v61 = vpop.f32.mrf.mxu1 }
 0x4e0   : > { %v5975_v7 = vpop.f32.mrf.mxu2 }
 0x4e1   : > { %v5976_v37 = vadd.f32 %v5975_v7, %v5937_v61 }
 0x4e2   : > { %v6187_v20 = vld [vmem:[#allocation2 + $0x1b0] sm:$0xff] }
 0x4e3   : > { %6243 = vst.msk [vmem:[%s9306_s28 + $0x1b0] sm:$0xff] %vm233_vm13, %v6187_v20 }
 0x4e4   : > { %v6013_v62 = vpop.f32.mrf.mxu3 }
 0x4e5   : > { %v6014_v56 = vadd.f32 %v6013_v62, %v5976_v37  ;;  %v6181_v42 = vld [vmem:[#allocation2 + $0x180] sm:$0x3] }
 0x4e6   : > { %6237 = vst.msk [vmem:[%s9306_s28 + $0x180] sm:$0x3] %vm240_vm0, %v6181_v42 }
 0x4e7   : > { %v6071_v30 = vadd.f32 %v6014_v56, %v5103_v12 }
 0x4e9   : > { %6129 = vst.msk [vmem:[#allocation2 + $0x1b8] sm:$0x3] %vm240_vm0, %v6071_v30 }
 0x4f0   : > { %v6188_v38 = vld [vmem:[#allocation2 + $0x1b8] sm:$0x3] }
 0x4f1   : > { %6244 = vst.msk [vmem:[%s9306_s28 + $0x1b8] sm:$0x3] %vm240_vm0, %v6188_v38 }
 0x4f2 PF: > { %s18_s14 = sadd.s32 1, %s8289_s14   ;;  %s10505_s9 = smov %s8273_s10 }
 0x4f3   : > { %p15_p0 = scmp.ge.s32.totalorder %s18_s14, 4   ;;  %s10506_s10 = smov %s8277_s11 }
 0x4f4   : > { %s10507_s11 = smov %s8352_s20  ;;  %s10508_s12 = smov %s8285_s13 }
 0x4f5   : > { %s10509_s13 = smov %s10511_s16  ;;  %17 = sbr.rel (!%p15_p0) target bundleno = 6 (0x6), region = 89 }
 0x4fa   :  { %6269 = vsyncpa [#allocation4], 1 }
 0x4fb   :  { %6271 = vsyncpa [#allocation4 + $0x1], 1 }
 0x4fc   :  { %6272 = vsyncpa [#allocation6], 1 }
 0x4fd   :  { %6274 = vsyncpa [#allocation6 + $0x1], 1 }

</bundles_post_ra>
